<compile_context>
chip_gen: v7x
topology: tpu7x:2x2x1
jax: 0.10.0
libtpu: 0.0.40
codegen_flags: <defaults>
</compile_context>

<pallas_src>
import jax
import jax.numpy as jnp
from jax import lax
from jax.experimental import pallas as pl
from jax.experimental.pallas import tpu as pltpu


# -----------------------------------------------------------------------------
# Kernel A: conv1(1->32,3x3) + ReLU + conv2(32->64,3x3) + bias + 2x2 max-pool,
# fully fused per batch block.  Output is NHWC-pooled features (nb, 12, 12, 64).
# -----------------------------------------------------------------------------
def _conv_stack_kernel(p1_ref, w1_ref, b1_ref, w2_ref, b2_ref, out_ref,
                       a1_scr, acc_scr):
    nb = p1_ref.shape[0]                                  # images per grid step

    # conv1 as one GEMM over all nb images: (nb*832, 9) @ (9, 32) -> ReLU.
    # p1 rows are (image, out_row i, padded out_col j<32); j >= 26 is zero pad.
    p1 = p1_ref[...].reshape(nb * 832, 9)
    a1 = jnp.dot(p1, w1_ref[...], preferred_element_type=jnp.float32)
    a1 = jnp.maximum(a1 + b1_ref[...], 0.0)
    a1_scr[...] = a1.reshape(nb, 26, 32, 32)              # (n, i, j_pad, cin)

    # conv2: 9 shifted GEMMs against the VMEM-resident conv1 activations
    # (in-kernel im2col; never reads/writes HBM).
    for t in range(9):
        kh, kw = t // 3, t % 3
        slab = a1_scr[:, kh:kh + 24, kw:kw + 24, :].reshape(nb * 576, 32)
        part = jnp.dot(slab, w2_ref[t], preferred_element_type=jnp.float32)
        if t == 0:
            acc_scr[...] = part
        else:
            acc_scr[...] += part

    acc = acc_scr[...] + b2_ref[...]                      # (nb*576, 64)

    # 2x2 max-pool.  Row pairs (i, i+1) are 24 rows apart -> leading-axis max.
    acc4 = acc.reshape(nb * 12, 2, 24, 64)
    rowp = jnp.maximum(acc4[:, 0], acc4[:, 1])            # (nb*12, 24, 64)

    # Column pairs (j, j+1) are adjacent sublanes: compact them with two
    # 0/1-selection matmuls batched over the pooled-row index (MXU-friendly,
    # avoids strided/sublane gathers).
    bsz = nb * 12
    q_ix = lax.broadcasted_iota(jnp.int32, (bsz, 12, 24), 1)
    j_ix = lax.broadcasted_iota(jnp.int32, (bsz, 12, 24), 2)
    sel_e = (j_ix == 2 * q_ix).astype(jnp.float32)
    sel_o = (j_ix == 2 * q_ix + 1).astype(jnp.float32)
    pe = jnp.einsum("pqj,pjc->pqc", sel_e, rowp,
                    preferred_element_type=jnp.float32)
    po = jnp.einsum("pqj,pjc->pqc", sel_o, rowp,
                    preferred_element_type=jnp.float32)
    out_ref[...] = jnp.maximum(pe, po).reshape(nb, 12, 12, 64)


def conv_stack_pallas(p1, w1r, b1, w2r, b2, nb):
    B = p1.shape[0]
    assert B % nb == 0
    return pl.pallas_call(
        _conv_stack_kernel,
        out_shape=jax.ShapeDtypeStruct((B, 12, 12, 64), jnp.float32),
        grid=(B // nb,),
        in_specs=[
            pl.BlockSpec((nb, 832, 9), lambda b: (b, 0, 0)),
            pl.BlockSpec((9, 32), lambda b: (0, 0)),
            pl.BlockSpec((1, 32), lambda b: (0, 0)),
            pl.BlockSpec((9, 32, 64), lambda b: (0, 0, 0)),
            pl.BlockSpec((1, 64), lambda b: (0, 0)),
        ],
        out_specs=pl.BlockSpec((nb, 12, 12, 64), lambda b: (b, 0, 0, 0)),
        scratch_shapes=[
            pltpu.VMEM((nb, 26, 32, 32), jnp.float32),    # conv1 activations
            pltpu.VMEM((nb * 576, 64), jnp.float32),      # conv2 accumulator
        ],
        compiler_params=pltpu.CompilerParams(dimension_semantics=("parallel",)),
    )(p1, w1r, b1, w2r, b2)


# -----------------------------------------------------------------------------
# Kernel B: fc1 (K-streamed, bf16 weight / f32 accumulate) + ReLU + fc2 +
# log_softmax, fused.  Grid axis = K blocks of the 9216-wide contraction.
# -----------------------------------------------------------------------------
def _mlp_kernel(x_ref, w1_ref, b1_ref, w2_ref, b2_ref, o_ref, acc_ref):
    k = pl.program_id(0)

    @pl.when(k == 0)
    def _():
        acc_ref[...] = jnp.zeros_like(acc_ref)

    w1 = w1_ref[...].astype(jnp.float32)                  # bf16 -> f32
    acc_ref[...] += jnp.dot(x_ref[...], w1, preferred_element_type=jnp.float32)

    @pl.when(k == pl.num_programs(0) - 1)
    def _():
        h = jnp.maximum(acc_ref[...] + b1_ref[...], 0.0)  # fc1 + ReLU
        logits = jnp.dot(h, w2_ref[...],
                         preferred_element_type=jnp.float32) + b2_ref[...]
        m = jnp.max(logits, axis=-1, keepdims=True)       # log_softmax
        z = logits - m
        o_ref[...] = z - jnp.log(jnp.sum(jnp.exp(z), axis=-1, keepdims=True))


def mlp_logsoftmax_pallas(x, w1_bf16, b1, w2, b2, kb=1024):
    B, D = x.shape
    H = w1_bf16.shape[1]
    C = w2.shape[1]
    assert D % kb == 0
    nk = D // kb
    return pl.pallas_call(
        _mlp_kernel,
        out_shape=jax.ShapeDtypeStruct((B, C), jnp.float32),
        grid=(nk,),
        in_specs=[
            pl.BlockSpec((B, kb), lambda k: (0, k)),
            pl.BlockSpec((kb, H), lambda k: (k, 0)),
            pl.BlockSpec((1, H), lambda k: (0, 0)),
            pl.BlockSpec((H, C), lambda k: (0, 0)),
            pl.BlockSpec((1, C), lambda k: (0, 0)),
        ],
        out_specs=pl.BlockSpec((B, C), lambda k: (0, 0)),
        scratch_shapes=[pltpu.VMEM((B, H), jnp.float32)],
        compiler_params=pltpu.CompilerParams(dimension_semantics=("arbitrary",)),
    )(x, w1_bf16, b1, w2, b2)


# ------------------------------- glue (plain JAX) ----------------------------
def init_params(key):
    ks = jax.random.split(key, 8)
    return dict(
        w1=jax.random.normal(ks[0], (32, 1, 3, 3), jnp.float32) / 3.0,              # conv1 OIHW
        b1=jax.random.normal(ks[1], (32,), jnp.float32) * 0.05,
        w2=jax.random.normal(ks[2], (64, 32, 3, 3), jnp.float32) / jnp.sqrt(288.0),  # conv2 OIHW
        b2=jax.random.normal(ks[3], (64,), jnp.float32) * 0.05,
        fw1=jax.random.normal(ks[4], (9216, 128), jnp.float32) / jnp.sqrt(9216.0),   # fc1 (in,out)
        fb1=jax.random.normal(ks[5], (128,), jnp.float32) * 0.05,
        fw2=jax.random.normal(ks[6], (128, 10), jnp.float32) / jnp.sqrt(128.0),      # fc2 (in,out)
        fb2=jax.random.normal(ks[7], (10,), jnp.float32) * 0.05,
    )


def prepare_params(params):
    """One-time weight preprocessing (hoisted out of the per-call forward)."""
    w1r = jnp.transpose(params["w1"][:, 0], (1, 2, 0)).reshape(9, 32)      # (kh*3+kw, cout)
    w2r = jnp.transpose(params["w2"], (2, 3, 1, 0)).reshape(9, 32, 64)     # (tap, cin, cout)
    # fc1 rows are in torch NCHW-flatten order (c*144 + h*12 + w); permute them
    # to the kernel's NHWC-flatten order (h*768 + w*64 + c) so no runtime
    # transpose of activations is needed.  Also cast to bf16 (f32 accumulate).
    fw1 = params["fw1"].reshape(64, 12, 12, 128)
    fw1 = jnp.transpose(fw1, (1, 2, 0, 3)).reshape(9216, 128)
    return dict(
        w1r=w1r, b1=params["b1"].reshape(1, 32),
        w2r=w2r, b2=params["b2"].reshape(1, 64),
        fw1=fw1.astype(jnp.bfloat16), fb1=params["fb1"].reshape(1, 128),
        fw2=params["fw2"], fb2=params["fb2"].reshape(1, 10),
    )


def _conv1_patches(x_img):
    """(B, 28, 28) -> (B, 26*32, 9) conv1 im2col patches, out-col dim padded to 32."""
    pats = jnp.stack([x_img[:, kh:kh + 26, kw:kw + 26]
                      for kh in range(3) for kw in range(3)], axis=-1)      # (B,26,26,9)
    pats = jnp.pad(pats, ((0, 0), (0, 0), (0, 6), (0, 0)))                  # (B,26,32,9)
    return pats.reshape(x_img.shape[0], 26 * 32, 9)


def _pick_conv_block(B):
    # Fold a few images into the GEMM M dim, but keep >= 2 grid steps so the
    # megacore "parallel" axis stays useful.
    for nb in (4, 2):
        if B % nb == 0 and B // nb >= 2:
            return nb
    return 1


@jax.jit
def net_forward(prep, x_nchw):
    B = x_nchw.shape[0]
    p1 = _conv1_patches(x_nchw[:, 0])                                       # (B, 832, 9)
    pooled = conv_stack_pallas(p1, prep["w1r"], prep["b1"],
                               prep["w2r"], prep["b2"], _pick_conv_block(B))
    flat = pooled.reshape(B, 9216)          # NHWC flatten; fw1 rows pre-permuted to match
    # dropout1 / dropout2 are identity in eval mode.
    return mlp_logsoftmax_pallas(flat, prep["fw1"], prep["fb1"],
                                 prep["fw2"], prep["fb2"])


def reference_forward(params, x_nchw):
    # pure-JAX reference (same semantics as the PyTorch module in eval mode)
    hi = lax.Precision.HIGHEST
    dn = ("NCHW", "OIHW", "NCHW")
    y = lax.conv_general_dilated(x_nchw, params["w1"], (1, 1), "VALID",
                                 dimension_numbers=dn, precision=hi)
    y = jnp.maximum(y + params["b1"][None, :, None, None], 0.0)
    y = lax.conv_general_dilated(y, params["w2"], (1, 1), "VALID",
                                 dimension_numbers=dn, precision=hi)
    y = y + params["b2"][None, :, None, None]
    B, C, H, W = y.shape
    y = y.reshape(B, C, H // 2, 2, W // 2, 2).max(axis=(3, 5))              # max_pool2d(2)
    y = y.reshape(B, -1)                                                    # torch NCHW flatten
    y = jnp.maximum(jnp.dot(y, params["fw1"], precision=hi) + params["fb1"], 0.0)
    y = jnp.dot(y, params["fw2"], precision=hi) + params["fb2"]
    return jax.nn.log_softmax(y, axis=1)


if __name__ == "__main__":
    key = jax.random.PRNGKey(0)
    k_x, k_p = jax.random.split(key)

    B = 2
    # 28x28x1 is forced by fc1's 9216 = 64 * 12 * 12 input features (MNIST-shaped).
    x = jax.random.normal(k_x, (B, 1, 28, 28), jnp.float32)
    params = init_params(k_p)
    prep = prepare_params(params)

    out = jax.block_until_ready(net_forward(prep, x))
    assert out.shape == (B, 10) and out.dtype == jnp.float32

    # sanity: valid log-probabilities and agreement with the pure-JAX reference
    assert jnp.allclose(jnp.exp(out).sum(axis=1), 1.0, atol=1e-4)
    ref = reference_forward(params, x)
    assert jnp.allclose(out, ref, atol=2e-2, rtol=2e-2), (
        f"max |diff| = {jnp.max(jnp.abs(out - ref))}")

    print("KERNEL_OK")
</pallas_src>

<mosaic_0001>
module attributes {stable_mosaic.version = 11 : i64} {
  func.func @_conv_stack_kernel(%arg0: i32, %arg1: memref<1x832x9xf32, #tpu.memory_space<vmem>>, %arg2: memref<9x32xf32, #tpu.memory_space<vmem>>, %arg3: memref<1x32xf32, #tpu.memory_space<vmem>>, %arg4: memref<9x32x64xf32, #tpu.memory_space<vmem>>, %arg5: memref<1x64xf32, #tpu.memory_space<vmem>>, %arg6: memref<1x12x12x64xf32, #tpu.memory_space<vmem>>, %arg7: memref<1x26x32x32xf32, #tpu.memory_space<vmem>>, %arg8: memref<576x64xf32, #tpu.memory_space<vmem>>) attributes {dimension_semantics = [#tpu.dimension_semantics<parallel>], iteration_bounds = array<i64: 2>, scalar_prefetch = 0 : i64, scratch_operands = 2 : i64, tpu.core_type = #tpu.core_type<tc>, window_params = [{transform_indices = @transform_0, window_bounds = array<i64: 1, 832, 9>}, {pipeline_mode = #tpu.pipeline_mode<synchronous>, transform_indices = @transform_1, window_bounds = array<i64: 9, 32>}, {pipeline_mode = #tpu.pipeline_mode<synchronous>, transform_indices = @transform_2, window_bounds = array<i64: 1, 32>}, {pipeline_mode = #tpu.pipeline_mode<synchronous>, transform_indices = @transform_3, window_bounds = array<i64: 9, 32, 64>}, {pipeline_mode = #tpu.pipeline_mode<synchronous>, transform_indices = @transform_4, window_bounds = array<i64: 1, 64>}, {transform_indices = @transform_5, window_bounds = array<i64: 1, 12, 12, 64>}]} {
    %c0 = arith.constant 0 : index
    %c0_0 = arith.constant 0 : index
    %c0_1 = arith.constant 0 : index
    %0 = vector.load %arg1[%c0, %c0_0, %c0_1] : memref<1x832x9xf32, #tpu.memory_space<vmem>>, vector<1x832x9xf32>
    %1 = vector.shape_cast %0 : vector<1x832x9xf32> to vector<832x9xf32>
    %c0_2 = arith.constant 0 : index
    %c0_3 = arith.constant 0 : index
    %2 = vector.load %arg2[%c0_2, %c0_3] : memref<9x32xf32, #tpu.memory_space<vmem>>, vector<9x32xf32>
    %cst = arith.constant dense<0.000000e+00> : vector<832x32xf32>
    %3 = tpu.matmul %1, %2, %cst {dimension_numbers = #tpu.dot_dimension_numbers<[1], [0], [0], [1], [0, 0, 1, 1], [], []>} : vector<832x9xf32>, vector<9x32xf32>, vector<832x32xf32> -> vector<832x32xf32>
    %c0_4 = arith.constant 0 : index
    %c0_5 = arith.constant 0 : index
    %4 = vector.load %arg3[%c0_4, %c0_5] : memref<1x32xf32, #tpu.memory_space<vmem>>, vector<1x32xf32>
    %5 = vector.broadcast %4 : vector<1x32xf32> to vector<832x32xf32>
    %6 = arith.addf %3, %5 : vector<832x32xf32>
    %cst_6 = arith.constant 0.000000e+00 : f32
    %7 = vector.broadcast %cst_6 : f32 to vector<832x32xf32>
    %8 = arith.maximumf %6, %7 : vector<832x32xf32>
    %9 = vector.shape_cast %8 : vector<832x32xf32> to vector<1x26x32x32xf32>
    %c0_7 = arith.constant 0 : index
    %c0_8 = arith.constant 0 : index
    %c0_9 = arith.constant 0 : index
    %c0_10 = arith.constant 0 : index
    %10 = vector.load %arg7[%c0_7, %c0_8, %c0_9, %c0_10] : memref<1x26x32x32xf32, #tpu.memory_space<vmem>>, vector<1x26x32x32xf32>
    tpu.vector_store %arg7[%c0_7, %c0_8, %c0_9, %c0_10], %9 {strides = array<i32>} : memref<1x26x32x32xf32, #tpu.memory_space<vmem>>, vector<1x26x32x32xf32>,
    %c0_11 = arith.constant 0 : index
    %c0_12 = arith.constant 0 : index
    %c0_13 = arith.constant 0 : index
    %c0_14 = arith.constant 0 : index
    %11 = vector.load %arg7[%c0_11, %c0_12, %c0_13, %c0_14] : memref<1x26x32x32xf32, #tpu.memory_space<vmem>>, vector<1x24x24x32xf32>
    %12 = vector.shape_cast %11 : vector<1x24x24x32xf32> to vector<576x32xf32>
    %c0_15 = arith.constant 0 : index
    %c0_16 = arith.constant 0 : index
    %c0_17 = arith.constant 0 : index
    %13 = vector.load %arg4[%c0_15, %c0_16, %c0_17] : memref<9x32x64xf32, #tpu.memory_space<vmem>>, vector<1x32x64xf32>
    %14 = vector.shape_cast %13 : vector<1x32x64xf32> to vector<32x64xf32>
    %cst_18 = arith.constant dense<0.000000e+00> : vector<576x64xf32>
    %15 = tpu.matmul %12, %14, %cst_18 {dimension_numbers = #tpu.dot_dimension_numbers<[1], [0], [0], [1], [0, 0, 1, 1], [], []>} : vector<576x32xf32>, vector<32x64xf32>, vector<576x64xf32> -> vector<576x64xf32>
    %c0_19 = arith.constant 0 : index
    %c0_20 = arith.constant 0 : index
    %16 = vector.load %arg8[%c0_19, %c0_20] : memref<576x64xf32, #tpu.memory_space<vmem>>, vector<576x64xf32>
    tpu.vector_store %arg8[%c0_19, %c0_20], %15 {strides = array<i32>} : memref<576x64xf32, #tpu.memory_space<vmem>>, vector<576x64xf32>,
    %c0_21 = arith.constant 0 : index
    %c0_22 = arith.constant 0 : index
    %c1 = arith.constant 1 : index
    %c0_23 = arith.constant 0 : index
    %17 = vector.load %arg7[%c0_21, %c0_22, %c1, %c0_23] : memref<1x26x32x32xf32, #tpu.memory_space<vmem>>, vector<1x24x24x32xf32>
    %18 = vector.shape_cast %17 : vector<1x24x24x32xf32> to vector<576x32xf32>
    %c1_24 = arith.constant 1 : index
    %c0_25 = arith.constant 0 : index
    %c0_26 = arith.constant 0 : index
    %19 = vector.load %arg4[%c1_24, %c0_25, %c0_26] : memref<9x32x64xf32, #tpu.memory_space<vmem>>, vector<1x32x64xf32>
    %20 = vector.shape_cast %19 : vector<1x32x64xf32> to vector<32x64xf32>
    %cst_27 = arith.constant dense<0.000000e+00> : vector<576x64xf32>
    %21 = tpu.matmul %18, %20, %cst_27 {dimension_numbers = #tpu.dot_dimension_numbers<[1], [0], [0], [1], [0, 0, 1, 1], [], []>} : vector<576x32xf32>, vector<32x64xf32>, vector<576x64xf32> -> vector<576x64xf32>
    %c0_28 = arith.constant 0 : index
    %c0_29 = arith.constant 0 : index
    %22 = vector.load %arg8[%c0_28, %c0_29] : memref<576x64xf32, #tpu.memory_space<vmem>>, vector<576x64xf32>
    %23 = arith.addf %22, %21 : vector<576x64xf32>
    %c0_30 = arith.constant 0 : index
    %c0_31 = arith.constant 0 : index
    %24 = vector.load %arg8[%c0_30, %c0_31] : memref<576x64xf32, #tpu.memory_space<vmem>>, vector<576x64xf32>
    tpu.vector_store %arg8[%c0_30, %c0_31], %23 {strides = array<i32>} : memref<576x64xf32, #tpu.memory_space<vmem>>, vector<576x64xf32>,
    %c0_32 = arith.constant 0 : index
    %c0_33 = arith.constant 0 : index
    %c2 = arith.constant 2 : index
    %c0_34 = arith.constant 0 : index
    %25 = vector.load %arg7[%c0_32, %c0_33, %c2, %c0_34] : memref<1x26x32x32xf32, #tpu.memory_space<vmem>>, vector<1x24x24x32xf32>
    %26 = vector.shape_cast %25 : vector<1x24x24x32xf32> to vector<576x32xf32>
    %c2_35 = arith.constant 2 : index
    %c0_36 = arith.constant 0 : index
    %c0_37 = arith.constant 0 : index
    %27 = vector.load %arg4[%c2_35, %c0_36, %c0_37] : memref<9x32x64xf32, #tpu.memory_space<vmem>>, vector<1x32x64xf32>
    %28 = vector.shape_cast %27 : vector<1x32x64xf32> to vector<32x64xf32>
    %cst_38 = arith.constant dense<0.000000e+00> : vector<576x64xf32>
    %29 = tpu.matmul %26, %28, %cst_38 {dimension_numbers = #tpu.dot_dimension_numbers<[1], [0], [0], [1], [0, 0, 1, 1], [], []>} : vector<576x32xf32>, vector<32x64xf32>, vector<576x64xf32> -> vector<576x64xf32>
    %c0_39 = arith.constant 0 : index
    %c0_40 = arith.constant 0 : index
    %30 = vector.load %arg8[%c0_39, %c0_40] : memref<576x64xf32, #tpu.memory_space<vmem>>, vector<576x64xf32>
    %31 = arith.addf %30, %29 : vector<576x64xf32>
    %c0_41 = arith.constant 0 : index
    %c0_42 = arith.constant 0 : index
    %32 = vector.load %arg8[%c0_41, %c0_42] : memref<576x64xf32, #tpu.memory_space<vmem>>, vector<576x64xf32>
    tpu.vector_store %arg8[%c0_41, %c0_42], %31 {strides = array<i32>} : memref<576x64xf32, #tpu.memory_space<vmem>>, vector<576x64xf32>,
    %c0_43 = arith.constant 0 : index
    %c1_44 = arith.constant 1 : index
    %c0_45 = arith.constant 0 : index
    %c0_46 = arith.constant 0 : index
    %33 = vector.load %arg7[%c0_43, %c1_44, %c0_45, %c0_46] : memref<1x26x32x32xf32, #tpu.memory_space<vmem>>, vector<1x24x24x32xf32>
    %34 = vector.shape_cast %33 : vector<1x24x24x32xf32> to vector<576x32xf32>
    %c3 = arith.constant 3 : index
    %c0_47 = arith.constant 0 : index
    %c0_48 = arith.constant 0 : index
    %35 = vector.load %arg4[%c3, %c0_47, %c0_48] : memref<9x32x64xf32, #tpu.memory_space<vmem>>, vector<1x32x64xf32>
    %36 = vector.shape_cast %35 : vector<1x32x64xf32> to vector<32x64xf32>
    %cst_49 = arith.constant dense<0.000000e+00> : vector<576x64xf32>
    %37 = tpu.matmul %34, %36, %cst_49 {dimension_numbers = #tpu.dot_dimension_numbers<[1], [0], [0], [1], [0, 0, 1, 1], [], []>} : vector<576x32xf32>, vector<32x64xf32>, vector<576x64xf32> -> vector<576x64xf32>
    %c0_50 = arith.constant 0 : index
    %c0_51 = arith.constant 0 : index
    %38 = vector.load %arg8[%c0_50, %c0_51] : memref<576x64xf32, #tpu.memory_space<vmem>>, vector<576x64xf32>
    %39 = arith.addf %38, %37 : vector<576x64xf32>
    %c0_52 = arith.constant 0 : index
    %c0_53 = arith.constant 0 : index
    %40 = vector.load %arg8[%c0_52, %c0_53] : memref<576x64xf32, #tpu.memory_space<vmem>>, vector<576x64xf32>
    tpu.vector_store %arg8[%c0_52, %c0_53], %39 {strides = array<i32>} : memref<576x64xf32, #tpu.memory_space<vmem>>, vector<576x64xf32>,
    %c0_54 = arith.constant 0 : index
    %c1_55 = arith.constant 1 : index
    %c1_56 = arith.constant 1 : index
    %c0_57 = arith.constant 0 : index
    %41 = vector.load %arg7[%c0_54, %c1_55, %c1_56, %c0_57] : memref<1x26x32x32xf32, #tpu.memory_space<vmem>>, vector<1x24x24x32xf32>
    %42 = vector.shape_cast %41 : vector<1x24x24x32xf32> to vector<576x32xf32>
    %c4 = arith.constant 4 : index
    %c0_58 = arith.constant 0 : index
    %c0_59 = arith.constant 0 : index
    %43 = vector.load %arg4[%c4, %c0_58, %c0_59] : memref<9x32x64xf32, #tpu.memory_space<vmem>>, vector<1x32x64xf32>
    %44 = vector.shape_cast %43 : vector<1x32x64xf32> to vector<32x64xf32>
    %cst_60 = arith.constant dense<0.000000e+00> : vector<576x64xf32>
    %45 = tpu.matmul %42, %44, %cst_60 {dimension_numbers = #tpu.dot_dimension_numbers<[1], [0], [0], [1], [0, 0, 1, 1], [], []>} : vector<576x32xf32>, vector<32x64xf32>, vector<576x64xf32> -> vector<576x64xf32>
    %c0_61 = arith.constant 0 : index
    %c0_62 = arith.constant 0 : index
    %46 = vector.load %arg8[%c0_61, %c0_62] : memref<576x64xf32, #tpu.memory_space<vmem>>, vector<576x64xf32>
    %47 = arith.addf %46, %45 : vector<576x64xf32>
    %c0_63 = arith.constant 0 : index
    %c0_64 = arith.constant 0 : index
    %48 = vector.load %arg8[%c0_63, %c0_64] : memref<576x64xf32, #tpu.memory_space<vmem>>, vector<576x64xf32>
    tpu.vector_store %arg8[%c0_63, %c0_64], %47 {strides = array<i32>} : memref<576x64xf32, #tpu.memory_space<vmem>>, vector<576x64xf32>,
    %c0_65 = arith.constant 0 : index
    %c1_66 = arith.constant 1 : index
    %c2_67 = arith.constant 2 : index
    %c0_68 = arith.constant 0 : index
    %49 = vector.load %arg7[%c0_65, %c1_66, %c2_67, %c0_68] : memref<1x26x32x32xf32, #tpu.memory_space<vmem>>, vector<1x24x24x32xf32>
    %50 = vector.shape_cast %49 : vector<1x24x24x32xf32> to vector<576x32xf32>
    %c5 = arith.constant 5 : index
    %c0_69 = arith.constant 0 : index
    %c0_70 = arith.constant 0 : index
    %51 = vector.load %arg4[%c5, %c0_69, %c0_70] : memref<9x32x64xf32, #tpu.memory_space<vmem>>, vector<1x32x64xf32>
    %52 = vector.shape_cast %51 : vector<1x32x64xf32> to vector<32x64xf32>
    %cst_71 = arith.constant dense<0.000000e+00> : vector<576x64xf32>
    %53 = tpu.matmul %50, %52, %cst_71 {dimension_numbers = #tpu.dot_dimension_numbers<[1], [0], [0], [1], [0, 0, 1, 1], [], []>} : vector<576x32xf32>, vector<32x64xf32>, vector<576x64xf32> -> vector<576x64xf32>
    %c0_72 = arith.constant 0 : index
    %c0_73 = arith.constant 0 : index
    %54 = vector.load %arg8[%c0_72, %c0_73] : memref<576x64xf32, #tpu.memory_space<vmem>>, vector<576x64xf32>
    %55 = arith.addf %54, %53 : vector<576x64xf32>
    %c0_74 = arith.constant 0 : index
    %c0_75 = arith.constant 0 : index
    %56 = vector.load %arg8[%c0_74, %c0_75] : memref<576x64xf32, #tpu.memory_space<vmem>>, vector<576x64xf32>
    tpu.vector_store %arg8[%c0_74, %c0_75], %55 {strides = array<i32>} : memref<576x64xf32, #tpu.memory_space<vmem>>, vector<576x64xf32>,
    %c0_76 = arith.constant 0 : index
    %c2_77 = arith.constant 2 : index
    %c0_78 = arith.constant 0 : index
    %c0_79 = arith.constant 0 : index
    %57 = vector.load %arg7[%c0_76, %c2_77, %c0_78, %c0_79] : memref<1x26x32x32xf32, #tpu.memory_space<vmem>>, vector<1x24x24x32xf32>
    %58 = vector.shape_cast %57 : vector<1x24x24x32xf32> to vector<576x32xf32>
    %c6 = arith.constant 6 : index
    %c0_80 = arith.constant 0 : index
    %c0_81 = arith.constant 0 : index
    %59 = vector.load %arg4[%c6, %c0_80, %c0_81] : memref<9x32x64xf32, #tpu.memory_space<vmem>>, vector<1x32x64xf32>
    %60 = vector.shape_cast %59 : vector<1x32x64xf32> to vector<32x64xf32>
    %cst_82 = arith.constant dense<0.000000e+00> : vector<576x64xf32>
    %61 = tpu.matmul %58, %60, %cst_82 {dimension_numbers = #tpu.dot_dimension_numbers<[1], [0], [0], [1], [0, 0, 1, 1], [], []>} : vector<576x32xf32>, vector<32x64xf32>, vector<576x64xf32> -> vector<576x64xf32>
    %c0_83 = arith.constant 0 : index
    %c0_84 = arith.constant 0 : index
    %62 = vector.load %arg8[%c0_83, %c0_84] : memref<576x64xf32, #tpu.memory_space<vmem>>, vector<576x64xf32>
    %63 = arith.addf %62, %61 : vector<576x64xf32>
    %c0_85 = arith.constant 0 : index
    %c0_86 = arith.constant 0 : index
    %64 = vector.load %arg8[%c0_85, %c0_86] : memref<576x64xf32, #tpu.memory_space<vmem>>, vector<576x64xf32>
    tpu.vector_store %arg8[%c0_85, %c0_86], %63 {strides = array<i32>} : memref<576x64xf32, #tpu.memory_space<vmem>>, vector<576x64xf32>,
    %c0_87 = arith.constant 0 : index
    %c2_88 = arith.constant 2 : index
    %c1_89 = arith.constant 1 : index
    %c0_90 = arith.constant 0 : index
    %65 = vector.load %arg7[%c0_87, %c2_88, %c1_89, %c0_90] : memref<1x26x32x32xf32, #tpu.memory_space<vmem>>, vector<1x24x24x32xf32>
    %66 = vector.shape_cast %65 : vector<1x24x24x32xf32> to vector<576x32xf32>
    %c7 = arith.constant 7 : index
    %c0_91 = arith.constant 0 : index
    %c0_92 = arith.constant 0 : index
    %67 = vector.load %arg4[%c7, %c0_91, %c0_92] : memref<9x32x64xf32, #tpu.memory_space<vmem>>, vector<1x32x64xf32>
    %68 = vector.shape_cast %67 : vector<1x32x64xf32> to vector<32x64xf32>
    %cst_93 = arith.constant dense<0.000000e+00> : vector<576x64xf32>
    %69 = tpu.matmul %66, %68, %cst_93 {dimension_numbers = #tpu.dot_dimension_numbers<[1], [0], [0], [1], [0, 0, 1, 1], [], []>} : vector<576x32xf32>, vector<32x64xf32>, vector<576x64xf32> -> vector<576x64xf32>
    %c0_94 = arith.constant 0 : index
    %c0_95 = arith.constant 0 : index
    %70 = vector.load %arg8[%c0_94, %c0_95] : memref<576x64xf32, #tpu.memory_space<vmem>>, vector<576x64xf32>
    %71 = arith.addf %70, %69 : vector<576x64xf32>
    %c0_96 = arith.constant 0 : index
    %c0_97 = arith.constant 0 : index
    %72 = vector.load %arg8[%c0_96, %c0_97] : memref<576x64xf32, #tpu.memory_space<vmem>>, vector<576x64xf32>
    tpu.vector_store %arg8[%c0_96, %c0_97], %71 {strides = array<i32>} : memref<576x64xf32, #tpu.memory_space<vmem>>, vector<576x64xf32>,
    %c0_98 = arith.constant 0 : index
    %c2_99 = arith.constant 2 : index
    %c2_100 = arith.constant 2 : index
    %c0_101 = arith.constant 0 : index
    %73 = vector.load %arg7[%c0_98, %c2_99, %c2_100, %c0_101] : memref<1x26x32x32xf32, #tpu.memory_space<vmem>>, vector<1x24x24x32xf32>
    %74 = vector.shape_cast %73 : vector<1x24x24x32xf32> to vector<576x32xf32>
    %c8 = arith.constant 8 : index
    %c0_102 = arith.constant 0 : index
    %c0_103 = arith.constant 0 : index
    %75 = vector.load %arg4[%c8, %c0_102, %c0_103] : memref<9x32x64xf32, #tpu.memory_space<vmem>>, vector<1x32x64xf32>
    %76 = vector.shape_cast %75 : vector<1x32x64xf32> to vector<32x64xf32>
    %cst_104 = arith.constant dense<0.000000e+00> : vector<576x64xf32>
    %77 = tpu.matmul %74, %76, %cst_104 {dimension_numbers = #tpu.dot_dimension_numbers<[1], [0], [0], [1], [0, 0, 1, 1], [], []>} : vector<576x32xf32>, vector<32x64xf32>, vector<576x64xf32> -> vector<576x64xf32>
    %c0_105 = arith.constant 0 : index
    %c0_106 = arith.constant 0 : index
    %78 = vector.load %arg8[%c0_105, %c0_106] : memref<576x64xf32, #tpu.memory_space<vmem>>, vector<576x64xf32>
    %79 = arith.addf %78, %77 : vector<576x64xf32>
    %c0_107 = arith.constant 0 : index
    %c0_108 = arith.constant 0 : index
    %80 = vector.load %arg8[%c0_107, %c0_108] : memref<576x64xf32, #tpu.memory_space<vmem>>, vector<576x64xf32>
    tpu.vector_store %arg8[%c0_107, %c0_108], %79 {strides = array<i32>} : memref<576x64xf32, #tpu.memory_space<vmem>>, vector<576x64xf32>,
    %c0_109 = arith.constant 0 : index
    %c0_110 = arith.constant 0 : index
    %81 = vector.load %arg8[%c0_109, %c0_110] : memref<576x64xf32, #tpu.memory_space<vmem>>, vector<576x64xf32>
    %c0_111 = arith.constant 0 : index
    %c0_112 = arith.constant 0 : index
    %82 = vector.load %arg5[%c0_111, %c0_112] : memref<1x64xf32, #tpu.memory_space<vmem>>, vector<1x64xf32>
    %83 = vector.broadcast %82 : vector<1x64xf32> to vector<576x64xf32>
    %84 = arith.addf %81, %83 : vector<576x64xf32>
    %85 = vector.shape_cast %84 : vector<576x64xf32> to vector<12x2x24x64xf32>
    %86 = vector.extract_strided_slice %85 {offsets = [0, 0, 0, 0], sizes = [12, 1, 24, 64], strides = [1, 1, 1, 1]} : vector<12x2x24x64xf32> to vector<12x1x24x64xf32>
    %87 = vector.shape_cast %86 : vector<12x1x24x64xf32> to vector<12x24x64xf32>
    %88 = vector.extract_strided_slice %85 {offsets = [0, 1, 0, 0], sizes = [12, 1, 24, 64], strides = [1, 1, 1, 1]} : vector<12x2x24x64xf32> to vector<12x1x24x64xf32>
    %89 = vector.shape_cast %88 : vector<12x1x24x64xf32> to vector<12x24x64xf32>
    %90 = arith.maximumf %87, %89 : vector<12x24x64xf32>
    %91 = tpu.iota {dimensions = array<i32: 1>} : vector<12x12x24xi32>
    %92 = tpu.iota {dimensions = array<i32: 2>} : vector<12x12x24xi32>
    %c2_i32 = arith.constant 2 : i32
    %93 = vector.broadcast %c2_i32 : i32 to vector<12x12x24xi32>
    %94 = arith.muli %93, %91 : vector<12x12x24xi32>
    %95 = arith.cmpi eq, %92, %94 : vector<12x12x24xi32>
    %96 = arith.extui %95 : vector<12x12x24xi1> to vector<12x12x24xi32>
    %97 = arith.sitofp %96 : vector<12x12x24xi32> to vector<12x12x24xf32>
    %c2_i32_113 = arith.constant 2 : i32
    %98 = vector.broadcast %c2_i32_113 : i32 to vector<12x12x24xi32>
    %99 = arith.muli %98, %91 : vector<12x12x24xi32>
    %c1_i32 = arith.constant 1 : i32
    %100 = vector.broadcast %c1_i32 : i32 to vector<12x12x24xi32>
    %101 = arith.addi %99, %100 : vector<12x12x24xi32>
    %102 = arith.cmpi eq, %92, %101 : vector<12x12x24xi32>
    %103 = arith.extui %102 : vector<12x12x24xi1> to vector<12x12x24xi32>
    %104 = arith.sitofp %103 : vector<12x12x24xi32> to vector<12x12x24xf32>
    "tpu.trace_start"() <{level = 10 : i32, message = "pqj,pjc->pqc"}> : () -> ()
    %cst_114 = arith.constant dense<0.000000e+00> : vector<12x12x64xf32>
    %105 = tpu.matmul %97, %90, %cst_114 {dimension_numbers = #tpu.dot_dimension_numbers<[2], [1], [1], [2], [0, 0, 0, 1, 1, 2], [0], [0]>} : vector<12x12x24xf32>, vector<12x24x64xf32>, vector<12x12x64xf32> -> vector<12x12x64xf32>
    %cst_115 = arith.constant dense<0.000000e+00> : vector<12x12x64xf32>
    %106 = tpu.matmul %104, %90, %cst_115 {dimension_numbers = #tpu.dot_dimension_numbers<[2], [1], [1], [2], [0, 0, 0, 1, 1, 2], [0], [0]>} : vector<12x12x24xf32>, vector<12x24x64xf32>, vector<12x12x64xf32> -> vector<12x12x64xf32>
    "tpu.trace_stop"() : () -> ()
    %107 = arith.maximumf %105, %106 : vector<12x12x64xf32>
    %108 = vector.shape_cast %107 : vector<12x12x64xf32> to vector<1x12x12x64xf32>
    %c0_116 = arith.constant 0 : index
    %c0_117 = arith.constant 0 : index
    %c0_118 = arith.constant 0 : index
    %c0_119 = arith.constant 0 : index
    %109 = vector.load %arg6[%c0_116, %c0_117, %c0_118, %c0_119] : memref<1x12x12x64xf32, #tpu.memory_space<vmem>>, vector<1x12x12x64xf32>
    tpu.vector_store %arg6[%c0_116, %c0_117, %c0_118, %c0_119], %108 {strides = array<i32>} : memref<1x12x12x64xf32, #tpu.memory_space<vmem>>, vector<1x12x12x64xf32>,
    return
  }
  func.func @transform_0(%arg0: i32) -> (i32, i32, i32) {
    %c0_i32 = arith.constant 0 : i32
    %c0_i32_0 = arith.constant 0 : i32
    %c0_i32_1 = arith.constant 0 : i32
    return %arg0, %c0_i32, %c0_i32_0 : i32, i32, i32
  }
  func.func @transform_1(%arg0: i32) -> (i32, i32) {
    %c0_i32 = arith.constant 0 : i32
    %c0_i32_0 = arith.constant 0 : i32
    %c0_i32_1 = arith.constant 0 : i32
    return %c0_i32, %c0_i32_0 : i32, i32
  }
  func.func @transform_2(%arg0: i32) -> (i32, i32) {
    %c0_i32 = arith.constant 0 : i32
    %c0_i32_0 = arith.constant 0 : i32
    %c0_i32_1 = arith.constant 0 : i32
    return %c0_i32, %c0_i32_0 : i32, i32
  }
  func.func @transform_3(%arg0: i32) -> (i32, i32, i32) {
    %c0_i32 = arith.constant 0 : i32
    %c0_i32_0 = arith.constant 0 : i32
    %c0_i32_1 = arith.constant 0 : i32
    %c0_i32_2 = arith.constant 0 : i32
    return %c0_i32, %c0_i32_0, %c0_i32_1 : i32, i32, i32
  }
  func.func @transform_4(%arg0: i32) -> (i32, i32) {
    %c0_i32 = arith.constant 0 : i32
    %c0_i32_0 = arith.constant 0 : i32
    %c0_i32_1 = arith.constant 0 : i32
    return %c0_i32, %c0_i32_0 : i32, i32
  }
  func.func @transform_5(%arg0: i32) -> (i32, i32, i32, i32) {
    %c0_i32 = arith.constant 0 : i32
    %c0_i32_0 = arith.constant 0 : i32
    %c0_i32_1 = arith.constant 0 : i32
    %c0_i32_2 = arith.constant 0 : i32
    return %arg0, %c0_i32, %c0_i32_0, %c0_i32_1 : i32, i32, i32, i32
  }
}

module attributes {stable_mosaic.version = 11 : i64} {
  func.func @_mlp_kernel(%arg0: i32, %arg1: memref<2x1024xf32, #tpu.memory_space<vmem>>, %arg2: memref<1024x128xbf16, #tpu.memory_space<vmem>>, %arg3: memref<1x128xf32, #tpu.memory_space<vmem>>, %arg4: memref<128x10xf32, #tpu.memory_space<vmem>>, %arg5: memref<1x10xf32, #tpu.memory_space<vmem>>, %arg6: memref<2x10xf32, #tpu.memory_space<vmem>>, %arg7: memref<2x128xf32, #tpu.memory_space<vmem>>) attributes {dimension_semantics = [#tpu.dimension_semantics<arbitrary>], iteration_bounds = array<i64: 9>, scalar_prefetch = 0 : i64, scratch_operands = 1 : i64, tpu.core_type = #tpu.core_type<tc>, window_params = [{transform_indices = @transform_0, window_bounds = array<i64: 2, 1024>}, {transform_indices = @transform_1, window_bounds = array<i64: 1024, 128>}, {pipeline_mode = #tpu.pipeline_mode<synchronous>, transform_indices = @transform_2, window_bounds = array<i64: 1, 128>}, {pipeline_mode = #tpu.pipeline_mode<synchronous>, transform_indices = @transform_3, window_bounds = array<i64: 128, 10>}, {pipeline_mode = #tpu.pipeline_mode<synchronous>, transform_indices = @transform_4, window_bounds = array<i64: 1, 10>}, {pipeline_mode = #tpu.pipeline_mode<synchronous>, transform_indices = @transform_5, window_bounds = array<i64: 2, 10>}]} {
    %c0_i32 = arith.constant 0 : i32
    %0 = arith.cmpi eq, %arg0, %c0_i32 : i32
    %1 = arith.extui %0 : i1 to i32
    %c0_i32_0 = arith.constant 0 : i32
    %2 = arith.cmpi ne, %1, %c0_i32_0 : i32
    scf.if %2 {
      %cst_9 = arith.constant 0.000000e+00 : f32
      %13 = vector.broadcast %cst_9 : f32 to vector<2x128xf32>
      %c0_10 = arith.constant 0 : index
      %c0_11 = arith.constant 0 : index
      %14 = vector.load %arg7[%c0_10, %c0_11] : memref<2x128xf32, #tpu.memory_space<vmem>>, vector<2x128xf32>
      tpu.vector_store %arg7[%c0_10, %c0_11], %13 {strides = array<i32>} : memref<2x128xf32, #tpu.memory_space<vmem>>, vector<2x128xf32>,
    } else {
    }
    %c0 = arith.constant 0 : index
    %c0_1 = arith.constant 0 : index
    %3 = vector.load %arg2[%c0, %c0_1] : memref<1024x128xbf16, #tpu.memory_space<vmem>>, vector<1024x128xbf16>
    %4 = arith.extf %3 : vector<1024x128xbf16> to vector<1024x128xf32>
    %c0_2 = arith.constant 0 : index
    %c0_3 = arith.constant 0 : index
    %5 = vector.load %arg7[%c0_2, %c0_3] : memref<2x128xf32, #tpu.memory_space<vmem>>, vector<2x128xf32>
    %c0_4 = arith.constant 0 : index
    %c0_5 = arith.constant 0 : index
    %6 = vector.load %arg1[%c0_4, %c0_5] : memref<2x1024xf32, #tpu.memory_space<vmem>>, vector<2x1024xf32>
    %cst = arith.constant dense<0.000000e+00> : vector<2x128xf32>
    %7 = tpu.matmul %6, %4, %cst {dimension_numbers = #tpu.dot_dimension_numbers<[1], [0], [0], [1], [0, 0, 1, 1], [], []>} : vector<2x1024xf32>, vector<1024x128xf32>, vector<2x128xf32> -> vector<2x128xf32>
    %8 = arith.addf %5, %7 : vector<2x128xf32>
    %c0_6 = arith.constant 0 : index
    %c0_7 = arith.constant 0 : index
    %9 = vector.load %arg7[%c0_6, %c0_7] : memref<2x128xf32, #tpu.memory_space<vmem>>, vector<2x128xf32>
    tpu.vector_store %arg7[%c0_6, %c0_7], %8 {strides = array<i32>} : memref<2x128xf32, #tpu.memory_space<vmem>>, vector<2x128xf32>,
    %c8_i32 = arith.constant 8 : i32
    %10 = arith.cmpi eq, %arg0, %c8_i32 : i32
    %11 = arith.extui %10 : i1 to i32
    %c0_i32_8 = arith.constant 0 : i32
    %12 = arith.cmpi ne, %11, %c0_i32_8 : i32
    scf.if %12 {
      %c0_9 = arith.constant 0 : index
      %c0_10 = arith.constant 0 : index
      %13 = vector.load %arg7[%c0_9, %c0_10] : memref<2x128xf32, #tpu.memory_space<vmem>>, vector<2x128xf32>
      %c0_11 = arith.constant 0 : index
      %c0_12 = arith.constant 0 : index
      %14 = vector.load %arg3[%c0_11, %c0_12] : memref<1x128xf32, #tpu.memory_space<vmem>>, vector<1x128xf32>
      %15 = vector.broadcast %14 : vector<1x128xf32> to vector<2x128xf32>
      %16 = arith.addf %13, %15 : vector<2x128xf32>
      %cst_13 = arith.constant 0.000000e+00 : f32
      %17 = vector.broadcast %cst_13 : f32 to vector<2x128xf32>
      %18 = arith.maximumf %16, %17 : vector<2x128xf32>
      %c0_14 = arith.constant 0 : index
      %c0_15 = arith.constant 0 : index
      %19 = vector.load %arg4[%c0_14, %c0_15] : memref<128x10xf32, #tpu.memory_space<vmem>>, vector<128x10xf32>
      %cst_16 = arith.constant dense<0.000000e+00> : vector<2x10xf32>
      %20 = tpu.matmul %18, %19, %cst_16 {dimension_numbers = #tpu.dot_dimension_numbers<[1], [0], [0], [1], [0, 0, 1, 1], [], []>} : vector<2x128xf32>, vector<128x10xf32>, vector<2x10xf32> -> vector<2x10xf32>
      %c0_17 = arith.constant 0 : index
      %c0_18 = arith.constant 0 : index
      %21 = vector.load %arg5[%c0_17, %c0_18] : memref<1x10xf32, #tpu.memory_space<vmem>>, vector<1x10xf32>
      %22 = vector.broadcast %21 : vector<1x10xf32> to vector<2x10xf32>
      %23 = arith.addf %20, %22 : vector<2x10xf32>
      %cst_19 = arith.constant dense<0xFF800000> : vector<2xf32>
      %24 = vector.multi_reduction <maximumf>, %23, %cst_19 [1] : vector<2x10xf32> to vector<2xf32>
      %25 = vector.shape_cast %24 : vector<2xf32> to vector<2x1xf32>
      %26 = vector.broadcast %25 : vector<2x1xf32> to vector<2x10xf32>
      %27 = arith.subf %23, %26 : vector<2x10xf32>
      %28 = math.exp %27 : vector<2x10xf32>
      %cst_20 = arith.constant dense<0.000000e+00> : vector<2xf32>
      %29 = vector.multi_reduction <add>, %28, %cst_20 [1] : vector<2x10xf32> to vector<2xf32>
      %30 = vector.shape_cast %29 : vector<2xf32> to vector<2x1xf32>
      %31 = math.log %30 : vector<2x1xf32>
      %32 = vector.broadcast %31 : vector<2x1xf32> to vector<2x10xf32>
      %33 = arith.subf %27, %32 : vector<2x10xf32>
      %c0_21 = arith.constant 0 : index
      %c0_22 = arith.constant 0 : index
      %34 = vector.load %arg6[%c0_21, %c0_22] : memref<2x10xf32, #tpu.memory_space<vmem>>, vector<2x10xf32>
      tpu.vector_store %arg6[%c0_21, %c0_22], %33 {strides = array<i32>} : memref<2x10xf32, #tpu.memory_space<vmem>>, vector<2x10xf32>,
    } else {
    }
    return
  }
  func.func @transform_0(%arg0: i32) -> (i32, i32) {
    %c0_i32 = arith.constant 0 : i32
    %c0_i32_0 = arith.constant 0 : i32
    return %c0_i32, %arg0 : i32, i32
  }
  func.func @transform_1(%arg0: i32) -> (i32, i32) {
    %c0_i32 = arith.constant 0 : i32
    %c0_i32_0 = arith.constant 0 : i32
    return %arg0, %c0_i32 : i32, i32
  }
  func.func @transform_2(%arg0: i32) -> (i32, i32) {
    %c0_i32 = arith.constant 0 : i32
    %c0_i32_0 = arith.constant 0 : i32
    %c0_i32_1 = arith.constant 0 : i32
    return %c0_i32, %c0_i32_0 : i32, i32
  }
  func.func @transform_3(%arg0: i32) -> (i32, i32) {
    %c0_i32 = arith.constant 0 : i32
    %c0_i32_0 = arith.constant 0 : i32
    %c0_i32_1 = arith.constant 0 : i32
    return %c0_i32, %c0_i32_0 : i32, i32
  }
  func.func @transform_4(%arg0: i32) -> (i32, i32) {
    %c0_i32 = arith.constant 0 : i32
    %c0_i32_0 = arith.constant 0 : i32
    %c0_i32_1 = arith.constant 0 : i32
    return %c0_i32, %c0_i32_0 : i32, i32
  }
  func.func @transform_5(%arg0: i32) -> (i32, i32) {
    %c0_i32 = arith.constant 0 : i32
    %c0_i32_0 = arith.constant 0 : i32
    %c0_i32_1 = arith.constant 0 : i32
    return %c0_i32, %c0_i32_0 : i32, i32
  }
}

</mosaic_0001>

<bundles_post_ra>
// kernel: net_forward.3
= control target key start
LH: loop header
LB: loop body
LE: loop exit
PB: predicated region body
PF: predicated region fallthrough
CT: control target
= control target key end

     0   :  { %10 = vsyncpa [#allocation4], 0  ;;  %s1783_s18 = smov 0   ;;  %s1966_s0 = inlined_call_operand.vmem [shape: f32[2,9216], index: 0, kind: input, shape index: {}]   ;;  %s1967_s1 = inlined_call_operand.vmem [shape: bf16[9216,128], index: 1, kind: input, shape index: {}]   ;;  %s1968_s2 = inlined_call_operand.vmem [shape: f32[1,128], index: 2, kind: input, shape index: {}]   ;;  %s1969_s3 = inlined_call_operand.vmem [shape: f32[128,10], index: 3, kind: input, shape index: {}]   ;;  %s1970_s4 = inlined_call_operand.vmem [shape: f32[1,10], index: 4, kind: input, shape index: {}]   ;;  %s1971_s5 = inlined_call_operand.hbm [shape: f32[2,10], index: 5, kind: output, shape index: {}]  }
   0x1 LB: > { %s1789_s19 = sadd.s32 4294967295, %s1745_s18   ;;  %p1007_p0 = scmp.ge.s32.totalorder %s1745_s18, 1  ;;  %s1745_s18 = sphi %s1783_s18, %s16_s18  }
   0x2   : > { %p195_p1 = scmp.lt.s32.totalorder %s1745_s18, 10 }
   0x4   : > { %p196_p2 = pnand %p1007_p0, %p195_p1 }
   0x5   : > { %s1008_s20 = sshll.u32 (!%p196_p2), %s1789_s19, 3  ;;  %s1010_s21 = sshll.u32 (!%p196_p2), %s1789_s19, 7 }
   0x6   : > { %199 = sbr.rel (%p196_p2) target bundleno = 878 (0x36e), region = 40  ;;  %p224_p3 = scmp.lt.s32.totalorder (!%p196_p2), %s1008_s20, 71 }
   0x7   : > { %p230_p4 = scmp.lt.s32.totalorder (!%p196_p2), %s1010_s21, 1151  ;;  %p1012_p5 = scmp.ne.s32.totalorder (!%p196_p2), %s1789_s19, 0 }
   0xd   : > { %s1973_s20 = smov (!%p224_p3, %s1008_s20), 71  ;;  %s1975_s21 = smov (!%p230_p4, %s1010_s21), 1151 }
   0xe   : > { %s1009_s22 = sshll.u32 %s1973_s20, 1  ;;  %s1011_s26 = sshll.u32 %s1975_s21, 2  ;;  %v1747_v0 = vmov (!%p1012_p5), 0.0  }
   0xf   : > { %s1798_s25 = scalar_lea.vmem %s1966_s0, %s1009_s22  ;;  %s1803_s29 = scalar_lea.vmem %s1967_s1, %s1011_s26  ;;  %239 = vst [vmem:[#allocation2] sm:$0x3] (!%p1012_p5), %v1747_v0 }
  0x10   : > { %238 = sbr.rel (%p1012_p5) target bundleno = 23 (0x17), region = 44 }
  0x17 PF: > { %v1283_v1 = vld [vmem:[%s1803_s29 + $0x40] sm:$0xff]   ;;  %v505_v4 = vlaneseq  ;;  %v1284_v6 = vld [vmem:[%s1803_s29 + $0x48] sm:$0xff]   ;;  %v1748_v8 = vmov 1983009808   ;;  %v1285_v14 = vld [vmem:[%s1803_s29 + $0x50] sm:$0xff]   ;;  %p1013_p6 = scmp.ne.s32.totalorder %s1789_s19, 8 }
  0x18   : > { %v1299_v2 = vld [vmem:[%s1803_s29 + $0xc0] sm:$0xff]   ;;  %1532 = vmatprep.subr.bf16.mxu0 %v1283_v1  ;;  %v1300_v7 = vld [vmem:[%s1803_s29 + $0xc8] sm:$0xff]   ;;  %v503_v9 = vunpack.c.l.s4 %v1748_v8  ;;  %v1301_v15 = vld [vmem:[%s1803_s29 + $0xd0] sm:$0xff]   ;;  %vm1750_vm0 = vmmov (!%p1013_p6), 0   ;;  %vm932_vm1 = vcmask (!%p1013_p6), 74752  }
  0x19   : > { %v1021_v3 = vld [vmem:[%s1803_s29] sm:$0xff]   ;;  %1564 = vmatprep.subr.bf16.mxu1 %v1299_v2  ;;  %v1276_v10 = vld [vmem:[%s1803_s29 + $0x8] sm:$0xff]   ;;  %v506_v13 = vshrl.u32 %v505_v4, 7  ;;  %v1277_v16 = vld [vmem:[%s1803_s29 + $0x10] sm:$0xff]  }
  0x1a   : > { %v1291_v5 = vld [vmem:[%s1803_s29 + $0x80] sm:$0xff]   ;;  %1534 = vmatpush3.bf16.msra.mxu0 %v1021_v3  ;;  %v1292_v11 = vld [vmem:[%s1803_s29 + $0x88] sm:$0xff]   ;;  %v504_v12 = vunpack.c.0.s8 %v503_v9  ;;  %v1293_v17 = vld [vmem:[%s1803_s29 + $0x90] sm:$0xff]  }
  0x1b   : > { %1566 = vmatpush3.bf16.msra.mxu1 %v1291_v5  ;;  %1536 = vmatprep.subr.bf16.mxu0 %v1284_v6  ;;  %v1286_v19 = vld [vmem:[%s1803_s29 + $0x58] sm:$0xff]   ;;  %v497_v21 = vld [vmem:[%s1798_s25] sm:$0xff]  ;;  %v1288_v33 = vld [vmem:[%s1803_s29 + $0x68] sm:$0xff]  }
  0x1c   : > { %1568 = vmatprep.subr.bf16.mxu1 %v1300_v7  ;;  %v507_v18 = vsub.s32 %v504_v12, %v506_v13  ;;  %v1302_v20 = vld [vmem:[%s1803_s29 + $0xd8] sm:$0xff]   ;;  %v501_v25 = vcombine.high %v497_v21, %v497_v21  ;;  %v1287_v26 = vld [vmem:[%s1803_s29 + $0x60] sm:$0xff]   ;;  %v1304_v34 = vld [vmem:[%s1803_s29 + $0xe8] sm:$0xff]  }
  0x1d   : > { %v1278_v22 = vld [vmem:[%s1803_s29 + $0x18] sm:$0xff]   ;;  %v1303_v27 = vld [vmem:[%s1803_s29 + $0xe0] sm:$0xff]   ;;  %v1280_v35 = vld [vmem:[%s1803_s29 + $0x28] sm:$0xff]  }
  0x1e   : > { %1538 = vmatpush3.bf16.msra.mxu0 %v1276_v10  ;;  %v1294_v23 = vld [vmem:[%s1803_s29 + $0x98] sm:$0xff]   ;;  %v508_v24 = vrot.slane %v497_v21, %v507_v18  ;;  %v515_v29 = vrot.slane %v501_v25, %v507_v18  ;;  %v1279_v30 = vld [vmem:[%s1803_s29 + $0x20] sm:$0xff]   ;;  %v1296_v36 = vld [vmem:[%s1803_s29 + $0xa8] sm:$0xff]  }
  0x1f   : > { %1570 = vmatpush3.bf16.msra.mxu1 %v1292_v11  ;;  %1540 = vmatprep.subr.bf16.mxu0 %v1285_v14  ;;  %v1295_v31 = vld [vmem:[%s1803_s29 + $0xa0] sm:$0xff]   ;;  %v1289_v37 = vld [vmem:[%s1803_s29 + $0x70] sm:$0xff]   ;;  %v498_v39 = vld [vmem:[%s1798_s25 + $0x8] sm:$0xff] }
  0x20   : > { %1572 = vmatprep.subr.bf16.mxu1 %v1301_v15  ;;  %v516_v28 = vcombine.high %v508_v24, %v508_v24  ;;  %v517_v32 = vcombine.high %v515_v29, %v515_v29  ;;  %v1305_v38 = vld [vmem:[%s1803_s29 + $0xf0] sm:$0xff]   ;;  %v1290_v42 = vld [vmem:[%s1803_s29 + $0x78] sm:$0xff]   ;;  %v518_v44 = vcombine.high %v498_v39, %v498_v39  ;;  %v1315_v47 = vld [vmem:[%s1803_s29 + $0x140] sm:$0xff]   ;;  %v1842_v49 = vrot.slane %v498_v39, %v507_v18 }
  0x21   : > { %v1281_v40 = vld [vmem:[%s1803_s29 + $0x30] sm:$0xff]   ;;  %v1306_v43 = vld [vmem:[%s1803_s29 + $0xf8] sm:$0xff]   ;;  %v1331_v48 = vld [vmem:[%s1803_s29 + $0x1c0] sm:$0xff]   ;;  %v1749_v39 = vmov (!%p1013_p6), 0.0|0.0  }
  0x22   : > { %1542 = vmatpush3.bf16.msra.mxu0 %v1277_v16  ;;  %607 = vmatprep.mubr.f32.mxu0 %v516_v28  ;;  %v1297_v41 = vld [vmem:[%s1803_s29 + $0xb0] sm:$0xff]   ;;  %v1282_v45 = vld [vmem:[%s1803_s29 + $0x38] sm:$0xff]   ;;  %v1844_v50 = vrot.slane %v518_v44, %v507_v18  ;;  %v1307_v51 = vld [vmem:[%s1803_s29 + $0x100] sm:$0xff]   ;;  %v533_v55 = vcombine.high %v1842_v49, %v1842_v49 }
  0x23   : > { %1574 = vmatpush3.bf16.msra.mxu1 %v1293_v17  ;;  %1544 = vmatprep.subr.bf16.mxu0 %v1286_v19  ;;  %v1298_v46 = vld [vmem:[%s1803_s29 + $0xb8] sm:$0xff]   ;;  %v1323_v52 = vld [vmem:[%s1803_s29 + $0x180] sm:$0xff]   ;;  %v1316_v53 = vld [vmem:[%s1803_s29 + $0x148] sm:$0xff]  }
  0x24   : > { %1576 = vmatprep.subr.bf16.mxu1 %v1302_v20  ;;  %677 = vmatprep.mubr.f32.mxu1 %v517_v32  ;;  %v1332_v54 = vld [vmem:[%s1803_s29 + $0x1c8] sm:$0xff]   ;;  %v534_v56 = vcombine.high %v1844_v50, %v1844_v50  ;;  %v1317_v59 = vld [vmem:[%s1803_s29 + $0x150] sm:$0xff]   ;;  %v1318_v63 = vld [vmem:[%s1803_s29 + $0x158] sm:$0xff]  }
  0x25   : > { %v1308_v57 = vld [vmem:[%s1803_s29 + $0x108] sm:$0xff]   ;;  %v1333_v60 = vld [vmem:[%s1803_s29 + $0x1d0] sm:$0xff]   ;;  %v1334_v0 = vld [vmem:[%s1803_s29 + $0x1d8] sm:$0xff]  }
  0x26   : > { %1546 = vmatpush3.bf16.msra.mxu0 %v1278_v22  ;;  %v1324_v58 = vld [vmem:[%s1803_s29 + $0x188] sm:$0xff]   ;;  %v1309_v61 = vld [vmem:[%s1803_s29 + $0x110] sm:$0xff]   ;;  %v1310_v1 = vld [vmem:[%s1803_s29 + $0x118] sm:$0xff]  }
  0x27   : > { %1578 = vmatpush3.bf16.msra.mxu1 %v1294_v23  ;;  %1548 = vmatprep.subr.bf16.mxu0 %v1287_v26  ;;  %v1325_v62 = vld [vmem:[%s1803_s29 + $0x190] sm:$0xff]   ;;  %v1326_v2 = vld [vmem:[%s1803_s29 + $0x198] sm:$0xff]   ;;  %v1319_v3 = vld [vmem:[%s1803_s29 + $0x160] sm:$0xff]  }
  0x28   : > { %1580 = vmatprep.subr.bf16.mxu1 %v1303_v27  ;;  %v1335_v4 = vld [vmem:[%s1803_s29 + $0x1e0] sm:$0xff]   ;;  %v1320_v7 = vld [vmem:[%s1803_s29 + $0x168] sm:$0xff]   ;;  %v1321_v11 = vld [vmem:[%s1803_s29 + $0x170] sm:$0xff]  }
  0x29   : > { %v1311_v5 = vld [vmem:[%s1803_s29 + $0x120] sm:$0xff]   ;;  %v1336_v8 = vld [vmem:[%s1803_s29 + $0x1e8] sm:$0xff]   ;;  %v1337_v12 = vld [vmem:[%s1803_s29 + $0x1f0] sm:$0xff]  }
  0x2a   : > { %1550 = vmatpush3.bf16.msra.mxu0 %v1279_v30  ;;  %v1327_v6 = vld [vmem:[%s1803_s29 + $0x1a0] sm:$0xff]   ;;  %v1312_v9 = vld [vmem:[%s1803_s29 + $0x128] sm:$0xff]   ;;  %v1313_v13 = vld [vmem:[%s1803_s29 + $0x130] sm:$0xff]  }
  0x2b   : > { %1582 = vmatpush3.bf16.msra.mxu1 %v1295_v31  ;;  %1552 = vmatprep.subr.bf16.mxu0 %v1288_v33  ;;  %v1328_v10 = vld [vmem:[%s1803_s29 + $0x1a8] sm:$0xff]   ;;  %v1329_v14 = vld [vmem:[%s1803_s29 + $0x1b0] sm:$0xff]   ;;  %v1322_v15 = vld [vmem:[%s1803_s29 + $0x178] sm:$0xff]  }
  0x2c   : > { %1584 = vmatprep.subr.bf16.mxu1 %v1304_v34  ;;  %v1338_v16 = vld [vmem:[%s1803_s29 + $0x1f8] sm:$0xff]   ;;  %v496_v33 = vld [vmem:[#allocation2] sm:$0x3] }
  0x2d   : > { %v1314_v17 = vld [vmem:[%s1803_s29 + $0x138] sm:$0xff]   ;;  %v843_v44 = vld [vmem:[%s1969_s3 + $0x20] sm:$0xff] (!%p1013_p6) }
  0x2e   : > { %1554 = vmatpush3.bf16.msra.mxu0 %v1280_v35  ;;  %v1330_v18 = vld [vmem:[%s1803_s29 + $0x1b8] sm:$0xff]  }
  0x2f   : > { %1586 = vmatpush3.bf16.msra.mxu1 %v1296_v36  ;;  %1556 = vmatprep.subr.bf16.mxu0 %v1289_v37  ;;  %v839_v36 = vld [vmem:[%s1969_s3] sm:$0xff] (!%p1013_p6)  ;;  %v840_v37 = vld [vmem:[%s1969_s3 + $0x8] sm:$0xff] (!%p1013_p6) }
  0x30   : > { %1588 = vmatprep.subr.bf16.mxu1 %v1305_v38  ;;  %v841_v38 = vld [vmem:[%s1969_s3 + $0x10] sm:$0xff] (!%p1013_p6) }
  0x32   : > { %1558 = vmatpush3.bf16.msra.mxu0 %v1281_v40  ;;  %v1660_v40 = vpack.c.bf16 (!%p1013_p6), %v840_v37, %v839_v36 }
  0x33   : > { %1590 = vmatpush3.bf16.msra.mxu1 %v1297_v41  ;;  %1560 = vmatprep.subr.bf16.mxu0 %v1290_v42  ;;  %v842_v41 = vld [vmem:[%s1969_s3 + $0x18] sm:$0xff] (!%p1013_p6)  ;;  %v1751_v42 = vmov (!%p1013_p6), 0.0  }
  0x34   : > { %1592 = vmatprep.subr.bf16.mxu1 %v1306_v43  ;;  %v1663_v43 = vpack.c.bf16 (!%p1013_p6), %v842_v41, %v841_v38 }
  0x36   : > { %1562 = vmatpush3.bf16.msra.mxu0 %v1282_v45  ;;  %v844_v45 = vld [vmem:[%s1969_s3 + $0x28] sm:$0xff] (!%p1013_p6) }
  0x37   : > { %1594 = vmatpush3.bf16.msra.mxu1 %v1298_v46  ;;  %1596 = vmatprep.subr.bf16.mxu0 %v1315_v47  ;;  %v1666_v46 = vpack.c.bf16 (!%p1013_p6), %v844_v45, %v843_v44  ;;  %v845_v47 = vld [vmem:[%s1969_s3 + $0x30] sm:$0xff] (!%p1013_p6) }
  0x38   : > { %1628 = vmatprep.subr.bf16.mxu1 %v1331_v48  ;;  %v846_v48 = vld [vmem:[%s1969_s3 + $0x38] sm:$0xff] (!%p1013_p6) }
  0x39   : > { %608 = vmatmul.mubr.f32.vlgmr.msra.gmra.mrb[0].mxu0 %v508_v24 }
  0x3a   : > { %678 = vmatmul.mubr.f32.vlgmr.msra.gmra.mrb[0].mxu1 %v515_v29  ;;  %1598 = vmatpush3.bf16.msra.mxu0 %v1307_v51  ;;  %v848_v51 = vld [vmem:[%s1969_s3 + $0x48] sm:$0xff] (!%p1013_p6) }
  0x3b   : > { %1630 = vmatpush3.bf16.msra.mxu1 %v1323_v52  ;;  %1600 = vmatprep.subr.bf16.mxu0 %v1316_v53  ;;  %v849_v53 = vld [vmem:[%s1969_s3 + $0x50] sm:$0xff] (!%p1013_p6) }
  0x3c   : > { %1632 = vmatprep.subr.bf16.mxu1 %v1332_v54  ;;  %747 = vmatprep.mubr.f32.mxu0 %v533_v55  ;;  %v850_v54 = vld [vmem:[%s1969_s3 + $0x58] sm:$0xff] (!%p1013_p6) }
  0x3d   : > { %817 = vmatprep.mubr.f32.mxu1 %v534_v56  ;;  %v1675_v55 = vpack.c.bf16 (!%p1013_p6), %v850_v54, %v849_v53  ;;  %v851_v56 = vld [vmem:[%s1969_s3 + $0x60] sm:$0xff] (!%p1013_p6) }
  0x3e   : > { %1602 = vmatpush3.bf16.msra.mxu0 %v1308_v57  ;;  %v852_v57 = vld [vmem:[%s1969_s3 + $0x68] sm:$0xff] (!%p1013_p6) }
  0x3f   : > { %1634 = vmatpush3.bf16.msra.mxu1 %v1324_v58  ;;  %1604 = vmatprep.subr.bf16.mxu0 %v1317_v59  ;;  %v1678_v58 = vpack.c.bf16 (!%p1013_p6), %v852_v57, %v851_v56 }
  0x40   : > { %1636 = vmatprep.subr.bf16.mxu1 %v1333_v60  ;;  %v1014_v60 = vld [vmem:[%s1968_s2] ss:$0 sm:$0xff] (!%p1013_p6) }
  0x42   : > { %1606 = vmatpush3.bf16.msra.mxu0 %v1309_v61  ;;  %v853_v61 = vld [vmem:[%s1969_s3 + $0x70] sm:$0xff] (!%p1013_p6) }
  0x43   : > { %1638 = vmatpush3.bf16.msra.mxu1 %v1325_v62  ;;  %1608 = vmatprep.subr.bf16.mxu0 %v1318_v63  ;;  %v854_v62 = vld [vmem:[%s1969_s3 + $0x78] sm:$0xff] (!%p1013_p6) }
  0x44   : > { %1640 = vmatprep.subr.bf16.mxu1 %v1334_v0  ;;  %v1681_v0 = vpack.c.bf16 (!%p1013_p6), %v854_v62, %v853_v61 }
  0x46   : > { %1610 = vmatpush3.bf16.msra.mxu0 %v1310_v1 }
  0x47   : > { %1642 = vmatpush3.bf16.msra.mxu1 %v1326_v2  ;;  %1612 = vmatprep.subr.bf16.mxu0 %v1319_v3  ;;  %v1015_v2 = vld [vmem:[%s1970_s4] ss:$0 sm:$0xff] (!%p1013_p6) }
  0x48   : > { %1644 = vmatprep.subr.bf16.mxu1 %v1335_v4 }
  0x4a   : > { %1614 = vmatpush3.bf16.msra.mxu0 %v1311_v5 }
  0x4b   : > { %1646 = vmatpush3.bf16.msra.mxu1 %v1327_v6  ;;  %1616 = vmatprep.subr.bf16.mxu0 %v1320_v7 }
  0x4c   : > { %1648 = vmatprep.subr.bf16.mxu1 %v1336_v8 }
  0x4e   : > { %1618 = vmatpush3.bf16.msra.mxu0 %v1312_v9 }
  0x4f   : > { %1650 = vmatpush3.bf16.msra.mxu1 %v1328_v10  ;;  %1620 = vmatprep.subr.bf16.mxu0 %v1321_v11 }
  0x50   : > { %1652 = vmatprep.subr.bf16.mxu1 %v1337_v12 }
  0x52   : > { %1622 = vmatpush3.bf16.msra.mxu0 %v1313_v13 }
  0x53   : > { %1654 = vmatpush3.bf16.msra.mxu1 %v1329_v14  ;;  %1624 = vmatprep.subr.bf16.mxu0 %v1322_v15 }
  0x54   : > { %1656 = vmatprep.subr.bf16.mxu1 %v1338_v16 }
  0x56   : > { %1626 = vmatpush3.bf16.msra.mxu0 %v1314_v17 }
  0x57   : > { %1658 = vmatpush3.bf16.msra.mxu1 %v1330_v18  ;;  %1659 = vmatprep.subr.bf16.mxu0 (!%p1013_p6), %v1749_v39 }
  0x59   : > { %748 = vmatmul.mubr.f32.vlgmr.msra.gmra.mrb[2].mxu0 %v1842_v49  ;;  %v1669_v49 = vpack.c.bf16 (!%p1013_p6), %v846_v48, %v845_v47 }
  0x5a   : > { %818 = vmatmul.mubr.f32.vlgmr.msra.gmra.mrb[2].mxu1 %v1844_v50  ;;  %1528 = vmatprep.mubr.msk.f32.mxu0 (!%p1013_p6), %vm1750_vm0, %v1751_v42  ;;  %v847_v50 = vld [vmem:[%s1969_s3 + $0x40] sm:$0xff] (!%p1013_p6) }
  0x5b   : > { %1661 = vmatpush3.bf16.msra.mxu0 (!%p1013_p6), %v1660_v40  ;;  %v1672_v52 = vpack.c.bf16 (!%p1013_p6), %v848_v51, %v847_v50 }
  0x5c   : > { %1662 = vmatprep.subr.bf16.mxu0 (!%p1013_p6), %v1749_v39 }
  0x5f   : > { %1664 = vmatpush3.bf16.msra.mxu0 (!%p1013_p6), %v1663_v43 }
  0x60   : > { %1665 = vmatprep.subr.bf16.mxu0 (!%p1013_p6), %v1749_v39 }
  0x63   : > { %1667 = vmatpush3.bf16.msra.mxu0 (!%p1013_p6), %v1666_v46 }
  0x64   : > { %1668 = vmatprep.subr.bf16.mxu0 (!%p1013_p6), %v1749_v39 }
  0x67   : > { %1670 = vmatpush3.bf16.msra.mxu0 (!%p1013_p6), %v1669_v49 }
  0x68   : > { %1671 = vmatprep.subr.bf16.mxu0 (!%p1013_p6), %v1749_v39 }
  0x6b   : > { %1673 = vmatpush3.bf16.msra.mxu0 (!%p1013_p6), %v1672_v52 }
  0x6c   : > { %1674 = vmatprep.subr.bf16.mxu0 (!%p1013_p6), %v1749_v39 }
  0x6f   : > { %1676 = vmatpush3.bf16.msra.mxu0 (!%p1013_p6), %v1675_v55 }
  0x70   : > { %1677 = vmatprep.subr.bf16.mxu0 (!%p1013_p6), %v1749_v39 }
  0x73   : > { %1679 = vmatpush3.bf16.msra.mxu0 (!%p1013_p6), %v1678_v58 }
  0x74   : > { %1680 = vmatprep.subr.bf16.mxu0 (!%p1013_p6), %v1749_v39 }
  0x77   : > { %1682 = vmatpush3.bf16.msra.mxu0 (!%p1013_p6), %v1681_v0 }
 0x10c   : > { %v1371_v19 = vpop.f32.mrb[0].mxu0 }
 0x10d   : > { %v1406_v20 = vpop.f32.mrb[0].mxu1  ;;  %v1372_v21 = vpop.f32.mrb[1].mxu0 }
 0x10e   : > { %v1407_v22 = vpop.f32.mrb[1].mxu1  ;;  %v1373_v23 = vadd.f32 %v1372_v21, %v1371_v19 }
 0x10f   : > { %v1408_v24 = vadd.f32 %v1407_v22, %v1406_v20 }
 0x111   : > { %v680_v25 = vadd.f32 %v1408_v24, %v1373_v23 }
 0x12c   : > { %v1441_v26 = vpop.f32.mrb[2].mxu0 }
 0x12d   : > { %v1476_v27 = vpop.f32.mrb[2].mxu1  ;;  %v1442_v28 = vpop.f32.mrb[3].mxu0 }
 0x12e   : > { %v1477_v29 = vpop.f32.mrb[3].mxu1  ;;  %v1443_v30 = vadd.f32 %v1442_v28, %v1441_v26 }
 0x12f   : > { %v1478_v31 = vadd.f32 %v1477_v29, %v1476_v27 }
 0x130   : > { %v750_v32 = vadd.f32 %v1443_v30, %v680_v25  ;;  %828 = sbr.rel (%p1013_p6) target bundleno = 853 (0x355), region = 48 }
 0x132   : > { %v820_v34 = vadd.f32 %v1478_v31, %v750_v32 }
 0x134   : > { %v823_v35 = vadd.f32 %v820_v34, %v496_v33 }
 0x136   : > { %824 = vst [vmem:[#allocation2] sm:$0x3] %v823_v35 }
 0x13d   : > { %v829_v59 = vld [vmem:[#allocation2] sm:$0x3] }
 0x13e   : > { %v837_v63 = vadd.f32 %v1014_v60, %v829_v59 }
 0x140   : > { %v838_v1 = vmax.f32 %v837_v63, 0.0 }
 0x142   : > { %1529 = vmatmul.mubr.f32.vlgmr.msra.gmra.mrb[0].mxu0 %v838_v1 }
 0x215   : > { %v928_v3 = vpop.f32.mrb[0].mxu0 }
 0x216   : > { %v929_v4 = vadd.f32 %v1015_v2, %v928_v3  ;;  %v1530_v5 = vpop.f32.mrb[1].mxu0 }
 0x218   : > { %v933_v6 = vsel %vm932_vm1, %v929_v4, -inf }
 0x219   : > { %934 = vmax.xlane.f32.xlu0 %v933_v6 }
 0x2a6   : > { %v935_v7 = vpop.xlane.xlu0 %934 }
 0x2a7   : > { %v936_v8 = vsub.f32 %v929_v4, %v935_v7 }
 0x2a9   : > { %v937_v9 = vmul.f32 1.442695, %v936_v8 }
 0x2ab   : > { %1705 = vpow2.f32 %v937_v9 }
 0x2b5   : > { %v1706_v10 = vpop.eup %1705 }
 0x2b6   : > { %v939_v11 = vsel %vm932_vm1, %v1706_v10, 0.0 }
 0x2b7   : > { %940 = vadd.xlane.f32.xlu0 %v939_v11 }
 0x344   : > { %v941_v12 = vpop.xlane.xlu0 %940 }
 0x345   : > { %1707 = vlog2.f32 %v941_v12 }
 0x34f   : > { %v1708_v13 = vpop.eup %1707 }
 0x350   : > { %v943_v14 = vmul.f32 0.6931472, %v1708_v13 }
 0x352   : > { %v944_v15 = vsub.f32 %v936_v8, %v943_v14 }
 0x354   : > { %945 = vst.msk [vmem:[#allocation3] sm:$0x3] %vm932_vm1, %v944_v15 }
 0x355 PF: > { %p1687_p7 = scmp.eq.s32.totalorder %s1789_s19, 8  ;;  %s1752_s20 = smov [#allocation3]  }
 0x356   : > { %s953_s21 = sshll.u32 %s1752_s20, 4  ;;  %s954_s21 = int_to_ptr.vmem [resolvable:$true] %s953_s21 }
 0x357   : > { %s1709_s22 = scalar_lea.vmem %s954_s21, 32  ;;  %p1716_p11 = scmp.lt.s32.totalorder %s954_s21, %s954_s21 }
 0x358   : > { %p1710_p8 = scmp.ne.s32.totalorder %s954_s21, %s1709_s22  ;;  %p1717_p12 = scmp.lt.s32.totalorder %s1709_s22, %s1709_s22 }
 0x35a   : > { %p1711_p9 = pnand %p1710_p8, %p1687_p7  ;;  %p1718_p13 = por %p1717_p12, %p1716_p11 }
 0x35c   : > { %p1712_p10 = pneg %p1711_p9 }
 0x35e   : > { %p1719_p0 = pnand %p1718_p13, %p1712_p10 }
 0x360   : > { %1722 = shalt.err (!%p1719_p0)
}
 0x361   : > { %s1723_s25 = scalar_lea.hbm %s1971_s5, 32 }
 0x362   : > { %p1724_p1 = scmp.ne.s32.totalorder %s1971_s5, %s1723_s25  ;;  %p1729_p4 = scmp.lt.u32.totalorder %s1723_s25, %s1971_s5 }
 0x364   : > { %p1725_p2 = pnand %p1724_p1, %p1687_p7 }
 0x366   : > { %p1726_p3 = pneg %p1725_p2 }
 0x368   : > { %p1731_p5 = pnand %p1729_p4, %p1726_p3 }
 0x36a   : > { %1734 = shalt.err (!%p1731_p5)
}
 0x36b   : > { %1684 = dma.vmem_to_hbm [thread:$0]  (%p1687_p7), %s954_s21, 32, %s1971_s5, [#allocation4]  }
 0x36c   : > { %1740 = dma.done.wait (%p1687_p7), [#allocation4], 32  }
 0x36d   : > { %1742 = vsyncadd (%p1687_p7), [#allocation4], 4294967264 }
 0x36e PF: > { %s16_s18 = sadd.s32 1, %s1745_s18  }
 0x36f   : > { %p13_p6 = scmp.ge.s32.totalorder %s16_s18, 11  }
 0x371   :  { %15 = sbr.rel (!%p13_p6) target bundleno = 1 (0x1), region = 78 }
 0x378   :  { %966 = vsyncpa [#allocation4], 1 }
 0x379   :  { %968 = vsyncpa [#allocation4 + $0x1], 1 }

// kernel: net_forward.2
= control target key start
LH: loop header
LB: loop body
LE: loop exit
PB: predicated region body
PF: predicated region fallthrough
CT: control target
= control target key end

     0   :  { %s15244_s18 = smov 0   ;;  %s18402_s0 = inlined_call_operand.vmem [shape: f32[2,832,9], index: 0, kind: input, shape index: {}]   ;;  %s18403_s1 = inlined_call_operand.vmem [shape: f32[9,32], index: 1, kind: input, shape index: {}]   ;;  %s18404_s2 = inlined_call_operand.vmem [shape: f32[1,32], index: 2, kind: input, shape index: {}]   ;;  %s18405_s3 = inlined_call_operand.vmem [shape: f32[9,32,64], index: 3, kind: input, shape index: {}]   ;;  %s18406_s4 = inlined_call_operand.vmem [shape: f32[1,64], index: 4, kind: input, shape index: {}]   ;;  %s18407_s5 = inlined_call_operand.vmem [shape: f32[2,12,12,64], index: 5, kind: output, shape index: {}]  }
   0x1 LB: > { %s11838_s19 = sadd.s32 4294967295, %s15210_s18   ;;  %p11842_p0 = scmp.ge.s32.totalorder %s15210_s18, 1  ;;  %s15210_s18 = sphi %s15244_s18, %s15_s18  }
   0x2   : > { %p187_p1 = scmp.lt.s32.totalorder %s15210_s18, 3 }
   0x4   : > { %p188_p2 = pnand %p11842_p0, %p187_p1 }
   0x6   : > { %191 = sbr.rel (%p188_p2) target bundleno = 1512 (0x5e8), region = 40 }
   0xd   : > { %v329_v0 = vld [vmem:[%s18403_s1] sm:$0xff]  ;;  %v330_v1 = vld [vmem:[%s18403_s1 + $0x8] sm:$0x1]  ;;  %vm651_vm0 = vcmask 1040384   ;;  %p215_p3 = scmp.lt.s32.totalorder %s11838_s19, 1  ;;  %vm15212_vm1 = vmmov 1  }
   0xe   : > { %v15016_v2 = vpack.c.bf16 %v330_v1, %v329_v0  ;;  %vm15017_vm2 = vmpackc.low %vm651_vm0, %vm15212_vm1  ;;  %vm338_vm3 = vcmask 72704   ;;  %v1521_v50 = vld [vmem:[%s18405_s3] sm:$0xff]  ;;  %v1522_v51 = vld [vmem:[%s18405_s3 + $0x8] sm:$0xff]  ;;  %vm1344_vm4 = vcmask 261120   ;;  %vm2166_vm5 = vcmask 523264  }
   0xf   : > { %s18639_s19 = smov (!%p215_p3, %s11838_s19), 1  ;;  %v15022_v52 = vpack.c.bf16 %v1522_v51, %v1521_v50  ;;  %v12099_v55 = vld [vmem:[%s18405_s3 + $0x40] sm:$0xff]  ;;  %v12100_v56 = vld [vmem:[%s18405_s3 + $0x48] sm:$0xff]  ;;  %v1523_v58 = vld [vmem:[%s18405_s3 + $0x10] sm:$0xff]  ;;  %vm9921_vm7 = vcmask 195584   ;;  %vm11759_vm11 = vcmask 519168  }
  0x10   : > { %15018 = vmatprep.subr.msk.bf16.mxu0 %vm15017_vm2, %v15016_v2  ;;  %s15190_s24 = smul.u32 832, %s18639_s19  ;;  %v15038_v57 = vpack.c.bf16 %v12100_v56, %v12099_v55  ;;  %v1524_v59 = vld [vmem:[%s18405_s3 + $0x18] sm:$0xff]  ;;  %v12101_v63 = vld [vmem:[%s18405_s3 + $0x50] sm:$0xff]  ;;  %v15501_v55 = vld [vmem:[%s18404_s2] ss:$0 sm:$0xff] }
  0x11   : > { %15021 = vmatpush3.bf16.msk.msra.mxu0 %vm15017_vm2, %v15016_v2  ;;  %15023 = vmatprep.subr.bf16.mxu1 %v15022_v52  ;;  %v15026_v60 = vpack.c.bf16 %v1524_v59, %v1523_v58  ;;  %v12102_v0 = vld [vmem:[%s18405_s3 + $0x58] sm:$0xff]  ;;  %s15191_s14 = smul.u32 192, %s18639_s19 }
  0x12   : > { %s15264_s27 = scalar_lea.vmem %s18402_s0, %s15190_s24  ;;  %15025 = vmatpush3.bf16.msra.mxu1 %v15022_v52  ;;  %15039 = vmatprep.subr.bf16.mxu0 %v15038_v57  ;;  %v15042_v1 = vpack.c.bf16 %v12102_v0, %v12101_v63 }
  0x13   : > { %v225_v3 = vld [vmem:[%s15264_s27] sm:$0xff]  ;;  %v226_v4 = vld [vmem:[%s15264_s27 + $0x8] sm:$0xff]  ;;  %v227_v5 = vld [vmem:[%s15264_s27 + $0x10] sm:$0xff]  ;;  %15027 = vmatprep.subr.bf16.mxu1 %v15026_v60  ;;  %s18337_s17 = scalar_lea.vmem %s18407_s5, %s15191_s14 }
  0x14   : > { %13600 = vmatprep.mubr.msk.f32.mxu0 %vm338_vm3, %v225_v3  ;;  %v228_v6 = vld [vmem:[%s15264_s27 + $0x18] sm:$0xff]  ;;  %v229_v7 = vld [vmem:[%s15264_s27 + $0x20] sm:$0xff]  ;;  %v230_v8 = vld [vmem:[%s15264_s27 + $0x28] sm:$0xff] }
  0x15   : > { %13601 = vmatmul.mubr.msk.f32.vlgmr.msra.gmra.mrb[0].mxu0 %vm338_vm3, %v226_v4  ;;  %v231_v9 = vld [vmem:[%s15264_s27 + $0x30] sm:$0xff]  ;;  %v232_v10 = vld [vmem:[%s15264_s27 + $0x38] sm:$0xff]  ;;  %v233_v11 = vld [vmem:[%s15264_s27 + $0x40] sm:$0xff] }
  0x16   : > { %13603 = vmatprep.mubr.msk.f32.mxu0 %vm338_vm3, %v227_v5  ;;  %v234_v12 = vld [vmem:[%s15264_s27 + $0x48] sm:$0xff]  ;;  %v235_v13 = vld [vmem:[%s15264_s27 + $0x50] sm:$0xff]  ;;  %v236_v14 = vld [vmem:[%s15264_s27 + $0x58] sm:$0xff]  ;;  %15041 = vmatpush3.bf16.msra.mxu0 %v15038_v57 }
  0x17   : > { %v237_v15 = vld [vmem:[%s15264_s27 + $0x60] sm:$0xff]  ;;  %v238_v16 = vld [vmem:[%s15264_s27 + $0x68] sm:$0xff]  ;;  %v239_v17 = vld [vmem:[%s15264_s27 + $0x70] sm:$0xff]  ;;  %15029 = vmatpush3.bf16.msra.mxu1 %v15026_v60  ;;  %15043 = vmatprep.subr.bf16.mxu0 %v15042_v1 }
  0x18   : > { %v240_v18 = vld [vmem:[%s15264_s27 + $0x78] sm:$0xff]  ;;  %v241_v19 = vld [vmem:[%s15264_s27 + $0x80] sm:$0xff]  ;;  %v242_v20 = vld [vmem:[%s15264_s27 + $0x88] sm:$0xff] }
  0x19   : > { %13604 = vmatmul.mubr.msk.f32.gmra.mrb[2].mxu0 %vm338_vm3, %v228_v6  ;;  %v243_v21 = vld [vmem:[%s15264_s27 + $0x90] sm:$0xff]  ;;  %v244_v22 = vld [vmem:[%s15264_s27 + $0x98] sm:$0xff]  ;;  %v245_v23 = vld [vmem:[%s15264_s27 + $0xa0] sm:$0xff] }
  0x1a   : > { %13606 = vmatprep.mubr.msk.f32.mxu0 %vm338_vm3, %v229_v7  ;;  %v246_v24 = vld [vmem:[%s15264_s27 + $0xa8] sm:$0xff]  ;;  %v247_v25 = vld [vmem:[%s15264_s27 + $0xb0] sm:$0xff]  ;;  %v248_v26 = vld [vmem:[%s15264_s27 + $0xb8] sm:$0xff]  ;;  %15045 = vmatpush3.bf16.msra.mxu0 %v15042_v1 }
  0x1b   : > { %v249_v27 = vld [vmem:[%s15264_s27 + $0xc0] sm:$0xff]  ;;  %v250_v28 = vld [vmem:[%s15264_s27 + $0xc8] sm:$0xff]  ;;  %v251_v29 = vld [vmem:[%s15264_s27 + $0xd0] sm:$0xff] }
  0x1c   : > { %v252_v30 = vld [vmem:[%s15264_s27 + $0xd8] sm:$0xff]  ;;  %v253_v31 = vld [vmem:[%s15264_s27 + $0xe0] sm:$0xff]  ;;  %v254_v32 = vld [vmem:[%s15264_s27 + $0xe8] sm:$0xff] }
  0x1d   : > { %13607 = vmatmul.mubr.msk.f32.gmra.mrb[4].mxu0 %vm338_vm3, %v230_v8  ;;  %v255_v33 = vld [vmem:[%s15264_s27 + $0xf0] sm:$0xff]  ;;  %v256_v34 = vld [vmem:[%s15264_s27 + $0xf8] sm:$0xff]  ;;  %v257_v35 = vld [vmem:[%s15264_s27 + $0x100] sm:$0xff] }
  0x1e   : > { %13609 = vmatprep.mubr.msk.f32.mxu0 %vm338_vm3, %v231_v9  ;;  %v258_v36 = vld [vmem:[%s15264_s27 + $0x108] sm:$0xff]  ;;  %v259_v37 = vld [vmem:[%s15264_s27 + $0x110] sm:$0xff]  ;;  %v260_v38 = vld [vmem:[%s15264_s27 + $0x118] sm:$0xff] }
  0x1f   : > { %v261_v39 = vld [vmem:[%s15264_s27 + $0x120] sm:$0xff]  ;;  %v262_v40 = vld [vmem:[%s15264_s27 + $0x128] sm:$0xff]  ;;  %v263_v41 = vld [vmem:[%s15264_s27 + $0x130] sm:$0xff] }
  0x20   : > { %v264_v42 = vld [vmem:[%s15264_s27 + $0x138] sm:$0xff]  ;;  %v265_v43 = vld [vmem:[%s15264_s27 + $0x140] sm:$0xff]  ;;  %v266_v44 = vld [vmem:[%s15264_s27 + $0x148] sm:$0xff] }
  0x21   : > { %13610 = vmatmul.mubr.msk.f32.gmra.mrb[6].mxu0 %vm338_vm3, %v232_v10  ;;  %v267_v45 = vld [vmem:[%s15264_s27 + $0x150] sm:$0xff]  ;;  %v268_v46 = vld [vmem:[%s15264_s27 + $0x158] sm:$0xff]  ;;  %v269_v47 = vld [vmem:[%s15264_s27 + $0x160] sm:$0xff] }
  0x22   : > { %13612 = vmatprep.mubr.msk.f32.mxu0 %vm338_vm3, %v233_v11  ;;  %v270_v48 = vld [vmem:[%s15264_s27 + $0x168] sm:$0xff]  ;;  %v271_v49 = vld [vmem:[%s15264_s27 + $0x170] sm:$0xff]  ;;  %v272_v53 = vld [vmem:[%s15264_s27 + $0x178] sm:$0xff] }
  0x23   : > { %v273_v54 = vld [vmem:[%s15264_s27 + $0x180] sm:$0xff]  ;;  %v274_v61 = vld [vmem:[%s15264_s27 + $0x188] sm:$0xff]  ;;  %v275_v62 = vld [vmem:[%s15264_s27 + $0x190] sm:$0xff] }
  0x24   : > { %v276_v2 = vld [vmem:[%s15264_s27 + $0x198] sm:$0xff]  ;;  %v277_v3 = vld [vmem:[%s15264_s27 + $0x1a0] sm:$0xff]  ;;  %v278_v4 = vld [vmem:[%s15264_s27 + $0x1a8] sm:$0xff] }
  0x25   : > { %13613 = vmatmul.mubr.msk.f32.gmra.mrb[8].mxu0 %vm338_vm3, %v234_v12  ;;  %v279_v5 = vld [vmem:[%s15264_s27 + $0x1b0] sm:$0xff]  ;;  %v280_v6 = vld [vmem:[%s15264_s27 + $0x1b8] sm:$0xff]  ;;  %v281_v7 = vld [vmem:[%s15264_s27 + $0x1c0] sm:$0xff] }
  0x26   : > { %13615 = vmatprep.mubr.msk.f32.mxu0 %vm338_vm3, %v235_v13  ;;  %v282_v8 = vld [vmem:[%s15264_s27 + $0x1c8] sm:$0xff]  ;;  %v283_v9 = vld [vmem:[%s15264_s27 + $0x1d0] sm:$0xff]  ;;  %v284_v10 = vld [vmem:[%s15264_s27 + $0x1d8] sm:$0xff] }
  0x27   : > { %v285_v11 = vld [vmem:[%s15264_s27 + $0x1e0] sm:$0xff]  ;;  %v286_v12 = vld [vmem:[%s15264_s27 + $0x1e8] sm:$0xff]  ;;  %v287_v13 = vld [vmem:[%s15264_s27 + $0x1f0] sm:$0xff] }
  0x28   : > { %v324_v50 = vld [vmem:[%s15264_s27 + $0x318] sm:$0xff]  ;;  %v325_v51 = vld [vmem:[%s15264_s27 + $0x320] sm:$0xff]  ;;  %v326_v52 = vld [vmem:[%s15264_s27 + $0x328] sm:$0xff] }
  0x29   : > { %13616 = vmatmul.mubr.msk.f32.gmra.mrb[10].mxu0 %vm338_vm3, %v236_v14  ;;  %v288_v14 = vld [vmem:[%s15264_s27 + $0x1f8] sm:$0xff] }
  0x2a   : > { %13618 = vmatprep.mubr.msk.f32.mxu0 %vm338_vm3, %v237_v15  ;;  %v289_v15 = vld [vmem:[%s15264_s27 + $0x200] sm:$0xff] }
  0x2d   : > { %13619 = vmatmul.mubr.msk.f32.gmra.mrb[12].mxu0 %vm338_vm3, %v238_v16  ;;  %v290_v16 = vld [vmem:[%s15264_s27 + $0x208] sm:$0xff] }
  0x2e   : > { %13621 = vmatprep.mubr.msk.f32.mxu0 %vm338_vm3, %v239_v17  ;;  %v291_v17 = vld [vmem:[%s15264_s27 + $0x210] sm:$0xff] }
  0x31   : > { %13622 = vmatmul.mubr.msk.f32.gmra.mrb[14].mxu0 %vm338_vm3, %v240_v18  ;;  %v292_v18 = vld [vmem:[%s15264_s27 + $0x218] sm:$0xff] }
  0x32   : > { %13624 = vmatprep.mubr.msk.f32.mxu0 %vm338_vm3, %v241_v19  ;;  %v293_v19 = vld [vmem:[%s15264_s27 + $0x220] sm:$0xff] }
  0x35   : > { %13625 = vmatmul.mubr.msk.f32.gmra.mrb[16].mxu0 %vm338_vm3, %v242_v20  ;;  %v294_v20 = vld [vmem:[%s15264_s27 + $0x228] sm:$0xff] }
  0x36   : > { %13627 = vmatprep.mubr.msk.f32.mxu0 %vm338_vm3, %v243_v21  ;;  %v295_v21 = vld [vmem:[%s15264_s27 + $0x230] sm:$0xff] }
  0x39   : > { %13628 = vmatmul.mubr.msk.f32.gmra.mrb[18].mxu0 %vm338_vm3, %v244_v22  ;;  %v296_v22 = vld [vmem:[%s15264_s27 + $0x238] sm:$0xff] }
  0x3a   : > { %13630 = vmatprep.mubr.msk.f32.mxu0 %vm338_vm3, %v245_v23  ;;  %v297_v23 = vld [vmem:[%s15264_s27 + $0x240] sm:$0xff] }
  0x3d   : > { %13631 = vmatmul.mubr.msk.f32.gmra.mrb[20].mxu0 %vm338_vm3, %v246_v24  ;;  %v298_v24 = vld [vmem:[%s15264_s27 + $0x248] sm:$0xff] }
  0x3e   : > { %13633 = vmatprep.mubr.msk.f32.mxu0 %vm338_vm3, %v247_v25  ;;  %v299_v25 = vld [vmem:[%s15264_s27 + $0x250] sm:$0xff] }
  0x41   : > { %13634 = vmatmul.mubr.msk.f32.gmra.mrb[22].mxu0 %vm338_vm3, %v248_v26  ;;  %v300_v26 = vld [vmem:[%s15264_s27 + $0x258] sm:$0xff] }
  0x42   : > { %13636 = vmatprep.mubr.msk.f32.mxu0 %vm338_vm3, %v249_v27  ;;  %v301_v27 = vld [vmem:[%s15264_s27 + $0x260] sm:$0xff] }
  0x45   : > { %13637 = vmatmul.mubr.msk.f32.gmra.mrb[24].mxu0 %vm338_vm3, %v250_v28  ;;  %v302_v28 = vld [vmem:[%s15264_s27 + $0x268] sm:$0xff] }
  0x46   : > { %13639 = vmatprep.mubr.msk.f32.mxu0 %vm338_vm3, %v251_v29  ;;  %v303_v29 = vld [vmem:[%s15264_s27 + $0x270] sm:$0xff] }
  0x49   : > { %13640 = vmatmul.mubr.msk.f32.gmra.mrb[26].mxu0 %vm338_vm3, %v252_v30  ;;  %v304_v30 = vld [vmem:[%s15264_s27 + $0x278] sm:$0xff] }
  0x4a   : > { %13642 = vmatprep.mubr.msk.f32.mxu0 %vm338_vm3, %v253_v31  ;;  %v305_v31 = vld [vmem:[%s15264_s27 + $0x280] sm:$0xff] }
  0x4d   : > { %13643 = vmatmul.mubr.msk.f32.gmra.mrb[28].mxu0 %vm338_vm3, %v254_v32  ;;  %v306_v32 = vld [vmem:[%s15264_s27 + $0x288] sm:$0xff] }
  0x4e   : > { %13645 = vmatprep.mubr.msk.f32.mxu0 %vm338_vm3, %v255_v33  ;;  %v307_v33 = vld [vmem:[%s15264_s27 + $0x290] sm:$0xff] }
  0x51   : > { %13646 = vmatmul.mubr.msk.f32.gmra.mrb[30].mxu0 %vm338_vm3, %v256_v34  ;;  %v308_v34 = vld [vmem:[%s15264_s27 + $0x298] sm:$0xff] }
  0x52   : > { %13648 = vmatprep.mubr.msk.f32.mxu0 %vm338_vm3, %v257_v35  ;;  %v309_v35 = vld [vmem:[%s15264_s27 + $0x2a0] sm:$0xff] }
  0x55   : > { %13649 = vmatmul.mubr.msk.f32.gmra.mrb[32].mxu0 %vm338_vm3, %v258_v36  ;;  %v310_v36 = vld [vmem:[%s15264_s27 + $0x2a8] sm:$0xff] }
  0x56   : > { %13651 = vmatprep.mubr.msk.f32.mxu0 %vm338_vm3, %v259_v37  ;;  %v311_v37 = vld [vmem:[%s15264_s27 + $0x2b0] sm:$0xff] }
  0x59   : > { %13652 = vmatmul.mubr.msk.f32.gmra.mrb[34].mxu0 %vm338_vm3, %v260_v38  ;;  %v312_v38 = vld [vmem:[%s15264_s27 + $0x2b8] sm:$0xff] }
  0x5a   : > { %13654 = vmatprep.mubr.msk.f32.mxu0 %vm338_vm3, %v261_v39  ;;  %v313_v39 = vld [vmem:[%s15264_s27 + $0x2c0] sm:$0xff] }
  0x5d   : > { %13655 = vmatmul.mubr.msk.f32.gmra.mrb[36].mxu0 %vm338_vm3, %v262_v40  ;;  %v314_v40 = vld [vmem:[%s15264_s27 + $0x2c8] sm:$0xff] }
  0x5e   : > { %13657 = vmatprep.mubr.msk.f32.mxu0 %vm338_vm3, %v263_v41  ;;  %v315_v41 = vld [vmem:[%s15264_s27 + $0x2d0] sm:$0xff] }
  0x61   : > { %13658 = vmatmul.mubr.msk.f32.gmra.mrb[38].mxu0 %vm338_vm3, %v264_v42  ;;  %v316_v42 = vld [vmem:[%s15264_s27 + $0x2d8] sm:$0xff] }
  0x62   : > { %13660 = vmatprep.mubr.msk.f32.mxu0 %vm338_vm3, %v265_v43  ;;  %v317_v43 = vld [vmem:[%s15264_s27 + $0x2e0] sm:$0xff] }
  0x65   : > { %13661 = vmatmul.mubr.msk.f32.gmra.mrb[40].mxu0 %vm338_vm3, %v266_v44  ;;  %v318_v44 = vld [vmem:[%s15264_s27 + $0x2e8] sm:$0xff] }
  0x66   : > { %13663 = vmatprep.mubr.msk.f32.mxu0 %vm338_vm3, %v267_v45  ;;  %v319_v45 = vld [vmem:[%s15264_s27 + $0x2f0] sm:$0xff] }
  0x69   : > { %13664 = vmatmul.mubr.msk.f32.gmra.mrb[42].mxu0 %vm338_vm3, %v268_v46  ;;  %v320_v46 = vld [vmem:[%s15264_s27 + $0x2f8] sm:$0xff] }
  0x6a   : > { %13666 = vmatprep.mubr.msk.f32.mxu0 %vm338_vm3, %v269_v47  ;;  %v321_v47 = vld [vmem:[%s15264_s27 + $0x300] sm:$0xff] }
  0x6d   : > { %13667 = vmatmul.mubr.msk.f32.gmra.mrb[44].mxu0 %vm338_vm3, %v270_v48  ;;  %v322_v48 = vld [vmem:[%s15264_s27 + $0x308] sm:$0xff] }
  0x6e   : > { %13669 = vmatprep.mubr.msk.f32.mxu0 %vm338_vm3, %v271_v49  ;;  %v323_v49 = vld [vmem:[%s15264_s27 + $0x310] sm:$0xff] }
  0x71   : > { %13670 = vmatmul.mubr.msk.f32.gmra.mrb[46].mxu0 %vm338_vm3, %v272_v53  ;;  %v327_v53 = vld [vmem:[%s15264_s27 + $0x330] sm:$0xff] }
  0x72   : > { %13672 = vmatprep.mubr.msk.f32.mxu0 %vm338_vm3, %v273_v54  ;;  %v328_v54 = vld [vmem:[%s15264_s27 + $0x338] sm:$0xff] }
  0x75   : > { %13673 = vmatmul.mubr.msk.f32.gmra.mrb[48].mxu0 %vm338_vm3, %v274_v61 }
  0x76   : > { %13675 = vmatprep.mubr.msk.f32.mxu0 %vm338_vm3, %v275_v62 }
  0x79   : > { %13676 = vmatmul.mubr.msk.f32.gmra.mrb[50].mxu0 %vm338_vm3, %v276_v2 }
  0x7a   : > { %13678 = vmatprep.mubr.msk.f32.mxu0 %vm338_vm3, %v277_v3 }
  0x7d   : > { %13679 = vmatmul.mubr.msk.f32.gmra.mrb[52].mxu0 %vm338_vm3, %v278_v4 }
  0x7e   : > { %13681 = vmatprep.mubr.msk.f32.mxu0 %vm338_vm3, %v279_v5 }
  0x81   : > { %13682 = vmatmul.mubr.msk.f32.gmra.mrb[54].mxu0 %vm338_vm3, %v280_v6 }
  0x82   : > { %13684 = vmatprep.mubr.msk.f32.mxu0 %vm338_vm3, %v281_v7 }
  0x85   : > { %13685 = vmatmul.mubr.msk.f32.gmra.mrb[56].mxu0 %vm338_vm3, %v282_v8 }
  0x86   : > { %13687 = vmatprep.mubr.msk.f32.mxu0 %vm338_vm3, %v283_v9 }
  0x89   : > { %13688 = vmatmul.mubr.msk.f32.gmra.mrb[58].mxu0 %vm338_vm3, %v284_v10 }
  0x8a   : > { %13690 = vmatprep.mubr.msk.f32.mxu0 %vm338_vm3, %v285_v11 }
  0x8d   : > { %13691 = vmatmul.mubr.msk.f32.gmra.mrb[60].mxu0 %vm338_vm3, %v286_v12 }
  0x8e   : > { %13693 = vmatprep.mubr.msk.f32.mxu0 %vm338_vm3, %v287_v13 }
  0x91   : > { %13694 = vmatmul.mubr.msk.f32.gmra.mrb[62].mxu0 %vm338_vm3, %v288_v14 }
  0x92   : > { %13696 = vmatprep.mubr.msk.f32.mxu0 %vm338_vm3, %v289_v15 }
  0x95   : > { %13697 = vmatmul.mubr.msk.f32.gmra.mrb[64].mxu0 %vm338_vm3, %v290_v16 }
  0x96   : > { %13699 = vmatprep.mubr.msk.f32.mxu0 %vm338_vm3, %v291_v17 }
  0x99   : > { %13700 = vmatmul.mubr.msk.f32.gmra.mrb[66].mxu0 %vm338_vm3, %v292_v18 }
  0x9a   : > { %13702 = vmatprep.mubr.msk.f32.mxu0 %vm338_vm3, %v293_v19 }
  0x9d   : > { %13703 = vmatmul.mubr.msk.f32.gmra.mrb[68].mxu0 %vm338_vm3, %v294_v20 }
  0x9e   : > { %13705 = vmatprep.mubr.msk.f32.mxu0 %vm338_vm3, %v295_v21 }
  0xa1   : > { %13706 = vmatmul.mubr.msk.f32.gmra.mrb[70].mxu0 %vm338_vm3, %v296_v22 }
  0xa2   : > { %13708 = vmatprep.mubr.msk.f32.mxu0 %vm338_vm3, %v297_v23 }
  0xa5   : > { %13709 = vmatmul.mubr.msk.f32.gmra.mrb[72].mxu0 %vm338_vm3, %v298_v24 }
  0xa6   : > { %13711 = vmatprep.mubr.msk.f32.mxu0 %vm338_vm3, %v299_v25 }
  0xa9   : > { %13712 = vmatmul.mubr.msk.f32.gmra.mrb[74].mxu0 %vm338_vm3, %v300_v26 }
  0xaa   : > { %13714 = vmatprep.mubr.msk.f32.mxu0 %vm338_vm3, %v301_v27 }
  0xad   : > { %13715 = vmatmul.mubr.msk.f32.gmra.mrb[76].mxu0 %vm338_vm3, %v302_v28 }
  0xae   : > { %13717 = vmatprep.mubr.msk.f32.mxu0 %vm338_vm3, %v303_v29 }
  0xb1   : > { %13718 = vmatmul.mubr.msk.f32.gmra.mrb[78].mxu0 %vm338_vm3, %v304_v30 }
  0xb2   : > { %13720 = vmatprep.mubr.msk.f32.mxu0 %vm338_vm3, %v305_v31 }
  0xb5   : > { %13721 = vmatmul.mubr.msk.f32.gmra.mrb[80].mxu0 %vm338_vm3, %v306_v32 }
  0xb6   : > { %13723 = vmatprep.mubr.msk.f32.mxu0 %vm338_vm3, %v307_v33 }
  0xb9   : > { %13724 = vmatmul.mubr.msk.f32.gmra.mrb[82].mxu0 %vm338_vm3, %v308_v34 }
  0xba   : > { %13726 = vmatprep.mubr.msk.f32.mxu0 %vm338_vm3, %v309_v35 }
  0xbd   : > { %13727 = vmatmul.mubr.msk.f32.gmra.mrb[84].mxu0 %vm338_vm3, %v310_v36 }
  0xbe   : > { %13729 = vmatprep.mubr.msk.f32.mxu0 %vm338_vm3, %v311_v37 }
  0xc1   : > { %13730 = vmatmul.mubr.msk.f32.gmra.mrb[86].mxu0 %vm338_vm3, %v312_v38 }
  0xc2   : > { %13732 = vmatprep.mubr.msk.f32.mxu0 %vm338_vm3, %v313_v39 }
  0xc5   : > { %13733 = vmatmul.mubr.msk.f32.gmra.mrb[88].mxu0 %vm338_vm3, %v314_v40 }
  0xc6   : > { %13735 = vmatprep.mubr.msk.f32.mxu0 %vm338_vm3, %v315_v41 }
  0xc9   : > { %13736 = vmatmul.mubr.msk.f32.gmra.mrb[90].mxu0 %vm338_vm3, %v316_v42 }
  0xca   : > { %13738 = vmatprep.mubr.msk.f32.mxu0 %vm338_vm3, %v317_v43 }
  0xcd   : > { %13739 = vmatmul.mubr.msk.f32.gmra.mrb[92].mxu0 %vm338_vm3, %v318_v44 }
  0xce   : > { %13741 = vmatprep.mubr.msk.f32.mxu0 %vm338_vm3, %v319_v45 }
  0xd1   : > { %13742 = vmatmul.mubr.msk.f32.gmra.mrb[94].mxu0 %vm338_vm3, %v320_v46 }
  0xd2   : > { %13744 = vmatprep.mubr.msk.f32.mxu0 %vm338_vm3, %v321_v47 }
  0xd5   : > { %13745 = vmatmul.mubr.msk.f32.gmra.mrb[96].mxu0 %vm338_vm3, %v322_v48 }
  0xd6   : > { %13747 = vmatprep.mubr.msk.f32.mxu0 %vm338_vm3, %v323_v49 }
  0xd9   : > { %13748 = vmatmul.mubr.msk.f32.gmra.mrb[98].mxu0 %vm338_vm3, %v324_v50 }
  0xda   : > { %13750 = vmatprep.mubr.msk.f32.mxu0 %vm338_vm3, %v325_v51 }
  0xdd   : > { %13751 = vmatmul.mubr.msk.f32.gmra.mrb[100].mxu0 %vm338_vm3, %v326_v52 }
  0xde   : > { %13753 = vmatprep.mubr.msk.f32.mxu0 %vm338_vm3, %v327_v53 }
  0xe1   : > { %13754 = vmatmul.mubr.msk.f32.gmra.mrb[102].mxu0 %vm338_vm3, %v328_v54 }
  0xe8   : > { %v13602_v56 = vpop.f32.mrb[0].mxu0 }
  0xe9   : > { %v727_v57 = vadd.f32 %v13602_v56, %v15501_v55  ;;  %v721_v58 = vpop.f32.mrb[1].mxu0 }
  0xea   : > { %v722_v59 = vadd.f32 %v15501_v55, %v721_v58 }
  0xeb   : > { %v1241_v60 = vmax.f32 %v727_v57, 0.0 }
  0xec   : > { %v1240_v61 = vmax.f32 %v722_v59, 0.0  ;;  %v13605_v62 = vpop.f32.mrb[2].mxu0 }
  0xed   : > { %1346 = vst.msk [vmem:[#allocation2 + $0x8] sm:$0xff] %vm1344_vm4, %v1241_v60  ;;  %v737_v63 = vadd.f32 %v13605_v62, %v15501_v55  ;;  %v731_v0 = vpop.f32.mrb[3].mxu0 }
  0xee   : > { %1345 = vst.msk [vmem:[#allocation2] sm:$0xff] %vm1344_vm4, %v1240_v61  ;;  %v732_v1 = vadd.f32 %v15501_v55, %v731_v0 }
  0xef   : > { %v1243_v2 = vmax.f32 %v737_v63, 0.0 }
  0xf0   : > { %v1242_v3 = vmax.f32 %v732_v1, 0.0  ;;  %v13608_v4 = vpop.f32.mrb[4].mxu0 }
  0xf1   : > { %1348 = vst.msk [vmem:[#allocation2 + $0x18] sm:$0xff] %vm1344_vm4, %v1243_v2  ;;  %v747_v5 = vadd.f32 %v13608_v4, %v15501_v55  ;;  %v741_v6 = vpop.f32.mrb[5].mxu0 }
  0xf2   : > { %1347 = vst.msk [vmem:[#allocation2 + $0x10] sm:$0xff] %vm1344_vm4, %v1242_v3  ;;  %v742_v7 = vadd.f32 %v15501_v55, %v741_v6 }
  0xf3   : > { %v1245_v8 = vmax.f32 %v747_v5, 0.0 }
  0xf4   : > { %v1244_v9 = vmax.f32 %v742_v7, 0.0  ;;  %v13611_v10 = vpop.f32.mrb[6].mxu0  ;;  %v1450_v16 = vld [vmem:[#allocation2 + $0x8] sm:$0xff] }
  0xf5   : > { %1350 = vst.msk [vmem:[#allocation2 + $0x28] sm:$0xff] %vm1344_vm4, %v1245_v8  ;;  %v757_v11 = vadd.f32 %v13611_v10, %v15501_v55  ;;  %v751_v12 = vpop.f32.mrb[7].mxu0  ;;  %v1449_v13 = vld [vmem:[#allocation2] sm:$0xff] }
  0xf6   : > { %v3173_v14 = vld [vmem:[#allocation2 + $0x2] sm:$0xff]  ;;  %1349 = vst.msk [vmem:[#allocation2 + $0x20] sm:$0xff] %vm1344_vm4, %v1244_v9  ;;  %v752_v15 = vadd.f32 %v15501_v55, %v751_v12  ;;  %13764 = vmatprep.mubr.msk.f32.mxu1 %vm1344_vm4, %v1449_v13 }
  0xf7   : > { %13996 = vmatprep.mubr.msk.f32.mxu0 %vm1344_vm4, %v3173_v14  ;;  %v1247_v17 = vmax.f32 %v757_v11, 0.0  ;;  %13765 = vmatmul.mubr.msk.f32.vlgmr.msra.gmra.mrb[0].mxu1 %vm1344_vm4, %v1450_v16 }
  0xf8   : > { %v1246_v18 = vmax.f32 %v752_v15, 0.0  ;;  %v13614_v19 = vpop.f32.mrb[8].mxu0 }
  0xf9   : > { %1352 = vst.msk [vmem:[#allocation2 + $0x38] sm:$0xff] %vm1344_vm4, %v1247_v17  ;;  %v767_v20 = vadd.f32 %v13614_v19, %v15501_v55  ;;  %v761_v21 = vpop.f32.mrb[9].mxu0  ;;  %v1451_v22 = vld [vmem:[#allocation2 + $0x10] sm:$0xff] }
  0xfa   : > { %v3174_v23 = vld [vmem:[#allocation2 + $0xa] sm:$0xff]  ;;  %v3175_v24 = vld [vmem:[#allocation2 + $0x12] sm:$0xff]  ;;  %1351 = vst.msk [vmem:[#allocation2 + $0x30] sm:$0xff] %vm1344_vm4, %v1246_v18  ;;  %v762_v25 = vadd.f32 %v15501_v55, %v761_v21  ;;  %13767 = vmatprep.mubr.msk.f32.mxu1 %vm1344_vm4, %v1451_v22 }
  0xfb   : > { %13997 = vmatmul.mubr.msk.f32.vlgmr.msra.gmra.mrb[104].mxu0 %vm1344_vm4, %v3174_v23  ;;  %v1249_v26 = vmax.f32 %v767_v20, 0.0 }
  0xfc   : > { %13999 = vmatprep.mubr.msk.f32.mxu0 %vm1344_vm4, %v3175_v24  ;;  %v1248_v27 = vmax.f32 %v762_v25, 0.0  ;;  %v13617_v28 = vpop.f32.mrb[10].mxu0  ;;  %v1453_v34 = vld [vmem:[#allocation2 + $0x28] sm:$0xff] }
  0xfd   : > { %1354 = vst.msk [vmem:[#allocation2 + $0x48] sm:$0xff] %vm1344_vm4, %v1249_v26  ;;  %v777_v29 = vadd.f32 %v13617_v28, %v15501_v55  ;;  %v771_v30 = vpop.f32.mrb[11].mxu0  ;;  %v1452_v31 = vld [vmem:[#allocation2 + $0x20] sm:$0xff] }
  0xfe   : > { %v3176_v32 = vld [vmem:[#allocation2 + $0x22] sm:$0xff]  ;;  %1353 = vst.msk [vmem:[#allocation2 + $0x40] sm:$0xff] %vm1344_vm4, %v1248_v27  ;;  %v772_v33 = vadd.f32 %v15501_v55, %v771_v30  ;;  %13768 = vmatmul.mubr.msk.f32.gmra.mrb[2].mxu1 %vm1344_vm4, %v1452_v31 }
  0xff   : > { %14000 = vmatmul.mubr.msk.f32.gmra.mrb[106].mxu0 %vm1344_vm4, %v3176_v32  ;;  %v1251_v35 = vmax.f32 %v777_v29, 0.0  ;;  %13770 = vmatprep.mubr.msk.f32.mxu1 %vm1344_vm4, %v1453_v34 }
 0x100   : > { %v1250_v36 = vmax.f32 %v772_v33, 0.0  ;;  %v13620_v37 = vpop.f32.mrb[12].mxu0 }
 0x101   : > { %1356 = vst.msk [vmem:[#allocation2 + $0x58] sm:$0xff] %vm1344_vm4, %v1251_v35  ;;  %v787_v38 = vadd.f32 %v13620_v37, %v15501_v55  ;;  %v781_v39 = vpop.f32.mrb[13].mxu0  ;;  %v1454_v40 = vld [vmem:[#allocation2 + $0x30] sm:$0xff] }
 0x102   : > { %v3177_v41 = vld [vmem:[#allocation2 + $0x2a] sm:$0xff]  ;;  %v3178_v42 = vld [vmem:[#allocation2 + $0x32] sm:$0xff]  ;;  %1355 = vst.msk [vmem:[#allocation2 + $0x50] sm:$0xff] %vm1344_vm4, %v1250_v36  ;;  %v782_v43 = vadd.f32 %v15501_v55, %v781_v39  ;;  %13771 = vmatmul.mubr.msk.f32.gmra.mrb[4].mxu1 %vm1344_vm4, %v1454_v40 }
 0x103   : > { %14002 = vmatprep.mubr.msk.f32.mxu0 %vm1344_vm4, %v3177_v41  ;;  %v1253_v44 = vmax.f32 %v787_v38, 0.0 }
 0x104   : > { %14003 = vmatmul.mubr.msk.f32.gmra.mrb[108].mxu0 %vm1344_vm4, %v3178_v42  ;;  %v1252_v45 = vmax.f32 %v782_v43, 0.0  ;;  %v13623_v46 = vpop.f32.mrb[14].mxu0  ;;  %v1456_v52 = vld [vmem:[#allocation2 + $0x48] sm:$0xff] }
 0x105   : > { %1358 = vst.msk [vmem:[#allocation2 + $0x68] sm:$0xff] %vm1344_vm4, %v1253_v44  ;;  %v797_v47 = vadd.f32 %v13623_v46, %v15501_v55  ;;  %v791_v48 = vpop.f32.mrb[15].mxu0  ;;  %v1455_v49 = vld [vmem:[#allocation2 + $0x40] sm:$0xff] }
 0x106   : > { %v3179_v50 = vld [vmem:[#allocation2 + $0x42] sm:$0xff]  ;;  %1357 = vst.msk [vmem:[#allocation2 + $0x60] sm:$0xff] %vm1344_vm4, %v1252_v45  ;;  %v792_v51 = vadd.f32 %v15501_v55, %v791_v48  ;;  %13773 = vmatprep.mubr.msk.f32.mxu1 %vm1344_vm4, %v1455_v49 }
 0x107   : > { %14005 = vmatprep.mubr.msk.f32.mxu0 %vm1344_vm4, %v3179_v50  ;;  %v1255_v53 = vmax.f32 %v797_v47, 0.0  ;;  %13774 = vmatmul.mubr.msk.f32.gmra.mrb[6].mxu1 %vm1344_vm4, %v1456_v52 }
 0x108   : > { %v1254_v54 = vmax.f32 %v792_v51, 0.0  ;;  %v13626_v56 = vpop.f32.mrb[16].mxu0 }
 0x109   : > { %1360 = vst.msk [vmem:[#allocation2 + $0x78] sm:$0xff] %vm1344_vm4, %v1255_v53  ;;  %v807_v57 = vadd.f32 %v13626_v56, %v15501_v55  ;;  %v801_v58 = vpop.f32.mrb[17].mxu0  ;;  %v1457_v59 = vld [vmem:[#allocation2 + $0x50] sm:$0xff] }
 0x10a   : > { %v3180_v60 = vld [vmem:[#allocation2 + $0x4a] sm:$0xff]  ;;  %v3181_v61 = vld [vmem:[#allocation2 + $0x52] sm:$0xff]  ;;  %1359 = vst.msk [vmem:[#allocation2 + $0x70] sm:$0xff] %vm1344_vm4, %v1254_v54  ;;  %v802_v62 = vadd.f32 %v15501_v55, %v801_v58  ;;  %13776 = vmatprep.mubr.msk.f32.mxu1 %vm1344_vm4, %v1457_v59 }
 0x10b   : > { %14006 = vmatmul.mubr.msk.f32.gmra.mrb[110].mxu0 %vm1344_vm4, %v3180_v60  ;;  %v1257_v63 = vmax.f32 %v807_v57, 0.0 }
 0x10c   : > { %14008 = vmatprep.mubr.msk.f32.mxu0 %vm1344_vm4, %v3181_v61  ;;  %v1256_v0 = vmax.f32 %v802_v62, 0.0  ;;  %v13629_v1 = vpop.f32.mrb[18].mxu0  ;;  %v1459_v7 = vld [vmem:[#allocation2 + $0x68] sm:$0xff] }
 0x10d   : > { %1362 = vst.msk [vmem:[#allocation2 + $0x88] sm:$0xff] %vm1344_vm4, %v1257_v63  ;;  %v817_v2 = vadd.f32 %v13629_v1, %v15501_v55  ;;  %v811_v3 = vpop.f32.mrb[19].mxu0  ;;  %v1458_v4 = vld [vmem:[#allocation2 + $0x60] sm:$0xff] }
 0x10e   : > { %v3182_v5 = vld [vmem:[#allocation2 + $0x62] sm:$0xff]  ;;  %1361 = vst.msk [vmem:[#allocation2 + $0x80] sm:$0xff] %vm1344_vm4, %v1256_v0  ;;  %v812_v6 = vadd.f32 %v15501_v55, %v811_v3  ;;  %13777 = vmatmul.mubr.msk.f32.gmra.mrb[8].mxu1 %vm1344_vm4, %v1458_v4 }
 0x10f   : > { %14009 = vmatmul.mubr.msk.f32.gmra.mrb[112].mxu0 %vm1344_vm4, %v3182_v5  ;;  %v1259_v8 = vmax.f32 %v817_v2, 0.0  ;;  %13779 = vmatprep.mubr.msk.f32.mxu1 %vm1344_vm4, %v1459_v7  ;;  %v12023_v63 = vld [vmem:[%s18405_s3 + $0x20] sm:$0xff]  ;;  %v12024_v0 = vld [vmem:[%s18405_s3 + $0x28] sm:$0xff] }
 0x110   : > { %v1258_v9 = vmax.f32 %v812_v6, 0.0  ;;  %v13632_v10 = vpop.f32.mrb[20].mxu0  ;;  %v15030_v2 = vpack.c.bf16 %v12024_v0, %v12023_v63 }
 0x111   : > { %1364 = vst.msk [vmem:[#allocation2 + $0x98] sm:$0xff] %vm1344_vm4, %v1259_v8  ;;  %v827_v11 = vadd.f32 %v13632_v10, %v15501_v55  ;;  %v821_v12 = vpop.f32.mrb[21].mxu0  ;;  %v1460_v13 = vld [vmem:[#allocation2 + $0x70] sm:$0xff] }
 0x112   : > { %v3183_v14 = vld [vmem:[#allocation2 + $0x6a] sm:$0xff]  ;;  %v3184_v15 = vld [vmem:[#allocation2 + $0x72] sm:$0xff]  ;;  %1363 = vst.msk [vmem:[#allocation2 + $0x90] sm:$0xff] %vm1344_vm4, %v1258_v9  ;;  %v822_v16 = vadd.f32 %v15501_v55, %v821_v12  ;;  %13780 = vmatmul.mubr.msk.f32.gmra.mrb[10].mxu1 %vm1344_vm4, %v1460_v13  ;;  %15031 = vmatprep.subr.bf16.mxu1 %v15030_v2 }
 0x113   : > { %14011 = vmatprep.mubr.msk.f32.mxu0 %vm1344_vm4, %v3183_v14  ;;  %v1261_v17 = vmax.f32 %v827_v11, 0.0  ;;  %15033 = vmatpush3.bf16.msra.mxu1 %v15030_v2  ;;  %v12251_v14 = vld [vmem:[%s18405_s3 + $0x80] sm:$0xff] }
 0x114   : > { %14012 = vmatmul.mubr.msk.f32.gmra.mrb[114].mxu0 %vm1344_vm4, %v3184_v15  ;;  %v1260_v18 = vmax.f32 %v822_v16, 0.0  ;;  %v13635_v19 = vpop.f32.mrb[22].mxu0  ;;  %v1462_v25 = vld [vmem:[#allocation2 + $0x88] sm:$0xff] }
 0x115   : > { %1366 = vst.msk [vmem:[#allocation2 + $0xa8] sm:$0xff] %vm1344_vm4, %v1261_v17  ;;  %v837_v20 = vadd.f32 %v13635_v19, %v15501_v55  ;;  %v831_v21 = vpop.f32.mrb[23].mxu0  ;;  %v1461_v22 = vld [vmem:[#allocation2 + $0x80] sm:$0xff]  ;;  %v12252_v15 = vld [vmem:[%s18405_s3 + $0x88] sm:$0xff] }
 0x116   : > { %v3185_v23 = vld [vmem:[#allocation2 + $0x82] sm:$0xff]  ;;  %1365 = vst.msk [vmem:[#allocation2 + $0xa0] sm:$0xff] %vm1344_vm4, %v1260_v18  ;;  %v832_v24 = vadd.f32 %v15501_v55, %v831_v21  ;;  %13782 = vmatprep.mubr.msk.f32.mxu1 %vm1344_vm4, %v1461_v22 }
 0x117   : > { %14014 = vmatprep.mubr.msk.f32.mxu0 %vm1344_vm4, %v3185_v23  ;;  %v1263_v26 = vmax.f32 %v837_v20, 0.0  ;;  %13783 = vmatmul.mubr.msk.f32.gmra.mrb[12].mxu1 %vm1344_vm4, %v1462_v25  ;;  %v15054_v20 = vpack.c.bf16 %v12252_v15, %v12251_v14  ;;  %v12026_v25 = vld [vmem:[%s18405_s3 + $0x38] sm:$0xff] }
 0x118   : > { %v1262_v27 = vmax.f32 %v832_v24, 0.0  ;;  %v13638_v28 = vpop.f32.mrb[24].mxu0  ;;  %v12025_v24 = vld [vmem:[%s18405_s3 + $0x30] sm:$0xff] }
 0x119   : > { %1368 = vst.msk [vmem:[#allocation2 + $0xb8] sm:$0xff] %vm1344_vm4, %v1263_v26  ;;  %v847_v29 = vadd.f32 %v13638_v28, %v15501_v55  ;;  %v841_v30 = vpop.f32.mrb[25].mxu0  ;;  %v1463_v31 = vld [vmem:[#allocation2 + $0x90] sm:$0xff]  ;;  %15055 = vmatprep.subr.bf16.mxu0 %v15054_v20  ;;  %v15034_v28 = vpack.c.bf16 %v12026_v25, %v12025_v24 }
 0x11a   : > { %v3186_v32 = vld [vmem:[#allocation2 + $0x8a] sm:$0xff]  ;;  %v3187_v33 = vld [vmem:[#allocation2 + $0x92] sm:$0xff]  ;;  %1367 = vst.msk [vmem:[#allocation2 + $0xb0] sm:$0xff] %vm1344_vm4, %v1262_v27  ;;  %v842_v34 = vadd.f32 %v15501_v55, %v841_v30  ;;  %13785 = vmatprep.mubr.msk.f32.mxu1 %vm1344_vm4, %v1463_v31  ;;  %15057 = vmatpush3.bf16.msra.mxu0 %v15054_v20 }
 0x11b   : > { %14015 = vmatmul.mubr.msk.f32.gmra.mrb[116].mxu0 %vm1344_vm4, %v3186_v32  ;;  %v1265_v35 = vmax.f32 %v847_v29, 0.0  ;;  %v12253_v29 = vld [vmem:[%s18405_s3 + $0x90] sm:$0xff]  ;;  %v12254_v30 = vld [vmem:[%s18405_s3 + $0x98] sm:$0xff]  ;;  %15035 = vmatprep.subr.bf16.mxu1 %v15034_v28 }
 0x11c   : > { %14017 = vmatprep.mubr.msk.f32.mxu0 %vm1344_vm4, %v3187_v33  ;;  %v1264_v36 = vmax.f32 %v842_v34, 0.0  ;;  %v13641_v37 = vpop.f32.mrb[26].mxu0  ;;  %v1465_v43 = vld [vmem:[#allocation2 + $0xa8] sm:$0xff]  ;;  %15037 = vmatpush3.bf16.msra.mxu1 %v15034_v28 }
 0x11d   : > { %1370 = vst.msk [vmem:[#allocation2 + $0xc8] sm:$0xff] %vm1344_vm4, %v1265_v35  ;;  %v857_v38 = vadd.f32 %v13641_v37, %v15501_v55  ;;  %v851_v39 = vpop.f32.mrb[27].mxu0  ;;  %v1464_v40 = vld [vmem:[#allocation2 + $0xa0] sm:$0xff] }
 0x11e   : > { %v3188_v41 = vld [vmem:[#allocation2 + $0xa2] sm:$0xff]  ;;  %1369 = vst.msk [vmem:[#allocation2 + $0xc0] sm:$0xff] %vm1344_vm4, %v1264_v36  ;;  %v852_v42 = vadd.f32 %v15501_v55, %v851_v39  ;;  %13786 = vmatmul.mubr.msk.f32.gmra.mrb[14].mxu1 %vm1344_vm4, %v1464_v40  ;;  %v15058_v36 = vpack.c.bf16 %v12254_v30, %v12253_v29 }
 0x11f   : > { %14018 = vmatmul.mubr.msk.f32.gmra.mrb[118].mxu0 %vm1344_vm4, %v3188_v41  ;;  %v1267_v44 = vmax.f32 %v857_v38, 0.0  ;;  %13788 = vmatprep.mubr.msk.f32.mxu1 %vm1344_vm4, %v1465_v43 }
 0x120   : > { %v1266_v45 = vmax.f32 %v852_v42, 0.0  ;;  %v13644_v46 = vpop.f32.mrb[28].mxu0  ;;  %15059 = vmatprep.subr.bf16.mxu0 %v15058_v36 }
 0x121   : > { %1372 = vst.msk [vmem:[#allocation2 + $0xd8] sm:$0xff] %vm1344_vm4, %v1267_v44  ;;  %v867_v47 = vadd.f32 %v13644_v46, %v15501_v55  ;;  %v861_v48 = vpop.f32.mrb[29].mxu0  ;;  %v1466_v49 = vld [vmem:[#allocation2 + $0xb0] sm:$0xff]  ;;  %15061 = vmatpush3.bf16.msra.mxu0 %v15058_v36 }
 0x122   : > { %v3189_v50 = vld [vmem:[#allocation2 + $0xaa] sm:$0xff]  ;;  %v3190_v51 = vld [vmem:[#allocation2 + $0xb2] sm:$0xff]  ;;  %1371 = vst.msk [vmem:[#allocation2 + $0xd0] sm:$0xff] %vm1344_vm4, %v1266_v45  ;;  %v862_v52 = vadd.f32 %v15501_v55, %v861_v48  ;;  %13789 = vmatmul.mubr.msk.f32.gmra.mrb[16].mxu1 %vm1344_vm4, %v1466_v49 }
 0x123   : > { %14020 = vmatprep.mubr.msk.f32.mxu0 %vm1344_vm4, %v3189_v50  ;;  %v1269_v53 = vmax.f32 %v867_v47, 0.0 }
 0x124   : > { %14021 = vmatmul.mubr.msk.f32.gmra.mrb[120].mxu0 %vm1344_vm4, %v3190_v51  ;;  %v1268_v54 = vmax.f32 %v862_v52, 0.0  ;;  %v13647_v56 = vpop.f32.mrb[30].mxu0  ;;  %v1468_v62 = vld [vmem:[#allocation2 + $0xc8] sm:$0xff] }
 0x125   : > { %1374 = vst.msk [vmem:[#allocation2 + $0xe8] sm:$0xff] %vm1344_vm4, %v1269_v53  ;;  %v877_v57 = vadd.f32 %v13647_v56, %v15501_v55  ;;  %v871_v58 = vpop.f32.mrb[31].mxu0  ;;  %v1467_v59 = vld [vmem:[#allocation2 + $0xc0] sm:$0xff] }
 0x126   : > { %v3191_v60 = vld [vmem:[#allocation2 + $0xc2] sm:$0xff]  ;;  %1373 = vst.msk [vmem:[#allocation2 + $0xe0] sm:$0xff] %vm1344_vm4, %v1268_v54  ;;  %v872_v61 = vadd.f32 %v15501_v55, %v871_v58  ;;  %13791 = vmatprep.mubr.msk.f32.mxu1 %vm1344_vm4, %v1467_v59 }
 0x127   : > { %14023 = vmatprep.mubr.msk.f32.mxu0 %vm1344_vm4, %v3191_v60  ;;  %v1271_v1 = vmax.f32 %v877_v57, 0.0  ;;  %13792 = vmatmul.mubr.msk.f32.gmra.mrb[18].mxu1 %vm1344_vm4, %v1468_v62 }
 0x128   : > { %v1270_v3 = vmax.f32 %v872_v61, 0.0  ;;  %v13650_v4 = vpop.f32.mrb[32].mxu0 }
 0x129   : > { %1376 = vst.msk [vmem:[#allocation2 + $0xf8] sm:$0xff] %vm1344_vm4, %v1271_v1  ;;  %v887_v5 = vadd.f32 %v13650_v4, %v15501_v55  ;;  %v881_v6 = vpop.f32.mrb[33].mxu0  ;;  %v1469_v7 = vld [vmem:[#allocation2 + $0xd0] sm:$0xff] }
 0x12a   : > { %v3192_v8 = vld [vmem:[#allocation2 + $0xca] sm:$0xff]  ;;  %v3193_v9 = vld [vmem:[#allocation2 + $0xd2] sm:$0xff]  ;;  %1375 = vst.msk [vmem:[#allocation2 + $0xf0] sm:$0xff] %vm1344_vm4, %v1270_v3  ;;  %v882_v10 = vadd.f32 %v15501_v55, %v881_v6  ;;  %13794 = vmatprep.mubr.msk.f32.mxu1 %vm1344_vm4, %v1469_v7 }
 0x12b   : > { %14024 = vmatmul.mubr.msk.f32.gmra.mrb[122].mxu0 %vm1344_vm4, %v3192_v8  ;;  %v1273_v11 = vmax.f32 %v887_v5, 0.0 }
 0x12c   : > { %14026 = vmatprep.mubr.msk.f32.mxu0 %vm1344_vm4, %v3193_v9  ;;  %v1272_v12 = vmax.f32 %v882_v10, 0.0  ;;  %v13653_v13 = vpop.f32.mrb[34].mxu0  ;;  %v1471_v22 = vld [vmem:[#allocation2 + $0xe8] sm:$0xff] }
 0x12d   : > { %1378 = vst.msk [vmem:[#allocation2 + $0x108] sm:$0xff] %vm1344_vm4, %v1273_v11  ;;  %v897_v16 = vadd.f32 %v13653_v13, %v15501_v55  ;;  %v891_v17 = vpop.f32.mrb[35].mxu0  ;;  %v1470_v18 = vld [vmem:[#allocation2 + $0xe0] sm:$0xff] }
 0x12e   : > { %v3194_v19 = vld [vmem:[#allocation2 + $0xe2] sm:$0xff]  ;;  %1377 = vst.msk [vmem:[#allocation2 + $0x100] sm:$0xff] %vm1344_vm4, %v1272_v12  ;;  %v892_v21 = vadd.f32 %v15501_v55, %v891_v17  ;;  %13795 = vmatmul.mubr.msk.f32.gmra.mrb[20].mxu1 %vm1344_vm4, %v1470_v18 }
 0x12f   : > { %14027 = vmatmul.mubr.msk.f32.gmra.mrb[124].mxu0 %vm1344_vm4, %v3194_v19  ;;  %v1275_v23 = vmax.f32 %v897_v16, 0.0  ;;  %13797 = vmatprep.mubr.msk.f32.mxu1 %vm1344_vm4, %v1471_v22 }
 0x130   : > { %v1274_v26 = vmax.f32 %v892_v21, 0.0  ;;  %v13656_v27 = vpop.f32.mrb[36].mxu0 }
 0x131   : > { %1380 = vst.msk [vmem:[#allocation2 + $0x118] sm:$0xff] %vm1344_vm4, %v1275_v23  ;;  %v907_v31 = vadd.f32 %v13656_v27, %v15501_v55  ;;  %v901_v32 = vpop.f32.mrb[37].mxu0  ;;  %v1472_v33 = vld [vmem:[#allocation2 + $0xf0] sm:$0xff] }
 0x132   : > { %v3195_v34 = vld [vmem:[#allocation2 + $0xea] sm:$0xff]  ;;  %v3196_v35 = vld [vmem:[#allocation2 + $0xf2] sm:$0xff]  ;;  %1379 = vst.msk [vmem:[#allocation2 + $0x110] sm:$0xff] %vm1344_vm4, %v1274_v26  ;;  %v902_v37 = vadd.f32 %v15501_v55, %v901_v32  ;;  %13798 = vmatmul.mubr.msk.f32.gmra.mrb[22].mxu1 %vm1344_vm4, %v1472_v33 }
 0x133   : > { %14029 = vmatprep.mubr.msk.f32.mxu0 %vm1344_vm4, %v3195_v34  ;;  %v1277_v38 = vmax.f32 %v907_v31, 0.0 }
 0x134   : > { %14030 = vmatmul.mubr.msk.f32.gmra.mrb[126].mxu0 %vm1344_vm4, %v3196_v35  ;;  %v1276_v39 = vmax.f32 %v902_v37, 0.0  ;;  %v13659_v40 = vpop.f32.mrb[38].mxu0  ;;  %v1474_v46 = vld [vmem:[#allocation2 + $0x108] sm:$0xff] }
 0x135   : > { %1382 = vst.msk [vmem:[#allocation2 + $0x128] sm:$0xff] %vm1344_vm4, %v1277_v38  ;;  %v917_v41 = vadd.f32 %v13659_v40, %v15501_v55  ;;  %v911_v42 = vpop.f32.mrb[39].mxu0  ;;  %v1473_v43 = vld [vmem:[#allocation2 + $0x100] sm:$0xff] }
 0x136   : > { %v3197_v44 = vld [vmem:[#allocation2 + $0x102] sm:$0xff]  ;;  %1381 = vst.msk [vmem:[#allocation2 + $0x120] sm:$0xff] %vm1344_vm4, %v1276_v39  ;;  %v912_v45 = vadd.f32 %v15501_v55, %v911_v42  ;;  %13800 = vmatprep.mubr.msk.f32.mxu1 %vm1344_vm4, %v1473_v43 }
 0x137   : > { %14032 = vmatprep.mubr.msk.f32.mxu0 %vm1344_vm4, %v3197_v44  ;;  %v1279_v47 = vmax.f32 %v917_v41, 0.0  ;;  %13801 = vmatmul.mubr.msk.f32.gmra.mrb[24].mxu1 %vm1344_vm4, %v1474_v46 }
 0x138   : > { %v1278_v48 = vmax.f32 %v912_v45, 0.0  ;;  %v13662_v49 = vpop.f32.mrb[40].mxu0 }
 0x139   : > { %1384 = vst.msk [vmem:[#allocation2 + $0x138] sm:$0xff] %vm1344_vm4, %v1279_v47  ;;  %v927_v50 = vadd.f32 %v13662_v49, %v15501_v55  ;;  %v921_v51 = vpop.f32.mrb[41].mxu0  ;;  %v1475_v52 = vld [vmem:[#allocation2 + $0x110] sm:$0xff] }
 0x13a   : > { %v3198_v53 = vld [vmem:[#allocation2 + $0x10a] sm:$0xff]  ;;  %v3199_v54 = vld [vmem:[#allocation2 + $0x112] sm:$0xff]  ;;  %1383 = vst.msk [vmem:[#allocation2 + $0x130] sm:$0xff] %vm1344_vm4, %v1278_v48  ;;  %v922_v56 = vadd.f32 %v15501_v55, %v921_v51  ;;  %13803 = vmatprep.mubr.msk.f32.mxu1 %vm1344_vm4, %v1475_v52 }
 0x13b   : > { %14033 = vmatmul.mubr.msk.f32.gmra.mrb[128].mxu0 %vm1344_vm4, %v3198_v53  ;;  %v1281_v57 = vmax.f32 %v927_v50, 0.0 }
 0x13c   : > { %14035 = vmatprep.mubr.msk.f32.mxu0 %vm1344_vm4, %v3199_v54  ;;  %v1280_v58 = vmax.f32 %v922_v56, 0.0  ;;  %v13665_v59 = vpop.f32.mrb[42].mxu0  ;;  %v1477_v1 = vld [vmem:[#allocation2 + $0x128] sm:$0xff] }
 0x13d   : > { %1386 = vst.msk [vmem:[#allocation2 + $0x148] sm:$0xff] %vm1344_vm4, %v1281_v57  ;;  %v937_v60 = vadd.f32 %v13665_v59, %v15501_v55  ;;  %v931_v61 = vpop.f32.mrb[43].mxu0  ;;  %v1476_v62 = vld [vmem:[#allocation2 + $0x120] sm:$0xff] }
 0x13e   : > { %v3200_v63 = vld [vmem:[#allocation2 + $0x122] sm:$0xff]  ;;  %1385 = vst.msk [vmem:[#allocation2 + $0x140] sm:$0xff] %vm1344_vm4, %v1280_v58  ;;  %v932_v0 = vadd.f32 %v15501_v55, %v931_v61  ;;  %13804 = vmatmul.mubr.msk.f32.gmra.mrb[26].mxu1 %vm1344_vm4, %v1476_v62 }
 0x13f   : > { %14036 = vmatmul.mubr.msk.f32.gmra.mrb[130].mxu0 %vm1344_vm4, %v3200_v63  ;;  %v1283_v2 = vmax.f32 %v937_v60, 0.0  ;;  %13806 = vmatprep.mubr.msk.f32.mxu1 %vm1344_vm4, %v1477_v1 }
 0x140   : > { %v1282_v3 = vmax.f32 %v932_v0, 0.0  ;;  %v13668_v4 = vpop.f32.mrb[44].mxu0 }
 0x141   : > { %1388 = vst.msk [vmem:[#allocation2 + $0x158] sm:$0xff] %vm1344_vm4, %v1283_v2  ;;  %v947_v5 = vadd.f32 %v13668_v4, %v15501_v55  ;;  %v941_v6 = vpop.f32.mrb[45].mxu0  ;;  %v1478_v7 = vld [vmem:[#allocation2 + $0x130] sm:$0xff] }
 0x142   : > { %v3201_v8 = vld [vmem:[#allocation2 + $0x12a] sm:$0xff]  ;;  %v3202_v9 = vld [vmem:[#allocation2 + $0x132] sm:$0xff]  ;;  %1387 = vst.msk [vmem:[#allocation2 + $0x150] sm:$0xff] %vm1344_vm4, %v1282_v3  ;;  %v942_v10 = vadd.f32 %v15501_v55, %v941_v6  ;;  %13807 = vmatmul.mubr.msk.f32.gmra.mrb[28].mxu1 %vm1344_vm4, %v1478_v7 }
 0x143   : > { %14038 = vmatprep.mubr.msk.f32.mxu0 %vm1344_vm4, %v3201_v8  ;;  %v1285_v11 = vmax.f32 %v947_v5, 0.0 }
 0x144   : > { %14039 = vmatmul.mubr.msk.f32.gmra.mrb[132].mxu0 %vm1344_vm4, %v3202_v9  ;;  %v1284_v12 = vmax.f32 %v942_v10, 0.0  ;;  %v13671_v13 = vpop.f32.mrb[46].mxu0  ;;  %v1480_v19 = vld [vmem:[#allocation2 + $0x148] sm:$0xff] }
 0x145   : > { %1390 = vst.msk [vmem:[#allocation2 + $0x168] sm:$0xff] %vm1344_vm4, %v1285_v11  ;;  %v957_v14 = vadd.f32 %v13671_v13, %v15501_v55  ;;  %v951_v15 = vpop.f32.mrb[47].mxu0  ;;  %v1479_v16 = vld [vmem:[#allocation2 + $0x140] sm:$0xff] }
 0x146   : > { %v3203_v17 = vld [vmem:[#allocation2 + $0x142] sm:$0xff]  ;;  %1389 = vst.msk [vmem:[#allocation2 + $0x160] sm:$0xff] %vm1344_vm4, %v1284_v12  ;;  %v952_v18 = vadd.f32 %v15501_v55, %v951_v15  ;;  %13809 = vmatprep.mubr.msk.f32.mxu1 %vm1344_vm4, %v1479_v16 }
 0x147   : > { %14041 = vmatprep.mubr.msk.f32.mxu0 %vm1344_vm4, %v3203_v17  ;;  %v1287_v20 = vmax.f32 %v957_v14, 0.0  ;;  %13810 = vmatmul.mubr.msk.f32.gmra.mrb[30].mxu1 %vm1344_vm4, %v1480_v19 }
 0x148   : > { %v1286_v21 = vmax.f32 %v952_v18, 0.0  ;;  %v13674_v22 = vpop.f32.mrb[48].mxu0 }
 0x149   : > { %1392 = vst.msk [vmem:[#allocation2 + $0x178] sm:$0xff] %vm1344_vm4, %v1287_v20  ;;  %v967_v23 = vadd.f32 %v13674_v22, %v15501_v55  ;;  %v961_v24 = vpop.f32.mrb[49].mxu0  ;;  %v1481_v25 = vld [vmem:[#allocation2 + $0x150] sm:$0xff] }
 0x14a   : > { %v3204_v26 = vld [vmem:[#allocation2 + $0x14a] sm:$0xff]  ;;  %v3205_v27 = vld [vmem:[#allocation2 + $0x152] sm:$0xff]  ;;  %1391 = vst.msk [vmem:[#allocation2 + $0x170] sm:$0xff] %vm1344_vm4, %v1286_v21  ;;  %v962_v28 = vadd.f32 %v15501_v55, %v961_v24  ;;  %13812 = vmatprep.mubr.msk.f32.mxu1 %vm1344_vm4, %v1481_v25 }
 0x14b   : > { %14042 = vmatmul.mubr.msk.f32.gmra.mrb[134].mxu0 %vm1344_vm4, %v3204_v26  ;;  %v1289_v29 = vmax.f32 %v967_v23, 0.0 }
 0x14c   : > { %14044 = vmatprep.mubr.msk.f32.mxu0 %vm1344_vm4, %v3205_v27  ;;  %v1288_v30 = vmax.f32 %v962_v28, 0.0  ;;  %v13677_v31 = vpop.f32.mrb[50].mxu0  ;;  %v1483_v37 = vld [vmem:[#allocation2 + $0x168] sm:$0xff] }
 0x14d   : > { %1394 = vst.msk [vmem:[#allocation2 + $0x188] sm:$0xff] %vm1344_vm4, %v1289_v29  ;;  %v977_v32 = vadd.f32 %v13677_v31, %v15501_v55  ;;  %v971_v33 = vpop.f32.mrb[51].mxu0  ;;  %v1482_v34 = vld [vmem:[#allocation2 + $0x160] sm:$0xff] }
 0x14e   : > { %v3206_v35 = vld [vmem:[#allocation2 + $0x162] sm:$0xff]  ;;  %1393 = vst.msk [vmem:[#allocation2 + $0x180] sm:$0xff] %vm1344_vm4, %v1288_v30  ;;  %v972_v36 = vadd.f32 %v15501_v55, %v971_v33  ;;  %13813 = vmatmul.mubr.msk.f32.gmra.mrb[32].mxu1 %vm1344_vm4, %v1482_v34 }
 0x14f   : > { %14045 = vmatmul.mubr.msk.f32.gmra.mrb[136].mxu0 %vm1344_vm4, %v3206_v35  ;;  %v1291_v38 = vmax.f32 %v977_v32, 0.0  ;;  %13815 = vmatprep.mubr.msk.f32.mxu1 %vm1344_vm4, %v1483_v37 }
 0x150   : > { %v1290_v39 = vmax.f32 %v972_v36, 0.0  ;;  %v13680_v40 = vpop.f32.mrb[52].mxu0 }
 0x151   : > { %1396 = vst.msk [vmem:[#allocation2 + $0x198] sm:$0xff] %vm1344_vm4, %v1291_v38  ;;  %v987_v41 = vadd.f32 %v13680_v40, %v15501_v55  ;;  %v981_v42 = vpop.f32.mrb[53].mxu0  ;;  %v1484_v43 = vld [vmem:[#allocation2 + $0x170] sm:$0xff] }
 0x152   : > { %v3207_v44 = vld [vmem:[#allocation2 + $0x16a] sm:$0xff]  ;;  %v3208_v45 = vld [vmem:[#allocation2 + $0x172] sm:$0xff]  ;;  %1395 = vst.msk [vmem:[#allocation2 + $0x190] sm:$0xff] %vm1344_vm4, %v1290_v39  ;;  %v982_v46 = vadd.f32 %v15501_v55, %v981_v42  ;;  %13816 = vmatmul.mubr.msk.f32.gmra.mrb[34].mxu1 %vm1344_vm4, %v1484_v43 }
 0x153   : > { %14047 = vmatprep.mubr.msk.f32.mxu0 %vm1344_vm4, %v3207_v44  ;;  %v1293_v47 = vmax.f32 %v987_v41, 0.0 }
 0x154   : > { %14048 = vmatmul.mubr.msk.f32.gmra.mrb[138].mxu0 %vm1344_vm4, %v3208_v45  ;;  %v1292_v48 = vmax.f32 %v982_v46, 0.0  ;;  %v13683_v49 = vpop.f32.mrb[54].mxu0  ;;  %v1486_v56 = vld [vmem:[#allocation2 + $0x188] sm:$0xff] }
 0x155   : > { %1398 = vst.msk [vmem:[#allocation2 + $0x1a8] sm:$0xff] %vm1344_vm4, %v1293_v47  ;;  %v997_v50 = vadd.f32 %v13683_v49, %v15501_v55  ;;  %v991_v51 = vpop.f32.mrb[55].mxu0  ;;  %v1485_v52 = vld [vmem:[#allocation2 + $0x180] sm:$0xff] }
 0x156   : > { %v3209_v53 = vld [vmem:[#allocation2 + $0x182] sm:$0xff]  ;;  %1397 = vst.msk [vmem:[#allocation2 + $0x1a0] sm:$0xff] %vm1344_vm4, %v1292_v48  ;;  %v992_v54 = vadd.f32 %v15501_v55, %v991_v51  ;;  %13818 = vmatprep.mubr.msk.f32.mxu1 %vm1344_vm4, %v1485_v52 }
 0x157   : > { %14050 = vmatprep.mubr.msk.f32.mxu0 %vm1344_vm4, %v3209_v53  ;;  %v1295_v57 = vmax.f32 %v997_v50, 0.0  ;;  %13819 = vmatmul.mubr.msk.f32.gmra.mrb[36].mxu1 %vm1344_vm4, %v1486_v56 }
 0x158   : > { %v1294_v58 = vmax.f32 %v992_v54, 0.0  ;;  %v13686_v59 = vpop.f32.mrb[56].mxu0 }
 0x159   : > { %1400 = vst.msk [vmem:[#allocation2 + $0x1b8] sm:$0xff] %vm1344_vm4, %v1295_v57  ;;  %v1007_v60 = vadd.f32 %v13686_v59, %v15501_v55  ;;  %v1001_v61 = vpop.f32.mrb[57].mxu0  ;;  %v1487_v62 = vld [vmem:[#allocation2 + $0x190] sm:$0xff] }
 0x15a   : > { %v3210_v63 = vld [vmem:[#allocation2 + $0x18a] sm:$0xff]  ;;  %v3211_v0 = vld [vmem:[#allocation2 + $0x192] sm:$0xff]  ;;  %1399 = vst.msk [vmem:[#allocation2 + $0x1b0] sm:$0xff] %vm1344_vm4, %v1294_v58  ;;  %v1002_v1 = vadd.f32 %v15501_v55, %v1001_v61  ;;  %13821 = vmatprep.mubr.msk.f32.mxu1 %vm1344_vm4, %v1487_v62 }
 0x15b   : > { %14051 = vmatmul.mubr.msk.f32.gmra.mrb[140].mxu0 %vm1344_vm4, %v3210_v63  ;;  %v1297_v2 = vmax.f32 %v1007_v60, 0.0 }
 0x15c   : > { %14053 = vmatprep.mubr.msk.f32.mxu0 %vm1344_vm4, %v3211_v0  ;;  %v1296_v3 = vmax.f32 %v1002_v1, 0.0  ;;  %v13689_v4 = vpop.f32.mrb[58].mxu0  ;;  %v1489_v10 = vld [vmem:[#allocation2 + $0x1a8] sm:$0xff] }
 0x15d   : > { %1402 = vst.msk [vmem:[#allocation2 + $0x1c8] sm:$0xff] %vm1344_vm4, %v1297_v2  ;;  %v1017_v5 = vadd.f32 %v13689_v4, %v15501_v55  ;;  %v1011_v6 = vpop.f32.mrb[59].mxu0  ;;  %v1488_v7 = vld [vmem:[#allocation2 + $0x1a0] sm:$0xff] }
 0x15e   : > { %v3212_v8 = vld [vmem:[#allocation2 + $0x1a2] sm:$0xff]  ;;  %1401 = vst.msk [vmem:[#allocation2 + $0x1c0] sm:$0xff] %vm1344_vm4, %v1296_v3  ;;  %v1012_v9 = vadd.f32 %v15501_v55, %v1011_v6  ;;  %13822 = vmatmul.mubr.msk.f32.gmra.mrb[38].mxu1 %vm1344_vm4, %v1488_v7 }
 0x15f   : > { %14054 = vmatmul.mubr.msk.f32.gmra.mrb[142].mxu0 %vm1344_vm4, %v3212_v8  ;;  %v1299_v11 = vmax.f32 %v1017_v5, 0.0  ;;  %13824 = vmatprep.mubr.msk.f32.mxu1 %vm1344_vm4, %v1489_v10  ;;  %v15774_v10 = vld [vmem:[%s18404_s2] ss:$0 sm:$0xff] }
 0x160   : > { %v1298_v12 = vmax.f32 %v1012_v9, 0.0  ;;  %v13692_v13 = vpop.f32.mrb[60].mxu0 }
 0x161   : > { %1404 = vst.msk [vmem:[#allocation2 + $0x1d8] sm:$0xff] %vm1344_vm4, %v1299_v11  ;;  %v1027_v14 = vadd.f32 %v13692_v13, %v15501_v55  ;;  %v1021_v15 = vpop.f32.mrb[61].mxu0  ;;  %v1490_v16 = vld [vmem:[#allocation2 + $0x1b0] sm:$0xff] }
 0x162   : > { %v3213_v17 = vld [vmem:[#allocation2 + $0x1aa] sm:$0xff]  ;;  %v3214_v18 = vld [vmem:[#allocation2 + $0x1b2] sm:$0xff]  ;;  %1403 = vst.msk [vmem:[#allocation2 + $0x1d0] sm:$0xff] %vm1344_vm4, %v1298_v12  ;;  %v1022_v19 = vadd.f32 %v15501_v55, %v1021_v15  ;;  %13825 = vmatmul.mubr.msk.f32.gmra.mrb[40].mxu1 %vm1344_vm4, %v1490_v16 }
 0x163   : > { %14056 = vmatprep.mubr.msk.f32.mxu0 %vm1344_vm4, %v3213_v17  ;;  %v1301_v20 = vmax.f32 %v1027_v14, 0.0 }
 0x164   : > { %14057 = vmatmul.mubr.msk.f32.gmra.mrb[144].mxu0 %vm1344_vm4, %v3214_v18  ;;  %v1300_v21 = vmax.f32 %v1022_v19, 0.0  ;;  %v13695_v22 = vpop.f32.mrb[62].mxu0  ;;  %v1492_v28 = vld [vmem:[#allocation2 + $0x1c8] sm:$0xff] }
 0x165   : > { %1406 = vst.msk [vmem:[#allocation2 + $0x1e8] sm:$0xff] %vm1344_vm4, %v1301_v20  ;;  %v1037_v23 = vadd.f32 %v13695_v22, %v15501_v55  ;;  %v1031_v24 = vpop.f32.mrb[63].mxu0  ;;  %v1491_v25 = vld [vmem:[#allocation2 + $0x1c0] sm:$0xff] }
 0x166   : > { %v3215_v26 = vld [vmem:[#allocation2 + $0x1c2] sm:$0xff]  ;;  %1405 = vst.msk [vmem:[#allocation2 + $0x1e0] sm:$0xff] %vm1344_vm4, %v1300_v21  ;;  %v1032_v27 = vadd.f32 %v15501_v55, %v1031_v24  ;;  %13827 = vmatprep.mubr.msk.f32.mxu1 %vm1344_vm4, %v1491_v25 }
 0x167   : > { %14059 = vmatprep.mubr.msk.f32.mxu0 %vm1344_vm4, %v3215_v26  ;;  %v1303_v29 = vmax.f32 %v1037_v23, 0.0  ;;  %13828 = vmatmul.mubr.msk.f32.gmra.mrb[42].mxu1 %vm1344_vm4, %v1492_v28 }
 0x168   : > { %v1302_v30 = vmax.f32 %v1032_v27, 0.0  ;;  %v13698_v31 = vpop.f32.mrb[64].mxu0 }
 0x169   : > { %1408 = vst.msk [vmem:[#allocation2 + $0x1f8] sm:$0xff] %vm1344_vm4, %v1303_v29  ;;  %v1047_v32 = vadd.f32 %v13698_v31, %v15501_v55  ;;  %v1041_v33 = vpop.f32.mrb[65].mxu0  ;;  %v1493_v34 = vld [vmem:[#allocation2 + $0x1d0] sm:$0xff] }
 0x16a   : > { %v3216_v35 = vld [vmem:[#allocation2 + $0x1ca] sm:$0xff]  ;;  %v3217_v36 = vld [vmem:[#allocation2 + $0x1d2] sm:$0xff]  ;;  %1407 = vst.msk [vmem:[#allocation2 + $0x1f0] sm:$0xff] %vm1344_vm4, %v1302_v30  ;;  %v1042_v37 = vadd.f32 %v15501_v55, %v1041_v33  ;;  %13830 = vmatprep.mubr.msk.f32.mxu1 %vm1344_vm4, %v1493_v34 }
 0x16b   : > { %14060 = vmatmul.mubr.msk.f32.gmra.mrb[146].mxu0 %vm1344_vm4, %v3216_v35  ;;  %v1305_v38 = vmax.f32 %v1047_v32, 0.0 }
 0x16c   : > { %14062 = vmatprep.mubr.msk.f32.mxu0 %vm1344_vm4, %v3217_v36  ;;  %v1304_v39 = vmax.f32 %v1042_v37, 0.0  ;;  %v13701_v40 = vpop.f32.mrb[66].mxu0  ;;  %v1495_v46 = vld [vmem:[#allocation2 + $0x1e8] sm:$0xff] }
 0x16d   : > { %1410 = vst.msk [vmem:[#allocation2 + $0x208] sm:$0xff] %vm1344_vm4, %v1305_v38  ;;  %v1057_v41 = vadd.f32 %v13701_v40, %v15501_v55  ;;  %v1051_v42 = vpop.f32.mrb[67].mxu0  ;;  %v1494_v43 = vld [vmem:[#allocation2 + $0x1e0] sm:$0xff] }
 0x16e   : > { %v3218_v44 = vld [vmem:[#allocation2 + $0x1e2] sm:$0xff]  ;;  %1409 = vst.msk [vmem:[#allocation2 + $0x200] sm:$0xff] %vm1344_vm4, %v1304_v39  ;;  %v1052_v45 = vadd.f32 %v15501_v55, %v1051_v42  ;;  %13831 = vmatmul.mubr.msk.f32.gmra.mrb[44].mxu1 %vm1344_vm4, %v1494_v43 }
 0x16f   : > { %14063 = vmatmul.mubr.msk.f32.gmra.mrb[148].mxu0 %vm1344_vm4, %v3218_v44  ;;  %v1307_v47 = vmax.f32 %v1057_v41, 0.0  ;;  %13833 = vmatprep.mubr.msk.f32.mxu1 %vm1344_vm4, %v1495_v46 }
 0x170   : > { %v1306_v48 = vmax.f32 %v1052_v45, 0.0  ;;  %v13704_v49 = vpop.f32.mrb[68].mxu0 }
 0x171   : > { %1412 = vst.msk [vmem:[#allocation2 + $0x218] sm:$0xff] %vm1344_vm4, %v1307_v47  ;;  %v1067_v50 = vadd.f32 %v13704_v49, %v15501_v55  ;;  %v1061_v51 = vpop.f32.mrb[69].mxu0  ;;  %v1496_v52 = vld [vmem:[#allocation2 + $0x1f0] sm:$0xff] }
 0x172   : > { %v3219_v53 = vld [vmem:[#allocation2 + $0x1ea] sm:$0xff]  ;;  %v3220_v54 = vld [vmem:[#allocation2 + $0x1f2] sm:$0xff]  ;;  %1411 = vst.msk [vmem:[#allocation2 + $0x210] sm:$0xff] %vm1344_vm4, %v1306_v48  ;;  %v1062_v56 = vadd.f32 %v15501_v55, %v1061_v51  ;;  %13834 = vmatmul.mubr.msk.f32.gmra.mrb[46].mxu1 %vm1344_vm4, %v1496_v52 }
 0x173   : > { %14065 = vmatprep.mubr.msk.f32.mxu0 %vm1344_vm4, %v3219_v53  ;;  %v1309_v57 = vmax.f32 %v1067_v50, 0.0 }
 0x174   : > { %14066 = vmatmul.mubr.msk.f32.gmra.mrb[150].mxu0 %vm1344_vm4, %v3220_v54  ;;  %v1308_v58 = vmax.f32 %v1062_v56, 0.0  ;;  %v13707_v59 = vpop.f32.mrb[70].mxu0  ;;  %v1498_v1 = vld [vmem:[#allocation2 + $0x208] sm:$0xff] }
 0x175   : > { %1414 = vst.msk [vmem:[#allocation2 + $0x228] sm:$0xff] %vm1344_vm4, %v1309_v57  ;;  %v1077_v60 = vadd.f32 %v13707_v59, %v15501_v55  ;;  %v1071_v61 = vpop.f32.mrb[71].mxu0  ;;  %v1497_v62 = vld [vmem:[#allocation2 + $0x200] sm:$0xff] }
 0x176   : > { %v3221_v63 = vld [vmem:[#allocation2 + $0x202] sm:$0xff]  ;;  %1413 = vst.msk [vmem:[#allocation2 + $0x220] sm:$0xff] %vm1344_vm4, %v1308_v58  ;;  %v1072_v0 = vadd.f32 %v15501_v55, %v1071_v61  ;;  %13836 = vmatprep.mubr.msk.f32.mxu1 %vm1344_vm4, %v1497_v62 }
 0x177   : > { %14068 = vmatprep.mubr.msk.f32.mxu0 %vm1344_vm4, %v3221_v63  ;;  %v1311_v2 = vmax.f32 %v1077_v60, 0.0  ;;  %13837 = vmatmul.mubr.msk.f32.gmra.mrb[48].mxu1 %vm1344_vm4, %v1498_v1 }
 0x178   : > { %v1310_v3 = vmax.f32 %v1072_v0, 0.0  ;;  %v13710_v4 = vpop.f32.mrb[72].mxu0 }
 0x179   : > { %1416 = vst.msk [vmem:[#allocation2 + $0x238] sm:$0xff] %vm1344_vm4, %v1311_v2  ;;  %v1087_v5 = vadd.f32 %v13710_v4, %v15501_v55  ;;  %v1081_v6 = vpop.f32.mrb[73].mxu0  ;;  %v1499_v7 = vld [vmem:[#allocation2 + $0x210] sm:$0xff] }
 0x17a   : > { %v3222_v8 = vld [vmem:[#allocation2 + $0x20a] sm:$0xff]  ;;  %v3223_v9 = vld [vmem:[#allocation2 + $0x212] sm:$0xff]  ;;  %1415 = vst.msk [vmem:[#allocation2 + $0x230] sm:$0xff] %vm1344_vm4, %v1310_v3  ;;  %v1082_v11 = vadd.f32 %v15774_v10, %v1081_v6  ;;  %13839 = vmatprep.mubr.msk.f32.mxu1 %vm1344_vm4, %v1499_v7 }
 0x17b   : > { %14069 = vmatmul.mubr.msk.f32.gmra.mrb[152].mxu0 %vm1344_vm4, %v3222_v8  ;;  %v1313_v12 = vmax.f32 %v1087_v5, 0.0 }
 0x17c   : > { %14071 = vmatprep.mubr.msk.f32.mxu0 %vm1344_vm4, %v3223_v9  ;;  %v1312_v55 = vmax.f32 %v1082_v11, 0.0  ;;  %v13713_v13 = vpop.f32.mrb[74].mxu0  ;;  %v1501_v19 = vld [vmem:[#allocation2 + $0x228] sm:$0xff] }
 0x17d   : > { %1418 = vst.msk [vmem:[#allocation2 + $0x248] sm:$0xff] %vm1344_vm4, %v1313_v12  ;;  %v1097_v14 = vadd.f32 %v15774_v10, %v13713_v13  ;;  %v1091_v15 = vpop.f32.mrb[75].mxu0  ;;  %v1500_v16 = vld [vmem:[#allocation2 + $0x220] sm:$0xff] }
 0x17e   : > { %v3224_v17 = vld [vmem:[#allocation2 + $0x222] sm:$0xff]  ;;  %1417 = vst.msk [vmem:[#allocation2 + $0x240] sm:$0xff] %vm1344_vm4, %v1312_v55  ;;  %v1092_v18 = vadd.f32 %v15774_v10, %v1091_v15  ;;  %13840 = vmatmul.mubr.msk.f32.gmra.mrb[50].mxu1 %vm1344_vm4, %v1500_v16 }
 0x17f   : > { %14072 = vmatmul.mubr.msk.f32.gmra.mrb[154].mxu0 %vm1344_vm4, %v3224_v17  ;;  %v1315_v20 = vmax.f32 %v1097_v14, 0.0  ;;  %13842 = vmatprep.mubr.msk.f32.mxu1 %vm1344_vm4, %v1501_v19 }
 0x180   : > { %v1314_v21 = vmax.f32 %v1092_v18, 0.0  ;;  %v13716_v22 = vpop.f32.mrb[76].mxu0 }
 0x181   : > { %1420 = vst.msk [vmem:[#allocation2 + $0x258] sm:$0xff] %vm1344_vm4, %v1315_v20  ;;  %v1107_v23 = vadd.f32 %v15774_v10, %v13716_v22  ;;  %v1101_v24 = vpop.f32.mrb[77].mxu0  ;;  %v1502_v25 = vld [vmem:[#allocation2 + $0x230] sm:$0xff] }
 0x182   : > { %v3225_v26 = vld [vmem:[#allocation2 + $0x22a] sm:$0xff]  ;;  %v3226_v27 = vld [vmem:[#allocation2 + $0x232] sm:$0xff]  ;;  %1419 = vst.msk [vmem:[#allocation2 + $0x250] sm:$0xff] %vm1344_vm4, %v1314_v21  ;;  %v1102_v28 = vadd.f32 %v15774_v10, %v1101_v24  ;;  %13843 = vmatmul.mubr.msk.f32.gmra.mrb[52].mxu1 %vm1344_vm4, %v1502_v25 }
 0x183   : > { %14074 = vmatprep.mubr.msk.f32.mxu0 %vm1344_vm4, %v3225_v26  ;;  %v1317_v29 = vmax.f32 %v1107_v23, 0.0 }
 0x184   : > { %14075 = vmatmul.mubr.msk.f32.gmra.mrb[156].mxu0 %vm1344_vm4, %v3226_v27  ;;  %v1316_v30 = vmax.f32 %v1102_v28, 0.0  ;;  %v13719_v31 = vpop.f32.mrb[78].mxu0  ;;  %v1504_v37 = vld [vmem:[#allocation2 + $0x248] sm:$0xff] }
 0x185   : > { %1422 = vst.msk [vmem:[#allocation2 + $0x268] sm:$0xff] %vm1344_vm4, %v1317_v29  ;;  %v1117_v32 = vadd.f32 %v15774_v10, %v13719_v31  ;;  %v1111_v33 = vpop.f32.mrb[79].mxu0  ;;  %v1503_v34 = vld [vmem:[#allocation2 + $0x240] sm:$0xff] }
 0x186   : > { %v3227_v35 = vld [vmem:[#allocation2 + $0x242] sm:$0xff]  ;;  %1421 = vst.msk [vmem:[#allocation2 + $0x260] sm:$0xff] %vm1344_vm4, %v1316_v30  ;;  %v1112_v36 = vadd.f32 %v15774_v10, %v1111_v33  ;;  %13845 = vmatprep.mubr.msk.f32.mxu1 %vm1344_vm4, %v1503_v34 }
 0x187   : > { %14077 = vmatprep.mubr.msk.f32.mxu0 %vm1344_vm4, %v3227_v35  ;;  %v1319_v38 = vmax.f32 %v1117_v32, 0.0  ;;  %13846 = vmatmul.mubr.msk.f32.gmra.mrb[54].mxu1 %vm1344_vm4, %v1504_v37 }
 0x188   : > { %v1318_v39 = vmax.f32 %v1112_v36, 0.0  ;;  %v13722_v40 = vpop.f32.mrb[80].mxu0 }
 0x189   : > { %1424 = vst.msk [vmem:[#allocation2 + $0x278] sm:$0xff] %vm1344_vm4, %v1319_v38  ;;  %v1127_v41 = vadd.f32 %v15774_v10, %v13722_v40  ;;  %v1121_v42 = vpop.f32.mrb[81].mxu0  ;;  %v1505_v43 = vld [vmem:[#allocation2 + $0x250] sm:$0xff] }
 0x18a   : > { %v3228_v44 = vld [vmem:[#allocation2 + $0x24a] sm:$0xff]  ;;  %v3229_v45 = vld [vmem:[#allocation2 + $0x252] sm:$0xff]  ;;  %1423 = vst.msk [vmem:[#allocation2 + $0x270] sm:$0xff] %vm1344_vm4, %v1318_v39  ;;  %v1122_v46 = vadd.f32 %v15774_v10, %v1121_v42  ;;  %13848 = vmatprep.mubr.msk.f32.mxu1 %vm1344_vm4, %v1505_v43 }
 0x18b   : > { %14078 = vmatmul.mubr.msk.f32.gmra.mrb[158].mxu0 %vm1344_vm4, %v3228_v44  ;;  %v1321_v47 = vmax.f32 %v1127_v41, 0.0 }
 0x18c   : > { %14080 = vmatprep.mubr.msk.f32.mxu0 %vm1344_vm4, %v3229_v45  ;;  %v1320_v48 = vmax.f32 %v1122_v46, 0.0  ;;  %v13725_v49 = vpop.f32.mrb[82].mxu0  ;;  %v1507_v56 = vld [vmem:[#allocation2 + $0x268] sm:$0xff] }
 0x18d   : > { %1426 = vst.msk [vmem:[#allocation2 + $0x288] sm:$0xff] %vm1344_vm4, %v1321_v47  ;;  %v1137_v50 = vadd.f32 %v15774_v10, %v13725_v49  ;;  %v1131_v51 = vpop.f32.mrb[83].mxu0  ;;  %v1506_v52 = vld [vmem:[#allocation2 + $0x260] sm:$0xff] }
 0x18e   : > { %v3230_v53 = vld [vmem:[#allocation2 + $0x262] sm:$0xff]  ;;  %1425 = vst.msk [vmem:[#allocation2 + $0x280] sm:$0xff] %vm1344_vm4, %v1320_v48  ;;  %v1132_v54 = vadd.f32 %v15774_v10, %v1131_v51  ;;  %13849 = vmatmul.mubr.msk.f32.gmra.mrb[56].mxu1 %vm1344_vm4, %v1506_v52 }
 0x18f   : > { %14081 = vmatmul.mubr.msk.f32.gmra.mrb[160].mxu0 %vm1344_vm4, %v3230_v53  ;;  %v1323_v57 = vmax.f32 %v1137_v50, 0.0  ;;  %13851 = vmatprep.mubr.msk.f32.mxu1 %vm1344_vm4, %v1507_v56 }
 0x190   : > { %v1322_v58 = vmax.f32 %v1132_v54, 0.0  ;;  %v13728_v59 = vpop.f32.mrb[84].mxu0 }
 0x191   : > { %1428 = vst.msk [vmem:[#allocation2 + $0x298] sm:$0xff] %vm1344_vm4, %v1323_v57  ;;  %v1147_v60 = vadd.f32 %v15774_v10, %v13728_v59  ;;  %v1141_v61 = vpop.f32.mrb[85].mxu0  ;;  %v1508_v62 = vld [vmem:[#allocation2 + $0x270] sm:$0xff] }
 0x192   : > { %v3231_v63 = vld [vmem:[#allocation2 + $0x26a] sm:$0xff]  ;;  %v3232_v0 = vld [vmem:[#allocation2 + $0x272] sm:$0xff]  ;;  %1427 = vst.msk [vmem:[#allocation2 + $0x290] sm:$0xff] %vm1344_vm4, %v1322_v58  ;;  %v1142_v1 = vadd.f32 %v15774_v10, %v1141_v61  ;;  %13852 = vmatmul.mubr.msk.f32.gmra.mrb[58].mxu1 %vm1344_vm4, %v1508_v62 }
 0x193   : > { %14083 = vmatprep.mubr.msk.f32.mxu0 %vm1344_vm4, %v3231_v63  ;;  %v1325_v2 = vmax.f32 %v1147_v60, 0.0 }
 0x194   : > { %14084 = vmatmul.mubr.msk.f32.gmra.mrb[162].mxu0 %vm1344_vm4, %v3232_v0  ;;  %v1324_v3 = vmax.f32 %v1142_v1, 0.0  ;;  %v13731_v4 = vpop.f32.mrb[86].mxu0  ;;  %v1510_v11 = vld [vmem:[#allocation2 + $0x288] sm:$0xff] }
 0x195   : > { %1430 = vst.msk [vmem:[#allocation2 + $0x2a8] sm:$0xff] %vm1344_vm4, %v1325_v2  ;;  %v1157_v5 = vadd.f32 %v15774_v10, %v13731_v4  ;;  %v1151_v6 = vpop.f32.mrb[87].mxu0  ;;  %v1509_v7 = vld [vmem:[#allocation2 + $0x280] sm:$0xff] }
 0x196   : > { %v3233_v8 = vld [vmem:[#allocation2 + $0x282] sm:$0xff]  ;;  %1429 = vst.msk [vmem:[#allocation2 + $0x2a0] sm:$0xff] %vm1344_vm4, %v1324_v3  ;;  %v1152_v9 = vadd.f32 %v15774_v10, %v1151_v6  ;;  %13854 = vmatprep.mubr.msk.f32.mxu1 %vm1344_vm4, %v1509_v7 }
 0x197   : > { %14086 = vmatprep.mubr.msk.f32.mxu0 %vm1344_vm4, %v3233_v8  ;;  %v1327_v12 = vmax.f32 %v1157_v5, 0.0  ;;  %13855 = vmatmul.mubr.msk.f32.gmra.mrb[60].mxu1 %vm1344_vm4, %v1510_v11  ;;  %v2239_v11 = vld [vmem:[#allocation2 + $0x1] sm:$0xff] }
 0x198   : > { %v1326_v55 = vmax.f32 %v1152_v9, 0.0  ;;  %v13734_v13 = vpop.f32.mrb[88].mxu0 }
 0x199   : > { %1432 = vst.msk [vmem:[#allocation2 + $0x2b8] sm:$0xff] %vm1344_vm4, %v1327_v12  ;;  %v1167_v14 = vadd.f32 %v15774_v10, %v13734_v13  ;;  %v1161_v15 = vpop.f32.mrb[89].mxu0  ;;  %v1511_v16 = vld [vmem:[#allocation2 + $0x290] sm:$0xff] }
 0x19a   : > { %v3234_v17 = vld [vmem:[#allocation2 + $0x28a] sm:$0xff]  ;;  %v3235_v18 = vld [vmem:[#allocation2 + $0x292] sm:$0xff]  ;;  %1431 = vst.msk [vmem:[#allocation2 + $0x2b0] sm:$0xff] %vm1344_vm4, %v1326_v55  ;;  %v1162_v19 = vadd.f32 %v15774_v10, %v1161_v15  ;;  %13857 = vmatprep.mubr.msk.f32.mxu1 %vm1344_vm4, %v1511_v16  ;;  %v5042_v55 = vld [vmem:[#allocation2 + $0x21] sm:$0xff] }
 0x19b   : > { %14087 = vmatmul.mubr.msk.f32.gmra.mrb[164].mxu0 %vm1344_vm4, %v3234_v17  ;;  %v1329_v20 = vmax.f32 %v1167_v14, 0.0  ;;  %v12175_v14 = vld [vmem:[%s18405_s3 + $0x60] sm:$0xff]  ;;  %v12176_v15 = vld [vmem:[%s18405_s3 + $0x68] sm:$0xff] }
 0x19c   : > { %14089 = vmatprep.mubr.msk.f32.mxu0 %vm1344_vm4, %v3235_v18  ;;  %v1328_v21 = vmax.f32 %v1162_v19, 0.0  ;;  %v13737_v22 = vpop.f32.mrb[90].mxu0  ;;  %v1513_v28 = vld [vmem:[#allocation2 + $0x2a8] sm:$0xff]  ;;  %v15046_v18 = vpack.c.bf16 %v12176_v15, %v12175_v14 }
 0x19d   : > { %1434 = vst.msk [vmem:[#allocation2 + $0x2c8] sm:$0xff] %vm1344_vm4, %v1329_v20  ;;  %v1177_v23 = vadd.f32 %v15774_v10, %v13737_v22  ;;  %v1171_v24 = vpop.f32.mrb[91].mxu0  ;;  %v1512_v25 = vld [vmem:[#allocation2 + $0x2a0] sm:$0xff]  ;;  %v2240_v19 = vld [vmem:[#allocation2 + $0x9] sm:$0xff]  ;;  %v2241_v22 = vld [vmem:[#allocation2 + $0x11] sm:$0xff] }
 0x19e   : > { %v3236_v26 = vld [vmem:[#allocation2 + $0x2a2] sm:$0xff]  ;;  %1433 = vst.msk [vmem:[#allocation2 + $0x2c0] sm:$0xff] %vm1344_vm4, %v1328_v21  ;;  %v1172_v27 = vadd.f32 %v15774_v10, %v1171_v24  ;;  %13858 = vmatmul.mubr.msk.f32.gmra.mrb[62].mxu1 %vm1344_vm4, %v1512_v25  ;;  %15047 = vmatprep.subr.bf16.mxu1 %v15046_v18  ;;  %v5044_v25 = vld [vmem:[#allocation2 + $0x31] sm:$0xff] }
 0x19f   : > { %14090 = vmatmul.mubr.msk.f32.gmra.mrb[166].mxu0 %vm1344_vm4, %v3236_v26  ;;  %v1331_v29 = vmax.f32 %v1177_v23, 0.0  ;;  %13860 = vmatprep.mubr.msk.f32.mxu1 %vm1344_vm4, %v1513_v28  ;;  %v5043_v23 = vld [vmem:[#allocation2 + $0x29] sm:$0xff]  ;;  %v5045_v28 = vld [vmem:[#allocation2 + $0x41] sm:$0xff] }
 0x1a0   : > { %v1330_v30 = vmax.f32 %v1172_v27, 0.0  ;;  %v13740_v31 = vpop.f32.mrb[92].mxu0  ;;  %v5066_v14 = vld [vmem:[#allocation2 + $0x121] sm:$0xff] }
 0x1a1   : > { %1436 = vst.msk [vmem:[#allocation2 + $0x2d8] sm:$0xff] %vm1344_vm4, %v1331_v29  ;;  %v1187_v32 = vadd.f32 %v15774_v10, %v13740_v31  ;;  %v1181_v33 = vpop.f32.mrb[93].mxu0  ;;  %v1514_v34 = vld [vmem:[#allocation2 + $0x2b0] sm:$0xff]  ;;  %v12403_v29 = vld [vmem:[%s18405_s3 + $0xc0] sm:$0xff] }
 0x1a2   : > { %v3237_v35 = vld [vmem:[#allocation2 + $0x2aa] sm:$0xff]  ;;  %v3238_v36 = vld [vmem:[#allocation2 + $0x2b2] sm:$0xff]  ;;  %1435 = vst.msk [vmem:[#allocation2 + $0x2d0] sm:$0xff] %vm1344_vm4, %v1330_v30  ;;  %v1182_v37 = vadd.f32 %v15774_v10, %v1181_v33  ;;  %13861 = vmatmul.mubr.msk.f32.gmra.mrb[64].mxu1 %vm1344_vm4, %v1514_v34  ;;  %v5048_v33 = vld [vmem:[#allocation2 + $0x61] sm:$0xff] }
 0x1a3   : > { %14092 = vmatprep.mubr.msk.f32.mxu0 %vm1344_vm4, %v3237_v35  ;;  %v1333_v38 = vmax.f32 %v1187_v32, 0.0  ;;  %v12404_v30 = vld [vmem:[%s18405_s3 + $0xc8] sm:$0xff]  ;;  %v5047_v31 = vld [vmem:[#allocation2 + $0x51] sm:$0xff] }
 0x1a4   : > { %14093 = vmatmul.mubr.msk.f32.gmra.mrb[168].mxu0 %vm1344_vm4, %v3238_v36  ;;  %v1332_v39 = vmax.f32 %v1182_v37, 0.0  ;;  %v13743_v40 = vpop.f32.mrb[94].mxu0  ;;  %v1516_v46 = vld [vmem:[#allocation2 + $0x2c8] sm:$0xff]  ;;  %v15070_v32 = vpack.c.bf16 %v12404_v30, %v12403_v29  ;;  %v12177_v34 = vld [vmem:[%s18405_s3 + $0x70] sm:$0xff]  ;;  %v12178_v35 = vld [vmem:[%s18405_s3 + $0x78] sm:$0xff] }
 0x1a5   : > { %1438 = vst.msk [vmem:[#allocation2 + $0x2e8] sm:$0xff] %vm1344_vm4, %v1333_v38  ;;  %v1197_v41 = vadd.f32 %v15774_v10, %v13743_v40  ;;  %v1191_v42 = vpop.f32.mrb[95].mxu0  ;;  %v1515_v43 = vld [vmem:[#allocation2 + $0x2c0] sm:$0xff]  ;;  %v15050_v36 = vpack.c.bf16 %v12178_v35, %v12177_v34  ;;  %v12405_v37 = vld [vmem:[%s18405_s3 + $0xd0] sm:$0xff]  ;;  %v12406_v38 = vld [vmem:[%s18405_s3 + $0xd8] sm:$0xff] }
 0x1a6   : > { %v3239_v44 = vld [vmem:[#allocation2 + $0x2c2] sm:$0xff]  ;;  %1437 = vst.msk [vmem:[#allocation2 + $0x2e0] sm:$0xff] %vm1344_vm4, %v1332_v39  ;;  %v1192_v45 = vadd.f32 %v15774_v10, %v1191_v42  ;;  %13863 = vmatprep.mubr.msk.f32.mxu1 %vm1344_vm4, %v1515_v43  ;;  %15071 = vmatprep.subr.bf16.mxu0 %v15070_v32  ;;  %v15074_v40 = vpack.c.bf16 %v12406_v38, %v12405_v37 }
 0x1a7   : > { %14095 = vmatprep.mubr.msk.f32.mxu0 %vm1344_vm4, %v3239_v44  ;;  %v1335_v47 = vmax.f32 %v1197_v41, 0.0  ;;  %13864 = vmatmul.mubr.msk.f32.gmra.mrb[66].mxu1 %vm1344_vm4, %v1516_v46  ;;  %v5049_v39 = vld [vmem:[#allocation2 + $0x69] sm:$0xff]  ;;  %v5050_v41 = vld [vmem:[#allocation2 + $0x71] sm:$0xff]  ;;  %v5051_v42 = vld [vmem:[#allocation2 + $0x81] sm:$0xff] }
 0x1a8   : > { %v1334_v48 = vmax.f32 %v1192_v45, 0.0  ;;  %v13746_v49 = vpop.f32.mrb[96].mxu0  ;;  %v5052_v43 = vld [vmem:[#allocation2 + $0x89] sm:$0xff]  ;;  %v5053_v45 = vld [vmem:[#allocation2 + $0x91] sm:$0xff]  ;;  %v5075_v37 = vld [vmem:[#allocation2 + $0x181] sm:$0xff] }
 0x1a9   : > { %1440 = vst.msk [vmem:[#allocation2 + $0x2f8] sm:$0xff] %vm1344_vm4, %v1335_v47  ;;  %v1517_v50 = vld [vmem:[#allocation2 + $0x2d0] sm:$0xff]  ;;  %v1207_v53 = vadd.f32 %v15774_v10, %v13746_v49  ;;  %v1201_v54 = vpop.f32.mrb[97].mxu0  ;;  %v5054_v47 = vld [vmem:[#allocation2 + $0xa1] sm:$0xff] }
 0x1aa   : > { %v3240_v51 = vld [vmem:[#allocation2 + $0x2ca] sm:$0xff]  ;;  %v3241_v52 = vld [vmem:[#allocation2 + $0x2d2] sm:$0xff]  ;;  %1439 = vst.msk [vmem:[#allocation2 + $0x2f0] sm:$0xff] %vm1344_vm4, %v1334_v48  ;;  %13866 = vmatprep.mubr.msk.f32.mxu1 %vm1344_vm4, %v1517_v50  ;;  %v1202_v56 = vadd.f32 %v15774_v10, %v1201_v54 }
 0x1ab   : > { %14096 = vmatmul.mubr.msk.f32.gmra.mrb[170].mxu0 %vm1344_vm4, %v3240_v51  ;;  %v1337_v57 = vmax.f32 %v1207_v53, 0.0  ;;  %v5055_v50 = vld [vmem:[#allocation2 + $0xa9] sm:$0xff]  ;;  %v5056_v51 = vld [vmem:[#allocation2 + $0xb1] sm:$0xff] }
 0x1ac   : > { %14098 = vmatprep.mubr.msk.f32.mxu0 %vm1344_vm4, %v3241_v52  ;;  %v1336_v58 = vmax.f32 %v1202_v56, 0.0  ;;  %v13749_v59 = vpop.f32.mrb[98].mxu0  ;;  %v1519_v0 = vld [vmem:[#allocation2 + $0x2e8] sm:$0xff] }
 0x1ad   : > { %v1518_v60 = vld [vmem:[#allocation2 + $0x2e0] sm:$0xff]  ;;  %1442 = vst.msk [vmem:[#allocation2 + $0x308] sm:$0xff] %vm1344_vm4, %v1337_v57  ;;  %v1217_v62 = vadd.f32 %v15774_v10, %v13749_v59  ;;  %v1211_v63 = vpop.f32.mrb[99].mxu0 }
 0x1ae   : > { %v3242_v61 = vld [vmem:[#allocation2 + $0x2e2] sm:$0xff]  ;;  %13867 = vmatmul.mubr.msk.f32.gmra.mrb[68].mxu1 %vm1344_vm4, %v1518_v60  ;;  %1441 = vst.msk [vmem:[#allocation2 + $0x300] sm:$0xff] %vm1344_vm4, %v1336_v58  ;;  %v1212_v1 = vadd.f32 %v15774_v10, %v1211_v63 }
 0x1af   : > { %14099 = vmatmul.mubr.msk.f32.gmra.mrb[172].mxu0 %vm1344_vm4, %v3242_v61  ;;  %13869 = vmatprep.mubr.msk.f32.mxu1 %vm1344_vm4, %v1519_v0  ;;  %v1339_v2 = vmax.f32 %v1217_v62, 0.0  ;;  %v5057_v57 = vld [vmem:[#allocation2 + $0xc1] sm:$0xff]  ;;  %v5058_v58 = vld [vmem:[#allocation2 + $0xc9] sm:$0xff]  ;;  %v5059_v62 = vld [vmem:[#allocation2 + $0xd1] sm:$0xff] }
 0x1b0   : > { %v1338_v3 = vmax.f32 %v1212_v1, 0.0  ;;  %v13752_v4 = vpop.f32.mrb[100].mxu0  ;;  %v5060_v0 = vld [vmem:[#allocation2 + $0xe1] sm:$0xff] }
 0x1b1   : > { %v1520_v5 = vld [vmem:[#allocation2 + $0x2f0] sm:$0xff]  ;;  %1444 = vst.msk [vmem:[#allocation2 + $0x318] sm:$0xff] %vm1344_vm4, %v1339_v2  ;;  %v1227_v8 = vadd.f32 %v15774_v10, %v13752_v4  ;;  %v1221_v9 = vpop.f32.mrb[101].mxu0 }
 0x1b2   : > { %v3243_v6 = vld [vmem:[#allocation2 + $0x2ea] sm:$0xff]  ;;  %v3244_v7 = vld [vmem:[#allocation2 + $0x2f2] sm:$0xff]  ;;  %13870 = vmatmul.mubr.msk.f32.gmra.mrb[70].mxu1 %vm1344_vm4, %v1520_v5  ;;  %1443 = vst.msk [vmem:[#allocation2 + $0x310] sm:$0xff] %vm1344_vm4, %v1338_v3  ;;  %v1222_v12 = vadd.f32 %v15774_v10, %v1221_v9 }
 0x1b3   : > { %14101 = vmatprep.mubr.msk.f32.mxu0 %vm1344_vm4, %v3243_v6  ;;  %13880 = vmatprep.mubr.msk.f32.mxu1 %vm1344_vm4, %v2239_v11  ;;  %v1341_v13 = vmax.f32 %v1227_v8, 0.0  ;;  %v5061_v2 = vld [vmem:[#allocation2 + $0xe9] sm:$0xff]  ;;  %v5062_v4 = vld [vmem:[#allocation2 + $0xf1] sm:$0xff] }
 0x1b4   : > { %14102 = vmatmul.mubr.msk.f32.gmra.mrb[174].mxu0 %vm1344_vm4, %v3244_v7  ;;  %v1340_v16 = vmax.f32 %v1222_v12, 0.0  ;;  %v13755_v17 = vpop.f32.mrb[102].mxu0  ;;  %v5063_v7 = vld [vmem:[#allocation2 + $0x101] sm:$0xff]  ;;  %v5064_v8 = vld [vmem:[#allocation2 + $0x109] sm:$0xff] }
 0x1b5   : > { %14228 = vmatprep.mubr.msk.f32.mxu0 %vm1344_vm4, %v5042_v55  ;;  %1446 = vst.msk [vmem:[#allocation2 + $0x328] sm:$0xff] %vm1344_vm4, %v1341_v13  ;;  %v1237_v20 = vadd.f32 %v15774_v10, %v13755_v17  ;;  %v1231_v21 = vpop.f32.mrb[103].mxu0  ;;  %v5065_v13 = vld [vmem:[#allocation2 + $0x111] sm:$0xff] }
 0x1b6   : > { %13881 = vmatmul.mubr.msk.f32.vlgmr.msra.gmra.mrb[72].mxu1 %vm1344_vm4, %v2240_v19  ;;  %1445 = vst.msk [vmem:[#allocation2 + $0x320] sm:$0xff] %vm1344_vm4, %v1340_v16  ;;  %v1232_v24 = vadd.f32 %v15774_v10, %v1231_v21  ;;  %v5046_v10 = vld [vmem:[#allocation2 + $0x49] sm:$0xff] }
 0x1b7   : > { %13883 = vmatprep.mubr.msk.f32.mxu1 %vm1344_vm4, %v2241_v22  ;;  %v1343_v26 = vmax.f32 %v1237_v20, 0.0  ;;  %15049 = vmatpush3.bf16.msra.mxu1 %v15046_v18  ;;  %v5067_v18 = vld [vmem:[#allocation2 + $0x129] sm:$0xff]  ;;  %v5068_v20 = vld [vmem:[#allocation2 + $0x131] sm:$0xff]  ;;  %v5069_v22 = vld [vmem:[#allocation2 + $0x141] sm:$0xff] }
 0x1b8   : > { %14229 = vmatmul.mubr.msk.f32.vlgmr.msra.gmra.mrb[176].mxu0 %vm1344_vm4, %v5043_v23  ;;  %v1342_v27 = vmax.f32 %v1232_v24, 0.0  ;;  %15051 = vmatprep.subr.bf16.mxu1 %v15050_v36  ;;  %v5070_v24 = vld [vmem:[#allocation2 + $0x149] sm:$0xff] }
 0x1b9   : > { %14231 = vmatprep.mubr.msk.f32.mxu0 %vm1344_vm4, %v5044_v25  ;;  %1448 = vst.msk [vmem:[#allocation2 + $0x338] sm:$0xff] %vm1344_vm4, %v1343_v26  ;;  %15073 = vmatpush3.bf16.msra.mxu0 %v15070_v32  ;;  %v5073_v32 = vld [vmem:[#allocation2 + $0x169] sm:$0xff] }
 0x1ba   : > { %13884 = vmatmul.mubr.msk.f32.gmra.mrb[74].mxu1 %vm1344_vm4, %v5042_v55  ;;  %1447 = vst.msk [vmem:[#allocation2 + $0x330] sm:$0xff] %vm1344_vm4, %v1342_v27  ;;  %15075 = vmatprep.subr.bf16.mxu0 %v15074_v40  ;;  %v5071_v27 = vld [vmem:[#allocation2 + $0x151] sm:$0xff] }
 0x1bb   : > { %13886 = vmatprep.mubr.msk.f32.mxu1 %vm1344_vm4, %v5043_v23  ;;  %15053 = vmatpush3.bf16.msra.mxu1 %v15050_v36 }
 0x1bc   : > { %14232 = vmatmul.mubr.msk.f32.gmra.mrb[178].mxu0 %vm1344_vm4, %v5045_v28 }
 0x1bd   : > { %14234 = vmatprep.mubr.msk.f32.mxu0 %vm1344_vm4, %v5046_v10  ;;  %15077 = vmatpush3.bf16.msra.mxu0 %v15074_v40 }
 0x1be   : > { %13887 = vmatmul.mubr.msk.f32.gmra.mrb[76].mxu1 %vm1344_vm4, %v5044_v25 }
 0x1bf   : > { %13889 = vmatprep.mubr.msk.f32.mxu1 %vm1344_vm4, %v5045_v28  ;;  %v5072_v28 = vld [vmem:[#allocation2 + $0x161] sm:$0xff] }
 0x1c0   : > { %14235 = vmatmul.mubr.msk.f32.gmra.mrb[180].mxu0 %vm1344_vm4, %v5047_v31 }
 0x1c1   : > { %14237 = vmatprep.mubr.msk.f32.mxu0 %vm1344_vm4, %v5048_v33 }
 0x1c2   : > { %13890 = vmatmul.mubr.msk.f32.gmra.mrb[78].mxu1 %vm1344_vm4, %v5046_v10 }
 0x1c3   : > { %13892 = vmatprep.mubr.msk.f32.mxu1 %vm1344_vm4, %v5047_v31 }
 0x1c4   : > { %14238 = vmatmul.mubr.msk.f32.gmra.mrb[182].mxu0 %vm1344_vm4, %v5049_v39 }
 0x1c5   : > { %14240 = vmatprep.mubr.msk.f32.mxu0 %vm1344_vm4, %v5050_v41 }
 0x1c6   : > { %13893 = vmatmul.mubr.msk.f32.gmra.mrb[80].mxu1 %vm1344_vm4, %v5048_v33  ;;  %v5074_v33 = vld [vmem:[#allocation2 + $0x171] sm:$0xff] }
 0x1c7   : > { %13895 = vmatprep.mubr.msk.f32.mxu1 %vm1344_vm4, %v5049_v39  ;;  %v5076_v39 = vld [vmem:[#allocation2 + $0x189] sm:$0xff] }
 0x1c8   : > { %14241 = vmatmul.mubr.msk.f32.gmra.mrb[184].mxu0 %vm1344_vm4, %v5051_v42 }
 0x1c9   : > { %14243 = vmatprep.mubr.msk.f32.mxu0 %vm1344_vm4, %v5052_v43 }
 0x1ca   : > { %v13766_v44 = vpop.f32.mrb[0].mxu1  ;;  %13896 = vmatmul.mubr.msk.f32.gmra.mrb[82].mxu1 %vm1344_vm4, %v5050_v41  ;;  %v5077_v41 = vld [vmem:[#allocation2 + $0x191] sm:$0xff] }
 0x1cb   : > { %2168 = vst.msk [vmem:[#allocation3 + $0x8] sm:$0xff] %vm2166_vm5, %v13766_v44  ;;  %v1807_v46 = vpop.f32.mrb[1].mxu1  ;;  %13898 = vmatprep.mubr.msk.f32.mxu1 %vm1344_vm4, %v5051_v42 }
 0x1cc   : > { %14244 = vmatmul.mubr.msk.f32.gmra.mrb[186].mxu0 %vm1344_vm4, %v5053_v45  ;;  %2167 = vst.msk [vmem:[#allocation3] sm:$0xff] %vm2166_vm5, %v1807_v46  ;;  %v5079_v46 = vld [vmem:[#allocation2 + $0x1a9] sm:$0xff] }
 0x1cd   : > { %14246 = vmatprep.mubr.msk.f32.mxu0 %vm1344_vm4, %v5054_v47 }
 0x1ce   : > { %v15936_v48 = vpop.f32.mrb[104].mxu0  ;;  %13899 = vmatmul.mubr.msk.f32.gmra.mrb[84].mxu1 %vm1344_vm4, %v5052_v43  ;;  %v5078_v43 = vld [vmem:[#allocation2 + $0x1a1] sm:$0xff] }
 0x1cf   : > { %v15939_v49 = vpop.f32.mrb[105].mxu0  ;;  %13901 = vmatprep.mubr.msk.f32.mxu1 %vm1344_vm4, %v5053_v45 }
 0x1d0   : > { %14247 = vmatmul.mubr.msk.f32.gmra.mrb[188].mxu0 %vm1344_vm4, %v5055_v50 }
 0x1d1   : > { %14249 = vmatprep.mubr.msk.f32.mxu0 %vm1344_vm4, %v5056_v51  ;;  %v13769_v52 = vpop.f32.mrb[2].mxu1 }
 0x1d2   : > { %v15944_v53 = vpop.f32.mrb[106].mxu0  ;;  %2170 = vst.msk [vmem:[#allocation3 + $0x18] sm:$0xff] %vm2166_vm5, %v13769_v52  ;;  %v1817_v54 = vpop.f32.mrb[3].mxu1  ;;  %13902 = vmatmul.mubr.msk.f32.gmra.mrb[86].mxu1 %vm1344_vm4, %v5054_v47  ;;  %v5080_v47 = vld [vmem:[#allocation2 + $0x1b1] sm:$0xff] }
 0x1d3   : > { %v15948_v56 = vpop.f32.mrb[107].mxu0  ;;  %2169 = vst.msk [vmem:[#allocation3 + $0x10] sm:$0xff] %vm2166_vm5, %v1817_v54  ;;  %13904 = vmatprep.mubr.msk.f32.mxu1 %vm1344_vm4, %v5055_v50 }
 0x1d4   : > { %14250 = vmatmul.mubr.msk.f32.gmra.mrb[190].mxu0 %vm1344_vm4, %v5057_v57 }
 0x1d5   : > { %14252 = vmatprep.mubr.msk.f32.mxu0 %vm1344_vm4, %v5058_v58  ;;  %v13772_v59 = vpop.f32.mrb[4].mxu1 }
 0x1d6   : > { %2172 = vst.msk [vmem:[#allocation3 + $0x28] sm:$0xff] %vm2166_vm5, %v13772_v59  ;;  %v1827_v60 = vpop.f32.mrb[5].mxu1  ;;  %13905 = vmatmul.mubr.msk.f32.gmra.mrb[88].mxu1 %vm1344_vm4, %v5056_v51 }
 0x1d7   : > { %v15956_v61 = vpop.f32.mrb[108].mxu0  ;;  %2171 = vst.msk [vmem:[#allocation3 + $0x20] sm:$0xff] %vm2166_vm5, %v1827_v60  ;;  %13907 = vmatprep.mubr.msk.f32.mxu1 %vm1344_vm4, %v5057_v57  ;;  %v5081_v57 = vld [vmem:[#allocation2 + $0x1c1] sm:$0xff] }
 0x1d8   : > { %v15960_v63 = vpop.f32.mrb[109].mxu0  ;;  %14253 = vmatmul.mubr.msk.f32.gmra.mrb[192].mxu0 %vm1344_vm4, %v5059_v62 }
 0x1d9   : > { %14255 = vmatprep.mubr.msk.f32.mxu0 %vm1344_vm4, %v5060_v0 }
 0x1da   : > { %v13775_v1 = vpop.f32.mrb[6].mxu1  ;;  %13908 = vmatmul.mubr.msk.f32.gmra.mrb[90].mxu1 %vm1344_vm4, %v5058_v58  ;;  %v5082_v58 = vld [vmem:[#allocation2 + $0x1c9] sm:$0xff] }
 0x1db   : > { %2174 = vst.msk [vmem:[#allocation3 + $0x38] sm:$0xff] %vm2166_vm5, %v13775_v1  ;;  %v1837_v3 = vpop.f32.mrb[7].mxu1  ;;  %13910 = vmatprep.mubr.msk.f32.mxu1 %vm1344_vm4, %v5059_v62 }
 0x1dc   : > { %14256 = vmatmul.mubr.msk.f32.gmra.mrb[194].mxu0 %vm1344_vm4, %v5061_v2  ;;  %2173 = vst.msk [vmem:[#allocation3 + $0x30] sm:$0xff] %vm2166_vm5, %v1837_v3 }
 0x1dd   : > { %14258 = vmatprep.mubr.msk.f32.mxu0 %vm1344_vm4, %v5062_v4 }
 0x1de   : > { %v15970_v5 = vpop.f32.mrb[110].mxu0  ;;  %13911 = vmatmul.mubr.msk.f32.gmra.mrb[92].mxu1 %vm1344_vm4, %v5060_v0  ;;  %v5083_v0 = vld [vmem:[#allocation2 + $0x1d1] sm:$0xff] }
 0x1df   : > { %v15973_v6 = vpop.f32.mrb[111].mxu0  ;;  %13913 = vmatprep.mubr.msk.f32.mxu1 %vm1344_vm4, %v5061_v2  ;;  %v5084_v2 = vld [vmem:[#allocation2 + $0x1e1] sm:$0xff] }
 0x1e0   : > { %14259 = vmatmul.mubr.msk.f32.gmra.mrb[196].mxu0 %vm1344_vm4, %v5063_v7 }
 0x1e1   : > { %14261 = vmatprep.mubr.msk.f32.mxu0 %vm1344_vm4, %v5064_v8  ;;  %v13778_v9 = vpop.f32.mrb[8].mxu1 }
 0x1e2   : > { %v15978_v11 = vpop.f32.mrb[112].mxu0  ;;  %2176 = vst.msk [vmem:[#allocation3 + $0x48] sm:$0xff] %vm2166_vm5, %v13778_v9  ;;  %v1847_v12 = vpop.f32.mrb[9].mxu1  ;;  %13914 = vmatmul.mubr.msk.f32.gmra.mrb[94].mxu1 %vm1344_vm4, %v5062_v4  ;;  %v5085_v4 = vld [vmem:[#allocation2 + $0x1e9] sm:$0xff] }
 0x1e3   : > { %v15982_v55 = vpop.f32.mrb[113].mxu0  ;;  %2175 = vst.msk [vmem:[#allocation3 + $0x40] sm:$0xff] %vm2166_vm5, %v1847_v12  ;;  %13916 = vmatprep.mubr.msk.f32.mxu1 %vm1344_vm4, %v5063_v7 }
 0x1e4   : > { %14262 = vmatmul.mubr.msk.f32.gmra.mrb[198].mxu0 %vm1344_vm4, %v5065_v13 }
 0x1e5   : > { %14264 = vmatprep.mubr.msk.f32.mxu0 %vm1344_vm4, %v5066_v14  ;;  %v13781_v15 = vpop.f32.mrb[10].mxu1 }
 0x1e6   : > { %2178 = vst.msk [vmem:[#allocation3 + $0x58] sm:$0xff] %vm2166_vm5, %v13781_v15  ;;  %v1857_v16 = vpop.f32.mrb[11].mxu1  ;;  %13917 = vmatmul.mubr.msk.f32.gmra.mrb[96].mxu1 %vm1344_vm4, %v5064_v8  ;;  %v5086_v8 = vld [vmem:[#allocation2 + $0x1f1] sm:$0xff] }
 0x1e7   : > { %v15990_v17 = vpop.f32.mrb[114].mxu0  ;;  %2177 = vst.msk [vmem:[#allocation3 + $0x50] sm:$0xff] %vm2166_vm5, %v1857_v16  ;;  %13919 = vmatprep.mubr.msk.f32.mxu1 %vm1344_vm4, %v5065_v13  ;;  %v5087_v13 = vld [vmem:[#allocation2 + $0x201] sm:$0xff] }
 0x1e8   : > { %v15994_v19 = vpop.f32.mrb[115].mxu0  ;;  %14265 = vmatmul.mubr.msk.f32.gmra.mrb[200].mxu0 %vm1344_vm4, %v5067_v18 }
 0x1e9   : > { %14267 = vmatprep.mubr.msk.f32.mxu0 %vm1344_vm4, %v5068_v20 }
 0x1ea   : > { %v13784_v21 = vpop.f32.mrb[12].mxu1  ;;  %13920 = vmatmul.mubr.msk.f32.gmra.mrb[98].mxu1 %vm1344_vm4, %v5066_v14  ;;  %v5088_v14 = vld [vmem:[#allocation2 + $0x209] sm:$0xff] }
 0x1eb   : > { %2180 = vst.msk [vmem:[#allocation3 + $0x68] sm:$0xff] %vm2166_vm5, %v13784_v21  ;;  %v1867_v23 = vpop.f32.mrb[13].mxu1  ;;  %13922 = vmatprep.mubr.msk.f32.mxu1 %vm1344_vm4, %v5067_v18  ;;  %v5089_v21 = vld [vmem:[#allocation2 + $0x211] sm:$0xff] }
 0x1ec   : > { %14268 = vmatmul.mubr.msk.f32.gmra.mrb[202].mxu0 %vm1344_vm4, %v5069_v22  ;;  %2179 = vst.msk [vmem:[#allocation3 + $0x60] sm:$0xff] %vm2166_vm5, %v1867_v23 }
 0x1ed   : > { %14270 = vmatprep.mubr.msk.f32.mxu0 %vm1344_vm4, %v5070_v24 }
 0x1ee   : > { %v16004_v25 = vpop.f32.mrb[116].mxu0  ;;  %13923 = vmatmul.mubr.msk.f32.gmra.mrb[100].mxu1 %vm1344_vm4, %v5068_v20 }
 0x1ef   : > { %v16007_v26 = vpop.f32.mrb[117].mxu0  ;;  %13925 = vmatprep.mubr.msk.f32.mxu1 %vm1344_vm4, %v5069_v22  ;;  %v5090_v22 = vld [vmem:[#allocation2 + $0x221] sm:$0xff] }
 0x1f0   : > { %14271 = vmatmul.mubr.msk.f32.gmra.mrb[204].mxu0 %vm1344_vm4, %v5071_v27 }
 0x1f1   : > { %14273 = vmatprep.mubr.msk.f32.mxu0 %vm1344_vm4, %v5072_v28  ;;  %v13787_v10 = vpop.f32.mrb[14].mxu1 }
 0x1f2   : > { %v16012_v29 = vpop.f32.mrb[118].mxu0  ;;  %2182 = vst.msk [vmem:[#allocation3 + $0x78] sm:$0xff] %vm2166_vm5, %v13787_v10  ;;  %v1877_v30 = vpop.f32.mrb[15].mxu1  ;;  %13926 = vmatmul.mubr.msk.f32.gmra.mrb[102].mxu1 %vm1344_vm4, %v5070_v24 }
 0x1f3   : > { %v16016_v31 = vpop.f32.mrb[119].mxu0  ;;  %2181 = vst.msk [vmem:[#allocation3 + $0x70] sm:$0xff] %vm2166_vm5, %v1877_v30  ;;  %13928 = vmatprep.mubr.msk.f32.mxu1 %vm1344_vm4, %v5071_v27  ;;  %v5092_v30 = vld [vmem:[#allocation2 + $0x231] sm:$0xff] }
 0x1f4   : > { %14274 = vmatmul.mubr.msk.f32.gmra.mrb[206].mxu0 %vm1344_vm4, %v5073_v32 }
 0x1f5   : > { %14276 = vmatprep.mubr.msk.f32.mxu0 %vm1344_vm4, %v5074_v33  ;;  %v13790_v34 = vpop.f32.mrb[16].mxu1 }
 0x1f6   : > { %2184 = vst.msk [vmem:[#allocation3 + $0x88] sm:$0xff] %vm2166_vm5, %v13790_v34  ;;  %v1887_v35 = vpop.f32.mrb[17].mxu1  ;;  %13929 = vmatmul.mubr.msk.f32.gmra.mrb[104].mxu1 %vm1344_vm4, %v5072_v28  ;;  %v5091_v28 = vld [vmem:[#allocation2 + $0x229] sm:$0xff] }
 0x1f7   : > { %v16024_v36 = vpop.f32.mrb[120].mxu0  ;;  %2183 = vst.msk [vmem:[#allocation3 + $0x80] sm:$0xff] %vm2166_vm5, %v1887_v35  ;;  %13931 = vmatprep.mubr.msk.f32.mxu1 %vm1344_vm4, %v5073_v32  ;;  %v5094_v35 = vld [vmem:[#allocation2 + $0x249] sm:$0xff] }
 0x1f8   : > { %v16028_v38 = vpop.f32.mrb[121].mxu0  ;;  %14277 = vmatmul.mubr.msk.f32.gmra.mrb[208].mxu0 %vm1344_vm4, %v5075_v37 }
 0x1f9   : > { %14279 = vmatprep.mubr.msk.f32.mxu0 %vm1344_vm4, %v5076_v39 }
 0x1fa   : > { %v13793_v40 = vpop.f32.mrb[18].mxu1  ;;  %13932 = vmatmul.mubr.msk.f32.gmra.mrb[106].mxu1 %vm1344_vm4, %v5074_v33  ;;  %v5093_v33 = vld [vmem:[#allocation2 + $0x241] sm:$0xff] }
 0x1fb   : > { %2186 = vst.msk [vmem:[#allocation3 + $0x98] sm:$0xff] %vm2166_vm5, %v13793_v40  ;;  %v1897_v42 = vpop.f32.mrb[19].mxu1  ;;  %13934 = vmatprep.mubr.msk.f32.mxu1 %vm1344_vm4, %v5075_v37  ;;  %v5095_v40 = vld [vmem:[#allocation2 + $0x251] sm:$0xff] }
 0x1fc   : > { %14280 = vmatmul.mubr.msk.f32.gmra.mrb[210].mxu0 %vm1344_vm4, %v5077_v41  ;;  %2185 = vst.msk [vmem:[#allocation3 + $0x90] sm:$0xff] %vm2166_vm5, %v1897_v42 }
 0x1fd   : > { %14282 = vmatprep.mubr.msk.f32.mxu0 %vm1344_vm4, %v5078_v43 }
 0x1fe   : > { %v16038_v44 = vpop.f32.mrb[122].mxu0  ;;  %13935 = vmatmul.mubr.msk.f32.gmra.mrb[108].mxu1 %vm1344_vm4, %v5076_v39 }
 0x1ff   : > { %v16041_v45 = vpop.f32.mrb[123].mxu0  ;;  %13937 = vmatprep.mubr.msk.f32.mxu1 %vm1344_vm4, %v5077_v41  ;;  %v5096_v41 = vld [vmem:[#allocation2 + $0x261] sm:$0xff] }
 0x200   : > { %14283 = vmatmul.mubr.msk.f32.gmra.mrb[212].mxu0 %vm1344_vm4, %v5079_v46 }
 0x201   : > { %14285 = vmatprep.mubr.msk.f32.mxu0 %vm1344_vm4, %v5080_v47  ;;  %v13796_v50 = vpop.f32.mrb[20].mxu1 }
 0x202   : > { %v16046_v51 = vpop.f32.mrb[124].mxu0  ;;  %2188 = vst.msk [vmem:[#allocation3 + $0xa8] sm:$0xff] %vm2166_vm5, %v13796_v50  ;;  %v1907_v52 = vpop.f32.mrb[21].mxu1  ;;  %13938 = vmatmul.mubr.msk.f32.gmra.mrb[110].mxu1 %vm1344_vm4, %v5078_v43  ;;  %v5097_v50 = vld [vmem:[#allocation2 + $0x269] sm:$0xff] }
 0x203   : > { %v16050_v54 = vpop.f32.mrb[125].mxu0  ;;  %2187 = vst.msk [vmem:[#allocation3 + $0xa0] sm:$0xff] %vm2166_vm5, %v1907_v52  ;;  %13940 = vmatprep.mubr.msk.f32.mxu1 %vm1344_vm4, %v5079_v46  ;;  %v5098_v52 = vld [vmem:[#allocation2 + $0x271] sm:$0xff] }
 0x204   : > { %14286 = vmatmul.mubr.msk.f32.gmra.mrb[214].mxu0 %vm1344_vm4, %v5081_v57 }
 0x205   : > { %14288 = vmatprep.mubr.msk.f32.mxu0 %vm1344_vm4, %v5082_v58  ;;  %v13799_v59 = vpop.f32.mrb[22].mxu1 }
 0x206   : > { %2190 = vst.msk [vmem:[#allocation3 + $0xb8] sm:$0xff] %vm2166_vm5, %v13799_v59  ;;  %v1917_v60 = vpop.f32.mrb[23].mxu1  ;;  %13941 = vmatmul.mubr.msk.f32.gmra.mrb[112].mxu1 %vm1344_vm4, %v5080_v47 }
 0x207   : > { %v16058_v62 = vpop.f32.mrb[126].mxu0  ;;  %2189 = vst.msk [vmem:[#allocation3 + $0xb0] sm:$0xff] %vm2166_vm5, %v1917_v60  ;;  %13943 = vmatprep.mubr.msk.f32.mxu1 %vm1344_vm4, %v5081_v57  ;;  %v5099_v60 = vld [vmem:[#allocation2 + $0x281] sm:$0xff] }
 0x208   : > { %v16062_v1 = vpop.f32.mrb[127].mxu0  ;;  %14289 = vmatmul.mubr.msk.f32.gmra.mrb[216].mxu0 %vm1344_vm4, %v5083_v0 }
 0x209   : > { %14291 = vmatprep.mubr.msk.f32.mxu0 %vm1344_vm4, %v5084_v2 }
 0x20a   : > { %v13802_v3 = vpop.f32.mrb[24].mxu1  ;;  %13944 = vmatmul.mubr.msk.f32.gmra.mrb[114].mxu1 %vm1344_vm4, %v5082_v58 }
 0x20b   : > { %2192 = vst.msk [vmem:[#allocation3 + $0xc8] sm:$0xff] %vm2166_vm5, %v13802_v3  ;;  %v1927_v7 = vpop.f32.mrb[25].mxu1  ;;  %13946 = vmatprep.mubr.msk.f32.mxu1 %vm1344_vm4, %v5083_v0 }
 0x20c   : > { %14292 = vmatmul.mubr.msk.f32.gmra.mrb[218].mxu0 %vm1344_vm4, %v5085_v4  ;;  %2191 = vst.msk [vmem:[#allocation3 + $0xc0] sm:$0xff] %vm2166_vm5, %v1927_v7 }
 0x20d   : > { %14294 = vmatprep.mubr.msk.f32.mxu0 %vm1344_vm4, %v5086_v8 }
 0x20e   : > { %v16072_v9 = vpop.f32.mrb[128].mxu0  ;;  %13947 = vmatmul.mubr.msk.f32.gmra.mrb[116].mxu1 %vm1344_vm4, %v5084_v2  ;;  %v5100_v2 = vld [vmem:[#allocation2 + $0x289] sm:$0xff] }
 0x20f   : > { %v16075_v12 = vpop.f32.mrb[129].mxu0  ;;  %13949 = vmatprep.mubr.msk.f32.mxu1 %vm1344_vm4, %v5085_v4  ;;  %v5101_v4 = vld [vmem:[#allocation2 + $0x291] sm:$0xff] }
 0x210   : > { %14295 = vmatmul.mubr.msk.f32.gmra.mrb[220].mxu0 %vm1344_vm4, %v5087_v13 }
 0x211   : > { %14297 = vmatprep.mubr.msk.f32.mxu0 %vm1344_vm4, %v5088_v14  ;;  %v13805_v15 = vpop.f32.mrb[26].mxu1 }
 0x212   : > { %v16080_v16 = vpop.f32.mrb[130].mxu0  ;;  %2194 = vst.msk [vmem:[#allocation3 + $0xd8] sm:$0xff] %vm2166_vm5, %v13805_v15  ;;  %v1937_v18 = vpop.f32.mrb[27].mxu1  ;;  %13950 = vmatmul.mubr.msk.f32.gmra.mrb[118].mxu1 %vm1344_vm4, %v5086_v8  ;;  %v5102_v8 = vld [vmem:[#allocation2 + $0x2a1] sm:$0xff]  ;;  %v5103_v15 = vld [vmem:[#allocation2 + $0x2a9] sm:$0xff] }
 0x213   : > { %v16084_v20 = vpop.f32.mrb[131].mxu0  ;;  %2193 = vst.msk [vmem:[#allocation3 + $0xd0] sm:$0xff] %vm2166_vm5, %v1937_v18  ;;  %13952 = vmatprep.mubr.msk.f32.mxu1 %vm1344_vm4, %v5087_v13  ;;  %v5104_v18 = vld [vmem:[#allocation2 + $0x2b1] sm:$0xff] }
 0x214   : > { %14298 = vmatmul.mubr.msk.f32.gmra.mrb[222].mxu0 %vm1344_vm4, %v5089_v21 }
 0x215   : > { %14300 = vmatprep.mubr.msk.f32.mxu0 %vm1344_vm4, %v5090_v22  ;;  %v13808_v23 = vpop.f32.mrb[28].mxu1 }
 0x216   : > { %2196 = vst.msk [vmem:[#allocation3 + $0xe8] sm:$0xff] %vm2166_vm5, %v13808_v23  ;;  %v1947_v24 = vpop.f32.mrb[29].mxu1  ;;  %13953 = vmatmul.mubr.msk.f32.gmra.mrb[120].mxu1 %vm1344_vm4, %v5088_v14 }
 0x217   : > { %v16092_v27 = vpop.f32.mrb[132].mxu0  ;;  %2195 = vst.msk [vmem:[#allocation3 + $0xe0] sm:$0xff] %vm2166_vm5, %v1947_v24  ;;  %13955 = vmatprep.mubr.msk.f32.mxu1 %vm1344_vm4, %v5089_v21 }
 0x218   : > { %v16096_v10 = vpop.f32.mrb[133].mxu0  ;;  %14301 = vmatmul.mubr.msk.f32.gmra.mrb[224].mxu0 %vm1344_vm4, %v5091_v28 }
 0x219   : > { %14303 = vmatprep.mubr.msk.f32.mxu0 %vm1344_vm4, %v5092_v30 }
 0x21a   : > { %v13811_v32 = vpop.f32.mrb[30].mxu1  ;;  %13956 = vmatmul.mubr.msk.f32.gmra.mrb[122].mxu1 %vm1344_vm4, %v5090_v22 }
 0x21b   : > { %2198 = vst.msk [vmem:[#allocation3 + $0xf8] sm:$0xff] %vm2166_vm5, %v13811_v32  ;;  %v1957_v34 = vpop.f32.mrb[31].mxu1  ;;  %13958 = vmatprep.mubr.msk.f32.mxu1 %vm1344_vm4, %v5091_v28  ;;  %v5105_v28 = vld [vmem:[#allocation2 + $0x2c1] sm:$0xff] }
 0x21c   : > { %14304 = vmatmul.mubr.msk.f32.gmra.mrb[226].mxu0 %vm1344_vm4, %v5093_v33  ;;  %2197 = vst.msk [vmem:[#allocation3 + $0xf0] sm:$0xff] %vm2166_vm5, %v1957_v34 }
 0x21d   : > { %14306 = vmatprep.mubr.msk.f32.mxu0 %vm1344_vm4, %v5094_v35 }
 0x21e   : > { %v16106_v37 = vpop.f32.mrb[134].mxu0  ;;  %13959 = vmatmul.mubr.msk.f32.gmra.mrb[124].mxu1 %vm1344_vm4, %v5092_v30  ;;  %v5106_v30 = vld [vmem:[#allocation2 + $0x2c9] sm:$0xff] }
 0x21f   : > { %v16109_v39 = vpop.f32.mrb[135].mxu0  ;;  %13961 = vmatprep.mubr.msk.f32.mxu1 %vm1344_vm4, %v5093_v33 }
 0x220   : > { %14307 = vmatmul.mubr.msk.f32.gmra.mrb[228].mxu0 %vm1344_vm4, %v5095_v40 }
 0x221   : > { %14309 = vmatprep.mubr.msk.f32.mxu0 %vm1344_vm4, %v5096_v41  ;;  %v13814_v42 = vpop.f32.mrb[32].mxu1 }
 0x222   : > { %v16114_v43 = vpop.f32.mrb[136].mxu0  ;;  %2200 = vst.msk [vmem:[#allocation3 + $0x108] sm:$0xff] %vm2166_vm5, %v13814_v42  ;;  %v1967_v46 = vpop.f32.mrb[33].mxu1  ;;  %13962 = vmatmul.mubr.msk.f32.gmra.mrb[126].mxu1 %vm1344_vm4, %v5094_v35  ;;  %v5107_v35 = vld [vmem:[#allocation2 + $0x2d1] sm:$0xff] }
 0x223   : > { %v16118_v47 = vpop.f32.mrb[137].mxu0  ;;  %2199 = vst.msk [vmem:[#allocation3 + $0x100] sm:$0xff] %vm2166_vm5, %v1967_v46  ;;  %13964 = vmatprep.mubr.msk.f32.mxu1 %vm1344_vm4, %v5095_v40  ;;  %v5109_v46 = vld [vmem:[#allocation2 + $0x2e9] sm:$0xff] }
 0x224   : > { %14310 = vmatmul.mubr.msk.f32.gmra.mrb[230].mxu0 %vm1344_vm4, %v5097_v50 }
 0x225   : > { %14312 = vmatprep.mubr.msk.f32.mxu0 %vm1344_vm4, %v5098_v52  ;;  %v13817_v57 = vpop.f32.mrb[34].mxu1 }
 0x226   : > { %2202 = vst.msk [vmem:[#allocation3 + $0x118] sm:$0xff] %vm2166_vm5, %v13817_v57  ;;  %v1977_v58 = vpop.f32.mrb[35].mxu1  ;;  %13965 = vmatmul.mubr.msk.f32.gmra.mrb[128].mxu1 %vm1344_vm4, %v5096_v41  ;;  %v5108_v41 = vld [vmem:[#allocation2 + $0x2e1] sm:$0xff] }
 0x227   : > { %v16126_v59 = vpop.f32.mrb[138].mxu0  ;;  %2201 = vst.msk [vmem:[#allocation3 + $0x110] sm:$0xff] %vm2166_vm5, %v1977_v58  ;;  %13967 = vmatprep.mubr.msk.f32.mxu1 %vm1344_vm4, %v5097_v50  ;;  %v5111_v57 = vld [vmem:[#allocation2 + $0x301] sm:$0xff] }
 0x228   : > { %v16130_v0 = vpop.f32.mrb[139].mxu0  ;;  %14313 = vmatmul.mubr.msk.f32.gmra.mrb[232].mxu0 %vm1344_vm4, %v5099_v60 }
 0x229   : > { %14315 = vmatprep.mubr.msk.f32.mxu0 %vm1344_vm4, %v5100_v2 }
 0x22a   : > { %v13820_v3 = vpop.f32.mrb[36].mxu1  ;;  %13968 = vmatmul.mubr.msk.f32.gmra.mrb[130].mxu1 %vm1344_vm4, %v5098_v52  ;;  %v5110_v52 = vld [vmem:[#allocation2 + $0x2f1] sm:$0xff] }
 0x22b   : > { %2204 = vst.msk [vmem:[#allocation3 + $0x128] sm:$0xff] %vm2166_vm5, %v13820_v3  ;;  %v1987_v7 = vpop.f32.mrb[37].mxu1  ;;  %13970 = vmatprep.mubr.msk.f32.mxu1 %vm1344_vm4, %v5099_v60  ;;  %v5112_v60 = vld [vmem:[#allocation2 + $0x309] sm:$0xff]  ;;  %v5113_v3 = vld [vmem:[#allocation2 + $0x311] sm:$0xff] }
 0x22c   : > { %14316 = vmatmul.mubr.msk.f32.gmra.mrb[234].mxu0 %vm1344_vm4, %v5101_v4  ;;  %2203 = vst.msk [vmem:[#allocation3 + $0x120] sm:$0xff] %vm2166_vm5, %v1987_v7 }
 0x22d   : > { %14318 = vmatprep.mubr.msk.f32.mxu0 %vm1344_vm4, %v5102_v8 }
 0x22e   : > { %v16140_v13 = vpop.f32.mrb[140].mxu0  ;;  %13971 = vmatmul.mubr.msk.f32.gmra.mrb[132].mxu1 %vm1344_vm4, %v5100_v2 }
 0x22f   : > { %v16143_v14 = vpop.f32.mrb[141].mxu0  ;;  %13973 = vmatprep.mubr.msk.f32.mxu1 %vm1344_vm4, %v5101_v4 }
 0x230   : > { %14319 = vmatmul.mubr.msk.f32.gmra.mrb[236].mxu0 %vm1344_vm4, %v5103_v15 }
 0x231   : > { %14321 = vmatprep.mubr.msk.f32.mxu0 %vm1344_vm4, %v5104_v18  ;;  %v13823_v21 = vpop.f32.mrb[38].mxu1 }
 0x232   : > { %v16148_v22 = vpop.f32.mrb[142].mxu0  ;;  %2206 = vst.msk [vmem:[#allocation3 + $0x138] sm:$0xff] %vm2166_vm5, %v13823_v21  ;;  %v1997_v23 = vpop.f32.mrb[39].mxu1  ;;  %13974 = vmatmul.mubr.msk.f32.gmra.mrb[134].mxu1 %vm1344_vm4, %v5102_v8  ;;  %v6911_v21 = vld [vmem:[#allocation2 + $0x40] sm:$0xff] }
 0x233   : > { %v16152_v24 = vpop.f32.mrb[143].mxu0  ;;  %2205 = vst.msk [vmem:[#allocation3 + $0x130] sm:$0xff] %vm2166_vm5, %v1997_v23  ;;  %13976 = vmatprep.mubr.msk.f32.mxu1 %vm1344_vm4, %v5103_v15 }
 0x234   : > { %14322 = vmatmul.mubr.msk.f32.gmra.mrb[238].mxu0 %vm1344_vm4, %v5105_v28 }
 0x235   : > { %14324 = vmatprep.mubr.msk.f32.mxu0 %vm1344_vm4, %v5106_v30  ;;  %v13826_v32 = vpop.f32.mrb[40].mxu1 }
 0x236   : > { %2208 = vst.msk [vmem:[#allocation3 + $0x148] sm:$0xff] %vm2166_vm5, %v13826_v32  ;;  %v2007_v33 = vpop.f32.mrb[41].mxu1  ;;  %13977 = vmatmul.mubr.msk.f32.gmra.mrb[136].mxu1 %vm1344_vm4, %v5104_v18  ;;  %v4108_v18 = vld [vmem:[#allocation2 + $0x20] sm:$0xff]  ;;  %v12328_v32 = vld [vmem:[%s18405_s3 + $0xa8] sm:$0xff] }
 0x237   : > { %v16160_v34 = vpop.f32.mrb[144].mxu0  ;;  %2207 = vst.msk [vmem:[#allocation3 + $0x140] sm:$0xff] %vm2166_vm5, %v2007_v33  ;;  %13979 = vmatprep.mubr.msk.f32.mxu1 %vm1344_vm4, %v5105_v28  ;;  %v4109_v28 = vld [vmem:[#allocation2 + $0x28] sm:$0xff] }
 0x238   : > { %v16164_v40 = vpop.f32.mrb[145].mxu0  ;;  %14325 = vmatmul.mubr.msk.f32.gmra.mrb[240].mxu0 %vm1344_vm4, %v5107_v35 }
 0x239   : > { %14327 = vmatprep.mubr.msk.f32.mxu0 %vm1344_vm4, %v5108_v41 }
 0x23a   : > { %v13829_v42 = vpop.f32.mrb[42].mxu1  ;;  %13980 = vmatmul.mubr.msk.f32.gmra.mrb[138].mxu1 %vm1344_vm4, %v5106_v30  ;;  %v12327_v30 = vld [vmem:[%s18405_s3 + $0xa0] sm:$0xff] }
 0x23b   : > { %2210 = vst.msk [vmem:[#allocation3 + $0x158] sm:$0xff] %vm2166_vm5, %v13829_v42  ;;  %v2017_v50 = vpop.f32.mrb[43].mxu1  ;;  %13982 = vmatprep.mubr.msk.f32.mxu1 %vm1344_vm4, %v5107_v35  ;;  %v6912_v42 = vld [vmem:[#allocation2 + $0x48] sm:$0xff] }
 0x23c   : > { %14328 = vmatmul.mubr.msk.f32.gmra.mrb[242].mxu0 %vm1344_vm4, %v5109_v46  ;;  %2209 = vst.msk [vmem:[#allocation3 + $0x150] sm:$0xff] %vm2166_vm5, %v2017_v50 }
 0x23d   : > { %14330 = vmatprep.mubr.msk.f32.mxu0 %vm1344_vm4, %v5110_v52 }
 0x23e   : > { %v16174_v58 = vpop.f32.mrb[146].mxu0  ;;  %13983 = vmatmul.mubr.msk.f32.gmra.mrb[140].mxu1 %vm1344_vm4, %v5108_v41  ;;  %v4110_v41 = vld [vmem:[#allocation2 + $0x30] sm:$0xff] }
 0x23f   : > { %v16177_v2 = vpop.f32.mrb[147].mxu0  ;;  %13985 = vmatprep.mubr.msk.f32.mxu1 %vm1344_vm4, %v5109_v46  ;;  %v15062_v46 = vpack.c.bf16 %v12328_v32, %v12327_v30  ;;  %v6917_v30 = vld [vmem:[#allocation2 + $0x80] sm:$0xff] }
 0x240   : > { %14331 = vmatmul.mubr.msk.f32.gmra.mrb[244].mxu0 %vm1344_vm4, %v5111_v57 }
 0x241   : > { %14333 = vmatprep.mubr.msk.f32.mxu0 %vm1344_vm4, %v5112_v60  ;;  %v13832_v4 = vpop.f32.mrb[44].mxu1  ;;  %15063 = vmatprep.subr.bf16.mxu1 %v15062_v46  ;;  %v6914_v60 = vld [vmem:[#allocation2 + $0x60] sm:$0xff] }
 0x242   : > { %v16182_v7 = vpop.f32.mrb[148].mxu0  ;;  %2212 = vst.msk [vmem:[#allocation3 + $0x168] sm:$0xff] %vm2166_vm5, %v13832_v4  ;;  %v2027_v8 = vpop.f32.mrb[45].mxu1  ;;  %13986 = vmatmul.mubr.msk.f32.gmra.mrb[142].mxu1 %vm1344_vm4, %v5110_v52  ;;  %v6913_v52 = vld [vmem:[#allocation2 + $0x50] sm:$0xff]  ;;  %v6915_v4 = vld [vmem:[#allocation2 + $0x68] sm:$0xff] }
 0x243   : > { %v16186_v15 = vpop.f32.mrb[149].mxu0  ;;  %2211 = vst.msk [vmem:[#allocation3 + $0x160] sm:$0xff] %vm2166_vm5, %v2027_v8  ;;  %14112 = vmatprep.mubr.msk.f32.mxu1 %vm1344_vm4, %v4108_v18 }
 0x244   : > { %14334 = vmatmul.mubr.msk.f32.gmra.mrb[246].mxu0 %vm1344_vm4, %v5113_v3 }
 0x245   : > { %14460 = vmatprep.mubr.msk.f32.mxu0 %vm1344_vm4, %v6911_v21  ;;  %v13835_v23 = vpop.f32.mrb[46].mxu1 }
 0x246   : > { %2214 = vst.msk [vmem:[#allocation3 + $0x178] sm:$0xff] %vm2166_vm5, %v13835_v23  ;;  %v2037_v33 = vpop.f32.mrb[47].mxu1  ;;  %14113 = vmatmul.mubr.msk.f32.vlgmr.msra.gmra.mrb[144].mxu1 %vm1344_vm4, %v4109_v28  ;;  %v12555_v23 = vld [vmem:[%s18405_s3 + $0x100] sm:$0xff]  ;;  %v12556_v28 = vld [vmem:[%s18405_s3 + $0x108] sm:$0xff] }
 0x247   : > { %v16199_v35 = vpop.f32.mrb[150].mxu0  ;;  %2213 = vst.msk [vmem:[#allocation3 + $0x170] sm:$0xff] %vm2166_vm5, %v2037_v33  ;;  %14115 = vmatprep.mubr.msk.f32.mxu1 %vm1344_vm4, %v4110_v41  ;;  %15065 = vmatpush3.bf16.msra.mxu1 %v15062_v46  ;;  %v15086_v32 = vpack.c.bf16 %v12556_v28, %v12555_v23  ;;  %v12330_v46 = vld [vmem:[%s18405_s3 + $0xb8] sm:$0xff]  ;;  %v12557_v23 = vld [vmem:[%s18405_s3 + $0x110] sm:$0xff] }
 0x248   : > { %v16203_v50 = vpop.f32.mrb[151].mxu0  ;;  %14461 = vmatmul.mubr.msk.f32.vlgmr.msra.gmra.mrb[248].mxu0 %vm1344_vm4, %v6912_v42  ;;  %v12558_v28 = vld [vmem:[%s18405_s3 + $0x118] sm:$0xff] }
 0x249   : > { %14463 = vmatprep.mubr.msk.f32.mxu0 %vm1344_vm4, %v6913_v52  ;;  %15087 = vmatprep.subr.bf16.mxu0 %v15086_v32 }
 0x24a   : > { %v13838_v57 = vpop.f32.mrb[48].mxu1  ;;  %14116 = vmatmul.mubr.msk.f32.gmra.mrb[146].mxu1 %vm1344_vm4, %v6911_v21  ;;  %v6916_v21 = vld [vmem:[#allocation2 + $0x70] sm:$0xff]  ;;  %15089 = vmatpush3.bf16.msra.mxu0 %v15086_v32 }
 0x24b   : > { %2216 = vst.msk [vmem:[#allocation3 + $0x188] sm:$0xff] %vm2166_vm5, %v13838_v57  ;;  %v2047_v3 = vpop.f32.mrb[49].mxu1  ;;  %14118 = vmatprep.mubr.msk.f32.mxu1 %vm1344_vm4, %v6912_v42  ;;  %v12329_v42 = vld [vmem:[%s18405_s3 + $0xb0] sm:$0xff] }
 0x24c   : > { %14464 = vmatmul.mubr.msk.f32.gmra.mrb[250].mxu0 %vm1344_vm4, %v6914_v60  ;;  %2215 = vst.msk [vmem:[#allocation3 + $0x180] sm:$0xff] %vm2166_vm5, %v2047_v3  ;;  %v15066_v3 = vpack.c.bf16 %v12330_v46, %v12329_v42  ;;  %v6920_v46 = vld [vmem:[#allocation2 + $0xa0] sm:$0xff] }
 0x24d   : > { %14466 = vmatprep.mubr.msk.f32.mxu0 %vm1344_vm4, %v6915_v4 }
 0x24e   : > { %v16214_v8 = vpop.f32.mrb[152].mxu0  ;;  %14119 = vmatmul.mubr.msk.f32.gmra.mrb[148].mxu1 %vm1344_vm4, %v6913_v52  ;;  %15067 = vmatprep.subr.bf16.mxu1 %v15066_v3 }
 0x24f   : > { %18412 = vst [vmem:[#allocation4_spill] sm:$0xff] %v16214_v8  ;;  %v16216_v18 = vpop.f32.mrb[153].mxu0  ;;  %14121 = vmatprep.mubr.msk.f32.mxu1 %vm1344_vm4, %v6914_v60  ;;  %v6918_v60 = vld [vmem:[#allocation2 + $0x88] sm:$0xff]  ;;  %15069 = vmatpush3.bf16.msra.mxu1 %v15066_v3  ;;  %v6952_v8 = vld [vmem:[#allocation2 + $0x1f0] sm:$0xff] }
 0x250   : > { %18413 = vst [vmem:[#allocation5_spill] sm:$0xff] %v16216_v18  ;;  %14467 = vmatmul.mubr.msk.f32.gmra.mrb[252].mxu0 %vm1344_vm4, %v6916_v21 }
 0x251   : > { %14469 = vmatprep.mubr.msk.f32.mxu0 %vm1344_vm4, %v6917_v30  ;;  %v13841_v33 = vpop.f32.mrb[50].mxu1 }
 0x252   : > { %v16228_v41 = vpop.f32.mrb[154].mxu0  ;;  %2218 = vst.msk [vmem:[#allocation3 + $0x198] sm:$0xff] %vm2166_vm5, %v13841_v33  ;;  %v2057_v52 = vpop.f32.mrb[51].mxu1  ;;  %14122 = vmatmul.mubr.msk.f32.gmra.mrb[150].mxu1 %vm1344_vm4, %v6915_v4  ;;  %v6919_v33 = vld [vmem:[#allocation2 + $0x90] sm:$0xff] }
 0x253   : > { %18414 = vst [vmem:[#allocation6_spill] sm:$0xff] %v16228_v41  ;;  %v16237_v57 = vpop.f32.mrb[155].mxu0  ;;  %2217 = vst.msk [vmem:[#allocation3 + $0x190] sm:$0xff] %vm2166_vm5, %v2057_v52  ;;  %14124 = vmatprep.mubr.msk.f32.mxu1 %vm1344_vm4, %v6916_v21  ;;  %v6921_v52 = vld [vmem:[#allocation2 + $0xa8] sm:$0xff] }
 0x254   : > { %18415 = vst [vmem:[#allocation7_spill] sm:$0xff] %v16237_v57  ;;  %14470 = vmatmul.mubr.msk.f32.gmra.mrb[254].mxu0 %vm1344_vm4, %v6918_v60  ;;  %v15090_v57 = vpack.c.bf16 %v12558_v28, %v12557_v23  ;;  %v6922_v23 = vld [vmem:[#allocation2 + $0xb0] sm:$0xff] }
 0x255   : > { %14472 = vmatprep.mubr.msk.f32.mxu0 %vm1344_vm4, %v6919_v33  ;;  %v13844_v4 = vpop.f32.mrb[52].mxu1 }
 0x256   : > { %15091 = vmatprep.subr.bf16.mxu0 %v15090_v57  ;;  %2220 = vst.msk [vmem:[#allocation3 + $0x1a8] sm:$0xff] %vm2166_vm5, %v13844_v4  ;;  %v2067_v32 = vpop.f32.mrb[53].mxu1  ;;  %14125 = vmatmul.mubr.msk.f32.gmra.mrb[152].mxu1 %vm1344_vm4, %v6917_v30  ;;  %v6925_v4 = vld [vmem:[#allocation2 + $0xd0] sm:$0xff] }
 0x257   : > { %v16251_v42 = vpop.f32.mrb[156].mxu0  ;;  %15093 = vmatpush3.bf16.msra.mxu0 %v15090_v57  ;;  %2219 = vst.msk [vmem:[#allocation3 + $0x1a0] sm:$0xff] %vm2166_vm5, %v2067_v32  ;;  %14127 = vmatprep.mubr.msk.f32.mxu1 %vm1344_vm4, %v6918_v60  ;;  %v6923_v57 = vld [vmem:[#allocation2 + $0xc0] sm:$0xff] }
 0x258   : > { %18416 = vst [vmem:[#allocation8_spill] sm:$0xff] %v16251_v42  ;;  %v16255_v21 = vpop.f32.mrb[157].mxu0  ;;  %14473 = vmatmul.mubr.msk.f32.gmra.mrb[0].mxu0 %vm1344_vm4, %v6920_v46  ;;  %v2957_v42 = vld [vmem:[#allocation3] sm:$0xff] }
 0x259   : > { %18417 = vst [vmem:[#allocation9_spill] sm:$0xff] %v16255_v21  ;;  %14475 = vmatprep.mubr.msk.f32.mxu0 %vm1344_vm4, %v6921_v52 }
 0x25a   : > { %v13847_v3 = vpop.f32.mrb[54].mxu1  ;;  %14128 = vmatmul.mubr.msk.f32.gmra.mrb[154].mxu1 %vm1344_vm4, %v6919_v33  ;;  %v6924_v33 = vld [vmem:[#allocation2 + $0xc8] sm:$0xff] }
 0x25b   : > { %2222 = vst.msk [vmem:[#allocation3 + $0x1b8] sm:$0xff] %vm2166_vm5, %v13847_v3  ;;  %v2077_v30 = vpop.f32.mrb[55].mxu1  ;;  %14130 = vmatprep.mubr.msk.f32.mxu1 %vm1344_vm4, %v6920_v46 }
 0x25c   : > { %14476 = vmatmul.mubr.msk.f32.gmra.mrb[2].mxu0 %vm1344_vm4, %v6922_v23  ;;  %2221 = vst.msk [vmem:[#allocation3 + $0x1b0] sm:$0xff] %vm2166_vm5, %v2077_v30 }
 0x25d   : > { %14478 = vmatprep.mubr.msk.f32.mxu0 %vm1344_vm4, %v6923_v57 }
 0x25e   : > { %v16266_v60 = vpop.f32.mrb[158].mxu0  ;;  %14131 = vmatmul.mubr.msk.f32.gmra.mrb[156].mxu1 %vm1344_vm4, %v6921_v52  ;;  %v6927_v52 = vld [vmem:[#allocation2 + $0xe8] sm:$0xff] }
 0x25f   : > { %18418 = vst [vmem:[#allocation10_spill] sm:$0xff] %v16266_v60  ;;  %v16268_v28 = vpop.f32.mrb[159].mxu0  ;;  %14133 = vmatprep.mubr.msk.f32.mxu1 %vm1344_vm4, %v6922_v23 }
 0x260   : > { %18419 = vst [vmem:[#allocation11_spill] sm:$0xff] %v16268_v28  ;;  %14479 = vmatmul.mubr.msk.f32.gmra.mrb[4].mxu0 %vm1344_vm4, %v6924_v33  ;;  %v6926_v28 = vld [vmem:[#allocation2 + $0xe0] sm:$0xff] }
 0x261   : > { %14481 = vmatprep.mubr.msk.f32.mxu0 %vm1344_vm4, %v6925_v4  ;;  %v13850_v32 = vpop.f32.mrb[56].mxu1 }
 0x262   : > { %v16274_v46 = vpop.f32.mrb[160].mxu0  ;;  %2224 = vst.msk [vmem:[#allocation3 + $0x1c8] sm:$0xff] %vm2166_vm5, %v13850_v32  ;;  %v2087_v3 = vpop.f32.mrb[57].mxu1  ;;  %14134 = vmatmul.mubr.msk.f32.gmra.mrb[158].mxu1 %vm1344_vm4, %v6923_v57 }
 0x263   : > { %18420 = vst [vmem:[#allocation12_spill] sm:$0xff] %v16274_v46  ;;  %v16277_v30 = vpop.f32.mrb[161].mxu0  ;;  %2223 = vst.msk [vmem:[#allocation3 + $0x1c0] sm:$0xff] %vm2166_vm5, %v2087_v3  ;;  %14136 = vmatprep.mubr.msk.f32.mxu1 %vm1344_vm4, %v6924_v33  ;;  %v6929_v33 = vld [vmem:[#allocation2 + $0x100] sm:$0xff] }
 0x264   : > { %18421 = vst [vmem:[#allocation13_spill] sm:$0xff] %v16277_v30  ;;  %14482 = vmatmul.mubr.msk.f32.gmra.mrb[6].mxu0 %vm1344_vm4, %v6926_v28  ;;  %v6928_v30 = vld [vmem:[#allocation2 + $0xf0] sm:$0xff] }
 0x265   : > { %14484 = vmatprep.mubr.msk.f32.mxu0 %vm1344_vm4, %v6927_v52  ;;  %v13853_v23 = vpop.f32.mrb[58].mxu1 }
 0x266   : > { %2226 = vst.msk [vmem:[#allocation3 + $0x1d8] sm:$0xff] %vm2166_vm5, %v13853_v23  ;;  %v2097_v46 = vpop.f32.mrb[59].mxu1  ;;  %14137 = vmatmul.mubr.msk.f32.gmra.mrb[160].mxu1 %vm1344_vm4, %v6925_v4  ;;  %v6930_v23 = vld [vmem:[#allocation2 + $0x108] sm:$0xff]  ;;  %v6931_v4 = vld [vmem:[#allocation2 + $0x110] sm:$0xff] }
 0x267   : > { %v16285_v32 = vpop.f32.mrb[162].mxu0  ;;  %2225 = vst.msk [vmem:[#allocation3 + $0x1d0] sm:$0xff] %vm2166_vm5, %v2097_v46  ;;  %14139 = vmatprep.mubr.msk.f32.mxu1 %vm1344_vm4, %v6926_v28 }
 0x268   : > { %18422 = vst [vmem:[#allocation14_spill] sm:$0xff] %v16285_v32  ;;  %v16289_v57 = vpop.f32.mrb[163].mxu0  ;;  %14485 = vmatmul.mubr.msk.f32.gmra.mrb[8].mxu0 %vm1344_vm4, %v6928_v30 }
 0x269   : > { %18423 = vst [vmem:[#allocation15_spill] sm:$0xff] %v16289_v57  ;;  %14487 = vmatprep.mubr.msk.f32.mxu0 %vm1344_vm4, %v6929_v33 }
 0x26a   : > { %v13856_v3 = vpop.f32.mrb[60].mxu1  ;;  %14140 = vmatmul.mubr.msk.f32.gmra.mrb[162].mxu1 %vm1344_vm4, %v6927_v52  ;;  %v6932_v52 = vld [vmem:[#allocation2 + $0x120] sm:$0xff] }
 0x26b   : > { %2228 = vst.msk [vmem:[#allocation3 + $0x1e8] sm:$0xff] %vm2166_vm5, %v13856_v3  ;;  %v2107_v32 = vpop.f32.mrb[61].mxu1  ;;  %14142 = vmatprep.mubr.msk.f32.mxu1 %vm1344_vm4, %v6928_v30  ;;  %v6933_v3 = vld [vmem:[#allocation2 + $0x128] sm:$0xff] }
 0x26c   : > { %14488 = vmatmul.mubr.msk.f32.gmra.mrb[10].mxu0 %vm1344_vm4, %v6930_v23  ;;  %2227 = vst.msk [vmem:[#allocation3 + $0x1e0] sm:$0xff] %vm2166_vm5, %v2107_v32 }
 0x26d   : > { %14490 = vmatprep.mubr.msk.f32.mxu0 %vm1344_vm4, %v6931_v4 }
 0x26e   : > { %v16300_v28 = vpop.f32.mrb[164].mxu0  ;;  %14143 = vmatmul.mubr.msk.f32.gmra.mrb[164].mxu1 %vm1344_vm4, %v6929_v33  ;;  %v6935_v33 = vld [vmem:[#allocation2 + $0x140] sm:$0xff] }
 0x26f   : > { %18424 = vst [vmem:[#allocation16_spill] sm:$0xff] %v16300_v28  ;;  %v16302_v46 = vpop.f32.mrb[165].mxu0  ;;  %14145 = vmatprep.mubr.msk.f32.mxu1 %vm1344_vm4, %v6930_v23 }
 0x270   : > { %18425 = vst [vmem:[#allocation17_spill] sm:$0xff] %v16302_v46  ;;  %14491 = vmatmul.mubr.msk.f32.gmra.mrb[12].mxu0 %vm1344_vm4, %v6932_v52  ;;  %v6934_v46 = vld [vmem:[#allocation2 + $0x130] sm:$0xff] }
 0x271   : > { %14493 = vmatprep.mubr.msk.f32.mxu0 %vm1344_vm4, %v6933_v3  ;;  %v13859_v30 = vpop.f32.mrb[62].mxu1 }
 0x272   : > { %v16308_v57 = vpop.f32.mrb[166].mxu0  ;;  %2230 = vst.msk [vmem:[#allocation3 + $0x1f8] sm:$0xff] %vm2166_vm5, %v13859_v30  ;;  %v2117_v32 = vpop.f32.mrb[63].mxu1  ;;  %14146 = vmatmul.mubr.msk.f32.gmra.mrb[166].mxu1 %vm1344_vm4, %v6931_v4 }
 0x273   : > { %18426 = vst [vmem:[#allocation18_spill] sm:$0xff] %v16308_v57  ;;  %v16311_v60 = vpop.f32.mrb[167].mxu0  ;;  %2229 = vst.msk [vmem:[#allocation3 + $0x1f0] sm:$0xff] %vm2166_vm5, %v2117_v32  ;;  %14148 = vmatprep.mubr.msk.f32.mxu1 %vm1344_vm4, %v6932_v52  ;;  %v6937_v52 = vld [vmem:[#allocation2 + $0x150] sm:$0xff] }
 0x274   : > { %18427 = vst [vmem:[#allocation19_spill] sm:$0xff] %v16311_v60  ;;  %14494 = vmatmul.mubr.msk.f32.gmra.mrb[14].mxu0 %vm1344_vm4, %v6934_v46  ;;  %v6936_v60 = vld [vmem:[#allocation2 + $0x148] sm:$0xff] }
 0x275   : > { %14496 = vmatprep.mubr.msk.f32.mxu0 %vm1344_vm4, %v6935_v33  ;;  %v13862_v23 = vpop.f32.mrb[64].mxu1 }
 0x276   : > { %2232 = vst.msk [vmem:[#allocation3 + $0x208] sm:$0xff] %vm2166_vm5, %v13862_v23  ;;  %v2127_v57 = vpop.f32.mrb[65].mxu1  ;;  %14149 = vmatmul.mubr.msk.f32.gmra.mrb[168].mxu1 %vm1344_vm4, %v6933_v3  ;;  %v6938_v23 = vld [vmem:[#allocation2 + $0x160] sm:$0xff] }
 0x277   : > { %v16319_v30 = vpop.f32.mrb[168].mxu0  ;;  %2231 = vst.msk [vmem:[#allocation3 + $0x200] sm:$0xff] %vm2166_vm5, %v2127_v57  ;;  %14151 = vmatprep.mubr.msk.f32.mxu1 %vm1344_vm4, %v6934_v46  ;;  %v6939_v57 = vld [vmem:[#allocation2 + $0x168] sm:$0xff] }
 0x278   : > { %18428 = vst [vmem:[#allocation20_spill] sm:$0xff] %v16319_v30  ;;  %v16323_v4 = vpop.f32.mrb[169].mxu0  ;;  %14497 = vmatmul.mubr.msk.f32.gmra.mrb[16].mxu0 %vm1344_vm4, %v6936_v60 }
 0x279   : > { %18429 = vst [vmem:[#allocation21_spill] sm:$0xff] %v16323_v4  ;;  %14499 = vmatprep.mubr.msk.f32.mxu0 %vm1344_vm4, %v6937_v52 }
 0x27a   : > { %v13865_v32 = vpop.f32.mrb[66].mxu1  ;;  %14152 = vmatmul.mubr.msk.f32.gmra.mrb[170].mxu1 %vm1344_vm4, %v6935_v33  ;;  %v6940_v33 = vld [vmem:[#allocation2 + $0x170] sm:$0xff] }
 0x27b   : > { %2234 = vst.msk [vmem:[#allocation3 + $0x218] sm:$0xff] %vm2166_vm5, %v13865_v32  ;;  %v2137_v30 = vpop.f32.mrb[67].mxu1  ;;  %14154 = vmatprep.mubr.msk.f32.mxu1 %vm1344_vm4, %v6936_v60  ;;  %v6941_v32 = vld [vmem:[#allocation2 + $0x180] sm:$0xff] }
 0x27c   : > { %14500 = vmatmul.mubr.msk.f32.gmra.mrb[18].mxu0 %vm1344_vm4, %v6938_v23  ;;  %2233 = vst.msk [vmem:[#allocation3 + $0x210] sm:$0xff] %vm2166_vm5, %v2137_v30 }
 0x27d   : > { %14502 = vmatprep.mubr.msk.f32.mxu0 %vm1344_vm4, %v6939_v57 }
 0x27e   : > { %v16334_v46 = vpop.f32.mrb[170].mxu0  ;;  %14155 = vmatmul.mubr.msk.f32.gmra.mrb[172].mxu1 %vm1344_vm4, %v6937_v52  ;;  %v6943_v52 = vld [vmem:[#allocation2 + $0x190] sm:$0xff] }
 0x27f   : > { %18430 = vst [vmem:[#allocation22_spill] sm:$0xff] %v16334_v46  ;;  %v16336_v3 = vpop.f32.mrb[171].mxu0  ;;  %14157 = vmatprep.mubr.msk.f32.mxu1 %vm1344_vm4, %v6938_v23  ;;  %v2958_v46 = vld [vmem:[#allocation3 + $0x8] sm:$0xff] }
 0x280   : > { %18431 = vst [vmem:[#allocation23_spill] sm:$0xff] %v16336_v3  ;;  %14503 = vmatmul.mubr.msk.f32.gmra.mrb[20].mxu0 %vm1344_vm4, %v6940_v33  ;;  %v6942_v3 = vld [vmem:[#allocation2 + $0x188] sm:$0xff] }
 0x281   : > { %14505 = vmatprep.mubr.msk.f32.mxu0 %vm1344_vm4, %v6941_v32  ;;  %v13868_v60 = vpop.f32.mrb[68].mxu1 }
 0x282   : > { %v16342_v4 = vpop.f32.mrb[172].mxu0  ;;  %2236 = vst.msk [vmem:[#allocation3 + $0x228] sm:$0xff] %vm2166_vm5, %v13868_v60  ;;  %v2147_v30 = vpop.f32.mrb[69].mxu1  ;;  %14158 = vmatmul.mubr.msk.f32.gmra.mrb[174].mxu1 %vm1344_vm4, %v6939_v57 }
 0x283   : > { %18432 = vst [vmem:[#allocation24_spill] sm:$0xff] %v16342_v4  ;;  %v16345_v28 = vpop.f32.mrb[173].mxu0  ;;  %2235 = vst.msk [vmem:[#allocation3 + $0x220] sm:$0xff] %vm2166_vm5, %v2147_v30  ;;  %14160 = vmatprep.mubr.msk.f32.mxu1 %vm1344_vm4, %v6940_v33  ;;  %v6945_v33 = vld [vmem:[#allocation2 + $0x1a8] sm:$0xff] }
 0x284   : > { %18433 = vst [vmem:[#allocation25_spill] sm:$0xff] %v16345_v28  ;;  %14506 = vmatmul.mubr.msk.f32.gmra.mrb[22].mxu0 %vm1344_vm4, %v6942_v3  ;;  %v6944_v28 = vld [vmem:[#allocation2 + $0x1a0] sm:$0xff] }
 0x285   : > { %14508 = vmatprep.mubr.msk.f32.mxu0 %vm1344_vm4, %v6943_v52  ;;  %v13871_v23 = vpop.f32.mrb[70].mxu1 }
 0x286   : > { %2238 = vst.msk [vmem:[#allocation3 + $0x238] sm:$0xff] %vm2166_vm5, %v13871_v23  ;;  %v2157_v4 = vpop.f32.mrb[71].mxu1  ;;  %14161 = vmatmul.mubr.msk.f32.gmra.mrb[176].mxu1 %vm1344_vm4, %v6941_v32 }
 0x287   : > { %v16353_v60 = vpop.f32.mrb[174].mxu0  ;;  %2237 = vst.msk [vmem:[#allocation3 + $0x230] sm:$0xff] %vm2166_vm5, %v2157_v4  ;;  %14163 = vmatprep.mubr.msk.f32.mxu1 %vm1344_vm4, %v6942_v3  ;;  %v6947_v3 = vld [vmem:[#allocation2 + $0x1c0] sm:$0xff] }
 0x288   : > { %18434 = vst [vmem:[#allocation26_spill] sm:$0xff] %v16353_v60  ;;  %v16357_v57 = vpop.f32.mrb[175].mxu0  ;;  %14509 = vmatmul.mubr.msk.f32.gmra.mrb[24].mxu0 %vm1344_vm4, %v6944_v28  ;;  %v6946_v60 = vld [vmem:[#allocation2 + $0x1b0] sm:$0xff] }
 0x289   : > { %18435 = vst [vmem:[#allocation27_spill] sm:$0xff] %v16357_v57  ;;  %14511 = vmatprep.mubr.msk.f32.mxu0 %vm1344_vm4, %v6945_v33  ;;  %v13882_v30 = vpop.f32.mrb[72].mxu1 }
 0x28a   : > { %v3030_v23 = vadd.f32 %v13882_v30, %v2958_v46  ;;  %v2598_v21 = vpop.f32.mrb[73].mxu1  ;;  %14164 = vmatmul.mubr.msk.f32.gmra.mrb[178].mxu1 %vm1344_vm4, %v6943_v52  ;;  %v2960_v30 = vld [vmem:[#allocation3 + $0x18] sm:$0xff] }
 0x28b   : > { %v16363_v32 = vpop.f32.mrb[176].mxu0  ;;  %v3029_v4 = vadd.f32 %v2957_v42, %v2598_v21  ;;  %14166 = vmatprep.mubr.msk.f32.mxu1 %vm1344_vm4, %v6944_v28  ;;  %v6948_v21 = vld [vmem:[#allocation2 + $0x1c8] sm:$0xff] }
 0x28c   : > { %18436 = vst [vmem:[#allocation28_spill] sm:$0xff] %v16363_v32  ;;  %v16366_v57 = vpop.f32.mrb[177].mxu0  ;;  %14512 = vmatmul.mubr.msk.f32.gmra.mrb[26].mxu0 %vm1344_vm4, %v6946_v60  ;;  %3102 = vst.msk [vmem:[#allocation3 + $0x8] sm:$0xff] %vm2166_vm5, %v3030_v23  ;;  %v2959_v32 = vld [vmem:[#allocation3 + $0x10] sm:$0xff] }
 0x28d   : > { %18437 = vst [vmem:[#allocation29_spill] sm:$0xff] %v16366_v57  ;;  %14514 = vmatprep.mubr.msk.f32.mxu0 %vm1344_vm4, %v6947_v3  ;;  %3101 = vst.msk [vmem:[#allocation3] sm:$0xff] %vm2166_vm5, %v3029_v4  ;;  %v13885_v46 = vpop.f32.mrb[74].mxu1  ;;  %v6949_v23 = vld [vmem:[#allocation2 + $0x1d0] sm:$0xff] }
 0x28e   : > { %v3032_v52 = vadd.f32 %v13885_v46, %v2960_v30  ;;  %v2608_v41 = vpop.f32.mrb[75].mxu1  ;;  %14167 = vmatmul.mubr.msk.f32.gmra.mrb[180].mxu1 %vm1344_vm4, %v6945_v33  ;;  %v2962_v46 = vld [vmem:[#allocation3 + $0x28] sm:$0xff] }
 0x28f   : > { %v16373_v42 = vpop.f32.mrb[178].mxu0  ;;  %v3031_v28 = vadd.f32 %v2959_v32, %v2608_v41  ;;  %14169 = vmatprep.mubr.msk.f32.mxu1 %vm1344_vm4, %v6946_v60  ;;  %v6950_v60 = vld [vmem:[#allocation2 + $0x1e0] sm:$0xff] }
 0x290   : > { %18438 = vst [vmem:[#allocation30_spill] sm:$0xff] %v16373_v42  ;;  %v16376_v57 = vpop.f32.mrb[179].mxu0  ;;  %14515 = vmatmul.mubr.msk.f32.gmra.mrb[28].mxu0 %vm1344_vm4, %v6948_v21  ;;  %3104 = vst.msk [vmem:[#allocation3 + $0x18] sm:$0xff] %vm2166_vm5, %v3032_v52  ;;  %v2961_v42 = vld [vmem:[#allocation3 + $0x20] sm:$0xff]  ;;  %v6951_v52 = vld [vmem:[#allocation2 + $0x1e8] sm:$0xff] }
 0x291   : > { %18439 = vst [vmem:[#allocation31_spill] sm:$0xff] %v16376_v57  ;;  %14517 = vmatprep.mubr.msk.f32.mxu0 %vm1344_vm4, %v6949_v23  ;;  %3103 = vst.msk [vmem:[#allocation3 + $0x10] sm:$0xff] %vm2166_vm5, %v3031_v28  ;;  %v13888_v4 = vpop.f32.mrb[76].mxu1 }
 0x292   : > { %v3034_v33 = vadd.f32 %v13888_v4, %v2962_v46  ;;  %v2618_v30 = vpop.f32.mrb[77].mxu1  ;;  %14170 = vmatmul.mubr.msk.f32.gmra.mrb[182].mxu1 %vm1344_vm4, %v6947_v3  ;;  %v2964_v46 = vld [vmem:[#allocation3 + $0x38] sm:$0xff] }
 0x293   : > { %v16383_v41 = vpop.f32.mrb[180].mxu0  ;;  %v3033_v32 = vadd.f32 %v2961_v42, %v2618_v30  ;;  %14172 = vmatprep.mubr.msk.f32.mxu1 %vm1344_vm4, %v6948_v21  ;;  %v3892_v18 = vld [vmem:[#allocation3 + $0x8] sm:$0xff] }
 0x294   : > { %18440 = vst [vmem:[#allocation32_spill] sm:$0xff] %v16383_v41  ;;  %v16386_v57 = vpop.f32.mrb[181].mxu0  ;;  %14518 = vmatmul.mubr.msk.f32.gmra.mrb[30].mxu0 %vm1344_vm4, %v6950_v60  ;;  %3106 = vst.msk [vmem:[#allocation3 + $0x28] sm:$0xff] %vm2166_vm5, %v3034_v33  ;;  %v3964_v28 = vadd.f32 %v15936_v48, %v3892_v18  ;;  %v3891_v4 = vld [vmem:[#allocation3] sm:$0xff] }
 0x295   : > { %18441 = vst [vmem:[#allocation33_spill] sm:$0xff] %v16386_v57  ;;  %14520 = vmatprep.mubr.msk.f32.mxu0 %vm1344_vm4, %v6951_v52  ;;  %3105 = vst.msk [vmem:[#allocation3 + $0x20] sm:$0xff] %vm2166_vm5, %v3033_v32  ;;  %v13891_v3 = vpop.f32.mrb[78].mxu1  ;;  %v3963_v42 = vadd.f32 %v3891_v4, %v15939_v49  ;;  %v2963_v57 = vld [vmem:[#allocation3 + $0x30] sm:$0xff]  ;;  %v6953_v18 = vld [vmem:[#allocation2 + $0x200] sm:$0xff] }
 0x296   : > { %v3036_v21 = vadd.f32 %v13891_v3, %v2964_v46  ;;  %v2628_v30 = vpop.f32.mrb[79].mxu1  ;;  %14173 = vmatmul.mubr.msk.f32.gmra.mrb[184].mxu1 %vm1344_vm4, %v6949_v23  ;;  %4036 = vst.msk [vmem:[#allocation3 + $0x8] sm:$0xff] %vm2166_vm5, %v3964_v28  ;;  %v2966_v28 = vld [vmem:[#allocation3 + $0x48] sm:$0xff]  ;;  %v2965_v46 = vld [vmem:[#allocation3 + $0x40] sm:$0xff] }
 0x297   : > { %v16395_v41 = vpop.f32.mrb[182].mxu0  ;;  %v3035_v33 = vadd.f32 %v2963_v57, %v2628_v30  ;;  %14175 = vmatprep.mubr.msk.f32.mxu1 %vm1344_vm4, %v6950_v60  ;;  %4035 = vst.msk [vmem:[#allocation3] sm:$0xff] %vm2166_vm5, %v3963_v42  ;;  %v3894_v49 = vld [vmem:[#allocation3 + $0x18] sm:$0xff]  ;;  %v6954_v30 = vld [vmem:[#allocation2 + $0x208] sm:$0xff] }
 0x298   : > { %v16399_v48 = vpop.f32.mrb[183].mxu0  ;;  %14521 = vmatmul.mubr.msk.f32.gmra.mrb[32].mxu0 %vm1344_vm4, %v6952_v8  ;;  %3108 = vst.msk [vmem:[#allocation3 + $0x38] sm:$0xff] %vm2166_vm5, %v3036_v21  ;;  %v3966_v23 = vadd.f32 %v15944_v53, %v3894_v49  ;;  %v3893_v32 = vld [vmem:[#allocation3 + $0x10] sm:$0xff] }
 0x299   : > { %14523 = vmatprep.mubr.msk.f32.mxu0 %vm1344_vm4, %v6953_v18  ;;  %3107 = vst.msk [vmem:[#allocation3 + $0x30] sm:$0xff] %vm2166_vm5, %v3035_v33  ;;  %v13894_v57 = vpop.f32.mrb[80].mxu1  ;;  %v3965_v60 = vadd.f32 %v3893_v32, %v15948_v56  ;;  %v6955_v33 = vld [vmem:[#allocation2 + $0x210] sm:$0xff]  ;;  %v2968_v32 = vld [vmem:[#allocation3 + $0x58] sm:$0xff] }
 0x29a   : > { %v3038_v4 = vadd.f32 %v13894_v57, %v2966_v28  ;;  %v2638_v3 = vpop.f32.mrb[81].mxu1  ;;  %14176 = vmatmul.mubr.msk.f32.gmra.mrb[186].mxu1 %vm1344_vm4, %v6951_v52  ;;  %4038 = vst.msk [vmem:[#allocation3 + $0x18] sm:$0xff] %vm2166_vm5, %v3966_v23 }
 0x29b   : > { %v16409_v42 = vpop.f32.mrb[184].mxu0  ;;  %v3037_v21 = vadd.f32 %v2965_v46, %v2638_v3  ;;  %14178 = vmatprep.mubr.msk.f32.mxu1 %vm1344_vm4, %v6952_v8  ;;  %4037 = vst.msk [vmem:[#allocation3 + $0x10] sm:$0xff] %vm2166_vm5, %v3965_v60  ;;  %v3896_v56 = vld [vmem:[#allocation3 + $0x28] sm:$0xff]  ;;  %v2967_v3 = vld [vmem:[#allocation3 + $0x50] sm:$0xff]  ;;  %v6956_v46 = vld [vmem:[#allocation2 + $0x220] sm:$0xff] }
 0x29c   : > { %v16413_v53 = vpop.f32.mrb[185].mxu0  ;;  %14524 = vmatmul.mubr.msk.f32.gmra.mrb[34].mxu0 %vm1344_vm4, %v6954_v30  ;;  %3110 = vst.msk [vmem:[#allocation3 + $0x48] sm:$0xff] %vm2166_vm5, %v3038_v4  ;;  %v3968_v52 = vadd.f32 %v15956_v61, %v3896_v56  ;;  %v3895_v49 = vld [vmem:[#allocation3 + $0x20] sm:$0xff] }
 0x29d   : > { %14526 = vmatprep.mubr.msk.f32.mxu0 %vm1344_vm4, %v6955_v33  ;;  %3109 = vst.msk [vmem:[#allocation3 + $0x40] sm:$0xff] %vm2166_vm5, %v3037_v21  ;;  %v13897_v23 = vpop.f32.mrb[82].mxu1  ;;  %v3967_v8 = vadd.f32 %v3895_v49, %v15960_v63  ;;  %v6957_v21 = vld [vmem:[#allocation2 + $0x228] sm:$0xff] }
 0x29e   : > { %v3040_v57 = vadd.f32 %v13897_v23, %v2968_v32  ;;  %v2648_v28 = vpop.f32.mrb[83].mxu1  ;;  %14179 = vmatmul.mubr.msk.f32.gmra.mrb[188].mxu1 %vm1344_vm4, %v6953_v18  ;;  %4040 = vst.msk [vmem:[#allocation3 + $0x28] sm:$0xff] %vm2166_vm5, %v3968_v52  ;;  %v2970_v49 = vld [vmem:[#allocation3 + $0x68] sm:$0xff] }
 0x29f   : > { %v16423_v60 = vpop.f32.mrb[186].mxu0  ;;  %v3039_v4 = vadd.f32 %v2967_v3, %v2648_v28  ;;  %14181 = vmatprep.mubr.msk.f32.mxu1 %vm1344_vm4, %v6954_v30  ;;  %4039 = vst.msk [vmem:[#allocation3 + $0x20] sm:$0xff] %vm2166_vm5, %v3967_v8  ;;  %v3898_v63 = vld [vmem:[#allocation3 + $0x38] sm:$0xff]  ;;  %v2969_v28 = vld [vmem:[#allocation3 + $0x60] sm:$0xff]  ;;  %v6958_v3 = vld [vmem:[#allocation2 + $0x230] sm:$0xff] }
 0x2a0   : > { %v16427_v61 = vpop.f32.mrb[187].mxu0  ;;  %14527 = vmatmul.mubr.msk.f32.gmra.mrb[36].mxu0 %vm1344_vm4, %v6956_v46  ;;  %3112 = vst.msk [vmem:[#allocation3 + $0x58] sm:$0xff] %vm2166_vm5, %v3040_v57  ;;  %v3970_v18 = vadd.f32 %v15970_v5, %v3898_v63  ;;  %v3897_v56 = vld [vmem:[#allocation3 + $0x30] sm:$0xff] }
 0x2a1   : > { %14529 = vmatprep.mubr.msk.f32.mxu0 %vm1344_vm4, %v6957_v21  ;;  %3111 = vst.msk [vmem:[#allocation3 + $0x50] sm:$0xff] %vm2166_vm5, %v3039_v4  ;;  %v13900_v52 = vpop.f32.mrb[84].mxu1  ;;  %v3969_v30 = vadd.f32 %v3897_v56, %v15973_v6  ;;  %v6959_v4 = vld [vmem:[#allocation2 + $0x240] sm:$0xff]  ;;  %v2972_v56 = vld [vmem:[#allocation3 + $0x78] sm:$0xff] }
 0x2a2   : > { %v3042_v23 = vadd.f32 %v13900_v52, %v2970_v49  ;;  %v2658_v32 = vpop.f32.mrb[85].mxu1  ;;  %14182 = vmatmul.mubr.msk.f32.gmra.mrb[190].mxu1 %vm1344_vm4, %v6955_v33  ;;  %4042 = vst.msk [vmem:[#allocation3 + $0x38] sm:$0xff] %vm2166_vm5, %v3970_v18 }
 0x2a3   : > { %v16437_v8 = vpop.f32.mrb[188].mxu0  ;;  %v3041_v57 = vadd.f32 %v2969_v28, %v2658_v32  ;;  %14184 = vmatprep.mubr.msk.f32.mxu1 %vm1344_vm4, %v6956_v46  ;;  %4041 = vst.msk [vmem:[#allocation3 + $0x30] sm:$0xff] %vm2166_vm5, %v3969_v30  ;;  %v3900_v6 = vld [vmem:[#allocation3 + $0x48] sm:$0xff]  ;;  %v2971_v32 = vld [vmem:[#allocation3 + $0x70] sm:$0xff] }
 0x2a4   : > { %v16441_v5 = vpop.f32.mrb[189].mxu0  ;;  %14530 = vmatmul.mubr.msk.f32.gmra.mrb[38].mxu0 %vm1344_vm4, %v6958_v3  ;;  %3114 = vst.msk [vmem:[#allocation3 + $0x68] sm:$0xff] %vm2166_vm5, %v3042_v23  ;;  %v3972_v33 = vadd.f32 %v15978_v11, %v3900_v6  ;;  %v3899_v63 = vld [vmem:[#allocation3 + $0x40] sm:$0xff]  ;;  %v6960_v28 = vld [vmem:[#allocation2 + $0x248] sm:$0xff] }
 0x2a5   : > { %14532 = vmatprep.mubr.msk.f32.mxu0 %vm1344_vm4, %v6959_v4  ;;  %3113 = vst.msk [vmem:[#allocation3 + $0x60] sm:$0xff] %vm2166_vm5, %v3041_v57  ;;  %v13903_v18 = vpop.f32.mrb[86].mxu1  ;;  %v3971_v46 = vadd.f32 %v3899_v63, %v15982_v55  ;;  %v6961_v57 = vld [vmem:[#allocation2 + $0x250] sm:$0xff]  ;;  %v2974_v63 = vld [vmem:[#allocation3 + $0x88] sm:$0xff] }
 0x2a6   : > { %v3044_v52 = vadd.f32 %v13903_v18, %v2972_v56  ;;  %v2668_v49 = vpop.f32.mrb[87].mxu1  ;;  %14185 = vmatmul.mubr.msk.f32.gmra.mrb[192].mxu1 %vm1344_vm4, %v6957_v21  ;;  %4044 = vst.msk [vmem:[#allocation3 + $0x48] sm:$0xff] %vm2166_vm5, %v3972_v33 }
 0x2a7   : > { %v16451_v30 = vpop.f32.mrb[190].mxu0  ;;  %v3043_v23 = vadd.f32 %v2971_v32, %v2668_v49  ;;  %14187 = vmatprep.mubr.msk.f32.mxu1 %vm1344_vm4, %v6958_v3  ;;  %4043 = vst.msk [vmem:[#allocation3 + $0x40] sm:$0xff] %vm2166_vm5, %v3971_v46  ;;  %v3902_v55 = vld [vmem:[#allocation3 + $0x58] sm:$0xff]  ;;  %v2973_v49 = vld [vmem:[#allocation3 + $0x80] sm:$0xff] }
 0x2a8   : > { %v16455_v11 = vpop.f32.mrb[191].mxu0  ;;  %14533 = vmatmul.mubr.msk.f32.gmra.mrb[40].mxu0 %vm1344_vm4, %v6960_v28  ;;  %3116 = vst.msk [vmem:[#allocation3 + $0x78] sm:$0xff] %vm2166_vm5, %v3044_v52  ;;  %v3974_v21 = vadd.f32 %v15990_v17, %v3902_v55  ;;  %v3901_v6 = vld [vmem:[#allocation3 + $0x50] sm:$0xff]  ;;  %v6962_v32 = vld [vmem:[#allocation2 + $0x260] sm:$0xff] }
 0x2a9   : > { %14535 = vmatprep.mubr.msk.f32.mxu0 %vm1344_vm4, %v6961_v57  ;;  %3115 = vst.msk [vmem:[#allocation3 + $0x70] sm:$0xff] %vm2166_vm5, %v3043_v23  ;;  %v13906_v33 = vpop.f32.mrb[88].mxu1  ;;  %v3973_v3 = vadd.f32 %v3901_v6, %v15994_v19  ;;  %v6963_v23 = vld [vmem:[#allocation2 + $0x268] sm:$0xff]  ;;  %v2976_v6 = vld [vmem:[#allocation3 + $0x98] sm:$0xff] }
 0x2aa   : > { %v3046_v18 = vadd.f32 %v13906_v33, %v2974_v63  ;;  %v2678_v56 = vpop.f32.mrb[89].mxu1  ;;  %14188 = vmatmul.mubr.msk.f32.gmra.mrb[194].mxu1 %vm1344_vm4, %v6959_v4  ;;  %4046 = vst.msk [vmem:[#allocation3 + $0x58] sm:$0xff] %vm2166_vm5, %v3974_v21 }
 0x2ab   : > { %v16465_v46 = vpop.f32.mrb[192].mxu0  ;;  %v3045_v52 = vadd.f32 %v2973_v49, %v2678_v56  ;;  %14190 = vmatprep.mubr.msk.f32.mxu1 %vm1344_vm4, %v6960_v28  ;;  %4045 = vst.msk [vmem:[#allocation3 + $0x50] sm:$0xff] %vm2166_vm5, %v3973_v3  ;;  %v3904_v19 = vld [vmem:[#allocation3 + $0x68] sm:$0xff]  ;;  %v2975_v56 = vld [vmem:[#allocation3 + $0x90] sm:$0xff] }
 0x2ac   : > { %v16469_v17 = vpop.f32.mrb[193].mxu0  ;;  %14536 = vmatmul.mubr.msk.f32.gmra.mrb[42].mxu0 %vm1344_vm4, %v6962_v32  ;;  %3118 = vst.msk [vmem:[#allocation3 + $0x88] sm:$0xff] %vm2166_vm5, %v3046_v18  ;;  %v3976_v4 = vadd.f32 %v16004_v25, %v3904_v19  ;;  %v3903_v55 = vld [vmem:[#allocation3 + $0x60] sm:$0xff]  ;;  %v6964_v49 = vld [vmem:[#allocation2 + $0x270] sm:$0xff] }
 0x2ad   : > { %14538 = vmatprep.mubr.msk.f32.mxu0 %vm1344_vm4, %v6963_v23  ;;  %3117 = vst.msk [vmem:[#allocation3 + $0x80] sm:$0xff] %vm2166_vm5, %v3045_v52  ;;  %v13909_v21 = vpop.f32.mrb[90].mxu1  ;;  %v3975_v28 = vadd.f32 %v3903_v55, %v16007_v26  ;;  %v6965_v52 = vld [vmem:[#allocation2 + $0x280] sm:$0xff]  ;;  %v2978_v55 = vld [vmem:[#allocation3 + $0xa8] sm:$0xff] }
 0x2ae   : > { %v3048_v33 = vadd.f32 %v13909_v21, %v2976_v6  ;;  %v2688_v63 = vpop.f32.mrb[91].mxu1  ;;  %14191 = vmatmul.mubr.msk.f32.gmra.mrb[196].mxu1 %vm1344_vm4, %v6961_v57  ;;  %4048 = vst.msk [vmem:[#allocation3 + $0x68] sm:$0xff] %vm2166_vm5, %v3976_v4 }
 0x2af   : > { %v16479_v3 = vpop.f32.mrb[194].mxu0  ;;  %v3047_v18 = vadd.f32 %v2975_v56, %v2688_v63  ;;  %14193 = vmatprep.mubr.msk.f32.mxu1 %vm1344_vm4, %v6962_v32  ;;  %4047 = vst.msk [vmem:[#allocation3 + $0x60] sm:$0xff] %vm2166_vm5, %v3975_v28  ;;  %v3906_v26 = vld [vmem:[#allocation3 + $0x78] sm:$0xff]  ;;  %v2977_v63 = vld [vmem:[#allocation3 + $0xa0] sm:$0xff]  ;;  %v6966_v56 = vld [vmem:[#allocation2 + $0x288] sm:$0xff] }
 0x2b0   : > { %v16483_v25 = vpop.f32.mrb[195].mxu0  ;;  %14539 = vmatmul.mubr.msk.f32.gmra.mrb[44].mxu0 %vm1344_vm4, %v6964_v49  ;;  %3120 = vst.msk [vmem:[#allocation3 + $0x98] sm:$0xff] %vm2166_vm5, %v3048_v33  ;;  %v3978_v57 = vadd.f32 %v16012_v29, %v3906_v26  ;;  %v3905_v19 = vld [vmem:[#allocation3 + $0x70] sm:$0xff] }
 0x2b1   : > { %14541 = vmatprep.mubr.msk.f32.mxu0 %vm1344_vm4, %v6965_v52  ;;  %3119 = vst.msk [vmem:[#allocation3 + $0x90] sm:$0xff] %vm2166_vm5, %v3047_v18  ;;  %v13912_v4 = vpop.f32.mrb[92].mxu1  ;;  %v3977_v32 = vadd.f32 %v3905_v19, %v16016_v31  ;;  %v6967_v18 = vld [vmem:[#allocation2 + $0x290] sm:$0xff]  ;;  %v2980_v19 = vld [vmem:[#allocation3 + $0xb8] sm:$0xff] }
 0x2b2   : > { %v3050_v21 = vadd.f32 %v13912_v4, %v2978_v55  ;;  %v2698_v6 = vpop.f32.mrb[93].mxu1  ;;  %14194 = vmatmul.mubr.msk.f32.gmra.mrb[198].mxu1 %vm1344_vm4, %v6963_v23  ;;  %4050 = vst.msk [vmem:[#allocation3 + $0x78] sm:$0xff] %vm2166_vm5, %v3978_v57 }
 0x2b3   : > { %v16493_v28 = vpop.f32.mrb[196].mxu0  ;;  %v3049_v33 = vadd.f32 %v2977_v63, %v2698_v6  ;;  %14196 = vmatprep.mubr.msk.f32.mxu1 %vm1344_vm4, %v6964_v49  ;;  %4049 = vst.msk [vmem:[#allocation3 + $0x70] sm:$0xff] %vm2166_vm5, %v3977_v32  ;;  %v3908_v31 = vld [vmem:[#allocation3 + $0x88] sm:$0xff]  ;;  %v2979_v6 = vld [vmem:[#allocation3 + $0xb0] sm:$0xff]  ;;  %v6968_v63 = vld [vmem:[#allocation2 + $0x2a0] sm:$0xff] }
 0x2b4   : > { %v16497_v29 = vpop.f32.mrb[197].mxu0  ;;  %14542 = vmatmul.mubr.msk.f32.gmra.mrb[46].mxu0 %vm1344_vm4, %v6966_v56  ;;  %3122 = vst.msk [vmem:[#allocation3 + $0xa8] sm:$0xff] %vm2166_vm5, %v3050_v21  ;;  %v3980_v23 = vadd.f32 %v16024_v36, %v3908_v31  ;;  %v3907_v26 = vld [vmem:[#allocation3 + $0x80] sm:$0xff] }
 0x2b5   : > { %14544 = vmatprep.mubr.msk.f32.mxu0 %vm1344_vm4, %v6967_v18  ;;  %3121 = vst.msk [vmem:[#allocation3 + $0xa0] sm:$0xff] %vm2166_vm5, %v3049_v33  ;;  %v13915_v57 = vpop.f32.mrb[94].mxu1  ;;  %v3979_v49 = vadd.f32 %v3907_v26, %v16028_v38  ;;  %v6969_v33 = vld [vmem:[#allocation2 + $0x2a8] sm:$0xff] }
 0x2b6   : > { %v3052_v4 = vadd.f32 %v13915_v57, %v2980_v19  ;;  %v2708_v55 = vpop.f32.mrb[95].mxu1  ;;  %14197 = vmatmul.mubr.msk.f32.gmra.mrb[200].mxu1 %vm1344_vm4, %v6965_v52  ;;  %4052 = vst.msk [vmem:[#allocation3 + $0x88] sm:$0xff] %vm2166_vm5, %v3980_v23  ;;  %v2982_v26 = vld [vmem:[#allocation3 + $0xc8] sm:$0xff] }
 0x2b7   : > { %v16507_v32 = vpop.f32.mrb[198].mxu0  ;;  %v3051_v21 = vadd.f32 %v2979_v6, %v2708_v55  ;;  %14199 = vmatprep.mubr.msk.f32.mxu1 %vm1344_vm4, %v6966_v56  ;;  %4051 = vst.msk [vmem:[#allocation3 + $0x80] sm:$0xff] %vm2166_vm5, %v3979_v49  ;;  %v3910_v38 = vld [vmem:[#allocation3 + $0x98] sm:$0xff]  ;;  %v2981_v55 = vld [vmem:[#allocation3 + $0xc0] sm:$0xff]  ;;  %v6970_v6 = vld [vmem:[#allocation2 + $0x2b0] sm:$0xff] }
 0x2b8   : > { %v16511_v36 = vpop.f32.mrb[199].mxu0  ;;  %14545 = vmatmul.mubr.msk.f32.gmra.mrb[48].mxu0 %vm1344_vm4, %v6968_v63  ;;  %3124 = vst.msk [vmem:[#allocation3 + $0xb8] sm:$0xff] %vm2166_vm5, %v3052_v4  ;;  %v3982_v52 = vadd.f32 %v16038_v44, %v3910_v38  ;;  %v3909_v31 = vld [vmem:[#allocation3 + $0x90] sm:$0xff] }
 0x2b9   : > { %14547 = vmatprep.mubr.msk.f32.mxu0 %vm1344_vm4, %v6969_v33  ;;  %3123 = vst.msk [vmem:[#allocation3 + $0xb0] sm:$0xff] %vm2166_vm5, %v3051_v21  ;;  %v13918_v23 = vpop.f32.mrb[96].mxu1  ;;  %v3981_v56 = vadd.f32 %v3909_v31, %v16041_v45  ;;  %v6971_v21 = vld [vmem:[#allocation2 + $0x2c0] sm:$0xff]  ;;  %v2984_v31 = vld [vmem:[#allocation3 + $0xd8] sm:$0xff] }
 0x2ba   : > { %v3054_v57 = vadd.f32 %v13918_v23, %v2982_v26  ;;  %v2718_v19 = vpop.f32.mrb[97].mxu1  ;;  %14200 = vmatmul.mubr.msk.f32.gmra.mrb[202].mxu1 %vm1344_vm4, %v6967_v18  ;;  %4054 = vst.msk [vmem:[#allocation3 + $0x98] sm:$0xff] %vm2166_vm5, %v3982_v52 }
 0x2bb   : > { %v16521_v49 = vpop.f32.mrb[200].mxu0  ;;  %v3053_v4 = vadd.f32 %v2981_v55, %v2718_v19  ;;  %14202 = vmatprep.mubr.msk.f32.mxu1 %vm1344_vm4, %v6968_v63  ;;  %4053 = vst.msk [vmem:[#allocation3 + $0x90] sm:$0xff] %vm2166_vm5, %v3981_v56  ;;  %v3912_v45 = vld [vmem:[#allocation3 + $0xa8] sm:$0xff]  ;;  %v2983_v19 = vld [vmem:[#allocation3 + $0xd0] sm:$0xff] }
 0x2bc   : > { %v16525_v44 = vpop.f32.mrb[201].mxu0  ;;  %14548 = vmatmul.mubr.msk.f32.gmra.mrb[50].mxu0 %vm1344_vm4, %v6970_v6  ;;  %3126 = vst.msk [vmem:[#allocation3 + $0xc8] sm:$0xff] %vm2166_vm5, %v3054_v57  ;;  %v3984_v18 = vadd.f32 %v16046_v51, %v3912_v45  ;;  %v3911_v38 = vld [vmem:[#allocation3 + $0xa0] sm:$0xff]  ;;  %v6972_v55 = vld [vmem:[#allocation2 + $0x2c8] sm:$0xff] }
 0x2bd   : > { %14550 = vmatprep.mubr.msk.f32.mxu0 %vm1344_vm4, %v6971_v21  ;;  %3125 = vst.msk [vmem:[#allocation3 + $0xc0] sm:$0xff] %vm2166_vm5, %v3053_v4  ;;  %v13921_v52 = vpop.f32.mrb[98].mxu1  ;;  %v3983_v63 = vadd.f32 %v3911_v38, %v16050_v54  ;;  %v6973_v4 = vld [vmem:[#allocation2 + $0x2d0] sm:$0xff]  ;;  %v2986_v38 = vld [vmem:[#allocation3 + $0xe8] sm:$0xff] }
 0x2be   : > { %v3056_v23 = vadd.f32 %v13921_v52, %v2984_v31  ;;  %v2728_v26 = vpop.f32.mrb[99].mxu1  ;;  %14203 = vmatmul.mubr.msk.f32.gmra.mrb[204].mxu1 %vm1344_vm4, %v6969_v33  ;;  %4056 = vst.msk [vmem:[#allocation3 + $0xa8] sm:$0xff] %vm2166_vm5, %v3984_v18 }
 0x2bf   : > { %v16535_v56 = vpop.f32.mrb[202].mxu0  ;;  %v3055_v57 = vadd.f32 %v2983_v19, %v2728_v26  ;;  %14205 = vmatprep.mubr.msk.f32.mxu1 %vm1344_vm4, %v6970_v6  ;;  %4055 = vst.msk [vmem:[#allocation3 + $0xa0] sm:$0xff] %vm2166_vm5, %v3983_v63  ;;  %v3914_v54 = vld [vmem:[#allocation3 + $0xb8] sm:$0xff]  ;;  %v2985_v26 = vld [vmem:[#allocation3 + $0xe0] sm:$0xff] }
 0x2c0   : > { %v16539_v51 = vpop.f32.mrb[203].mxu0  ;;  %14551 = vmatmul.mubr.msk.f32.gmra.mrb[52].mxu0 %vm1344_vm4, %v6972_v55  ;;  %3128 = vst.msk [vmem:[#allocation3 + $0xd8] sm:$0xff] %vm2166_vm5, %v3056_v23  ;;  %v3986_v33 = vadd.f32 %v16058_v62, %v3914_v54  ;;  %v3913_v45 = vld [vmem:[#allocation3 + $0xb0] sm:$0xff]  ;;  %v6974_v19 = vld [vmem:[#allocation2 + $0x2e0] sm:$0xff] }
 0x2c1   : > { %14553 = vmatprep.mubr.msk.f32.mxu0 %vm1344_vm4, %v6973_v4  ;;  %3127 = vst.msk [vmem:[#allocation3 + $0xd0] sm:$0xff] %vm2166_vm5, %v3055_v57  ;;  %v13924_v18 = vpop.f32.mrb[100].mxu1  ;;  %v3985_v6 = vadd.f32 %v3913_v45, %v16062_v1  ;;  %v6975_v57 = vld [vmem:[#allocation2 + $0x2e8] sm:$0xff]  ;;  %v2988_v45 = vld [vmem:[#allocation3 + $0xf8] sm:$0xff] }
 0x2c2   : > { %v3058_v52 = vadd.f32 %v13924_v18, %v2986_v38  ;;  %v2738_v31 = vpop.f32.mrb[101].mxu1  ;;  %14206 = vmatmul.mubr.msk.f32.gmra.mrb[206].mxu1 %vm1344_vm4, %v6971_v21  ;;  %4058 = vst.msk [vmem:[#allocation3 + $0xb8] sm:$0xff] %vm2166_vm5, %v3986_v33 }
 0x2c3   : > { %v16549_v63 = vpop.f32.mrb[204].mxu0  ;;  %v3057_v23 = vadd.f32 %v2985_v26, %v2738_v31  ;;  %14208 = vmatprep.mubr.msk.f32.mxu1 %vm1344_vm4, %v6972_v55  ;;  %4057 = vst.msk [vmem:[#allocation3 + $0xb0] sm:$0xff] %vm2166_vm5, %v3985_v6  ;;  %v3916_v1 = vld [vmem:[#allocation3 + $0xc8] sm:$0xff]  ;;  %v2987_v31 = vld [vmem:[#allocation3 + $0xf0] sm:$0xff] }
 0x2c4   : > { %v16553_v62 = vpop.f32.mrb[205].mxu0  ;;  %14554 = vmatmul.mubr.msk.f32.gmra.mrb[54].mxu0 %vm1344_vm4, %v6974_v19  ;;  %3130 = vst.msk [vmem:[#allocation3 + $0xe8] sm:$0xff] %vm2166_vm5, %v3058_v52  ;;  %v3988_v21 = vadd.f32 %v16072_v9, %v3916_v1  ;;  %v3915_v54 = vld [vmem:[#allocation3 + $0xc0] sm:$0xff]  ;;  %v6976_v26 = vld [vmem:[#allocation2 + $0x2f0] sm:$0xff] }
 0x2c5   : > { %14556 = vmatprep.mubr.msk.f32.mxu0 %vm1344_vm4, %v6975_v57  ;;  %3129 = vst.msk [vmem:[#allocation3 + $0xe0] sm:$0xff] %vm2166_vm5, %v3057_v23  ;;  %v13927_v33 = vpop.f32.mrb[102].mxu1  ;;  %v3987_v55 = vadd.f32 %v3915_v54, %v16075_v12  ;;  %v6977_v23 = vld [vmem:[#allocation2 + $0x300] sm:$0xff]  ;;  %v2990_v54 = vld [vmem:[#allocation3 + $0x108] sm:$0xff] }
 0x2c6   : > { %v3060_v18 = vadd.f32 %v13927_v33, %v2988_v45  ;;  %v2748_v38 = vpop.f32.mrb[103].mxu1  ;;  %14209 = vmatmul.mubr.msk.f32.gmra.mrb[208].mxu1 %vm1344_vm4, %v6973_v4  ;;  %4060 = vst.msk [vmem:[#allocation3 + $0xc8] sm:$0xff] %vm2166_vm5, %v3988_v21 }
 0x2c7   : > { %v16563_v6 = vpop.f32.mrb[206].mxu0  ;;  %v3059_v52 = vadd.f32 %v2987_v31, %v2748_v38  ;;  %14211 = vmatprep.mubr.msk.f32.mxu1 %vm1344_vm4, %v6974_v19  ;;  %4059 = vst.msk [vmem:[#allocation3 + $0xc0] sm:$0xff] %vm2166_vm5, %v3987_v55  ;;  %v3918_v12 = vld [vmem:[#allocation3 + $0xd8] sm:$0xff]  ;;  %v2989_v38 = vld [vmem:[#allocation3 + $0x100] sm:$0xff]  ;;  %v6978_v31 = vld [vmem:[#allocation2 + $0x308] sm:$0xff] }
 0x2c8   : > { %v16567_v9 = vpop.f32.mrb[207].mxu0  ;;  %14557 = vmatmul.mubr.msk.f32.gmra.mrb[56].mxu0 %vm1344_vm4, %v6976_v26  ;;  %3132 = vst.msk [vmem:[#allocation3 + $0xf8] sm:$0xff] %vm2166_vm5, %v3060_v18  ;;  %v3990_v4 = vadd.f32 %v16080_v16, %v3918_v12  ;;  %v3917_v1 = vld [vmem:[#allocation3 + $0xd0] sm:$0xff] }
 0x2c9   : > { %14559 = vmatprep.mubr.msk.f32.mxu0 %vm1344_vm4, %v6977_v23  ;;  %3131 = vst.msk [vmem:[#allocation3 + $0xf0] sm:$0xff] %vm2166_vm5, %v3059_v52  ;;  %v13930_v21 = vpop.f32.mrb[104].mxu1  ;;  %v3989_v19 = vadd.f32 %v3917_v1, %v16084_v20  ;;  %v6979_v52 = vld [vmem:[#allocation2 + $0x310] sm:$0xff]  ;;  %v2992_v1 = vld [vmem:[#allocation3 + $0x118] sm:$0xff] }
 0x2ca   : > { %v3062_v33 = vadd.f32 %v13930_v21, %v2990_v54  ;;  %v2758_v45 = vpop.f32.mrb[105].mxu1  ;;  %14212 = vmatmul.mubr.msk.f32.gmra.mrb[210].mxu1 %vm1344_vm4, %v6975_v57  ;;  %4062 = vst.msk [vmem:[#allocation3 + $0xd8] sm:$0xff] %vm2166_vm5, %v3990_v4 }
 0x2cb   : > { %v16577_v55 = vpop.f32.mrb[208].mxu0  ;;  %v3061_v18 = vadd.f32 %v2989_v38, %v2758_v45  ;;  %14214 = vmatprep.mubr.msk.f32.mxu1 %vm1344_vm4, %v6976_v26  ;;  %4061 = vst.msk [vmem:[#allocation3 + $0xd0] sm:$0xff] %vm2166_vm5, %v3989_v19  ;;  %v3920_v20 = vld [vmem:[#allocation3 + $0xe8] sm:$0xff]  ;;  %v2991_v45 = vld [vmem:[#allocation3 + $0x110] sm:$0xff]  ;;  %v6980_v38 = vld [vmem:[#allocation2 + $0x320] sm:$0xff] }
 0x2cc   : > { %v16581_v16 = vpop.f32.mrb[209].mxu0  ;;  %14560 = vmatmul.mubr.msk.f32.gmra.mrb[58].mxu0 %vm1344_vm4, %v6978_v31  ;;  %3134 = vst.msk [vmem:[#allocation3 + $0x108] sm:$0xff] %vm2166_vm5, %v3062_v33  ;;  %v3992_v57 = vadd.f32 %v16092_v27, %v3920_v20  ;;  %v3919_v12 = vld [vmem:[#allocation3 + $0xe0] sm:$0xff] }
 0x2cd   : > { %14562 = vmatprep.mubr.msk.f32.mxu0 %vm1344_vm4, %v6979_v52  ;;  %3133 = vst.msk [vmem:[#allocation3 + $0x100] sm:$0xff] %vm2166_vm5, %v3061_v18  ;;  %v13933_v4 = vpop.f32.mrb[106].mxu1  ;;  %v3991_v26 = vadd.f32 %v3919_v12, %v16096_v10  ;;  %v6981_v18 = vld [vmem:[#allocation2 + $0x328] sm:$0xff] }
 0x2ce   : > { %v3064_v21 = vadd.f32 %v13933_v4, %v2992_v1  ;;  %v2768_v54 = vpop.f32.mrb[107].mxu1  ;;  %14215 = vmatmul.mubr.msk.f32.gmra.mrb[212].mxu1 %vm1344_vm4, %v6977_v23  ;;  %4064 = vst.msk [vmem:[#allocation3 + $0xe8] sm:$0xff] %vm2166_vm5, %v3992_v57  ;;  %v2994_v12 = vld [vmem:[#allocation3 + $0x128] sm:$0xff] }
 0x2cf   : > { %v16591_v19 = vpop.f32.mrb[210].mxu0  ;;  %v3063_v33 = vadd.f32 %v2991_v45, %v2768_v54  ;;  %14217 = vmatprep.mubr.msk.f32.mxu1 %vm1344_vm4, %v6978_v31  ;;  %4063 = vst.msk [vmem:[#allocation3 + $0xe0] sm:$0xff] %vm2166_vm5, %v3991_v26  ;;  %v3922_v10 = vld [vmem:[#allocation3 + $0xf8] sm:$0xff]  ;;  %v2993_v54 = vld [vmem:[#allocation3 + $0x120] sm:$0xff] }
 0x2d0   : > { %v16595_v27 = vpop.f32.mrb[211].mxu0  ;;  %14563 = vmatmul.mubr.msk.f32.gmra.mrb[60].mxu0 %vm1344_vm4, %v6980_v38  ;;  %3136 = vst.msk [vmem:[#allocation3 + $0x118] sm:$0xff] %vm2166_vm5, %v3064_v21  ;;  %v3994_v23 = vadd.f32 %v16106_v37, %v3922_v10  ;;  %v3921_v20 = vld [vmem:[#allocation3 + $0xf0] sm:$0xff]  ;;  %v5976_v45 = vld [vmem:[#allocation2 + $0x22] sm:$0xff] }
 0x2d1   : > { %14565 = vmatprep.mubr.msk.f32.mxu0 %vm1344_vm4, %v6981_v18  ;;  %3135 = vst.msk [vmem:[#allocation3 + $0x110] sm:$0xff] %vm2166_vm5, %v3063_v33  ;;  %v13936_v57 = vpop.f32.mrb[108].mxu1  ;;  %v3993_v31 = vadd.f32 %v3921_v20, %v16109_v39  ;;  %v6982_v21 = vld [vmem:[#allocation2 + $0x330] sm:$0xff]  ;;  %v8779_v33 = vld [vmem:[#allocation2 + $0x42] sm:$0xff]  ;;  %v2996_v20 = vld [vmem:[#allocation3 + $0x138] sm:$0xff] }
 0x2d2   : > { %v3066_v4 = vadd.f32 %v13936_v57, %v2994_v12  ;;  %v2778_v1 = vpop.f32.mrb[109].mxu1  ;;  %14218 = vmatmul.mubr.msk.f32.gmra.mrb[214].mxu1 %vm1344_vm4, %v6979_v52  ;;  %4066 = vst.msk [vmem:[#allocation3 + $0xf8] sm:$0xff] %vm2166_vm5, %v3994_v23  ;;  %v5977_v52 = vld [vmem:[#allocation2 + $0x2a] sm:$0xff]  ;;  %v12479_v57 = vld [vmem:[%s18405_s3 + $0xe0] sm:$0xff] }
 0x2d3   : > { %v16605_v26 = vpop.f32.mrb[212].mxu0  ;;  %v3065_v38 = vadd.f32 %v2993_v54, %v2778_v1  ;;  %14344 = vmatprep.mubr.msk.f32.mxu1 %vm1344_vm4, %v5976_v45  ;;  %4065 = vst.msk [vmem:[#allocation3 + $0xf0] sm:$0xff] %vm2166_vm5, %v3993_v31  ;;  %v3924_v39 = vld [vmem:[#allocation3 + $0x108] sm:$0xff]  ;;  %v2995_v54 = vld [vmem:[#allocation3 + $0x130] sm:$0xff] }
 0x2d4   : > { %v16608_v37 = vpop.f32.mrb[213].mxu0  ;;  %14566 = vmatmul.mubr.msk.f32.gmra.mrb[62].mxu0 %vm1344_vm4, %v6982_v21  ;;  %3138 = vst.msk [vmem:[#allocation3 + $0x128] sm:$0xff] %vm2166_vm5, %v3066_v4  ;;  %v3996_v18 = vadd.f32 %v16114_v43, %v3924_v39  ;;  %v3923_v10 = vld [vmem:[#allocation3 + $0x100] sm:$0xff]  ;;  %v12480_v12 = vld [vmem:[%s18405_s3 + $0xe8] sm:$0xff]  ;;  %v5978_v43 = vld [vmem:[#allocation2 + $0x32] sm:$0xff] }
 0x2d5   : > { %18442 = vst [vmem:[#allocation34_spill] sm:$0xff] %v16608_v37  ;;  %14692 = vmatprep.mubr.msk.f32.mxu0 %vm1344_vm4, %v8779_v33  ;;  %3137 = vst.msk [vmem:[#allocation3 + $0x120] sm:$0xff] %vm2166_vm5, %v3065_v38  ;;  %v13939_v23 = vpop.f32.mrb[110].mxu1  ;;  %v3995_v31 = vadd.f32 %v3923_v10, %v16118_v47  ;;  %v8780_v21 = vld [vmem:[#allocation2 + $0x4a] sm:$0xff]  ;;  %v15078_v38 = vpack.c.bf16 %v12480_v12, %v12479_v57  ;;  %v8781_v47 = vld [vmem:[#allocation2 + $0x52] sm:$0xff] }
 0x2d6   : > { %v3068_v4 = vadd.f32 %v13939_v23, %v2996_v20  ;;  %v2788_v1 = vpop.f32.mrb[111].mxu1  ;;  %14345 = vmatmul.mubr.msk.f32.vlgmr.msra.gmra.mrb[216].mxu1 %vm1344_vm4, %v5977_v52  ;;  %4068 = vst.msk [vmem:[#allocation3 + $0x108] sm:$0xff] %vm2166_vm5, %v3996_v18  ;;  %v2998_v20 = vld [vmem:[#allocation3 + $0x148] sm:$0xff] }
 0x2d7   : > { %v16624_v45 = vpop.f32.mrb[214].mxu0  ;;  %v3067_v39 = vadd.f32 %v2995_v54, %v2788_v1  ;;  %14347 = vmatprep.mubr.msk.f32.mxu1 %vm1344_vm4, %v5978_v43  ;;  %4067 = vst.msk [vmem:[#allocation3 + $0x100] sm:$0xff] %vm2166_vm5, %v3995_v31  ;;  %v3926_v10 = vld [vmem:[#allocation3 + $0x118] sm:$0xff]  ;;  %15079 = vmatprep.subr.bf16.mxu1 %v15078_v38  ;;  %v2997_v54 = vld [vmem:[#allocation3 + $0x140] sm:$0xff] }
 0x2d8   : > { %v16628_v37 = vpop.f32.mrb[215].mxu0  ;;  %14693 = vmatmul.mubr.msk.f32.vlgmr.msra.gmra.mrb[64].mxu0 %vm1344_vm4, %v8780_v21  ;;  %3140 = vst.msk [vmem:[#allocation3 + $0x138] sm:$0xff] %vm2166_vm5, %v3068_v4  ;;  %v3998_v52 = vadd.f32 %v16126_v59, %v3926_v10  ;;  %v3925_v23 = vld [vmem:[#allocation3 + $0x110] sm:$0xff]  ;;  %15081 = vmatpush3.bf16.msra.mxu1 %v15078_v38  ;;  %v8782_v4 = vld [vmem:[#allocation2 + $0x62] sm:$0xff] }
 0x2d9   : > { %14695 = vmatprep.mubr.msk.f32.mxu0 %vm1344_vm4, %v8781_v47  ;;  %3139 = vst.msk [vmem:[#allocation3 + $0x130] sm:$0xff] %vm2166_vm5, %v3067_v39  ;;  %v13942_v18 = vpop.f32.mrb[112].mxu1  ;;  %v3997_v57 = vadd.f32 %v3925_v23, %v16130_v0  ;;  %v8783_v38 = vld [vmem:[#allocation2 + $0x6a] sm:$0xff] }
 0x2da   : > { %v3070_v12 = vadd.f32 %v13942_v18, %v2998_v20  ;;  %v2798_v1 = vpop.f32.mrb[113].mxu1  ;;  %14348 = vmatmul.mubr.msk.f32.gmra.mrb[218].mxu1 %vm1344_vm4, %v8779_v33  ;;  %4070 = vst.msk [vmem:[#allocation3 + $0x118] sm:$0xff] %vm2166_vm5, %v3998_v52  ;;  %v3000_v52 = vld [vmem:[#allocation3 + $0x158] sm:$0xff]  ;;  %v2999_v20 = vld [vmem:[#allocation3 + $0x150] sm:$0xff] }
 0x2db   : > { %v16638_v31 = vpop.f32.mrb[216].mxu0  ;;  %v3069_v43 = vadd.f32 %v2997_v54, %v2798_v1  ;;  %14350 = vmatprep.mubr.msk.f32.mxu1 %vm1344_vm4, %v8780_v21  ;;  %4069 = vst.msk [vmem:[#allocation3 + $0x110] sm:$0xff] %vm2166_vm5, %v3997_v57  ;;  %v3928_v0 = vld [vmem:[#allocation3 + $0x128] sm:$0xff]  ;;  %v8784_v57 = vld [vmem:[#allocation2 + $0x72] sm:$0xff] }
 0x2dc   : > { %v16642_v59 = vpop.f32.mrb[217].mxu0  ;;  %14696 = vmatmul.mubr.msk.f32.gmra.mrb[66].mxu0 %vm1344_vm4, %v8782_v4  ;;  %3142 = vst.msk [vmem:[#allocation3 + $0x148] sm:$0xff] %vm2166_vm5, %v3070_v12  ;;  %v4000_v33 = vadd.f32 %v16140_v13, %v3928_v0  ;;  %v3927_v39 = vld [vmem:[#allocation3 + $0x120] sm:$0xff] }
 0x2dd   : > { %14698 = vmatprep.mubr.msk.f32.mxu0 %vm1344_vm4, %v8783_v38  ;;  %3141 = vst.msk [vmem:[#allocation3 + $0x140] sm:$0xff] %vm2166_vm5, %v3069_v43  ;;  %v13945_v10 = vpop.f32.mrb[114].mxu1  ;;  %v3999_v23 = vadd.f32 %v3927_v39, %v16143_v14  ;;  %v8785_v13 = vld [vmem:[#allocation2 + $0x82] sm:$0xff]  ;;  %v8786_v39 = vld [vmem:[#allocation2 + $0x8a] sm:$0xff] }
 0x2de   : > { %v3072_v21 = vadd.f32 %v13945_v10, %v3000_v52  ;;  %v2808_v18 = vpop.f32.mrb[115].mxu1  ;;  %14351 = vmatmul.mubr.msk.f32.gmra.mrb[220].mxu1 %vm1344_vm4, %v8781_v47  ;;  %4072 = vst.msk [vmem:[#allocation3 + $0x128] sm:$0xff] %vm2166_vm5, %v4000_v33  ;;  %v3002_v33 = vld [vmem:[#allocation3 + $0x168] sm:$0xff] }
 0x2df   : > { %v16652_v1 = vpop.f32.mrb[218].mxu0  ;;  %v3071_v12 = vadd.f32 %v2999_v20, %v2808_v18  ;;  %14353 = vmatprep.mubr.msk.f32.mxu1 %vm1344_vm4, %v8782_v4  ;;  %4071 = vst.msk [vmem:[#allocation3 + $0x120] sm:$0xff] %vm2166_vm5, %v3999_v23  ;;  %v3930_v14 = vld [vmem:[#allocation3 + $0x138] sm:$0xff]  ;;  %v3001_v18 = vld [vmem:[#allocation3 + $0x160] sm:$0xff]  ;;  %v12481_v23 = vld [vmem:[%s18405_s3 + $0xf0] sm:$0xff] }
 0x2e0   : > { %v16656_v54 = vpop.f32.mrb[219].mxu0  ;;  %14699 = vmatmul.mubr.msk.f32.gmra.mrb[68].mxu0 %vm1344_vm4, %v8784_v57  ;;  %3144 = vst.msk [vmem:[#allocation3 + $0x158] sm:$0xff] %vm2166_vm5, %v3072_v21  ;;  %v4002_v47 = vadd.f32 %v16148_v22, %v3930_v14  ;;  %v3929_v43 = vld [vmem:[#allocation3 + $0x130] sm:$0xff]  ;;  %v12482_v22 = vld [vmem:[%s18405_s3 + $0xf8] sm:$0xff] }
 0x2e1   : > { %14701 = vmatprep.mubr.msk.f32.mxu0 %vm1344_vm4, %v8785_v13  ;;  %3143 = vst.msk [vmem:[#allocation3 + $0x150] sm:$0xff] %vm2166_vm5, %v3071_v12  ;;  %v13948_v0 = vpop.f32.mrb[116].mxu1  ;;  %v4001_v4 = vadd.f32 %v3929_v43, %v16152_v24  ;;  %v8787_v24 = vld [vmem:[#allocation2 + $0x92] sm:$0xff]  ;;  %v15082_v14 = vpack.c.bf16 %v12482_v22, %v12481_v23 }
 0x2e2   : > { %v3074_v10 = vadd.f32 %v13948_v0, %v3002_v33  ;;  %v2818_v52 = vpop.f32.mrb[117].mxu1  ;;  %14354 = vmatmul.mubr.msk.f32.gmra.mrb[222].mxu1 %vm1344_vm4, %v8783_v38  ;;  %4074 = vst.msk [vmem:[#allocation3 + $0x138] sm:$0xff] %vm2166_vm5, %v4002_v47  ;;  %v3004_v33 = vld [vmem:[#allocation3 + $0x178] sm:$0xff]  ;;  %v3003_v23 = vld [vmem:[#allocation3 + $0x170] sm:$0xff] }
 0x2e3   : > { %v16666_v20 = vpop.f32.mrb[220].mxu0  ;;  %v3073_v21 = vadd.f32 %v3001_v18, %v2818_v52  ;;  %14356 = vmatprep.mubr.msk.f32.mxu1 %vm1344_vm4, %v8784_v57  ;;  %4073 = vst.msk [vmem:[#allocation3 + $0x130] sm:$0xff] %vm2166_vm5, %v4001_v4  ;;  %v3932_v38 = vld [vmem:[#allocation3 + $0x148] sm:$0xff]  ;;  %15083 = vmatprep.subr.bf16.mxu1 %v15082_v14 }
 0x2e4   : > { %v16676_v12 = vpop.f32.mrb[221].mxu0  ;;  %14702 = vmatmul.mubr.msk.f32.gmra.mrb[70].mxu0 %vm1344_vm4, %v8786_v39  ;;  %3146 = vst.msk [vmem:[#allocation3 + $0x168] sm:$0xff] %vm2166_vm5, %v3074_v10  ;;  %v4004_v43 = vadd.f32 %v16160_v34, %v3932_v38  ;;  %v3931_v0 = vld [vmem:[#allocation3 + $0x140] sm:$0xff]  ;;  %15085 = vmatpush3.bf16.msra.mxu1 %v15082_v14 }
 0x2e5   : > { %14704 = vmatprep.mubr.msk.f32.mxu0 %vm1344_vm4, %v8787_v24  ;;  %3145 = vst.msk [vmem:[#allocation3 + $0x160] sm:$0xff] %vm2166_vm5, %v3073_v21  ;;  %v13951_v47 = vpop.f32.mrb[118].mxu1  ;;  %v4003_v57 = vadd.f32 %v3931_v0, %v16164_v40  ;;  %v8788_v4 = vld [vmem:[#allocation2 + $0xa2] sm:$0xff]  ;;  %v8789_v21 = vld [vmem:[#allocation2 + $0xaa] sm:$0xff] }
 0x2e6   : > { %v3076_v52 = vadd.f32 %v13951_v47, %v3004_v33  ;;  %v2828_v18 = vpop.f32.mrb[119].mxu1  ;;  %14357 = vmatmul.mubr.msk.f32.gmra.mrb[224].mxu1 %vm1344_vm4, %v8785_v13  ;;  %4076 = vst.msk [vmem:[#allocation3 + $0x148] sm:$0xff] %vm2166_vm5, %v4004_v43  ;;  %v3006_v0 = vld [vmem:[#allocation3 + $0x188] sm:$0xff] }
 0x2e7   : > { %v16686_v22 = vpop.f32.mrb[222].mxu0  ;;  %v3075_v10 = vadd.f32 %v3003_v23, %v2828_v18  ;;  %14359 = vmatprep.mubr.msk.f32.mxu1 %vm1344_vm4, %v8786_v39  ;;  %4075 = vst.msk [vmem:[#allocation3 + $0x140] sm:$0xff] %vm2166_vm5, %v4003_v57  ;;  %v3934_v40 = vld [vmem:[#allocation3 + $0x158] sm:$0xff]  ;;  %v3005_v18 = vld [vmem:[#allocation3 + $0x180] sm:$0xff] }
 0x2e8   : > { %v16690_v34 = vpop.f32.mrb[223].mxu0  ;;  %14705 = vmatmul.mubr.msk.f32.gmra.mrb[72].mxu0 %vm1344_vm4, %v8788_v4  ;;  %3148 = vst.msk [vmem:[#allocation3 + $0x178] sm:$0xff] %vm2166_vm5, %v3076_v52  ;;  %v4006_v13 = vadd.f32 %v16174_v58, %v3934_v40  ;;  %v3933_v38 = vld [vmem:[#allocation3 + $0x150] sm:$0xff]  ;;  %v8791_v58 = vld [vmem:[#allocation2 + $0xc2] sm:$0xff] }
 0x2e9   : > { %14707 = vmatprep.mubr.msk.f32.mxu0 %vm1344_vm4, %v8789_v21  ;;  %3147 = vst.msk [vmem:[#allocation3 + $0x170] sm:$0xff] %vm2166_vm5, %v3075_v10  ;;  %v13954_v43 = vpop.f32.mrb[120].mxu1  ;;  %v4005_v39 = vadd.f32 %v3933_v38, %v16177_v2  ;;  %v8790_v57 = vld [vmem:[#allocation2 + $0xb2] sm:$0xff] }
 0x2ea   : > { %v3078_v47 = vadd.f32 %v13954_v43, %v3006_v0  ;;  %v2838_v33 = vpop.f32.mrb[121].mxu1  ;;  %14360 = vmatmul.mubr.msk.f32.gmra.mrb[226].mxu1 %vm1344_vm4, %v8787_v24  ;;  %4078 = vst.msk [vmem:[#allocation3 + $0x158] sm:$0xff] %vm2166_vm5, %v4006_v13  ;;  %v3008_v13 = vld [vmem:[#allocation3 + $0x198] sm:$0xff]  ;;  %v3007_v0 = vld [vmem:[#allocation3 + $0x190] sm:$0xff] }
 0x2eb   : > { %v16700_v23 = vpop.f32.mrb[224].mxu0  ;;  %v3077_v14 = vadd.f32 %v3005_v18, %v2838_v33  ;;  %14362 = vmatprep.mubr.msk.f32.mxu1 %vm1344_vm4, %v8788_v4  ;;  %4077 = vst.msk [vmem:[#allocation3 + $0x150] sm:$0xff] %vm2166_vm5, %v4005_v39  ;;  %v3936_v2 = vld [vmem:[#allocation3 + $0x168] sm:$0xff] }
 0x2ec   : > { %v16704_v52 = vpop.f32.mrb[225].mxu0  ;;  %14708 = vmatmul.mubr.msk.f32.gmra.mrb[74].mxu0 %vm1344_vm4, %v8790_v57  ;;  %3150 = vst.msk [vmem:[#allocation3 + $0x188] sm:$0xff] %vm2166_vm5, %v3078_v47  ;;  %v4008_v24 = vadd.f32 %v16182_v7, %v3936_v2  ;;  %v3935_v10 = vld [vmem:[#allocation3 + $0x160] sm:$0xff]  ;;  %v8792_v39 = vld [vmem:[#allocation2 + $0xca] sm:$0xff]  ;;  %v8793_v7 = vld [vmem:[#allocation2 + $0xd2] sm:$0xff] }
 0x2ed   : > { %14710 = vmatprep.mubr.msk.f32.mxu0 %vm1344_vm4, %v8791_v58  ;;  %3149 = vst.msk [vmem:[#allocation3 + $0x180] sm:$0xff] %vm2166_vm5, %v3077_v14  ;;  %v13957_v40 = vpop.f32.mrb[122].mxu1  ;;  %v4007_v38 = vadd.f32 %v3935_v10, %v16186_v15 }
 0x2ee   : > { %v3080_v4 = vadd.f32 %v13957_v40, %v3008_v13  ;;  %v2848_v43 = vpop.f32.mrb[123].mxu1  ;;  %14363 = vmatmul.mubr.msk.f32.gmra.mrb[228].mxu1 %vm1344_vm4, %v8789_v21  ;;  %4080 = vst.msk [vmem:[#allocation3 + $0x168] sm:$0xff] %vm2166_vm5, %v4008_v24  ;;  %v3010_v24 = vld [vmem:[#allocation3 + $0x1a8] sm:$0xff]  ;;  %v3009_v13 = vld [vmem:[#allocation3 + $0x1a0] sm:$0xff] }
 0x2ef   : > { %v16714_v33 = vpop.f32.mrb[226].mxu0  ;;  %v3079_v47 = vadd.f32 %v3007_v0, %v2848_v43  ;;  %14365 = vmatprep.mubr.msk.f32.mxu1 %vm1344_vm4, %v8790_v57  ;;  %4079 = vst.msk [vmem:[#allocation3 + $0x160] sm:$0xff] %vm2166_vm5, %v4007_v38  ;;  %v3938_v15 = vld [vmem:[#allocation3 + $0x178] sm:$0xff]  ;;  %v8794_v38 = vld [vmem:[#allocation2 + $0xe2] sm:$0xff] }
 0x2f0   : > { %v16718_v18 = vpop.f32.mrb[227].mxu0  ;;  %14711 = vmatmul.mubr.msk.f32.gmra.mrb[76].mxu0 %vm1344_vm4, %v8792_v39  ;;  %3152 = vst.msk [vmem:[#allocation3 + $0x198] sm:$0xff] %vm2166_vm5, %v3080_v4  ;;  %v4010_v21 = vadd.f32 %v16199_v35, %v3938_v15  ;;  %v3937_v14 = vld [vmem:[#allocation3 + $0x170] sm:$0xff] }
 0x2f1   : > { %14713 = vmatprep.mubr.msk.f32.mxu0 %vm1344_vm4, %v8793_v7  ;;  %3151 = vst.msk [vmem:[#allocation3 + $0x190] sm:$0xff] %vm2166_vm5, %v3079_v47  ;;  %v13960_v2 = vpop.f32.mrb[124].mxu1  ;;  %v4009_v10 = vadd.f32 %v3937_v14, %v16203_v50  ;;  %v8795_v35 = vld [vmem:[#allocation2 + $0xea] sm:$0xff]  ;;  %v18445_v47 = vld [vmem:[#allocation4_spill] sm:$0xff]  ;;  %v3012_v14 = vld [vmem:[#allocation3 + $0x1b8] sm:$0xff] }
 0x2f2   : > { %v3082_v57 = vadd.f32 %v13960_v2, %v3010_v24  ;;  %v2858_v40 = vpop.f32.mrb[125].mxu1  ;;  %14366 = vmatmul.mubr.msk.f32.gmra.mrb[230].mxu1 %vm1344_vm4, %v8791_v58  ;;  %4082 = vst.msk [vmem:[#allocation3 + $0x178] sm:$0xff] %vm2166_vm5, %v4010_v21  ;;  %v18446_v2 = vld [vmem:[#allocation5_spill] sm:$0xff] }
 0x2f3   : > { %v16728_v43 = vpop.f32.mrb[228].mxu0  ;;  %v3081_v4 = vadd.f32 %v3009_v13, %v2858_v40  ;;  %14368 = vmatprep.mubr.msk.f32.mxu1 %vm1344_vm4, %v8792_v39  ;;  %4081 = vst.msk [vmem:[#allocation3 + $0x170] sm:$0xff] %vm2166_vm5, %v4009_v10  ;;  %v3940_v50 = vld [vmem:[#allocation3 + $0x188] sm:$0xff]  ;;  %v3011_v13 = vld [vmem:[#allocation3 + $0x1b0] sm:$0xff] }
 0x2f4   : > { %18443 = vst [vmem:[#allocation35_spill] sm:$0xff] %v16728_v43  ;;  %v16732_v0 = vpop.f32.mrb[229].mxu0  ;;  %14714 = vmatmul.mubr.msk.f32.gmra.mrb[78].mxu0 %vm1344_vm4, %v8794_v38  ;;  %3154 = vst.msk [vmem:[#allocation3 + $0x1a8] sm:$0xff] %vm2166_vm5, %v3082_v57  ;;  %v4012_v58 = vadd.f32 %v18445_v47, %v3940_v50  ;;  %v3939_v15 = vld [vmem:[#allocation3 + $0x180] sm:$0xff]  ;;  %v8796_v10 = vld [vmem:[#allocation2 + $0xf2] sm:$0xff] }
 0x2f5   : > { %18444 = vst [vmem:[#allocation36_spill] sm:$0xff] %v16732_v0  ;;  %14716 = vmatprep.mubr.msk.f32.mxu0 %vm1344_vm4, %v8795_v35  ;;  %3153 = vst.msk [vmem:[#allocation3 + $0x1a0] sm:$0xff] %vm2166_vm5, %v3081_v4  ;;  %v13963_v21 = vpop.f32.mrb[126].mxu1  ;;  %v4011_v24 = vadd.f32 %v3939_v15, %v18446_v2  ;;  %v8797_v4 = vld [vmem:[#allocation2 + $0x102] sm:$0xff]  ;;  %v18449_v47 = vld [vmem:[#allocation6_spill] sm:$0xff] }
 0x2f6   : > { %v3084_v39 = vadd.f32 %v13963_v21, %v3012_v14  ;;  %v2868_v40 = vpop.f32.mrb[127].mxu1  ;;  %14369 = vmatmul.mubr.msk.f32.gmra.mrb[232].mxu1 %vm1344_vm4, %v8793_v7  ;;  %4084 = vst.msk [vmem:[#allocation3 + $0x188] sm:$0xff] %vm2166_vm5, %v4012_v58  ;;  %v3014_v21 = vld [vmem:[#allocation3 + $0x1c8] sm:$0xff]  ;;  %v18450_v14 = vld [vmem:[#allocation7_spill] sm:$0xff] }
 0x2f7   : > { %v16742_v0 = vpop.f32.mrb[230].mxu0  ;;  %v3083_v57 = vadd.f32 %v3011_v13, %v2868_v40  ;;  %14371 = vmatprep.mubr.msk.f32.mxu1 %vm1344_vm4, %v8794_v38  ;;  %4083 = vst.msk [vmem:[#allocation3 + $0x180] sm:$0xff] %vm2166_vm5, %v4011_v24  ;;  %v3942_v50 = vld [vmem:[#allocation3 + $0x198] sm:$0xff]  ;;  %v3013_v13 = vld [vmem:[#allocation3 + $0x1c0] sm:$0xff]  ;;  %v8798_v24 = vld [vmem:[#allocation2 + $0x10a] sm:$0xff] }
 0x2f8   : > { %18447 = vst [vmem:[#allocation4_spill] sm:$0xff] %v16742_v0  ;;  %v16746_v43 = vpop.f32.mrb[231].mxu0  ;;  %14717 = vmatmul.mubr.msk.f32.gmra.mrb[80].mxu0 %vm1344_vm4, %v8796_v10  ;;  %3156 = vst.msk [vmem:[#allocation3 + $0x1b8] sm:$0xff] %vm2166_vm5, %v3084_v39  ;;  %v4014_v7 = vadd.f32 %v18449_v47, %v3942_v50  ;;  %v3941_v15 = vld [vmem:[#allocation3 + $0x190] sm:$0xff]  ;;  %v18453_v47 = vld [vmem:[#allocation8_spill] sm:$0xff] }
 0x2f9   : > { %18448 = vst [vmem:[#allocation5_spill] sm:$0xff] %v16746_v43  ;;  %14719 = vmatprep.mubr.msk.f32.mxu0 %vm1344_vm4, %v8797_v4  ;;  %3155 = vst.msk [vmem:[#allocation3 + $0x1b0] sm:$0xff] %vm2166_vm5, %v3083_v57  ;;  %v13966_v58 = vpop.f32.mrb[128].mxu1  ;;  %v4013_v2 = vadd.f32 %v3941_v15, %v18450_v14  ;;  %v8799_v57 = vld [vmem:[#allocation2 + $0x112] sm:$0xff] }
 0x2fa   : > { %v3086_v38 = vadd.f32 %v13966_v58, %v3014_v21  ;;  %v2878_v40 = vpop.f32.mrb[129].mxu1  ;;  %14372 = vmatmul.mubr.msk.f32.gmra.mrb[234].mxu1 %vm1344_vm4, %v8795_v35  ;;  %4086 = vst.msk [vmem:[#allocation3 + $0x198] sm:$0xff] %vm2166_vm5, %v4014_v7  ;;  %v3016_v58 = vld [vmem:[#allocation3 + $0x1d8] sm:$0xff]  ;;  %v18454_v21 = vld [vmem:[#allocation9_spill] sm:$0xff] }
 0x2fb   : > { %v16756_v43 = vpop.f32.mrb[232].mxu0  ;;  %v3085_v39 = vadd.f32 %v3013_v13, %v2878_v40  ;;  %14374 = vmatprep.mubr.msk.f32.mxu1 %vm1344_vm4, %v8796_v10  ;;  %4085 = vst.msk [vmem:[#allocation3 + $0x190] sm:$0xff] %vm2166_vm5, %v4013_v2  ;;  %v3944_v50 = vld [vmem:[#allocation3 + $0x1a8] sm:$0xff]  ;;  %v3015_v13 = vld [vmem:[#allocation3 + $0x1d0] sm:$0xff] }
 0x2fc   : > { %18451 = vst [vmem:[#allocation6_spill] sm:$0xff] %v16756_v43  ;;  %v16760_v0 = vpop.f32.mrb[233].mxu0  ;;  %14720 = vmatmul.mubr.msk.f32.gmra.mrb[82].mxu0 %vm1344_vm4, %v8798_v24  ;;  %3158 = vst.msk [vmem:[#allocation3 + $0x1c8] sm:$0xff] %vm2166_vm5, %v3086_v38  ;;  %v4016_v35 = vadd.f32 %v18453_v47, %v3944_v50  ;;  %v3943_v15 = vld [vmem:[#allocation3 + $0x1a0] sm:$0xff]  ;;  %v18457_v47 = vld [vmem:[#allocation10_spill] sm:$0xff] }
 0x2fd   : > { %18452 = vst [vmem:[#allocation7_spill] sm:$0xff] %v16760_v0  ;;  %14722 = vmatprep.mubr.msk.f32.mxu0 %vm1344_vm4, %v8799_v57  ;;  %3157 = vst.msk [vmem:[#allocation3 + $0x1c0] sm:$0xff] %vm2166_vm5, %v3085_v39  ;;  %v13969_v7 = vpop.f32.mrb[130].mxu1  ;;  %v4015_v14 = vadd.f32 %v3943_v15, %v18454_v21  ;;  %v8800_v2 = vld [vmem:[#allocation2 + $0x122] sm:$0xff]  ;;  %v8801_v39 = vld [vmem:[#allocation2 + $0x12a] sm:$0xff] }
 0x2fe   : > { %v3088_v10 = vadd.f32 %v13969_v7, %v3016_v58  ;;  %v2888_v40 = vpop.f32.mrb[131].mxu1  ;;  %14375 = vmatmul.mubr.msk.f32.gmra.mrb[236].mxu1 %vm1344_vm4, %v8797_v4  ;;  %4088 = vst.msk [vmem:[#allocation3 + $0x1a8] sm:$0xff] %vm2166_vm5, %v4016_v35  ;;  %v3018_v7 = vld [vmem:[#allocation3 + $0x1e8] sm:$0xff]  ;;  %v18458_v58 = vld [vmem:[#allocation11_spill] sm:$0xff] }
 0x2ff   : > { %v16770_v0 = vpop.f32.mrb[234].mxu0  ;;  %v3087_v38 = vadd.f32 %v3015_v13, %v2888_v40  ;;  %14377 = vmatprep.mubr.msk.f32.mxu1 %vm1344_vm4, %v8798_v24  ;;  %4087 = vst.msk [vmem:[#allocation3 + $0x1a0] sm:$0xff] %vm2166_vm5, %v4015_v14  ;;  %v3946_v50 = vld [vmem:[#allocation3 + $0x1b8] sm:$0xff]  ;;  %v3017_v13 = vld [vmem:[#allocation3 + $0x1e0] sm:$0xff] }
 0x300   : > { %18455 = vst [vmem:[#allocation8_spill] sm:$0xff] %v16770_v0  ;;  %v16774_v43 = vpop.f32.mrb[235].mxu0  ;;  %14723 = vmatmul.mubr.msk.f32.gmra.mrb[84].mxu0 %vm1344_vm4, %v8800_v2  ;;  %3160 = vst.msk [vmem:[#allocation3 + $0x1d8] sm:$0xff] %vm2166_vm5, %v3088_v10  ;;  %v4018_v4 = vadd.f32 %v18457_v47, %v3946_v50  ;;  %v3945_v15 = vld [vmem:[#allocation3 + $0x1b0] sm:$0xff]  ;;  %v18461_v47 = vld [vmem:[#allocation12_spill] sm:$0xff] }
 0x301   : > { %18456 = vst [vmem:[#allocation9_spill] sm:$0xff] %v16774_v43  ;;  %14725 = vmatprep.mubr.msk.f32.mxu0 %vm1344_vm4, %v8801_v39  ;;  %3159 = vst.msk [vmem:[#allocation3 + $0x1d0] sm:$0xff] %vm2166_vm5, %v3087_v38  ;;  %v13972_v35 = vpop.f32.mrb[132].mxu1  ;;  %v4017_v21 = vadd.f32 %v3945_v15, %v18458_v58  ;;  %v8802_v14 = vld [vmem:[#allocation2 + $0x132] sm:$0xff]  ;;  %v8803_v38 = vld [vmem:[#allocation2 + $0x142] sm:$0xff] }
 0x302   : > { %v3090_v24 = vadd.f32 %v13972_v35, %v3018_v7  ;;  %v2898_v40 = vpop.f32.mrb[133].mxu1  ;;  %14378 = vmatmul.mubr.msk.f32.gmra.mrb[238].mxu1 %vm1344_vm4, %v8799_v57  ;;  %4090 = vst.msk [vmem:[#allocation3 + $0x1b8] sm:$0xff] %vm2166_vm5, %v4018_v4  ;;  %v3020_v35 = vld [vmem:[#allocation3 + $0x1f8] sm:$0xff]  ;;  %v18462_v7 = vld [vmem:[#allocation13_spill] sm:$0xff] }
 0x303   : > { %v16784_v43 = vpop.f32.mrb[236].mxu0  ;;  %v3089_v10 = vadd.f32 %v3017_v13, %v2898_v40  ;;  %14380 = vmatprep.mubr.msk.f32.mxu1 %vm1344_vm4, %v8800_v2  ;;  %4089 = vst.msk [vmem:[#allocation3 + $0x1b0] sm:$0xff] %vm2166_vm5, %v4017_v21  ;;  %v3948_v50 = vld [vmem:[#allocation3 + $0x1c8] sm:$0xff]  ;;  %v3019_v13 = vld [vmem:[#allocation3 + $0x1f0] sm:$0xff] }
 0x304   : > { %18459 = vst [vmem:[#allocation10_spill] sm:$0xff] %v16784_v43  ;;  %v16788_v0 = vpop.f32.mrb[237].mxu0  ;;  %14726 = vmatmul.mubr.msk.f32.gmra.mrb[86].mxu0 %vm1344_vm4, %v8802_v14  ;;  %3162 = vst.msk [vmem:[#allocation3 + $0x1e8] sm:$0xff] %vm2166_vm5, %v3090_v24  ;;  %v4020_v57 = vadd.f32 %v18461_v47, %v3948_v50  ;;  %v3947_v15 = vld [vmem:[#allocation3 + $0x1c0] sm:$0xff]  ;;  %v8804_v21 = vld [vmem:[#allocation2 + $0x14a] sm:$0xff] }
 0x305   : > { %18460 = vst [vmem:[#allocation11_spill] sm:$0xff] %v16788_v0  ;;  %14728 = vmatprep.mubr.msk.f32.mxu0 %vm1344_vm4, %v8803_v38  ;;  %3161 = vst.msk [vmem:[#allocation3 + $0x1e0] sm:$0xff] %vm2166_vm5, %v3089_v10  ;;  %v13975_v4 = vpop.f32.mrb[134].mxu1  ;;  %v4019_v58 = vadd.f32 %v3947_v15, %v18462_v7  ;;  %v8805_v10 = vld [vmem:[#allocation2 + $0x152] sm:$0xff] }
 0x306   : > { %v3092_v2 = vadd.f32 %v13975_v4, %v3020_v35  ;;  %v2908_v40 = vpop.f32.mrb[135].mxu1  ;;  %14381 = vmatmul.mubr.msk.f32.gmra.mrb[240].mxu1 %vm1344_vm4, %v8801_v39  ;;  %4092 = vst.msk [vmem:[#allocation3 + $0x1c8] sm:$0xff] %vm2166_vm5, %v4020_v57  ;;  %v18465_v47 = vld [vmem:[#allocation14_spill] sm:$0xff]  ;;  %v3022_v4 = vld [vmem:[#allocation3 + $0x208] sm:$0xff]  ;;  %v18466_v35 = vld [vmem:[#allocation15_spill] sm:$0xff] }
 0x307   : > { %v16798_v0 = vpop.f32.mrb[238].mxu0  ;;  %v3091_v24 = vadd.f32 %v3019_v13, %v2908_v40  ;;  %14383 = vmatprep.mubr.msk.f32.mxu1 %vm1344_vm4, %v8802_v14  ;;  %4091 = vst.msk [vmem:[#allocation3 + $0x1c0] sm:$0xff] %vm2166_vm5, %v4019_v58  ;;  %v3950_v50 = vld [vmem:[#allocation3 + $0x1d8] sm:$0xff]  ;;  %v3021_v13 = vld [vmem:[#allocation3 + $0x200] sm:$0xff] }
 0x308   : > { %18463 = vst [vmem:[#allocation12_spill] sm:$0xff] %v16798_v0  ;;  %v16802_v43 = vpop.f32.mrb[239].mxu0  ;;  %14729 = vmatmul.mubr.msk.f32.gmra.mrb[88].mxu0 %vm1344_vm4, %v8804_v21  ;;  %3164 = vst.msk [vmem:[#allocation3 + $0x1f8] sm:$0xff] %vm2166_vm5, %v3092_v2  ;;  %v4022_v39 = vadd.f32 %v18465_v47, %v3950_v50  ;;  %v3949_v15 = vld [vmem:[#allocation3 + $0x1d0] sm:$0xff]  ;;  %v8806_v58 = vld [vmem:[#allocation2 + $0x162] sm:$0xff] }
 0x309   : > { %18464 = vst [vmem:[#allocation13_spill] sm:$0xff] %v16802_v43  ;;  %14731 = vmatprep.mubr.msk.f32.mxu0 %vm1344_vm4, %v8805_v10  ;;  %3163 = vst.msk [vmem:[#allocation3 + $0x1f0] sm:$0xff] %vm2166_vm5, %v3091_v24  ;;  %v13978_v57 = vpop.f32.mrb[136].mxu1  ;;  %v4021_v7 = vadd.f32 %v3949_v15, %v18466_v35  ;;  %v8807_v24 = vld [vmem:[#allocation2 + $0x16a] sm:$0xff]  ;;  %v18469_v47 = vld [vmem:[#allocation16_spill] sm:$0xff] }
 0x30a   : > { %v3094_v14 = vadd.f32 %v13978_v57, %v3022_v4  ;;  %v2918_v40 = vpop.f32.mrb[137].mxu1  ;;  %14384 = vmatmul.mubr.msk.f32.gmra.mrb[242].mxu1 %vm1344_vm4, %v8803_v38  ;;  %4094 = vst.msk [vmem:[#allocation3 + $0x1d8] sm:$0xff] %vm2166_vm5, %v4022_v39  ;;  %v3024_v57 = vld [vmem:[#allocation3 + $0x218] sm:$0xff]  ;;  %v18470_v4 = vld [vmem:[#allocation17_spill] sm:$0xff] }
 0x30b   : > { %v16812_v43 = vpop.f32.mrb[240].mxu0  ;;  %v3093_v2 = vadd.f32 %v3021_v13, %v2918_v40  ;;  %14386 = vmatprep.mubr.msk.f32.mxu1 %vm1344_vm4, %v8804_v21  ;;  %4093 = vst.msk [vmem:[#allocation3 + $0x1d0] sm:$0xff] %vm2166_vm5, %v4021_v7  ;;  %v3952_v50 = vld [vmem:[#allocation3 + $0x1e8] sm:$0xff]  ;;  %v3023_v13 = vld [vmem:[#allocation3 + $0x210] sm:$0xff] }
 0x30c   : > { %18467 = vst [vmem:[#allocation14_spill] sm:$0xff] %v16812_v43  ;;  %v16816_v0 = vpop.f32.mrb[241].mxu0  ;;  %14732 = vmatmul.mubr.msk.f32.gmra.mrb[90].mxu0 %vm1344_vm4, %v8806_v58  ;;  %3166 = vst.msk [vmem:[#allocation3 + $0x208] sm:$0xff] %vm2166_vm5, %v3094_v14  ;;  %v4024_v38 = vadd.f32 %v18469_v47, %v3952_v50  ;;  %v3951_v15 = vld [vmem:[#allocation3 + $0x1e0] sm:$0xff]  ;;  %v8808_v7 = vld [vmem:[#allocation2 + $0x172] sm:$0xff] }
 0x30d   : > { %18468 = vst [vmem:[#allocation15_spill] sm:$0xff] %v16816_v0  ;;  %14734 = vmatprep.mubr.msk.f32.mxu0 %vm1344_vm4, %v8807_v24  ;;  %3165 = vst.msk [vmem:[#allocation3 + $0x200] sm:$0xff] %vm2166_vm5, %v3093_v2  ;;  %v13981_v39 = vpop.f32.mrb[138].mxu1  ;;  %v4023_v35 = vadd.f32 %v3951_v15, %v18470_v4  ;;  %v8809_v2 = vld [vmem:[#allocation2 + $0x182] sm:$0xff]  ;;  %v18472_v47 = vld [vmem:[#allocation18_spill] sm:$0xff] }
 0x30e   : > { %v3096_v21 = vadd.f32 %v13981_v39, %v3024_v57  ;;  %v2928_v40 = vpop.f32.mrb[139].mxu1  ;;  %14387 = vmatmul.mubr.msk.f32.gmra.mrb[244].mxu1 %vm1344_vm4, %v8805_v10  ;;  %4096 = vst.msk [vmem:[#allocation3 + $0x1e8] sm:$0xff] %vm2166_vm5, %v4024_v38  ;;  %v3026_v39 = vld [vmem:[#allocation3 + $0x228] sm:$0xff]  ;;  %v18473_v57 = vld [vmem:[#allocation19_spill] sm:$0xff] }
 0x30f   : > { %v16826_v0 = vpop.f32.mrb[242].mxu0  ;;  %v3095_v14 = vadd.f32 %v3023_v13, %v2928_v40  ;;  %14389 = vmatprep.mubr.msk.f32.mxu1 %vm1344_vm4, %v8806_v58  ;;  %4095 = vst.msk [vmem:[#allocation3 + $0x1e0] sm:$0xff] %vm2166_vm5, %v4023_v35  ;;  %v3954_v50 = vld [vmem:[#allocation3 + $0x1f8] sm:$0xff]  ;;  %v3025_v13 = vld [vmem:[#allocation3 + $0x220] sm:$0xff]  ;;  %v8810_v35 = vld [vmem:[#allocation2 + $0x18a] sm:$0xff] }
 0x310   : > { %v16830_v43 = vpop.f32.mrb[243].mxu0  ;;  %14735 = vmatmul.mubr.msk.f32.gmra.mrb[92].mxu0 %vm1344_vm4, %v8808_v7  ;;  %3168 = vst.msk [vmem:[#allocation3 + $0x218] sm:$0xff] %vm2166_vm5, %v3096_v21  ;;  %v4026_v10 = vadd.f32 %v18472_v47, %v3954_v50  ;;  %v3953_v15 = vld [vmem:[#allocation3 + $0x1f0] sm:$0xff] }
 0x311   : > { %18471 = vst [vmem:[#allocation16_spill] sm:$0xff] %v16830_v43  ;;  %14737 = vmatprep.mubr.msk.f32.mxu0 %vm1344_vm4, %v8809_v2  ;;  %3167 = vst.msk [vmem:[#allocation3 + $0x210] sm:$0xff] %vm2166_vm5, %v3095_v14  ;;  %v13984_v38 = vpop.f32.mrb[140].mxu1  ;;  %v4025_v4 = vadd.f32 %v3953_v15, %v18473_v57  ;;  %v8811_v14 = vld [vmem:[#allocation2 + $0x192] sm:$0xff] }
 0x312   : > { %v3098_v58 = vadd.f32 %v13984_v38, %v3026_v39  ;;  %v2938_v40 = vpop.f32.mrb[141].mxu1  ;;  %14390 = vmatmul.mubr.msk.f32.gmra.mrb[246].mxu1 %vm1344_vm4, %v8807_v24  ;;  %4098 = vst.msk [vmem:[#allocation3 + $0x1f8] sm:$0xff] %vm2166_vm5, %v4026_v10  ;;  %v18476_v24 = vld [vmem:[#allocation20_spill] sm:$0xff]  ;;  %v3028_v39 = vld [vmem:[#allocation3 + $0x238] sm:$0xff] }
 0x313   : > { %v16841_v43 = vpop.f32.mrb[244].mxu0  ;;  %v3097_v21 = vadd.f32 %v3025_v13, %v2938_v40  ;;  %14392 = vmatprep.mubr.msk.f32.mxu1 %vm1344_vm4, %v8808_v7  ;;  %4097 = vst.msk [vmem:[#allocation3 + $0x1f0] sm:$0xff] %vm2166_vm5, %v4025_v4  ;;  %v3956_v47 = vld [vmem:[#allocation3 + $0x208] sm:$0xff] }
 0x314   : > { %18474 = vst [vmem:[#allocation17_spill] sm:$0xff] %v16841_v43  ;;  %14738 = vmatmul.mubr.msk.f32.gmra.mrb[94].mxu0 %vm1344_vm4, %v8810_v35  ;;  %v16846_v50 = vpop.f32.mrb[245].mxu0  ;;  %3170 = vst.msk [vmem:[#allocation3 + $0x228] sm:$0xff] %vm2166_vm5, %v3098_v58  ;;  %v4028_v15 = vadd.f32 %v18476_v24, %v3956_v47  ;;  %v3955_v38 = vld [vmem:[#allocation3 + $0x200] sm:$0xff]  ;;  %v18477_v7 = vld [vmem:[#allocation21_spill] sm:$0xff] }
 0x315   : > { %18475 = vst [vmem:[#allocation18_spill] sm:$0xff] %v16846_v50  ;;  %14740 = vmatprep.mubr.msk.f32.mxu0 %vm1344_vm4, %v8811_v14  ;;  %3169 = vst.msk [vmem:[#allocation3 + $0x220] sm:$0xff] %vm2166_vm5, %v3097_v21  ;;  %v13987_v10 = vpop.f32.mrb[142].mxu1  ;;  %v4027_v57 = vadd.f32 %v3955_v38, %v18477_v7  ;;  %v3027_v43 = vld [vmem:[#allocation3 + $0x230] sm:$0xff]  ;;  %v8812_v4 = vld [vmem:[#allocation2 + $0x1a2] sm:$0xff] }
 0x316   : > { %v3100_v40 = vadd.f32 %v13987_v10, %v3028_v39  ;;  %v2948_v13 = vpop.f32.mrb[143].mxu1  ;;  %14393 = vmatmul.mubr.msk.f32.gmra.mrb[248].mxu1 %vm1344_vm4, %v8809_v2  ;;  %4100 = vst.msk [vmem:[#allocation3 + $0x208] sm:$0xff] %vm2166_vm5, %v4028_v15  ;;  %v8813_v21 = vld [vmem:[#allocation2 + $0x1aa] sm:$0xff] }
 0x317   : > { %v16855_v50 = vpop.f32.mrb[246].mxu0  ;;  %v3099_v58 = vadd.f32 %v3027_v43, %v2948_v13  ;;  %14395 = vmatprep.mubr.msk.f32.mxu1 %vm1344_vm4, %v8810_v35  ;;  %4099 = vst.msk [vmem:[#allocation3 + $0x200] sm:$0xff] %vm2166_vm5, %v4027_v57  ;;  %v3958_v24 = vld [vmem:[#allocation3 + $0x218] sm:$0xff]  ;;  %v18480_v2 = vld [vmem:[#allocation22_spill] sm:$0xff]  ;;  %v4827_v15 = vld [vmem:[#allocation3 + $0x8] sm:$0xff] }
 0x318   : > { %18478 = vst [vmem:[#allocation19_spill] sm:$0xff] %v16855_v50  ;;  %14741 = vmatmul.mubr.msk.f32.gmra.mrb[96].mxu0 %vm1344_vm4, %v8812_v4  ;;  %v16860_v47 = vpop.f32.mrb[247].mxu0  ;;  %3172 = vst.msk [vmem:[#allocation3 + $0x238] sm:$0xff] %vm2166_vm5, %v3100_v40  ;;  %v4030_v38 = vadd.f32 %v18480_v2, %v3958_v24  ;;  %v3957_v10 = vld [vmem:[#allocation3 + $0x210] sm:$0xff]  ;;  %v18481_v35 = vld [vmem:[#allocation23_spill] sm:$0xff] }
 0x319   : > { %18479 = vst [vmem:[#allocation20_spill] sm:$0xff] %v16860_v47  ;;  %14743 = vmatprep.mubr.msk.f32.mxu0 %vm1344_vm4, %v8813_v21  ;;  %3171 = vst.msk [vmem:[#allocation3 + $0x230] sm:$0xff] %vm2166_vm5, %v3099_v58  ;;  %v14114_v43 = vpop.f32.mrb[144].mxu1  ;;  %v4029_v39 = vadd.f32 %v3957_v10, %v18481_v35  ;;  %v4826_v50 = vld [vmem:[#allocation3] sm:$0xff]  ;;  %v8814_v47 = vld [vmem:[#allocation2 + $0x1b2] sm:$0xff] }
 0x31a   : > { %v4899_v7 = vadd.f32 %v14114_v43, %v4827_v15  ;;  %v4467_v13 = vpop.f32.mrb[145].mxu1  ;;  %14396 = vmatmul.mubr.msk.f32.gmra.mrb[250].mxu1 %vm1344_vm4, %v8811_v14  ;;  %4102 = vst.msk [vmem:[#allocation3 + $0x218] sm:$0xff] %vm2166_vm5, %v4030_v38  ;;  %v8815_v58 = vld [vmem:[#allocation2 + $0x1c2] sm:$0xff]  ;;  %v4829_v38 = vld [vmem:[#allocation3 + $0x18] sm:$0xff] }
 0x31b   : > { %v16869_v57 = vpop.f32.mrb[248].mxu0  ;;  %v4898_v40 = vadd.f32 %v4826_v50, %v4467_v13  ;;  %14398 = vmatprep.mubr.msk.f32.mxu1 %vm1344_vm4, %v8812_v4  ;;  %4101 = vst.msk [vmem:[#allocation3 + $0x210] sm:$0xff] %vm2166_vm5, %v4029_v39  ;;  %v3960_v2 = vld [vmem:[#allocation3 + $0x228] sm:$0xff]  ;;  %v18484_v14 = vld [vmem:[#allocation24_spill] sm:$0xff] }
 0x31c   : > { %18482 = vst [vmem:[#allocation21_spill] sm:$0xff] %v16869_v57  ;;  %v16873_v24 = vpop.f32.mrb[249].mxu0  ;;  %14744 = vmatmul.mubr.msk.f32.gmra.mrb[98].mxu0 %vm1344_vm4, %v8814_v47  ;;  %4971 = vst.msk [vmem:[#allocation3 + $0x8] sm:$0xff] %vm2166_vm5, %v4899_v7  ;;  %v4032_v10 = vadd.f32 %v18484_v14, %v3960_v2  ;;  %v3959_v43 = vld [vmem:[#allocation3 + $0x220] sm:$0xff]  ;;  %v18485_v4 = vld [vmem:[#allocation25_spill] sm:$0xff] }
 0x31d   : > { %18483 = vst [vmem:[#allocation22_spill] sm:$0xff] %v16873_v24  ;;  %14746 = vmatprep.mubr.msk.f32.mxu0 %vm1344_vm4, %v8815_v58  ;;  %4970 = vst.msk [vmem:[#allocation3] sm:$0xff] %vm2166_vm5, %v4898_v40  ;;  %v14117_v50 = vpop.f32.mrb[146].mxu1  ;;  %v4031_v15 = vadd.f32 %v3959_v43, %v18485_v4  ;;  %v4828_v24 = vld [vmem:[#allocation3 + $0x10] sm:$0xff] }
 0x31e   : > { %v4901_v35 = vadd.f32 %v14117_v50, %v4829_v38  ;;  %v4477_v13 = vpop.f32.mrb[147].mxu1  ;;  %14399 = vmatmul.mubr.msk.f32.gmra.mrb[252].mxu1 %vm1344_vm4, %v8813_v21  ;;  %v8816_v57 = vld [vmem:[#allocation2 + $0x1ca] sm:$0xff]  ;;  %4104 = vst.msk [vmem:[#allocation3 + $0x228] sm:$0xff] %vm2166_vm5, %v4032_v10  ;;  %v8817_v40 = vld [vmem:[#allocation2 + $0x1d2] sm:$0xff] }
 0x31f   : > { %v16883_v39 = vpop.f32.mrb[250].mxu0  ;;  %v4900_v7 = vadd.f32 %v4828_v24, %v4477_v13  ;;  %14401 = vmatprep.mubr.msk.f32.mxu1 %vm1344_vm4, %v8814_v47  ;;  %4103 = vst.msk [vmem:[#allocation3 + $0x220] sm:$0xff] %vm2166_vm5, %v4031_v15  ;;  %v3962_v14 = vld [vmem:[#allocation3 + $0x238] sm:$0xff]  ;;  %v18488_v21 = vld [vmem:[#allocation26_spill] sm:$0xff]  ;;  %v4831_v10 = vld [vmem:[#allocation3 + $0x28] sm:$0xff] }
 0x320   : > { %18486 = vst [vmem:[#allocation23_spill] sm:$0xff] %v16883_v39  ;;  %v16887_v2 = vpop.f32.mrb[251].mxu0  ;;  %14747 = vmatmul.mubr.msk.f32.gmra.mrb[100].mxu0 %vm1344_vm4, %v8816_v57  ;;  %4973 = vst.msk [vmem:[#allocation3 + $0x18] sm:$0xff] %vm2166_vm5, %v4901_v35  ;;  %v4034_v43 = vadd.f32 %v18488_v21, %v3962_v14  ;;  %v3961_v50 = vld [vmem:[#allocation3 + $0x230] sm:$0xff]  ;;  %v18489_v47 = vld [vmem:[#allocation27_spill] sm:$0xff] }
 0x321   : > { %18487 = vst [vmem:[#allocation24_spill] sm:$0xff] %v16887_v2  ;;  %14749 = vmatprep.mubr.msk.f32.mxu0 %vm1344_vm4, %v8817_v40  ;;  %4972 = vst.msk [vmem:[#allocation3 + $0x10] sm:$0xff] %vm2166_vm5, %v4900_v7  ;;  %v14120_v24 = vpop.f32.mrb[148].mxu1  ;;  %v4033_v38 = vadd.f32 %v3961_v50, %v18489_v47  ;;  %v4830_v2 = vld [vmem:[#allocation3 + $0x20] sm:$0xff]  ;;  %v8819_v7 = vld [vmem:[#allocation2 + $0x1ea] sm:$0xff] }
 0x322   : > { %v4903_v4 = vadd.f32 %v14120_v24, %v4831_v10  ;;  %v4487_v13 = vpop.f32.mrb[149].mxu1  ;;  %14402 = vmatmul.mubr.msk.f32.gmra.mrb[254].mxu1 %vm1344_vm4, %v8815_v58  ;;  %v8818_v39 = vld [vmem:[#allocation2 + $0x1e2] sm:$0xff]  ;;  %4106 = vst.msk [vmem:[#allocation3 + $0x238] sm:$0xff] %vm2166_vm5, %v4034_v43  ;;  %v4833_v43 = vld [vmem:[#allocation3 + $0x38] sm:$0xff] }
 0x323   : > { %v16897_v15 = vpop.f32.mrb[252].mxu0  ;;  %v4902_v35 = vadd.f32 %v4830_v2, %v4487_v13  ;;  %14404 = vmatprep.mubr.msk.f32.mxu1 %vm1344_vm4, %v8816_v57  ;;  %4105 = vst.msk [vmem:[#allocation3 + $0x230] sm:$0xff] %vm2166_vm5, %v4033_v38  ;;  %v5761_v21 = vld [vmem:[#allocation3 + $0x8] sm:$0xff]  ;;  %v18492_v58 = vld [vmem:[#allocation28_spill] sm:$0xff] }
 0x324   : > { %18490 = vst [vmem:[#allocation25_spill] sm:$0xff] %v16897_v15  ;;  %v16901_v14 = vpop.f32.mrb[253].mxu0  ;;  %14750 = vmatmul.mubr.msk.f32.gmra.mrb[102].mxu0 %vm1344_vm4, %v8818_v39  ;;  %4975 = vst.msk [vmem:[#allocation3 + $0x28] sm:$0xff] %vm2166_vm5, %v4903_v4  ;;  %v5833_v50 = vadd.f32 %v18492_v58, %v5761_v21  ;;  %v5760_v24 = vld [vmem:[#allocation3] sm:$0xff]  ;;  %v18493_v57 = vld [vmem:[#allocation29_spill] sm:$0xff] }
 0x325   : > { %18491 = vst [vmem:[#allocation26_spill] sm:$0xff] %v16901_v14  ;;  %14752 = vmatprep.mubr.msk.f32.mxu0 %vm1344_vm4, %v8819_v7  ;;  %4974 = vst.msk [vmem:[#allocation3 + $0x20] sm:$0xff] %vm2166_vm5, %v4902_v35  ;;  %v14123_v2 = vpop.f32.mrb[150].mxu1  ;;  %v5832_v10 = vadd.f32 %v5760_v24, %v18493_v57  ;;  %v4832_v14 = vld [vmem:[#allocation3 + $0x30] sm:$0xff]  ;;  %v8821_v35 = vld [vmem:[#allocation2 + $0x202] sm:$0xff] }
 0x326   : > { %v4905_v47 = vadd.f32 %v14123_v2, %v4833_v43  ;;  %v4497_v13 = vpop.f32.mrb[151].mxu1  ;;  %14405 = vmatmul.mubr.msk.f32.gmra.mrb[0].mxu1 %vm1344_vm4, %v8817_v40  ;;  %v8820_v15 = vld [vmem:[#allocation2 + $0x1f2] sm:$0xff]  ;;  %5905 = vst.msk [vmem:[#allocation3 + $0x8] sm:$0xff] %vm2166_vm5, %v5833_v50  ;;  %v4835_v50 = vld [vmem:[#allocation3 + $0x48] sm:$0xff] }
 0x327   : > { %v16911_v38 = vpop.f32.mrb[254].mxu0  ;;  %v4904_v4 = vadd.f32 %v4832_v14, %v4497_v13  ;;  %14407 = vmatprep.mubr.msk.f32.mxu1 %vm1344_vm4, %v8818_v39  ;;  %5904 = vst.msk [vmem:[#allocation3] sm:$0xff] %vm2166_vm5, %v5832_v10  ;;  %v5763_v58 = vld [vmem:[#allocation3 + $0x18] sm:$0xff]  ;;  %v18496_v40 = vld [vmem:[#allocation30_spill] sm:$0xff] }
 0x328   : > { %18494 = vst [vmem:[#allocation27_spill] sm:$0xff] %v16911_v38  ;;  %v16915_v21 = vpop.f32.mrb[255].mxu0  ;;  %14753 = vmatmul.mubr.msk.f32.gmra.mrb[104].mxu0 %vm1344_vm4, %v8820_v15  ;;  %4977 = vst.msk [vmem:[#allocation3 + $0x38] sm:$0xff] %vm2166_vm5, %v4905_v47  ;;  %v5835_v24 = vadd.f32 %v18496_v40, %v5763_v58  ;;  %v5762_v2 = vld [vmem:[#allocation3 + $0x10] sm:$0xff]  ;;  %v18497_v39 = vld [vmem:[#allocation31_spill] sm:$0xff] }
 0x329   : > { %18495 = vst [vmem:[#allocation28_spill] sm:$0xff] %v16915_v21  ;;  %14755 = vmatprep.mubr.msk.f32.mxu0 %vm1344_vm4, %v8821_v35  ;;  %4976 = vst.msk [vmem:[#allocation3 + $0x30] sm:$0xff] %vm2166_vm5, %v4904_v4  ;;  %v14126_v14 = vpop.f32.mrb[152].mxu1  ;;  %v5834_v43 = vadd.f32 %v5762_v2, %v18497_v39  ;;  %v4834_v21 = vld [vmem:[#allocation3 + $0x40] sm:$0xff]  ;;  %v8822_v38 = vld [vmem:[#allocation2 + $0x20a] sm:$0xff] }
 0x32a   : > { %v4907_v57 = vadd.f32 %v14126_v14, %v4835_v50  ;;  %v4507_v13 = vpop.f32.mrb[153].mxu1  ;;  %14408 = vmatmul.mubr.msk.f32.gmra.mrb[2].mxu1 %vm1344_vm4, %v8819_v7  ;;  %5907 = vst.msk [vmem:[#allocation3 + $0x18] sm:$0xff] %vm2166_vm5, %v5835_v24  ;;  %v8823_v4 = vld [vmem:[#allocation2 + $0x212] sm:$0xff]  ;;  %v18500_v7 = vld [vmem:[#allocation32_spill] sm:$0xff] }
 0x32b   : > { %v16925_v10 = vpop.f32.mrb[0].mxu0  ;;  %v4906_v47 = vadd.f32 %v4834_v21, %v4507_v13  ;;  %14410 = vmatprep.mubr.msk.f32.mxu1 %vm1344_vm4, %v8820_v15  ;;  %5906 = vst.msk [vmem:[#allocation3 + $0x10] sm:$0xff] %vm2166_vm5, %v5834_v43  ;;  %v5765_v40 = vld [vmem:[#allocation3 + $0x28] sm:$0xff]  ;;  %v4837_v24 = vld [vmem:[#allocation3 + $0x58] sm:$0xff] }
 0x32c   : > { %18498 = vst [vmem:[#allocation29_spill] sm:$0xff] %v16925_v10  ;;  %v16929_v58 = vpop.f32.mrb[1].mxu0  ;;  %14756 = vmatmul.mubr.msk.f32.gmra.mrb[106].mxu0 %vm1344_vm4, %v8822_v38  ;;  %4979 = vst.msk [vmem:[#allocation3 + $0x48] sm:$0xff] %vm2166_vm5, %v4907_v57  ;;  %v5837_v2 = vadd.f32 %v18500_v7, %v5765_v40  ;;  %v5764_v14 = vld [vmem:[#allocation3 + $0x20] sm:$0xff]  ;;  %v18501_v15 = vld [vmem:[#allocation33_spill] sm:$0xff] }
 0x32d   : > { %18499 = vst [vmem:[#allocation30_spill] sm:$0xff] %v16929_v58  ;;  %14758 = vmatprep.mubr.msk.f32.mxu0 %vm1344_vm4, %v8823_v4  ;;  %4978 = vst.msk [vmem:[#allocation3 + $0x40] sm:$0xff] %vm2166_vm5, %v4906_v47  ;;  %v14129_v21 = vpop.f32.mrb[154].mxu1  ;;  %v5836_v50 = vadd.f32 %v5764_v14, %v18501_v15  ;;  %v4836_v58 = vld [vmem:[#allocation3 + $0x50] sm:$0xff]  ;;  %v8824_v10 = vld [vmem:[#allocation2 + $0x222] sm:$0xff] }
 0x32e   : > { %v4909_v39 = vadd.f32 %v14129_v21, %v4837_v24  ;;  %v4517_v13 = vpop.f32.mrb[155].mxu1  ;;  %14411 = vmatmul.mubr.msk.f32.gmra.mrb[4].mxu1 %vm1344_vm4, %v8821_v35  ;;  %5909 = vst.msk [vmem:[#allocation3 + $0x28] sm:$0xff] %vm2166_vm5, %v5837_v2  ;;  %v8825_v47 = vld [vmem:[#allocation2 + $0x22a] sm:$0xff]  ;;  %v4838_v15 = vld [vmem:[#allocation3 + $0x60] sm:$0xff] }
 0x32f   : > { %v16939_v43 = vpop.f32.mrb[2].mxu0  ;;  %v4908_v57 = vadd.f32 %v4836_v58, %v4517_v13  ;;  %14413 = vmatprep.mubr.msk.f32.mxu1 %vm1344_vm4, %v8822_v38  ;;  %5908 = vst.msk [vmem:[#allocation3 + $0x20] sm:$0xff] %vm2166_vm5, %v5836_v50  ;;  %v5767_v7 = vld [vmem:[#allocation3 + $0x38] sm:$0xff]  ;;  %v4839_v2 = vld [vmem:[#allocation3 + $0x68] sm:$0xff] }
 0x330   : > { %v16943_v40 = vpop.f32.mrb[3].mxu0  ;;  %14759 = vmatmul.mubr.msk.f32.gmra.mrb[108].mxu0 %vm1344_vm4, %v8824_v10  ;;  %4981 = vst.msk [vmem:[#allocation3 + $0x58] sm:$0xff] %vm2166_vm5, %v4909_v39  ;;  %v5839_v35 = vadd.f32 %v16395_v41, %v5767_v7  ;;  %v5766_v14 = vld [vmem:[#allocation3 + $0x30] sm:$0xff] }
 0x331   : > { %14761 = vmatprep.mubr.msk.f32.mxu0 %vm1344_vm4, %v8825_v47  ;;  %4980 = vst.msk [vmem:[#allocation3 + $0x50] sm:$0xff] %vm2166_vm5, %v4908_v57  ;;  %v14132_v58 = vpop.f32.mrb[156].mxu1  ;;  %v5838_v38 = vadd.f32 %v5766_v14, %v16399_v48  ;;  %v8826_v13 = vld [vmem:[#allocation2 + $0x232] sm:$0xff]  ;;  %v8827_v57 = vld [vmem:[#allocation2 + $0x242] sm:$0xff] }
 0x332   : > { %v4911_v21 = vadd.f32 %v14132_v58, %v4839_v2  ;;  %v4527_v24 = vpop.f32.mrb[157].mxu1  ;;  %14414 = vmatmul.mubr.msk.f32.gmra.mrb[6].mxu1 %vm1344_vm4, %v8823_v4  ;;  %5911 = vst.msk [vmem:[#allocation3 + $0x38] sm:$0xff] %vm2166_vm5, %v5839_v35  ;;  %v4841_v14 = vld [vmem:[#allocation3 + $0x78] sm:$0xff] }
 0x333   : > { %v16953_v50 = vpop.f32.mrb[4].mxu0  ;;  %v4910_v39 = vadd.f32 %v4838_v15, %v4527_v24  ;;  %14416 = vmatprep.mubr.msk.f32.mxu1 %vm1344_vm4, %v8824_v10  ;;  %5910 = vst.msk [vmem:[#allocation3 + $0x30] sm:$0xff] %vm2166_vm5, %v5838_v38  ;;  %v5769_v48 = vld [vmem:[#allocation3 + $0x48] sm:$0xff]  ;;  %v4840_v24 = vld [vmem:[#allocation3 + $0x70] sm:$0xff] }
 0x334   : > { %v16957_v41 = vpop.f32.mrb[5].mxu0  ;;  %14762 = vmatmul.mubr.msk.f32.gmra.mrb[110].mxu0 %vm1344_vm4, %v8826_v13  ;;  %4983 = vst.msk [vmem:[#allocation3 + $0x68] sm:$0xff] %vm2166_vm5, %v4911_v21  ;;  %v5841_v4 = vadd.f32 %v16409_v42, %v5769_v48  ;;  %v5768_v7 = vld [vmem:[#allocation3 + $0x40] sm:$0xff]  ;;  %v8828_v15 = vld [vmem:[#allocation2 + $0x24a] sm:$0xff] }
 0x335   : > { %14764 = vmatprep.mubr.msk.f32.mxu0 %vm1344_vm4, %v8827_v57  ;;  %4982 = vst.msk [vmem:[#allocation3 + $0x60] sm:$0xff] %vm2166_vm5, %v4910_v39  ;;  %v14135_v35 = vpop.f32.mrb[158].mxu1  ;;  %v5840_v10 = vadd.f32 %v5768_v7, %v16413_v53  ;;  %v8829_v39 = vld [vmem:[#allocation2 + $0x252] sm:$0xff]  ;;  %v4843_v7 = vld [vmem:[#allocation3 + $0x88] sm:$0xff] }
 0x336   : > { %v4913_v58 = vadd.f32 %v14135_v35, %v4841_v14  ;;  %v4537_v2 = vpop.f32.mrb[159].mxu1  ;;  %14417 = vmatmul.mubr.msk.f32.gmra.mrb[8].mxu1 %vm1344_vm4, %v8825_v47  ;;  %5913 = vst.msk [vmem:[#allocation3 + $0x48] sm:$0xff] %vm2166_vm5, %v5841_v4 }
 0x337   : > { %v16967_v38 = vpop.f32.mrb[6].mxu0  ;;  %v4912_v21 = vadd.f32 %v4840_v24, %v4537_v2  ;;  %14419 = vmatprep.mubr.msk.f32.mxu1 %vm1344_vm4, %v8826_v13  ;;  %5912 = vst.msk [vmem:[#allocation3 + $0x40] sm:$0xff] %vm2166_vm5, %v5840_v10  ;;  %v5771_v53 = vld [vmem:[#allocation3 + $0x58] sm:$0xff]  ;;  %v4842_v2 = vld [vmem:[#allocation3 + $0x80] sm:$0xff] }
 0x338   : > { %v16971_v42 = vpop.f32.mrb[7].mxu0  ;;  %14765 = vmatmul.mubr.msk.f32.gmra.mrb[112].mxu0 %vm1344_vm4, %v8828_v15  ;;  %4985 = vst.msk [vmem:[#allocation3 + $0x78] sm:$0xff] %vm2166_vm5, %v4913_v58  ;;  %v5843_v47 = vadd.f32 %v16423_v60, %v5771_v53  ;;  %v5770_v48 = vld [vmem:[#allocation3 + $0x50] sm:$0xff]  ;;  %v8830_v24 = vld [vmem:[#allocation2 + $0x262] sm:$0xff] }
 0x339   : > { %14767 = vmatprep.mubr.msk.f32.mxu0 %vm1344_vm4, %v8829_v39  ;;  %4984 = vst.msk [vmem:[#allocation3 + $0x70] sm:$0xff] %vm2166_vm5, %v4912_v21  ;;  %v14138_v4 = vpop.f32.mrb[160].mxu1  ;;  %v5842_v13 = vadd.f32 %v5770_v48, %v16427_v61  ;;  %v8831_v21 = vld [vmem:[#allocation2 + $0x26a] sm:$0xff]  ;;  %v4845_v48 = vld [vmem:[#allocation3 + $0x98] sm:$0xff] }
 0x33a   : > { %v4915_v35 = vadd.f32 %v14138_v4, %v4843_v7  ;;  %v4547_v14 = vpop.f32.mrb[161].mxu1  ;;  %14420 = vmatmul.mubr.msk.f32.gmra.mrb[10].mxu1 %vm1344_vm4, %v8827_v57  ;;  %5915 = vst.msk [vmem:[#allocation3 + $0x58] sm:$0xff] %vm2166_vm5, %v5843_v47 }
 0x33b   : > { %v16981_v10 = vpop.f32.mrb[8].mxu0  ;;  %v4914_v58 = vadd.f32 %v4842_v2, %v4547_v14  ;;  %14422 = vmatprep.mubr.msk.f32.mxu1 %vm1344_vm4, %v8828_v15  ;;  %5914 = vst.msk [vmem:[#allocation3 + $0x50] sm:$0xff] %vm2166_vm5, %v5842_v13  ;;  %v5773_v61 = vld [vmem:[#allocation3 + $0x68] sm:$0xff]  ;;  %v4844_v14 = vld [vmem:[#allocation3 + $0x90] sm:$0xff] }
 0x33c   : > { %v16985_v60 = vpop.f32.mrb[9].mxu0  ;;  %14768 = vmatmul.mubr.msk.f32.gmra.mrb[114].mxu0 %vm1344_vm4, %v8830_v24  ;;  %4987 = vst.msk [vmem:[#allocation3 + $0x88] sm:$0xff] %vm2166_vm5, %v4915_v35  ;;  %v5845_v57 = vadd.f32 %v16437_v8, %v5773_v61  ;;  %v5772_v53 = vld [vmem:[#allocation3 + $0x60] sm:$0xff]  ;;  %v8832_v2 = vld [vmem:[#allocation2 + $0x272] sm:$0xff] }
 0x33d   : > { %14770 = vmatprep.mubr.msk.f32.mxu0 %vm1344_vm4, %v8831_v21  ;;  %4986 = vst.msk [vmem:[#allocation3 + $0x80] sm:$0xff] %vm2166_vm5, %v4914_v58  ;;  %v14141_v47 = vpop.f32.mrb[162].mxu1  ;;  %v5844_v15 = vadd.f32 %v5772_v53, %v16441_v5  ;;  %v8833_v58 = vld [vmem:[#allocation2 + $0x282] sm:$0xff] }
 0x33e   : > { %v4917_v4 = vadd.f32 %v14141_v47, %v4845_v48  ;;  %v4557_v7 = vpop.f32.mrb[163].mxu1  ;;  %14423 = vmatmul.mubr.msk.f32.gmra.mrb[12].mxu1 %vm1344_vm4, %v8829_v39  ;;  %5917 = vst.msk [vmem:[#allocation3 + $0x68] sm:$0xff] %vm2166_vm5, %v5845_v57  ;;  %v4847_v53 = vld [vmem:[#allocation3 + $0xa8] sm:$0xff] }
 0x33f   : > { %v16995_v13 = vpop.f32.mrb[10].mxu0  ;;  %v4916_v35 = vadd.f32 %v4844_v14, %v4557_v7  ;;  %14425 = vmatprep.mubr.msk.f32.mxu1 %vm1344_vm4, %v8830_v24  ;;  %5916 = vst.msk [vmem:[#allocation3 + $0x60] sm:$0xff] %vm2166_vm5, %v5844_v15  ;;  %v5775_v5 = vld [vmem:[#allocation3 + $0x78] sm:$0xff]  ;;  %v4846_v7 = vld [vmem:[#allocation3 + $0xa0] sm:$0xff]  ;;  %v8834_v14 = vld [vmem:[#allocation2 + $0x28a] sm:$0xff] }
 0x340   : > { %v16999_v8 = vpop.f32.mrb[11].mxu0  ;;  %14771 = vmatmul.mubr.msk.f32.gmra.mrb[116].mxu0 %vm1344_vm4, %v8832_v2  ;;  %4989 = vst.msk [vmem:[#allocation3 + $0x98] sm:$0xff] %vm2166_vm5, %v4917_v4  ;;  %v5847_v39 = vadd.f32 %v16451_v30, %v5775_v5  ;;  %v5774_v61 = vld [vmem:[#allocation3 + $0x70] sm:$0xff] }
 0x341   : > { %14773 = vmatprep.mubr.msk.f32.mxu0 %vm1344_vm4, %v8833_v58  ;;  %4988 = vst.msk [vmem:[#allocation3 + $0x90] sm:$0xff] %vm2166_vm5, %v4916_v35  ;;  %v14144_v57 = vpop.f32.mrb[164].mxu1  ;;  %v5846_v24 = vadd.f32 %v5774_v61, %v16455_v11  ;;  %v8835_v35 = vld [vmem:[#allocation2 + $0x292] sm:$0xff] }
 0x342   : > { %v4919_v47 = vadd.f32 %v14144_v57, %v4847_v53  ;;  %v4567_v48 = vpop.f32.mrb[165].mxu1  ;;  %14426 = vmatmul.mubr.msk.f32.gmra.mrb[14].mxu1 %vm1344_vm4, %v8831_v21  ;;  %5919 = vst.msk [vmem:[#allocation3 + $0x78] sm:$0xff] %vm2166_vm5, %v5847_v39  ;;  %v4849_v61 = vld [vmem:[#allocation3 + $0xb8] sm:$0xff] }
 0x343   : > { %v17009_v15 = vpop.f32.mrb[12].mxu0  ;;  %v4918_v4 = vadd.f32 %v4846_v7, %v4567_v48  ;;  %14428 = vmatprep.mubr.msk.f32.mxu1 %vm1344_vm4, %v8832_v2  ;;  %5918 = vst.msk [vmem:[#allocation3 + $0x70] sm:$0xff] %vm2166_vm5, %v5846_v24  ;;  %v5777_v11 = vld [vmem:[#allocation3 + $0x88] sm:$0xff]  ;;  %v4848_v48 = vld [vmem:[#allocation3 + $0xb0] sm:$0xff] }
 0x344   : > { %v17013_v30 = vpop.f32.mrb[13].mxu0  ;;  %14774 = vmatmul.mubr.msk.f32.gmra.mrb[118].mxu0 %vm1344_vm4, %v8834_v14  ;;  %4991 = vst.msk [vmem:[#allocation3 + $0xa8] sm:$0xff] %vm2166_vm5, %v4919_v47  ;;  %v5849_v21 = vadd.f32 %v16465_v46, %v5777_v11  ;;  %v5776_v5 = vld [vmem:[#allocation3 + $0x80] sm:$0xff] }
 0x345   : > { %14776 = vmatprep.mubr.msk.f32.mxu0 %vm1344_vm4, %v8835_v35  ;;  %4990 = vst.msk [vmem:[#allocation3 + $0xa0] sm:$0xff] %vm2166_vm5, %v4918_v4  ;;  %v14147_v39 = vpop.f32.mrb[166].mxu1  ;;  %v5848_v2 = vadd.f32 %v5776_v5, %v16469_v17  ;;  %v8836_v7 = vld [vmem:[#allocation2 + $0x2a2] sm:$0xff]  ;;  %v8837_v4 = vld [vmem:[#allocation2 + $0x2aa] sm:$0xff] }
 0x346   : > { %v4921_v57 = vadd.f32 %v14147_v39, %v4849_v61  ;;  %v4577_v53 = vpop.f32.mrb[167].mxu1  ;;  %14429 = vmatmul.mubr.msk.f32.gmra.mrb[16].mxu1 %vm1344_vm4, %v8833_v58  ;;  %5921 = vst.msk [vmem:[#allocation3 + $0x88] sm:$0xff] %vm2166_vm5, %v5849_v21  ;;  %v4851_v5 = vld [vmem:[#allocation3 + $0xc8] sm:$0xff] }
 0x347   : > { %v17023_v24 = vpop.f32.mrb[14].mxu0  ;;  %v4920_v47 = vadd.f32 %v4848_v48, %v4577_v53  ;;  %14431 = vmatprep.mubr.msk.f32.mxu1 %vm1344_vm4, %v8834_v14  ;;  %5920 = vst.msk [vmem:[#allocation3 + $0x80] sm:$0xff] %vm2166_vm5, %v5848_v2  ;;  %v5779_v17 = vld [vmem:[#allocation3 + $0x98] sm:$0xff]  ;;  %v4850_v53 = vld [vmem:[#allocation3 + $0xc0] sm:$0xff] }
 0x348   : > { %v17027_v46 = vpop.f32.mrb[15].mxu0  ;;  %14777 = vmatmul.mubr.msk.f32.gmra.mrb[120].mxu0 %vm1344_vm4, %v8836_v7  ;;  %4993 = vst.msk [vmem:[#allocation3 + $0xb8] sm:$0xff] %vm2166_vm5, %v4921_v57  ;;  %v5851_v58 = vadd.f32 %v16479_v3, %v5779_v17  ;;  %v5778_v11 = vld [vmem:[#allocation3 + $0x90] sm:$0xff] }
 0x349   : > { %14779 = vmatprep.mubr.msk.f32.mxu0 %vm1344_vm4, %v8837_v4  ;;  %4992 = vst.msk [vmem:[#allocation3 + $0xb0] sm:$0xff] %vm2166_vm5, %v4920_v47  ;;  %v14150_v21 = vpop.f32.mrb[168].mxu1  ;;  %v5850_v14 = vadd.f32 %v5778_v11, %v16483_v25  ;;  %v8838_v48 = vld [vmem:[#allocation2 + $0x2b2] sm:$0xff]  ;;  %v8839_v47 = vld [vmem:[#allocation2 + $0x2c2] sm:$0xff] }
 0x34a   : > { %v4923_v39 = vadd.f32 %v14150_v21, %v4851_v5  ;;  %v4587_v61 = vpop.f32.mrb[169].mxu1  ;;  %14432 = vmatmul.mubr.msk.f32.gmra.mrb[18].mxu1 %vm1344_vm4, %v8835_v35  ;;  %5923 = vst.msk [vmem:[#allocation3 + $0x98] sm:$0xff] %vm2166_vm5, %v5851_v58  ;;  %v4853_v11 = vld [vmem:[#allocation3 + $0xd8] sm:$0xff] }
 0x34b   : > { %v17037_v2 = vpop.f32.mrb[16].mxu0  ;;  %v4922_v57 = vadd.f32 %v4850_v53, %v4587_v61  ;;  %14434 = vmatprep.mubr.msk.f32.mxu1 %vm1344_vm4, %v8836_v7  ;;  %5922 = vst.msk [vmem:[#allocation3 + $0x90] sm:$0xff] %vm2166_vm5, %v5850_v14  ;;  %v5781_v25 = vld [vmem:[#allocation3 + $0xa8] sm:$0xff]  ;;  %v4852_v61 = vld [vmem:[#allocation3 + $0xd0] sm:$0xff] }
 0x34c   : > { %v17041_v3 = vpop.f32.mrb[17].mxu0  ;;  %14780 = vmatmul.mubr.msk.f32.gmra.mrb[122].mxu0 %vm1344_vm4, %v8838_v48  ;;  %4995 = vst.msk [vmem:[#allocation3 + $0xc8] sm:$0xff] %vm2166_vm5, %v4923_v39  ;;  %v5853_v35 = vadd.f32 %v16493_v28, %v5781_v25  ;;  %v5780_v17 = vld [vmem:[#allocation3 + $0xa0] sm:$0xff]  ;;  %v8840_v53 = vld [vmem:[#allocation2 + $0x2ca] sm:$0xff] }
 0x34d   : > { %14782 = vmatprep.mubr.msk.f32.mxu0 %vm1344_vm4, %v8839_v47  ;;  %4994 = vst.msk [vmem:[#allocation3 + $0xc0] sm:$0xff] %vm2166_vm5, %v4922_v57  ;;  %v14153_v58 = vpop.f32.mrb[170].mxu1  ;;  %v5852_v7 = vadd.f32 %v5780_v17, %v16497_v29  ;;  %v8841_v57 = vld [vmem:[#allocation2 + $0x2d2] sm:$0xff]  ;;  %v4855_v17 = vld [vmem:[#allocation3 + $0xe8] sm:$0xff] }
 0x34e   : > { %v4925_v21 = vadd.f32 %v14153_v58, %v4853_v11  ;;  %v4597_v5 = vpop.f32.mrb[171].mxu1  ;;  %14435 = vmatmul.mubr.msk.f32.gmra.mrb[20].mxu1 %vm1344_vm4, %v8837_v4  ;;  %5925 = vst.msk [vmem:[#allocation3 + $0xa8] sm:$0xff] %vm2166_vm5, %v5853_v35 }
 0x34f   : > { %v17051_v14 = vpop.f32.mrb[18].mxu0  ;;  %v4924_v39 = vadd.f32 %v4852_v61, %v4597_v5  ;;  %14437 = vmatprep.mubr.msk.f32.mxu1 %vm1344_vm4, %v8838_v48  ;;  %5924 = vst.msk [vmem:[#allocation3 + $0xa0] sm:$0xff] %vm2166_vm5, %v5852_v7  ;;  %v5783_v29 = vld [vmem:[#allocation3 + $0xb8] sm:$0xff]  ;;  %v4854_v5 = vld [vmem:[#allocation3 + $0xe0] sm:$0xff] }
 0x350   : > { %v17055_v28 = vpop.f32.mrb[19].mxu0  ;;  %14783 = vmatmul.mubr.msk.f32.gmra.mrb[124].mxu0 %vm1344_vm4, %v8840_v53  ;;  %4997 = vst.msk [vmem:[#allocation3 + $0xd8] sm:$0xff] %vm2166_vm5, %v4925_v21  ;;  %v5855_v4 = vadd.f32 %v16507_v32, %v5783_v29  ;;  %v5782_v25 = vld [vmem:[#allocation3 + $0xb0] sm:$0xff]  ;;  %v8842_v61 = vld [vmem:[#allocation2 + $0x2e2] sm:$0xff] }
 0x351   : > { %14785 = vmatprep.mubr.msk.f32.mxu0 %vm1344_vm4, %v8841_v57  ;;  %4996 = vst.msk [vmem:[#allocation3 + $0xd0] sm:$0xff] %vm2166_vm5, %v4924_v39  ;;  %v14156_v35 = vpop.f32.mrb[172].mxu1  ;;  %v5854_v48 = vadd.f32 %v5782_v25, %v16511_v36  ;;  %v8843_v39 = vld [vmem:[#allocation2 + $0x2ea] sm:$0xff]  ;;  %v4857_v25 = vld [vmem:[#allocation3 + $0xf8] sm:$0xff] }
 0x352   : > { %v4927_v58 = vadd.f32 %v14156_v35, %v4855_v17  ;;  %v4607_v11 = vpop.f32.mrb[173].mxu1  ;;  %14438 = vmatmul.mubr.msk.f32.gmra.mrb[22].mxu1 %vm1344_vm4, %v8839_v47  ;;  %5927 = vst.msk [vmem:[#allocation3 + $0xb8] sm:$0xff] %vm2166_vm5, %v5855_v4 }
 0x353   : > { %v17065_v7 = vpop.f32.mrb[20].mxu0  ;;  %v4926_v21 = vadd.f32 %v4854_v5, %v4607_v11  ;;  %14440 = vmatprep.mubr.msk.f32.mxu1 %vm1344_vm4, %v8840_v53  ;;  %5926 = vst.msk [vmem:[#allocation3 + $0xb0] sm:$0xff] %vm2166_vm5, %v5854_v48  ;;  %v5785_v36 = vld [vmem:[#allocation3 + $0xc8] sm:$0xff]  ;;  %v4856_v11 = vld [vmem:[#allocation3 + $0xf0] sm:$0xff] }
 0x354   : > { %v17069_v32 = vpop.f32.mrb[21].mxu0  ;;  %14786 = vmatmul.mubr.msk.f32.gmra.mrb[126].mxu0 %vm1344_vm4, %v8842_v61  ;;  %4999 = vst.msk [vmem:[#allocation3 + $0xe8] sm:$0xff] %vm2166_vm5, %v4927_v58  ;;  %v5857_v47 = vadd.f32 %v16521_v49, %v5785_v36  ;;  %v5784_v29 = vld [vmem:[#allocation3 + $0xc0] sm:$0xff]  ;;  %v8844_v5 = vld [vmem:[#allocation2 + $0x2f2] sm:$0xff] }
 0x355   : > { %14788 = vmatprep.mubr.msk.f32.mxu0 %vm1344_vm4, %v8843_v39  ;;  %4998 = vst.msk [vmem:[#allocation3 + $0xe0] sm:$0xff] %vm2166_vm5, %v4926_v21  ;;  %v14159_v4 = vpop.f32.mrb[174].mxu1  ;;  %v5856_v53 = vadd.f32 %v5784_v29, %v16525_v44  ;;  %v8845_v21 = vld [vmem:[#allocation2 + $0x302] sm:$0xff] }
 0x356   : > { %v4929_v35 = vadd.f32 %v14159_v4, %v4857_v25  ;;  %v4617_v17 = vpop.f32.mrb[175].mxu1  ;;  %14441 = vmatmul.mubr.msk.f32.gmra.mrb[24].mxu1 %vm1344_vm4, %v8841_v57  ;;  %5929 = vst.msk [vmem:[#allocation3 + $0xc8] sm:$0xff] %vm2166_vm5, %v5857_v47  ;;  %v4859_v29 = vld [vmem:[#allocation3 + $0x108] sm:$0xff] }
 0x357   : > { %v17079_v48 = vpop.f32.mrb[22].mxu0  ;;  %v4928_v58 = vadd.f32 %v4856_v11, %v4617_v17  ;;  %14443 = vmatprep.mubr.msk.f32.mxu1 %vm1344_vm4, %v8842_v61  ;;  %5928 = vst.msk [vmem:[#allocation3 + $0xc0] sm:$0xff] %vm2166_vm5, %v5856_v53  ;;  %v5787_v44 = vld [vmem:[#allocation3 + $0xd8] sm:$0xff]  ;;  %v4858_v17 = vld [vmem:[#allocation3 + $0x100] sm:$0xff]  ;;  %v8846_v11 = vld [vmem:[#allocation2 + $0x30a] sm:$0xff] }
 0x358   : > { %v17083_v49 = vpop.f32.mrb[23].mxu0  ;;  %14789 = vmatmul.mubr.msk.f32.gmra.mrb[128].mxu0 %vm1344_vm4, %v8844_v5  ;;  %5001 = vst.msk [vmem:[#allocation3 + $0xf8] sm:$0xff] %vm2166_vm5, %v4929_v35  ;;  %v5859_v57 = vadd.f32 %v16535_v56, %v5787_v44  ;;  %v5786_v36 = vld [vmem:[#allocation3 + $0xd0] sm:$0xff] }
 0x359   : > { %14791 = vmatprep.mubr.msk.f32.mxu0 %vm1344_vm4, %v8845_v21  ;;  %5000 = vst.msk [vmem:[#allocation3 + $0xf0] sm:$0xff] %vm2166_vm5, %v4928_v58  ;;  %v14162_v47 = vpop.f32.mrb[176].mxu1  ;;  %v5858_v61 = vadd.f32 %v5786_v36, %v16539_v51  ;;  %v8847_v58 = vld [vmem:[#allocation2 + $0x312] sm:$0xff] }
 0x35a   : > { %v4931_v4 = vadd.f32 %v14162_v47, %v4859_v29  ;;  %v4627_v25 = vpop.f32.mrb[177].mxu1  ;;  %14444 = vmatmul.mubr.msk.f32.gmra.mrb[26].mxu1 %vm1344_vm4, %v8843_v39  ;;  %5931 = vst.msk [vmem:[#allocation3 + $0xd8] sm:$0xff] %vm2166_vm5, %v5859_v57  ;;  %v4861_v36 = vld [vmem:[#allocation3 + $0x118] sm:$0xff] }
 0x35b   : > { %v17093_v53 = vpop.f32.mrb[24].mxu0  ;;  %v4930_v35 = vadd.f32 %v4858_v17, %v4627_v25  ;;  %14446 = vmatprep.mubr.msk.f32.mxu1 %vm1344_vm4, %v8844_v5  ;;  %5930 = vst.msk [vmem:[#allocation3 + $0xd0] sm:$0xff] %vm2166_vm5, %v5858_v61  ;;  %v5789_v51 = vld [vmem:[#allocation3 + $0xe8] sm:$0xff]  ;;  %v4860_v25 = vld [vmem:[#allocation3 + $0x110] sm:$0xff] }
 0x35c   : > { %v17097_v56 = vpop.f32.mrb[25].mxu0  ;;  %14792 = vmatmul.mubr.msk.f32.gmra.mrb[130].mxu0 %vm1344_vm4, %v8846_v11  ;;  %5003 = vst.msk [vmem:[#allocation3 + $0x108] sm:$0xff] %vm2166_vm5, %v4931_v4  ;;  %v5861_v39 = vadd.f32 %v16549_v63, %v5789_v51  ;;  %v5788_v44 = vld [vmem:[#allocation3 + $0xe0] sm:$0xff] }
 0x35d   : > { %14794 = vmatprep.mubr.msk.f32.mxu0 %vm1344_vm4, %v8847_v58  ;;  %5002 = vst.msk [vmem:[#allocation3 + $0x100] sm:$0xff] %vm2166_vm5, %v4930_v35  ;;  %v14165_v57 = vpop.f32.mrb[178].mxu1  ;;  %v5860_v5 = vadd.f32 %v5788_v44, %v16553_v62  ;;  %v8848_v17 = vld [vmem:[#allocation2 + $0x322] sm:$0xff]  ;;  %v8849_v35 = vld [vmem:[#allocation2 + $0x32a] sm:$0xff] }
 0x35e   : > { %v4933_v47 = vadd.f32 %v14165_v57, %v4861_v36  ;;  %v4637_v29 = vpop.f32.mrb[179].mxu1  ;;  %14447 = vmatmul.mubr.msk.f32.gmra.mrb[28].mxu1 %vm1344_vm4, %v8845_v21  ;;  %5933 = vst.msk [vmem:[#allocation3 + $0xe8] sm:$0xff] %vm2166_vm5, %v5861_v39  ;;  %v4863_v44 = vld [vmem:[#allocation3 + $0x128] sm:$0xff] }
 0x35f   : > { %v17107_v61 = vpop.f32.mrb[26].mxu0  ;;  %v4932_v4 = vadd.f32 %v4860_v25, %v4637_v29  ;;  %14449 = vmatprep.mubr.msk.f32.mxu1 %vm1344_vm4, %v8846_v11  ;;  %5932 = vst.msk [vmem:[#allocation3 + $0xe0] sm:$0xff] %vm2166_vm5, %v5860_v5  ;;  %v5791_v62 = vld [vmem:[#allocation3 + $0xf8] sm:$0xff]  ;;  %v4862_v29 = vld [vmem:[#allocation3 + $0x120] sm:$0xff] }
 0x360   : > { %v17111_v63 = vpop.f32.mrb[27].mxu0  ;;  %14795 = vmatmul.mubr.msk.f32.gmra.mrb[132].mxu0 %vm1344_vm4, %v8848_v17  ;;  %5005 = vst.msk [vmem:[#allocation3 + $0x118] sm:$0xff] %vm2166_vm5, %v4933_v47  ;;  %v5863_v21 = vadd.f32 %v16563_v6, %v5791_v62  ;;  %v5790_v51 = vld [vmem:[#allocation3 + $0xf0] sm:$0xff]  ;;  %v7845_v25 = vld [vmem:[#allocation2 + $0x41] sm:$0xff]  ;;  %v4865_v62 = vld [vmem:[#allocation3 + $0x138] sm:$0xff] }
 0x361   : > { %14797 = vmatprep.mubr.msk.f32.mxu0 %vm1344_vm4, %v8849_v35  ;;  %5004 = vst.msk [vmem:[#allocation3 + $0x110] sm:$0xff] %vm2166_vm5, %v4932_v4  ;;  %v14168_v39 = vpop.f32.mrb[180].mxu1  ;;  %v5862_v11 = vadd.f32 %v5790_v51, %v16567_v9  ;;  %v8850_v47 = vld [vmem:[#allocation2 + $0x332] sm:$0xff] }
 0x362   : > { %v4935_v57 = vadd.f32 %v14168_v39, %v4863_v44  ;;  %v4647_v36 = vpop.f32.mrb[181].mxu1  ;;  %14450 = vmatmul.mubr.msk.f32.gmra.mrb[30].mxu1 %vm1344_vm4, %v8847_v58  ;;  %5935 = vst.msk [vmem:[#allocation3 + $0xf8] sm:$0xff] %vm2166_vm5, %v5863_v21  ;;  %v7846_v21 = vld [vmem:[#allocation2 + $0x49] sm:$0xff] }
 0x363   : > { %v17121_v5 = vpop.f32.mrb[28].mxu0  ;;  %v4934_v17 = vadd.f32 %v4862_v29, %v4647_v36  ;;  %14576 = vmatprep.mubr.msk.f32.mxu1 %vm1344_vm4, %v7845_v25  ;;  %5934 = vst.msk [vmem:[#allocation3 + $0xf0] sm:$0xff] %vm2166_vm5, %v5862_v11  ;;  %v5793_v9 = vld [vmem:[#allocation3 + $0x108] sm:$0xff]  ;;  %v4864_v36 = vld [vmem:[#allocation3 + $0x130] sm:$0xff] }
 0x364   : > { %v17124_v6 = vpop.f32.mrb[29].mxu0  ;;  %14798 = vmatmul.mubr.msk.f32.gmra.mrb[134].mxu0 %vm1344_vm4, %v8850_v47  ;;  %5007 = vst.msk [vmem:[#allocation3 + $0x128] sm:$0xff] %vm2166_vm5, %v4935_v57  ;;  %v5865_v58 = vadd.f32 %v16577_v55, %v5793_v9  ;;  %v5792_v4 = vld [vmem:[#allocation3 + $0x100] sm:$0xff]  ;;  %v7847_v11 = vld [vmem:[#allocation2 + $0x51] sm:$0xff]  ;;  %v4867_v9 = vld [vmem:[#allocation3 + $0x148] sm:$0xff] }
 0x365   : > { %5006 = vst.msk [vmem:[#allocation3 + $0x120] sm:$0xff] %vm2166_vm5, %v4934_v17  ;;  %v14171_v35 = vpop.f32.mrb[182].mxu1  ;;  %v5864_v51 = vadd.f32 %v5792_v4, %v16581_v16  ;;  %v7848_v4 = vld [vmem:[#allocation2 + $0x61] sm:$0xff] }
 0x366   : > { %v4937_v39 = vadd.f32 %v14171_v35, %v4865_v62  ;;  %v4657_v44 = vpop.f32.mrb[183].mxu1  ;;  %14577 = vmatmul.mubr.msk.f32.vlgmr.msra.gmra.mrb[32].mxu1 %vm1344_vm4, %v7846_v21  ;;  %5937 = vst.msk [vmem:[#allocation3 + $0x108] sm:$0xff] %vm2166_vm5, %v5865_v58  ;;  %v4866_v21 = vld [vmem:[#allocation3 + $0x140] sm:$0xff] }
 0x367   : > { %v17133_v29 = vpop.f32.mrb[30].mxu0  ;;  %v4936_v57 = vadd.f32 %v4864_v36, %v4657_v44  ;;  %14579 = vmatprep.mubr.msk.f32.mxu1 %vm1344_vm4, %v7847_v11  ;;  %5936 = vst.msk [vmem:[#allocation3 + $0x100] sm:$0xff] %vm2166_vm5, %v5864_v51  ;;  %v5795_v25 = vld [vmem:[#allocation3 + $0x118] sm:$0xff]  ;;  %v7849_v51 = vld [vmem:[#allocation2 + $0x69] sm:$0xff] }
 0x368   : > { %v17137_v55 = vpop.f32.mrb[31].mxu0  ;;  %5009 = vst.msk [vmem:[#allocation3 + $0x138] sm:$0xff] %vm2166_vm5, %v4937_v39  ;;  %v5867_v16 = vadd.f32 %v16591_v19, %v5795_v25  ;;  %v5794_v47 = vld [vmem:[#allocation3 + $0x110] sm:$0xff]  ;;  %v4869_v25 = vld [vmem:[#allocation3 + $0x158] sm:$0xff] }
 0x369   : > { %5008 = vst.msk [vmem:[#allocation3 + $0x130] sm:$0xff] %vm2166_vm5, %v4936_v57  ;;  %v14174_v17 = vpop.f32.mrb[184].mxu1  ;;  %v5866_v58 = vadd.f32 %v5794_v47, %v16595_v27  ;;  %v7850_v47 = vld [vmem:[#allocation2 + $0x71] sm:$0xff] }
 0x36a   : > { %v4939_v35 = vadd.f32 %v14174_v17, %v4867_v9  ;;  %v4667_v62 = vpop.f32.mrb[185].mxu1  ;;  %14580 = vmatmul.mubr.msk.f32.gmra.mrb[34].mxu1 %vm1344_vm4, %v7848_v4  ;;  %5939 = vst.msk [vmem:[#allocation3 + $0x118] sm:$0xff] %vm2166_vm5, %v5867_v16  ;;  %v18502_v17 = vld [vmem:[#allocation34_spill] sm:$0xff] }
 0x36b   : > { %v17145_v44 = vpop.f32.mrb[32].mxu0  ;;  %v4938_v39 = vadd.f32 %v4866_v21, %v4667_v62  ;;  %14582 = vmatprep.mubr.msk.f32.mxu1 %vm1344_vm4, %v7849_v51  ;;  %5938 = vst.msk [vmem:[#allocation3 + $0x110] sm:$0xff] %vm2166_vm5, %v5866_v58  ;;  %v5797_v36 = vld [vmem:[#allocation3 + $0x128] sm:$0xff]  ;;  %v4868_v62 = vld [vmem:[#allocation3 + $0x150] sm:$0xff] }
 0x36c   : > { %v17149_v19 = vpop.f32.mrb[33].mxu0  ;;  %5011 = vst.msk [vmem:[#allocation3 + $0x148] sm:$0xff] %vm2166_vm5, %v4939_v35  ;;  %v5869_v27 = vadd.f32 %v16605_v26, %v5797_v36  ;;  %v5796_v11 = vld [vmem:[#allocation3 + $0x120] sm:$0xff] }
 0x36d   : > { %5010 = vst.msk [vmem:[#allocation3 + $0x140] sm:$0xff] %vm2166_vm5, %v4938_v39  ;;  %v14177_v57 = vpop.f32.mrb[186].mxu1  ;;  %v5868_v16 = vadd.f32 %v5796_v11, %v18502_v17  ;;  %v7851_v58 = vld [vmem:[#allocation2 + $0x81] sm:$0xff] }
 0x36e   : > { %v4941_v9 = vadd.f32 %v14177_v57, %v4869_v25  ;;  %v4677_v4 = vpop.f32.mrb[187].mxu1  ;;  %14583 = vmatmul.mubr.msk.f32.gmra.mrb[36].mxu1 %vm1344_vm4, %v7850_v47  ;;  %5941 = vst.msk [vmem:[#allocation3 + $0x128] sm:$0xff] %vm2166_vm5, %v5869_v27  ;;  %v4871_v57 = vld [vmem:[#allocation3 + $0x168] sm:$0xff] }
 0x36f   : > { %v17157_v21 = vpop.f32.mrb[34].mxu0  ;;  %v4940_v35 = vadd.f32 %v4868_v62, %v4677_v4  ;;  %14585 = vmatprep.mubr.msk.f32.mxu1 %vm1344_vm4, %v7851_v58  ;;  %5940 = vst.msk [vmem:[#allocation3 + $0x120] sm:$0xff] %vm2166_vm5, %v5868_v16  ;;  %v5799_v51 = vld [vmem:[#allocation3 + $0x138] sm:$0xff]  ;;  %v7852_v25 = vld [vmem:[#allocation2 + $0x89] sm:$0xff]  ;;  %v4870_v4 = vld [vmem:[#allocation3 + $0x160] sm:$0xff] }
 0x370   : > { %v17161_v26 = vpop.f32.mrb[35].mxu0  ;;  %5013 = vst.msk [vmem:[#allocation3 + $0x158] sm:$0xff] %vm2166_vm5, %v4941_v9  ;;  %v5871_v39 = vadd.f32 %v16624_v45, %v5799_v51  ;;  %v5798_v36 = vld [vmem:[#allocation3 + $0x130] sm:$0xff] }
 0x371   : > { %5012 = vst.msk [vmem:[#allocation3 + $0x150] sm:$0xff] %vm2166_vm5, %v4940_v35  ;;  %v14180_v11 = vpop.f32.mrb[188].mxu1  ;;  %v5870_v27 = vadd.f32 %v5798_v36, %v16628_v37  ;;  %v7853_v16 = vld [vmem:[#allocation2 + $0x91] sm:$0xff] }
 0x372   : > { %v4943_v47 = vadd.f32 %v14180_v11, %v4871_v57  ;;  %v4687_v17 = vpop.f32.mrb[189].mxu1  ;;  %14586 = vmatmul.mubr.msk.f32.gmra.mrb[38].mxu1 %vm1344_vm4, %v7852_v25  ;;  %5943 = vst.msk [vmem:[#allocation3 + $0x138] sm:$0xff] %vm2166_vm5, %v5871_v39  ;;  %v4873_v36 = vld [vmem:[#allocation3 + $0x178] sm:$0xff]  ;;  %v7854_v11 = vld [vmem:[#allocation2 + $0xa1] sm:$0xff] }
 0x373   : > { %v17169_v62 = vpop.f32.mrb[36].mxu0  ;;  %v4942_v9 = vadd.f32 %v4870_v4, %v4687_v17  ;;  %14588 = vmatprep.mubr.msk.f32.mxu1 %vm1344_vm4, %v7853_v16  ;;  %5942 = vst.msk [vmem:[#allocation3 + $0x130] sm:$0xff] %vm2166_vm5, %v5870_v27  ;;  %v5801_v58 = vld [vmem:[#allocation3 + $0x148] sm:$0xff]  ;;  %v4872_v17 = vld [vmem:[#allocation3 + $0x170] sm:$0xff] }
 0x374   : > { %v17173_v45 = vpop.f32.mrb[37].mxu0  ;;  %5015 = vst.msk [vmem:[#allocation3 + $0x168] sm:$0xff] %vm2166_vm5, %v4943_v47  ;;  %v5873_v37 = vadd.f32 %v16638_v31, %v5801_v58  ;;  %v5800_v35 = vld [vmem:[#allocation3 + $0x140] sm:$0xff]  ;;  %v7855_v27 = vld [vmem:[#allocation2 + $0xa9] sm:$0xff] }
 0x375   : > { %5014 = vst.msk [vmem:[#allocation3 + $0x160] sm:$0xff] %vm2166_vm5, %v4942_v9  ;;  %v14183_v51 = vpop.f32.mrb[190].mxu1  ;;  %v5872_v39 = vadd.f32 %v5800_v35, %v16642_v59  ;;  %v4875_v35 = vld [vmem:[#allocation3 + $0x188] sm:$0xff] }
 0x376   : > { %v4945_v57 = vadd.f32 %v14183_v51, %v4873_v36  ;;  %v4697_v25 = vpop.f32.mrb[191].mxu1  ;;  %14589 = vmatmul.mubr.msk.f32.gmra.mrb[40].mxu1 %vm1344_vm4, %v7854_v11  ;;  %5945 = vst.msk [vmem:[#allocation3 + $0x148] sm:$0xff] %vm2166_vm5, %v5873_v37  ;;  %v7856_v51 = vld [vmem:[#allocation2 + $0xb1] sm:$0xff] }
 0x377   : > { %v17181_v4 = vpop.f32.mrb[38].mxu0  ;;  %v4944_v47 = vadd.f32 %v4872_v17, %v4697_v25  ;;  %14591 = vmatprep.mubr.msk.f32.mxu1 %vm1344_vm4, %v7855_v27  ;;  %5944 = vst.msk [vmem:[#allocation3 + $0x140] sm:$0xff] %vm2166_vm5, %v5872_v39  ;;  %v5803_v16 = vld [vmem:[#allocation3 + $0x158] sm:$0xff]  ;;  %v4874_v25 = vld [vmem:[#allocation3 + $0x180] sm:$0xff] }
 0x378   : > { %v17185_v31 = vpop.f32.mrb[39].mxu0  ;;  %5017 = vst.msk [vmem:[#allocation3 + $0x178] sm:$0xff] %vm2166_vm5, %v4945_v57  ;;  %v5875_v59 = vadd.f32 %v16652_v1, %v5803_v16  ;;  %v5802_v9 = vld [vmem:[#allocation3 + $0x150] sm:$0xff]  ;;  %v7857_v39 = vld [vmem:[#allocation2 + $0xc1] sm:$0xff] }
 0x379   : > { %5016 = vst.msk [vmem:[#allocation3 + $0x170] sm:$0xff] %vm2166_vm5, %v4944_v47  ;;  %v14186_v58 = vpop.f32.mrb[192].mxu1  ;;  %v5874_v37 = vadd.f32 %v5802_v9, %v16656_v54  ;;  %v4877_v9 = vld [vmem:[#allocation3 + $0x198] sm:$0xff] }
 0x37a   : > { %v4947_v36 = vadd.f32 %v14186_v58, %v4875_v35  ;;  %v4707_v11 = vpop.f32.mrb[193].mxu1  ;;  %14592 = vmatmul.mubr.msk.f32.gmra.mrb[42].mxu1 %vm1344_vm4, %v7856_v51  ;;  %5947 = vst.msk [vmem:[#allocation3 + $0x158] sm:$0xff] %vm2166_vm5, %v5875_v59  ;;  %v7858_v58 = vld [vmem:[#allocation2 + $0xc9] sm:$0xff] }
 0x37b   : > { %v17193_v17 = vpop.f32.mrb[40].mxu0  ;;  %v4946_v57 = vadd.f32 %v4874_v25, %v4707_v11  ;;  %14594 = vmatprep.mubr.msk.f32.mxu1 %vm1344_vm4, %v7857_v39  ;;  %5946 = vst.msk [vmem:[#allocation3 + $0x150] sm:$0xff] %vm2166_vm5, %v5874_v37  ;;  %v5805_v27 = vld [vmem:[#allocation3 + $0x168] sm:$0xff]  ;;  %v4876_v11 = vld [vmem:[#allocation3 + $0x190] sm:$0xff] }
 0x37c   : > { %v17197_v1 = vpop.f32.mrb[41].mxu0  ;;  %5019 = vst.msk [vmem:[#allocation3 + $0x188] sm:$0xff] %vm2166_vm5, %v4947_v36  ;;  %v5877_v54 = vadd.f32 %v16666_v20, %v5805_v27  ;;  %v5804_v47 = vld [vmem:[#allocation3 + $0x160] sm:$0xff]  ;;  %v7859_v37 = vld [vmem:[#allocation2 + $0xd1] sm:$0xff] }
 0x37d   : > { %5018 = vst.msk [vmem:[#allocation3 + $0x180] sm:$0xff] %vm2166_vm5, %v4946_v57  ;;  %v14189_v16 = vpop.f32.mrb[194].mxu1  ;;  %v5876_v59 = vadd.f32 %v5804_v47, %v16676_v12  ;;  %v4879_v47 = vld [vmem:[#allocation3 + $0x1a8] sm:$0xff] }
 0x37e   : > { %v4949_v35 = vadd.f32 %v14189_v16, %v4877_v9  ;;  %v4717_v51 = vpop.f32.mrb[195].mxu1  ;;  %14595 = vmatmul.mubr.msk.f32.gmra.mrb[44].mxu1 %vm1344_vm4, %v7858_v58  ;;  %5949 = vst.msk [vmem:[#allocation3 + $0x168] sm:$0xff] %vm2166_vm5, %v5877_v54  ;;  %v7860_v16 = vld [vmem:[#allocation2 + $0xe1] sm:$0xff] }
 0x37f   : > { %v17205_v25 = vpop.f32.mrb[42].mxu0  ;;  %v4948_v36 = vadd.f32 %v4876_v11, %v4717_v51  ;;  %14597 = vmatprep.mubr.msk.f32.mxu1 %vm1344_vm4, %v7859_v37  ;;  %5948 = vst.msk [vmem:[#allocation3 + $0x160] sm:$0xff] %vm2166_vm5, %v5876_v59  ;;  %v5807_v39 = vld [vmem:[#allocation3 + $0x178] sm:$0xff]  ;;  %v4878_v51 = vld [vmem:[#allocation3 + $0x1a0] sm:$0xff]  ;;  %v7861_v59 = vld [vmem:[#allocation2 + $0xe9] sm:$0xff] }
 0x380   : > { %v17209_v20 = vpop.f32.mrb[43].mxu0  ;;  %5021 = vst.msk [vmem:[#allocation3 + $0x198] sm:$0xff] %vm2166_vm5, %v4949_v35  ;;  %v5879_v12 = vadd.f32 %v16686_v22, %v5807_v39  ;;  %v5806_v57 = vld [vmem:[#allocation3 + $0x170] sm:$0xff] }
 0x381   : > { %5020 = vst.msk [vmem:[#allocation3 + $0x190] sm:$0xff] %vm2166_vm5, %v4948_v36  ;;  %v14192_v27 = vpop.f32.mrb[196].mxu1  ;;  %v5878_v54 = vadd.f32 %v5806_v57, %v16690_v34  ;;  %v4881_v57 = vld [vmem:[#allocation3 + $0x1b8] sm:$0xff] }
 0x382   : > { %v4951_v9 = vadd.f32 %v14192_v27, %v4879_v47  ;;  %v4727_v58 = vpop.f32.mrb[197].mxu1  ;;  %14598 = vmatmul.mubr.msk.f32.gmra.mrb[46].mxu1 %vm1344_vm4, %v7860_v16  ;;  %5951 = vst.msk [vmem:[#allocation3 + $0x178] sm:$0xff] %vm2166_vm5, %v5879_v12  ;;  %v7862_v27 = vld [vmem:[#allocation2 + $0xf1] sm:$0xff] }
 0x383   : > { %v17217_v11 = vpop.f32.mrb[44].mxu0  ;;  %v4950_v35 = vadd.f32 %v4878_v51, %v4727_v58  ;;  %14600 = vmatprep.mubr.msk.f32.mxu1 %vm1344_vm4, %v7861_v59  ;;  %5950 = vst.msk [vmem:[#allocation3 + $0x170] sm:$0xff] %vm2166_vm5, %v5878_v54  ;;  %v5809_v37 = vld [vmem:[#allocation3 + $0x188] sm:$0xff]  ;;  %v4880_v58 = vld [vmem:[#allocation3 + $0x1b0] sm:$0xff] }
 0x384   : > { %v17221_v22 = vpop.f32.mrb[45].mxu0  ;;  %5023 = vst.msk [vmem:[#allocation3 + $0x1a8] sm:$0xff] %vm2166_vm5, %v4951_v9  ;;  %v5881_v34 = vadd.f32 %v16700_v23, %v5809_v37  ;;  %v5808_v36 = vld [vmem:[#allocation3 + $0x180] sm:$0xff] }
 0x385   : > { %5022 = vst.msk [vmem:[#allocation3 + $0x1a0] sm:$0xff] %vm2166_vm5, %v4950_v35  ;;  %v14195_v39 = vpop.f32.mrb[198].mxu1  ;;  %v5880_v12 = vadd.f32 %v5808_v36, %v16704_v52  ;;  %v7863_v54 = vld [vmem:[#allocation2 + $0x101] sm:$0xff] }
 0x386   : > { %v4953_v47 = vadd.f32 %v14195_v39, %v4881_v57  ;;  %v4737_v16 = vpop.f32.mrb[199].mxu1  ;;  %14601 = vmatmul.mubr.msk.f32.gmra.mrb[48].mxu1 %vm1344_vm4, %v7862_v27  ;;  %5953 = vst.msk [vmem:[#allocation3 + $0x188] sm:$0xff] %vm2166_vm5, %v5881_v34  ;;  %v4883_v36 = vld [vmem:[#allocation3 + $0x1c8] sm:$0xff] }
 0x387   : > { %v17229_v51 = vpop.f32.mrb[46].mxu0  ;;  %v4952_v9 = vadd.f32 %v4880_v58, %v4737_v16  ;;  %14603 = vmatprep.mubr.msk.f32.mxu1 %vm1344_vm4, %v7863_v54  ;;  %5952 = vst.msk [vmem:[#allocation3 + $0x180] sm:$0xff] %vm2166_vm5, %v5880_v12  ;;  %v5811_v59 = vld [vmem:[#allocation3 + $0x198] sm:$0xff]  ;;  %v7864_v39 = vld [vmem:[#allocation2 + $0x109] sm:$0xff]  ;;  %v4882_v16 = vld [vmem:[#allocation3 + $0x1c0] sm:$0xff] }
 0x388   : > { %v17233_v23 = vpop.f32.mrb[47].mxu0  ;;  %5025 = vst.msk [vmem:[#allocation3 + $0x1b8] sm:$0xff] %vm2166_vm5, %v4953_v47  ;;  %v5883_v52 = vadd.f32 %v16714_v33, %v5811_v59  ;;  %v5810_v35 = vld [vmem:[#allocation3 + $0x190] sm:$0xff] }
 0x389   : > { %5024 = vst.msk [vmem:[#allocation3 + $0x1b0] sm:$0xff] %vm2166_vm5, %v4952_v9  ;;  %v14198_v37 = vpop.f32.mrb[200].mxu1  ;;  %v5882_v34 = vadd.f32 %v5810_v35, %v16718_v18  ;;  %v7865_v12 = vld [vmem:[#allocation2 + $0x111] sm:$0xff] }
 0x38a   : > { %v4955_v57 = vadd.f32 %v14198_v37, %v4883_v36  ;;  %v4747_v27 = vpop.f32.mrb[201].mxu1  ;;  %14604 = vmatmul.mubr.msk.f32.gmra.mrb[50].mxu1 %vm1344_vm4, %v7864_v39  ;;  %5955 = vst.msk [vmem:[#allocation3 + $0x198] sm:$0xff] %vm2166_vm5, %v5883_v52  ;;  %v18505_v18 = vld [vmem:[#allocation35_spill] sm:$0xff]  ;;  %v7866_v36 = vld [vmem:[#allocation2 + $0x121] sm:$0xff] }
 0x38b   : > { %v17241_v58 = vpop.f32.mrb[48].mxu0  ;;  %v4954_v47 = vadd.f32 %v4882_v16, %v4747_v27  ;;  %14606 = vmatprep.mubr.msk.f32.mxu1 %vm1344_vm4, %v7865_v12  ;;  %5954 = vst.msk [vmem:[#allocation3 + $0x190] sm:$0xff] %vm2166_vm5, %v5882_v34  ;;  %v5813_v54 = vld [vmem:[#allocation3 + $0x1a8] sm:$0xff]  ;;  %v4885_v37 = vld [vmem:[#allocation3 + $0x1d8] sm:$0xff]  ;;  %v18506_v39 = vld [vmem:[#allocation36_spill] sm:$0xff] }
 0x38c   : > { %18503 = vst [vmem:[#allocation31_spill] sm:$0xff] %v17241_v58  ;;  %v17245_v33 = vpop.f32.mrb[49].mxu0  ;;  %5027 = vst.msk [vmem:[#allocation3 + $0x1c8] sm:$0xff] %vm2166_vm5, %v4955_v57  ;;  %v5885_v9 = vadd.f32 %v18505_v18, %v5813_v54  ;;  %v5812_v59 = vld [vmem:[#allocation3 + $0x1a0] sm:$0xff]  ;;  %v7867_v34 = vld [vmem:[#allocation2 + $0x129] sm:$0xff] }
 0x38d   : > { %18504 = vst [vmem:[#allocation32_spill] sm:$0xff] %v17245_v33  ;;  %5026 = vst.msk [vmem:[#allocation3 + $0x1c0] sm:$0xff] %vm2166_vm5, %v4954_v47  ;;  %v14201_v35 = vpop.f32.mrb[202].mxu1  ;;  %v5884_v52 = vadd.f32 %v5812_v59, %v18506_v39  ;;  %v4884_v33 = vld [vmem:[#allocation3 + $0x1d0] sm:$0xff]  ;;  %v18509_v54 = vld [vmem:[#allocation4_spill] sm:$0xff] }
 0x38e   : > { %v4957_v27 = vadd.f32 %v14201_v35, %v4885_v37  ;;  %v4757_v16 = vpop.f32.mrb[203].mxu1  ;;  %14607 = vmatmul.mubr.msk.f32.gmra.mrb[52].mxu1 %vm1344_vm4, %v7866_v36  ;;  %5957 = vst.msk [vmem:[#allocation3 + $0x1a8] sm:$0xff] %vm2166_vm5, %v5885_v9  ;;  %v4887_v37 = vld [vmem:[#allocation3 + $0x1e8] sm:$0xff]  ;;  %v7868_v36 = vld [vmem:[#allocation2 + $0x131] sm:$0xff] }
 0x38f   : > { %v17253_v58 = vpop.f32.mrb[50].mxu0  ;;  %v4956_v57 = vadd.f32 %v4884_v33, %v4757_v16  ;;  %14609 = vmatprep.mubr.msk.f32.mxu1 %vm1344_vm4, %v7867_v34  ;;  %5956 = vst.msk [vmem:[#allocation3 + $0x1a0] sm:$0xff] %vm2166_vm5, %v5884_v52  ;;  %v5815_v47 = vld [vmem:[#allocation3 + $0x1b8] sm:$0xff]  ;;  %v18510_v39 = vld [vmem:[#allocation5_spill] sm:$0xff] }
 0x390   : > { %18507 = vst [vmem:[#allocation33_spill] sm:$0xff] %v17253_v58  ;;  %v17257_v12 = vpop.f32.mrb[51].mxu0  ;;  %5029 = vst.msk [vmem:[#allocation3 + $0x1d8] sm:$0xff] %vm2166_vm5, %v4957_v27  ;;  %v5887_v18 = vadd.f32 %v18509_v54, %v5815_v47  ;;  %v5814_v59 = vld [vmem:[#allocation3 + $0x1b0] sm:$0xff]  ;;  %v7869_v52 = vld [vmem:[#allocation2 + $0x141] sm:$0xff] }
 0x391   : > { %18508 = vst [vmem:[#allocation34_spill] sm:$0xff] %v17257_v12  ;;  %5028 = vst.msk [vmem:[#allocation3 + $0x1d0] sm:$0xff] %vm2166_vm5, %v4956_v57  ;;  %v14204_v35 = vpop.f32.mrb[204].mxu1  ;;  %v5886_v9 = vadd.f32 %v5814_v59, %v18510_v39  ;;  %v4886_v12 = vld [vmem:[#allocation3 + $0x1e0] sm:$0xff]  ;;  %v18513_v47 = vld [vmem:[#allocation6_spill] sm:$0xff] }
 0x392   : > { %v4959_v33 = vadd.f32 %v14204_v35, %v4887_v37  ;;  %v4767_v16 = vpop.f32.mrb[205].mxu1  ;;  %14610 = vmatmul.mubr.msk.f32.gmra.mrb[54].mxu1 %vm1344_vm4, %v7868_v36  ;;  %5959 = vst.msk [vmem:[#allocation3 + $0x1b8] sm:$0xff] %vm2166_vm5, %v5887_v18  ;;  %v4889_v37 = vld [vmem:[#allocation3 + $0x1f8] sm:$0xff]  ;;  %v7870_v36 = vld [vmem:[#allocation2 + $0x149] sm:$0xff] }
 0x393   : > { %v17265_v58 = vpop.f32.mrb[52].mxu0  ;;  %v4958_v27 = vadd.f32 %v4886_v12, %v4767_v16  ;;  %14612 = vmatprep.mubr.msk.f32.mxu1 %vm1344_vm4, %v7869_v52  ;;  %5958 = vst.msk [vmem:[#allocation3 + $0x1b0] sm:$0xff] %vm2166_vm5, %v5886_v9  ;;  %v5817_v57 = vld [vmem:[#allocation3 + $0x1c8] sm:$0xff]  ;;  %v18514_v39 = vld [vmem:[#allocation7_spill] sm:$0xff] }
 0x394   : > { %18511 = vst [vmem:[#allocation35_spill] sm:$0xff] %v17265_v58  ;;  %v17269_v34 = vpop.f32.mrb[53].mxu0  ;;  %5031 = vst.msk [vmem:[#allocation3 + $0x1e8] sm:$0xff] %vm2166_vm5, %v4959_v33  ;;  %v5889_v54 = vadd.f32 %v18513_v47, %v5817_v57  ;;  %v5816_v59 = vld [vmem:[#allocation3 + $0x1c0] sm:$0xff]  ;;  %v7871_v9 = vld [vmem:[#allocation2 + $0x151] sm:$0xff] }
 0x395   : > { %18512 = vst [vmem:[#allocation36_spill] sm:$0xff] %v17269_v34  ;;  %5030 = vst.msk [vmem:[#allocation3 + $0x1e0] sm:$0xff] %vm2166_vm5, %v4958_v27  ;;  %v14207_v35 = vpop.f32.mrb[206].mxu1  ;;  %v5888_v18 = vadd.f32 %v5816_v59, %v18514_v39  ;;  %v4888_v34 = vld [vmem:[#allocation3 + $0x1f0] sm:$0xff]  ;;  %v18517_v57 = vld [vmem:[#allocation8_spill] sm:$0xff] }
 0x396   : > { %v4961_v12 = vadd.f32 %v14207_v35, %v4889_v37  ;;  %v4777_v16 = vpop.f32.mrb[207].mxu1  ;;  %14613 = vmatmul.mubr.msk.f32.gmra.mrb[56].mxu1 %vm1344_vm4, %v7870_v36  ;;  %5961 = vst.msk [vmem:[#allocation3 + $0x1c8] sm:$0xff] %vm2166_vm5, %v5889_v54  ;;  %v4891_v37 = vld [vmem:[#allocation3 + $0x208] sm:$0xff] }
 0x397   : > { %v17277_v58 = vpop.f32.mrb[54].mxu0  ;;  %v4960_v33 = vadd.f32 %v4888_v34, %v4777_v16  ;;  %14615 = vmatprep.mubr.msk.f32.mxu1 %vm1344_vm4, %v7871_v9  ;;  %5960 = vst.msk [vmem:[#allocation3 + $0x1c0] sm:$0xff] %vm2166_vm5, %v5888_v18  ;;  %v5819_v27 = vld [vmem:[#allocation3 + $0x1d8] sm:$0xff]  ;;  %v7872_v36 = vld [vmem:[#allocation2 + $0x161] sm:$0xff]  ;;  %v7873_v18 = vld [vmem:[#allocation2 + $0x169] sm:$0xff] }
 0x398   : > { %18515 = vst [vmem:[#allocation4_spill] sm:$0xff] %v17277_v58  ;;  %v17281_v52 = vpop.f32.mrb[55].mxu0  ;;  %5033 = vst.msk [vmem:[#allocation3 + $0x1f8] sm:$0xff] %vm2166_vm5, %v4961_v12  ;;  %v5891_v47 = vadd.f32 %v18517_v57, %v5819_v27  ;;  %v5818_v59 = vld [vmem:[#allocation3 + $0x1d0] sm:$0xff]  ;;  %v18518_v39 = vld [vmem:[#allocation9_spill] sm:$0xff] }
 0x399   : > { %18516 = vst [vmem:[#allocation5_spill] sm:$0xff] %v17281_v52  ;;  %5032 = vst.msk [vmem:[#allocation3 + $0x1f0] sm:$0xff] %vm2166_vm5, %v4960_v33  ;;  %v14210_v35 = vpop.f32.mrb[208].mxu1  ;;  %v5890_v54 = vadd.f32 %v5818_v59, %v18518_v39  ;;  %v4890_v52 = vld [vmem:[#allocation3 + $0x200] sm:$0xff]  ;;  %v18521_v27 = vld [vmem:[#allocation10_spill] sm:$0xff] }
 0x39a   : > { %v4963_v34 = vadd.f32 %v14210_v35, %v4891_v37  ;;  %v4787_v16 = vpop.f32.mrb[209].mxu1  ;;  %14616 = vmatmul.mubr.msk.f32.gmra.mrb[58].mxu1 %vm1344_vm4, %v7872_v36  ;;  %5963 = vst.msk [vmem:[#allocation3 + $0x1d8] sm:$0xff] %vm2166_vm5, %v5891_v47  ;;  %v4893_v37 = vld [vmem:[#allocation3 + $0x218] sm:$0xff] }
 0x39b   : > { %v17289_v58 = vpop.f32.mrb[56].mxu0  ;;  %v4962_v12 = vadd.f32 %v4890_v52, %v4787_v16  ;;  %14618 = vmatprep.mubr.msk.f32.mxu1 %vm1344_vm4, %v7873_v18  ;;  %5962 = vst.msk [vmem:[#allocation3 + $0x1d0] sm:$0xff] %vm2166_vm5, %v5890_v54  ;;  %v5821_v33 = vld [vmem:[#allocation3 + $0x1e8] sm:$0xff]  ;;  %v7874_v36 = vld [vmem:[#allocation2 + $0x171] sm:$0xff] }
 0x39c   : > { %18519 = vst [vmem:[#allocation6_spill] sm:$0xff] %v17289_v58  ;;  %v17293_v9 = vpop.f32.mrb[57].mxu0  ;;  %5035 = vst.msk [vmem:[#allocation3 + $0x208] sm:$0xff] %vm2166_vm5, %v4963_v34  ;;  %v5893_v57 = vadd.f32 %v18521_v27, %v5821_v33  ;;  %v5820_v59 = vld [vmem:[#allocation3 + $0x1e0] sm:$0xff]  ;;  %v18522_v39 = vld [vmem:[#allocation11_spill] sm:$0xff] }
 0x39d   : > { %18520 = vst [vmem:[#allocation7_spill] sm:$0xff] %v17293_v9  ;;  %5034 = vst.msk [vmem:[#allocation3 + $0x200] sm:$0xff] %vm2166_vm5, %v4962_v12  ;;  %v14213_v35 = vpop.f32.mrb[210].mxu1  ;;  %v5892_v47 = vadd.f32 %v5820_v59, %v18522_v39  ;;  %v4892_v9 = vld [vmem:[#allocation3 + $0x210] sm:$0xff]  ;;  %v7875_v54 = vld [vmem:[#allocation2 + $0x181] sm:$0xff] }
 0x39e   : > { %v4965_v52 = vadd.f32 %v14213_v35, %v4893_v37  ;;  %v4797_v16 = vpop.f32.mrb[211].mxu1  ;;  %14619 = vmatmul.mubr.msk.f32.gmra.mrb[60].mxu1 %vm1344_vm4, %v7874_v36  ;;  %5965 = vst.msk [vmem:[#allocation3 + $0x1e8] sm:$0xff] %vm2166_vm5, %v5893_v57  ;;  %v18525_v33 = vld [vmem:[#allocation12_spill] sm:$0xff]  ;;  %v4895_v37 = vld [vmem:[#allocation3 + $0x228] sm:$0xff] }
 0x39f   : > { %v17301_v58 = vpop.f32.mrb[58].mxu0  ;;  %v4964_v34 = vadd.f32 %v4892_v9, %v4797_v16  ;;  %14621 = vmatprep.mubr.msk.f32.mxu1 %vm1344_vm4, %v7875_v54  ;;  %5964 = vst.msk [vmem:[#allocation3 + $0x1e0] sm:$0xff] %vm2166_vm5, %v5892_v47  ;;  %v5823_v12 = vld [vmem:[#allocation3 + $0x1f8] sm:$0xff]  ;;  %v7876_v36 = vld [vmem:[#allocation2 + $0x189] sm:$0xff] }
 0x3a0   : > { %18523 = vst [vmem:[#allocation8_spill] sm:$0xff] %v17301_v58  ;;  %v17305_v18 = vpop.f32.mrb[59].mxu0  ;;  %5037 = vst.msk [vmem:[#allocation3 + $0x218] sm:$0xff] %vm2166_vm5, %v4965_v52  ;;  %v5895_v27 = vadd.f32 %v18525_v33, %v5823_v12  ;;  %v5822_v59 = vld [vmem:[#allocation3 + $0x1f0] sm:$0xff]  ;;  %v18526_v39 = vld [vmem:[#allocation13_spill] sm:$0xff] }
 0x3a1   : > { %18524 = vst [vmem:[#allocation9_spill] sm:$0xff] %v17305_v18  ;;  %5036 = vst.msk [vmem:[#allocation3 + $0x210] sm:$0xff] %vm2166_vm5, %v4964_v34  ;;  %v14216_v35 = vpop.f32.mrb[212].mxu1  ;;  %v5894_v57 = vadd.f32 %v5822_v59, %v18526_v39  ;;  %v4894_v18 = vld [vmem:[#allocation3 + $0x220] sm:$0xff]  ;;  %v7877_v47 = vld [vmem:[#allocation2 + $0x191] sm:$0xff] }
 0x3a2   : > { %v4967_v9 = vadd.f32 %v14216_v35, %v4895_v37  ;;  %v4807_v16 = vpop.f32.mrb[213].mxu1  ;;  %14622 = vmatmul.mubr.msk.f32.gmra.mrb[62].mxu1 %vm1344_vm4, %v7876_v36  ;;  %5967 = vst.msk [vmem:[#allocation3 + $0x1f8] sm:$0xff] %vm2166_vm5, %v5895_v27  ;;  %v18529_v12 = vld [vmem:[#allocation14_spill] sm:$0xff]  ;;  %v4897_v37 = vld [vmem:[#allocation3 + $0x238] sm:$0xff]  ;;  %v7878_v36 = vld [vmem:[#allocation2 + $0x1a1] sm:$0xff] }
 0x3a3   : > { %v17313_v58 = vpop.f32.mrb[60].mxu0  ;;  %v4966_v52 = vadd.f32 %v4894_v18, %v4807_v16  ;;  %14624 = vmatprep.mubr.msk.f32.mxu1 %vm1344_vm4, %v7877_v47  ;;  %5966 = vst.msk [vmem:[#allocation3 + $0x1f0] sm:$0xff] %vm2166_vm5, %v5894_v57  ;;  %v5825_v34 = vld [vmem:[#allocation3 + $0x208] sm:$0xff]  ;;  %v18530_v39 = vld [vmem:[#allocation15_spill] sm:$0xff] }
 0x3a4   : > { %18527 = vst [vmem:[#allocation10_spill] sm:$0xff] %v17313_v58  ;;  %v17317_v54 = vpop.f32.mrb[61].mxu0  ;;  %5039 = vst.msk [vmem:[#allocation3 + $0x228] sm:$0xff] %vm2166_vm5, %v4967_v9  ;;  %v5897_v33 = vadd.f32 %v18529_v12, %v5825_v34  ;;  %v5824_v59 = vld [vmem:[#allocation3 + $0x200] sm:$0xff]  ;;  %v7879_v57 = vld [vmem:[#allocation2 + $0x1a9] sm:$0xff] }
 0x3a5   : > { %18528 = vst [vmem:[#allocation11_spill] sm:$0xff] %v17317_v54  ;;  %5038 = vst.msk [vmem:[#allocation3 + $0x220] sm:$0xff] %vm2166_vm5, %v4966_v52  ;;  %v14219_v35 = vpop.f32.mrb[214].mxu1  ;;  %v5896_v27 = vadd.f32 %v5824_v59, %v18530_v39  ;;  %v4896_v54 = vld [vmem:[#allocation3 + $0x230] sm:$0xff] }
 0x3a6   : > { %v4969_v18 = vadd.f32 %v14219_v35, %v4897_v37  ;;  %v4817_v16 = vpop.f32.mrb[215].mxu1  ;;  %14625 = vmatmul.mubr.msk.f32.gmra.mrb[64].mxu1 %vm1344_vm4, %v7878_v36  ;;  %5969 = vst.msk [vmem:[#allocation3 + $0x208] sm:$0xff] %vm2166_vm5, %v5897_v33  ;;  %v6695_v35 = vld [vmem:[#allocation3 + $0x8] sm:$0xff]  ;;  %v7880_v37 = vld [vmem:[#allocation2 + $0x1b1] sm:$0xff]  ;;  %v18531_v36 = vld [vmem:[#allocation16_spill] sm:$0xff] }
 0x3a7   : > { %v17325_v58 = vpop.f32.mrb[62].mxu0  ;;  %v4968_v9 = vadd.f32 %v4896_v54, %v4817_v16  ;;  %14627 = vmatprep.mubr.msk.f32.mxu1 %vm1344_vm4, %v7879_v57  ;;  %5968 = vst.msk [vmem:[#allocation3 + $0x200] sm:$0xff] %vm2166_vm5, %v5896_v27  ;;  %v5827_v52 = vld [vmem:[#allocation3 + $0x218] sm:$0xff]  ;;  %v6694_v16 = vld [vmem:[#allocation3] sm:$0xff] }
 0x3a8   : > { %v17329_v47 = vpop.f32.mrb[63].mxu0  ;;  %5041 = vst.msk [vmem:[#allocation3 + $0x238] sm:$0xff] %vm2166_vm5, %v4969_v18  ;;  %v5899_v34 = vadd.f32 %v16826_v0, %v5827_v52  ;;  %v5826_v12 = vld [vmem:[#allocation3 + $0x210] sm:$0xff]  ;;  %v7881_v27 = vld [vmem:[#allocation2 + $0x1c1] sm:$0xff] }
 0x3a9   : > { %5040 = vst.msk [vmem:[#allocation3 + $0x230] sm:$0xff] %vm2166_vm5, %v4968_v9  ;;  %v14346_v59 = vpop.f32.mrb[216].mxu1  ;;  %v5898_v33 = vadd.f32 %v5826_v12, %v18531_v36  ;;  %v18534_v52 = vld [vmem:[#allocation17_spill] sm:$0xff] }
 0x3aa   : > { %v6767_v54 = vadd.f32 %v14346_v59, %v6695_v35  ;;  %v6335_v39 = vpop.f32.mrb[217].mxu1  ;;  %14628 = vmatmul.mubr.msk.f32.gmra.mrb[66].mxu1 %vm1344_vm4, %v7880_v37  ;;  %5971 = vst.msk [vmem:[#allocation3 + $0x218] sm:$0xff] %vm2166_vm5, %v5899_v34  ;;  %v6697_v37 = vld [vmem:[#allocation3 + $0x18] sm:$0xff]  ;;  %v7882_v36 = vld [vmem:[#allocation2 + $0x1c9] sm:$0xff] }
 0x3ab   : > { %v17338_v57 = vpop.f32.mrb[64].mxu0  ;;  %v6766_v18 = vadd.f32 %v6694_v16, %v6335_v39  ;;  %14630 = vmatprep.mubr.msk.f32.mxu1 %vm1344_vm4, %v7881_v27  ;;  %5970 = vst.msk [vmem:[#allocation3 + $0x210] sm:$0xff] %vm2166_vm5, %v5898_v33  ;;  %v5829_v9 = vld [vmem:[#allocation3 + $0x228] sm:$0xff]  ;;  %v6696_v27 = vld [vmem:[#allocation3 + $0x10] sm:$0xff] }
 0x3ac   : > { %18532 = vst [vmem:[#allocation12_spill] sm:$0xff] %v17338_v57  ;;  %v17342_v0 = vpop.f32.mrb[65].mxu0  ;;  %6839 = vst.msk [vmem:[#allocation3 + $0x8] sm:$0xff] %vm2166_vm5, %v6767_v54  ;;  %v5901_v12 = vadd.f32 %v18534_v52, %v5829_v9  ;;  %v5828_v59 = vld [vmem:[#allocation3 + $0x220] sm:$0xff]  ;;  %v18535_v57 = vld [vmem:[#allocation18_spill] sm:$0xff] }
 0x3ad   : > { %18533 = vst [vmem:[#allocation13_spill] sm:$0xff] %v17342_v0  ;;  %6838 = vst.msk [vmem:[#allocation3] sm:$0xff] %vm2166_vm5, %v6766_v18  ;;  %v14349_v35 = vpop.f32.mrb[218].mxu1  ;;  %v5900_v34 = vadd.f32 %v5828_v59, %v18535_v57  ;;  %v7883_v33 = vld [vmem:[#allocation2 + $0x1d1] sm:$0xff] }
 0x3ae   : > { %v6769_v39 = vadd.f32 %v14349_v35, %v6697_v37  ;;  %v6345_v16 = vpop.f32.mrb[219].mxu1  ;;  %14631 = vmatmul.mubr.msk.f32.gmra.mrb[68].mxu1 %vm1344_vm4, %v7882_v36  ;;  %5973 = vst.msk [vmem:[#allocation3 + $0x228] sm:$0xff] %vm2166_vm5, %v5901_v12  ;;  %v18538_v57 = vld [vmem:[#allocation19_spill] sm:$0xff]  ;;  %v6699_v37 = vld [vmem:[#allocation3 + $0x28] sm:$0xff] }
 0x3af   : > { %v17350_v0 = vpop.f32.mrb[66].mxu0  ;;  %v6768_v54 = vadd.f32 %v6696_v27, %v6345_v16  ;;  %14633 = vmatprep.mubr.msk.f32.mxu1 %vm1344_vm4, %v7883_v33  ;;  %5972 = vst.msk [vmem:[#allocation3 + $0x220] sm:$0xff] %vm2166_vm5, %v5900_v34  ;;  %v5831_v18 = vld [vmem:[#allocation3 + $0x238] sm:$0xff]  ;;  %v7884_v36 = vld [vmem:[#allocation2 + $0x1e1] sm:$0xff]  ;;  %v7885_v34 = vld [vmem:[#allocation2 + $0x1e9] sm:$0xff] }
 0x3b0   : > { %18536 = vst [vmem:[#allocation14_spill] sm:$0xff] %v17350_v0  ;;  %v17354_v9 = vpop.f32.mrb[67].mxu0  ;;  %6841 = vst.msk [vmem:[#allocation3 + $0x18] sm:$0xff] %vm2166_vm5, %v6769_v39  ;;  %v5903_v52 = vadd.f32 %v18538_v57, %v5831_v18  ;;  %v5830_v59 = vld [vmem:[#allocation3 + $0x230] sm:$0xff]  ;;  %v18539_v0 = vld [vmem:[#allocation20_spill] sm:$0xff] }
 0x3b1   : > { %18537 = vst [vmem:[#allocation15_spill] sm:$0xff] %v17354_v9  ;;  %6840 = vst.msk [vmem:[#allocation3 + $0x10] sm:$0xff] %vm2166_vm5, %v6768_v54  ;;  %v14352_v35 = vpop.f32.mrb[220].mxu1  ;;  %v5902_v12 = vadd.f32 %v5830_v59, %v18539_v0  ;;  %v6698_v33 = vld [vmem:[#allocation3 + $0x20] sm:$0xff]  ;;  %v18542_v0 = vld [vmem:[#allocation21_spill] sm:$0xff] }
 0x3b2   : > { %v6771_v16 = vadd.f32 %v14352_v35, %v6699_v37  ;;  %v6355_v27 = vpop.f32.mrb[221].mxu1  ;;  %14634 = vmatmul.mubr.msk.f32.gmra.mrb[70].mxu1 %vm1344_vm4, %v7884_v36  ;;  %5975 = vst.msk [vmem:[#allocation3 + $0x238] sm:$0xff] %vm2166_vm5, %v5903_v52  ;;  %v6701_v37 = vld [vmem:[#allocation3 + $0x38] sm:$0xff] }
 0x3b3   : > { %v17362_v9 = vpop.f32.mrb[68].mxu0  ;;  %v6770_v39 = vadd.f32 %v6698_v33, %v6355_v27  ;;  %14636 = vmatprep.mubr.msk.f32.mxu1 %vm1344_vm4, %v7885_v34  ;;  %5974 = vst.msk [vmem:[#allocation3 + $0x230] sm:$0xff] %vm2166_vm5, %v5902_v12  ;;  %v7630_v54 = vld [vmem:[#allocation3 + $0x8] sm:$0xff]  ;;  %v7886_v36 = vld [vmem:[#allocation2 + $0x1f1] sm:$0xff] }
 0x3b4   : > { %18540 = vst [vmem:[#allocation16_spill] sm:$0xff] %v17362_v9  ;;  %v17366_v18 = vpop.f32.mrb[69].mxu0  ;;  %6843 = vst.msk [vmem:[#allocation3 + $0x28] sm:$0xff] %vm2166_vm5, %v6771_v16  ;;  %v7702_v57 = vadd.f32 %v18542_v0, %v7630_v54  ;;  %v7629_v59 = vld [vmem:[#allocation3] sm:$0xff]  ;;  %v18543_v9 = vld [vmem:[#allocation22_spill] sm:$0xff] }
 0x3b5   : > { %18541 = vst [vmem:[#allocation17_spill] sm:$0xff] %v17366_v18  ;;  %6842 = vst.msk [vmem:[#allocation3 + $0x20] sm:$0xff] %vm2166_vm5, %v6770_v39  ;;  %v14355_v35 = vpop.f32.mrb[222].mxu1  ;;  %v7701_v52 = vadd.f32 %v7629_v59, %v18543_v9  ;;  %v6700_v34 = vld [vmem:[#allocation3 + $0x30] sm:$0xff]  ;;  %v7887_v12 = vld [vmem:[#allocation2 + $0x201] sm:$0xff] }
 0x3b6   : > { %v6773_v27 = vadd.f32 %v14355_v35, %v6701_v37  ;;  %v6365_v33 = vpop.f32.mrb[223].mxu1  ;;  %14637 = vmatmul.mubr.msk.f32.gmra.mrb[72].mxu1 %vm1344_vm4, %v7886_v36  ;;  %7774 = vst.msk [vmem:[#allocation3 + $0x8] sm:$0xff] %vm2166_vm5, %v7702_v57  ;;  %v18546_v9 = vld [vmem:[#allocation23_spill] sm:$0xff]  ;;  %v6703_v37 = vld [vmem:[#allocation3 + $0x48] sm:$0xff] }
 0x3b7   : > { %v17374_v18 = vpop.f32.mrb[70].mxu0  ;;  %v6772_v16 = vadd.f32 %v6700_v34, %v6365_v33  ;;  %14639 = vmatprep.mubr.msk.f32.mxu1 %vm1344_vm4, %v7887_v12  ;;  %7773 = vst.msk [vmem:[#allocation3] sm:$0xff] %vm2166_vm5, %v7701_v52  ;;  %v7632_v39 = vld [vmem:[#allocation3 + $0x18] sm:$0xff]  ;;  %v7888_v36 = vld [vmem:[#allocation2 + $0x209] sm:$0xff]  ;;  %v6702_v12 = vld [vmem:[#allocation3 + $0x40] sm:$0xff] }
 0x3b8   : > { %18544 = vst [vmem:[#allocation18_spill] sm:$0xff] %v17374_v18  ;;  %v17378_v54 = vpop.f32.mrb[71].mxu0  ;;  %6845 = vst.msk [vmem:[#allocation3 + $0x38] sm:$0xff] %vm2166_vm5, %v6773_v27  ;;  %v7704_v0 = vadd.f32 %v18546_v9, %v7632_v39  ;;  %v7631_v59 = vld [vmem:[#allocation3 + $0x10] sm:$0xff]  ;;  %v18547_v18 = vld [vmem:[#allocation24_spill] sm:$0xff] }
 0x3b9   : > { %18545 = vst [vmem:[#allocation19_spill] sm:$0xff] %v17378_v54  ;;  %6844 = vst.msk [vmem:[#allocation3 + $0x30] sm:$0xff] %vm2166_vm5, %v6772_v16  ;;  %v14358_v35 = vpop.f32.mrb[224].mxu1  ;;  %v7703_v57 = vadd.f32 %v7631_v59, %v18547_v18  ;;  %v7889_v52 = vld [vmem:[#allocation2 + $0x211] sm:$0xff]  ;;  %v18550_v18 = vld [vmem:[#allocation25_spill] sm:$0xff] }
 0x3ba   : > { %v6775_v33 = vadd.f32 %v14358_v35, %v6703_v37  ;;  %v6375_v34 = vpop.f32.mrb[225].mxu1  ;;  %14640 = vmatmul.mubr.msk.f32.gmra.mrb[74].mxu1 %vm1344_vm4, %v7888_v36  ;;  %7776 = vst.msk [vmem:[#allocation3 + $0x18] sm:$0xff] %vm2166_vm5, %v7704_v0  ;;  %v6705_v37 = vld [vmem:[#allocation3 + $0x58] sm:$0xff]  ;;  %v7890_v36 = vld [vmem:[#allocation2 + $0x221] sm:$0xff] }
 0x3bb   : > { %v17386_v54 = vpop.f32.mrb[72].mxu0  ;;  %v6774_v27 = vadd.f32 %v6702_v12, %v6375_v34  ;;  %14642 = vmatprep.mubr.msk.f32.mxu1 %vm1344_vm4, %v7889_v52  ;;  %7775 = vst.msk [vmem:[#allocation3 + $0x10] sm:$0xff] %vm2166_vm5, %v7703_v57  ;;  %v7634_v16 = vld [vmem:[#allocation3 + $0x28] sm:$0xff]  ;;  %v6704_v52 = vld [vmem:[#allocation3 + $0x50] sm:$0xff] }
 0x3bc   : > { %18548 = vst [vmem:[#allocation20_spill] sm:$0xff] %v17386_v54  ;;  %v17390_v39 = vpop.f32.mrb[73].mxu0  ;;  %6847 = vst.msk [vmem:[#allocation3 + $0x48] sm:$0xff] %vm2166_vm5, %v6775_v33  ;;  %v7706_v9 = vadd.f32 %v18550_v18, %v7634_v16  ;;  %v7633_v59 = vld [vmem:[#allocation3 + $0x20] sm:$0xff]  ;;  %v18551_v54 = vld [vmem:[#allocation26_spill] sm:$0xff] }
 0x3bd   : > { %18549 = vst [vmem:[#allocation21_spill] sm:$0xff] %v17390_v39  ;;  %6846 = vst.msk [vmem:[#allocation3 + $0x40] sm:$0xff] %vm2166_vm5, %v6774_v27  ;;  %v14361_v35 = vpop.f32.mrb[226].mxu1  ;;  %v7705_v0 = vadd.f32 %v7633_v59, %v18551_v54  ;;  %v7891_v57 = vld [vmem:[#allocation2 + $0x229] sm:$0xff]  ;;  %v18554_v54 = vld [vmem:[#allocation27_spill] sm:$0xff] }
 0x3be   : > { %v6777_v34 = vadd.f32 %v14361_v35, %v6705_v37  ;;  %v6385_v12 = vpop.f32.mrb[227].mxu1  ;;  %14643 = vmatmul.mubr.msk.f32.gmra.mrb[76].mxu1 %vm1344_vm4, %v7890_v36  ;;  %7778 = vst.msk [vmem:[#allocation3 + $0x28] sm:$0xff] %vm2166_vm5, %v7706_v9  ;;  %v6707_v37 = vld [vmem:[#allocation3 + $0x68] sm:$0xff]  ;;  %v7892_v36 = vld [vmem:[#allocation2 + $0x231] sm:$0xff] }
 0x3bf   : > { %v17398_v39 = vpop.f32.mrb[74].mxu0  ;;  %v6776_v33 = vadd.f32 %v6704_v52, %v6385_v12  ;;  %14645 = vmatprep.mubr.msk.f32.mxu1 %vm1344_vm4, %v7891_v57  ;;  %7777 = vst.msk [vmem:[#allocation3 + $0x20] sm:$0xff] %vm2166_vm5, %v7705_v0  ;;  %v7636_v27 = vld [vmem:[#allocation3 + $0x38] sm:$0xff]  ;;  %v6706_v57 = vld [vmem:[#allocation3 + $0x60] sm:$0xff] }
 0x3c0   : > { %18552 = vst [vmem:[#allocation22_spill] sm:$0xff] %v17398_v39  ;;  %v17402_v16 = vpop.f32.mrb[75].mxu0  ;;  %6849 = vst.msk [vmem:[#allocation3 + $0x58] sm:$0xff] %vm2166_vm5, %v6777_v34  ;;  %v7708_v18 = vadd.f32 %v18554_v54, %v7636_v27  ;;  %v7635_v59 = vld [vmem:[#allocation3 + $0x30] sm:$0xff]  ;;  %v18555_v39 = vld [vmem:[#allocation28_spill] sm:$0xff] }
 0x3c1   : > { %18553 = vst [vmem:[#allocation23_spill] sm:$0xff] %v17402_v16  ;;  %6848 = vst.msk [vmem:[#allocation3 + $0x50] sm:$0xff] %vm2166_vm5, %v6776_v33  ;;  %v14364_v35 = vpop.f32.mrb[228].mxu1  ;;  %v7707_v9 = vadd.f32 %v7635_v59, %v18555_v39  ;;  %v7893_v0 = vld [vmem:[#allocation2 + $0x241] sm:$0xff] }
 0x3c2   : > { %v6779_v12 = vadd.f32 %v14364_v35, %v6707_v37  ;;  %v6395_v52 = vpop.f32.mrb[229].mxu1  ;;  %14646 = vmatmul.mubr.msk.f32.gmra.mrb[78].mxu1 %vm1344_vm4, %v7892_v36  ;;  %7780 = vst.msk [vmem:[#allocation3 + $0x38] sm:$0xff] %vm2166_vm5, %v7708_v18  ;;  %v18558_v39 = vld [vmem:[#allocation29_spill] sm:$0xff]  ;;  %v6709_v37 = vld [vmem:[#allocation3 + $0x78] sm:$0xff] }
 0x3c3   : > { %v17410_v16 = vpop.f32.mrb[76].mxu0  ;;  %v6778_v34 = vadd.f32 %v6706_v57, %v6395_v52  ;;  %14648 = vmatprep.mubr.msk.f32.mxu1 %vm1344_vm4, %v7893_v0  ;;  %7779 = vst.msk [vmem:[#allocation3 + $0x30] sm:$0xff] %vm2166_vm5, %v7707_v9  ;;  %v7638_v33 = vld [vmem:[#allocation3 + $0x48] sm:$0xff]  ;;  %v6708_v0 = vld [vmem:[#allocation3 + $0x70] sm:$0xff] }
 0x3c4   : > { %18556 = vst [vmem:[#allocation24_spill] sm:$0xff] %v17410_v16  ;;  %v17414_v27 = vpop.f32.mrb[77].mxu0  ;;  %6851 = vst.msk [vmem:[#allocation3 + $0x68] sm:$0xff] %vm2166_vm5, %v6779_v12  ;;  %v7710_v54 = vadd.f32 %v18558_v39, %v7638_v33  ;;  %v7637_v59 = vld [vmem:[#allocation3 + $0x40] sm:$0xff]  ;;  %v7894_v36 = vld [vmem:[#allocation2 + $0x249] sm:$0xff] }
 0x3c5   : > { %18557 = vst [vmem:[#allocation25_spill] sm:$0xff] %v17414_v27  ;;  %6850 = vst.msk [vmem:[#allocation3 + $0x60] sm:$0xff] %vm2166_vm5, %v6778_v34  ;;  %v14367_v35 = vpop.f32.mrb[230].mxu1  ;;  %v18559_v16 = vld [vmem:[#allocation30_spill] sm:$0xff] }
 0x3c6   : > { %v7709_v18 = vadd.f32 %v7637_v59, %v18559_v16  ;;  %v6781_v52 = vadd.f32 %v14367_v35, %v6709_v37  ;;  %v6405_v57 = vpop.f32.mrb[231].mxu1  ;;  %14649 = vmatmul.mubr.msk.f32.gmra.mrb[80].mxu1 %vm1344_vm4, %v7894_v36  ;;  %v7895_v9 = vld [vmem:[#allocation2 + $0x251] sm:$0xff]  ;;  %7782 = vst.msk [vmem:[#allocation3 + $0x48] sm:$0xff] %vm2166_vm5, %v7710_v54  ;;  %v6711_v35 = vld [vmem:[#allocation3 + $0x88] sm:$0xff] }
 0x3c7   : > { %v17422_v27 = vpop.f32.mrb[78].mxu0  ;;  %v6780_v12 = vadd.f32 %v6708_v0, %v6405_v57  ;;  %14651 = vmatprep.mubr.msk.f32.mxu1 %vm1344_vm4, %v7895_v9  ;;  %v7640_v34 = vld [vmem:[#allocation3 + $0x58] sm:$0xff]  ;;  %v7896_v37 = vld [vmem:[#allocation2 + $0x261] sm:$0xff] }
 0x3c8   : > { %v17426_v33 = vpop.f32.mrb[79].mxu0  ;;  %7781 = vst.msk [vmem:[#allocation3 + $0x40] sm:$0xff] %vm2166_vm5, %v7709_v18  ;;  %6853 = vst.msk [vmem:[#allocation3 + $0x78] sm:$0xff] %vm2166_vm5, %v6781_v52  ;;  %v7712_v16 = vadd.f32 %v16939_v43, %v7640_v34  ;;  %v7639_v39 = vld [vmem:[#allocation3 + $0x50] sm:$0xff]  ;;  %v6710_v0 = vld [vmem:[#allocation3 + $0x80] sm:$0xff] }
 0x3c9   : > { %6852 = vst.msk [vmem:[#allocation3 + $0x70] sm:$0xff] %vm2166_vm5, %v6780_v12  ;;  %v14370_v59 = vpop.f32.mrb[232].mxu1  ;;  %v7711_v54 = vadd.f32 %v7639_v39, %v16943_v40  ;;  %v7897_v18 = vld [vmem:[#allocation2 + $0x269] sm:$0xff] }
 0x3ca   : > { %v6783_v36 = vadd.f32 %v14370_v59, %v6711_v35  ;;  %v6415_v57 = vpop.f32.mrb[233].mxu1  ;;  %14652 = vmatmul.mubr.msk.f32.gmra.mrb[82].mxu1 %vm1344_vm4, %v7896_v37  ;;  %7784 = vst.msk [vmem:[#allocation3 + $0x58] sm:$0xff] %vm2166_vm5, %v7712_v16  ;;  %v6713_v59 = vld [vmem:[#allocation3 + $0x98] sm:$0xff] }
 0x3cb   : > { %v17434_v9 = vpop.f32.mrb[80].mxu0  ;;  %v6782_v52 = vadd.f32 %v6710_v0, %v6415_v57  ;;  %14654 = vmatprep.mubr.msk.f32.mxu1 %vm1344_vm4, %v7897_v18  ;;  %7783 = vst.msk [vmem:[#allocation3 + $0x50] sm:$0xff] %vm2166_vm5, %v7711_v54  ;;  %v7642_v12 = vld [vmem:[#allocation3 + $0x68] sm:$0xff]  ;;  %v7898_v35 = vld [vmem:[#allocation2 + $0x271] sm:$0xff] }
 0x3cc   : > { %v17438_v43 = vpop.f32.mrb[81].mxu0  ;;  %6855 = vst.msk [vmem:[#allocation3 + $0x88] sm:$0xff] %vm2166_vm5, %v6783_v36  ;;  %v7714_v40 = vadd.f32 %v16953_v50, %v7642_v12  ;;  %v7641_v34 = vld [vmem:[#allocation3 + $0x60] sm:$0xff]  ;;  %v6712_v0 = vld [vmem:[#allocation3 + $0x90] sm:$0xff] }
 0x3cd   : > { %6854 = vst.msk [vmem:[#allocation3 + $0x80] sm:$0xff] %vm2166_vm5, %v6782_v52  ;;  %v14373_v39 = vpop.f32.mrb[234].mxu1  ;;  %v7713_v16 = vadd.f32 %v7641_v34, %v16957_v41  ;;  %v7899_v54 = vld [vmem:[#allocation2 + $0x281] sm:$0xff] }
 0x3ce   : > { %v6785_v37 = vadd.f32 %v14373_v39, %v6713_v59  ;;  %v6425_v57 = vpop.f32.mrb[235].mxu1  ;;  %14655 = vmatmul.mubr.msk.f32.gmra.mrb[84].mxu1 %vm1344_vm4, %v7898_v35  ;;  %7786 = vst.msk [vmem:[#allocation3 + $0x68] sm:$0xff] %vm2166_vm5, %v7714_v40  ;;  %v6715_v39 = vld [vmem:[#allocation3 + $0xa8] sm:$0xff] }
 0x3cf   : > { %v17446_v18 = vpop.f32.mrb[82].mxu0  ;;  %v6784_v36 = vadd.f32 %v6712_v0, %v6425_v57  ;;  %14657 = vmatprep.mubr.msk.f32.mxu1 %vm1344_vm4, %v7899_v54  ;;  %7785 = vst.msk [vmem:[#allocation3 + $0x60] sm:$0xff] %vm2166_vm5, %v7713_v16  ;;  %v7644_v52 = vld [vmem:[#allocation3 + $0x78] sm:$0xff]  ;;  %v7900_v59 = vld [vmem:[#allocation2 + $0x289] sm:$0xff]  ;;  %v6714_v0 = vld [vmem:[#allocation3 + $0xa0] sm:$0xff] }
 0x3d0   : > { %v17450_v50 = vpop.f32.mrb[83].mxu0  ;;  %6857 = vst.msk [vmem:[#allocation3 + $0x98] sm:$0xff] %vm2166_vm5, %v6785_v37  ;;  %v7716_v41 = vadd.f32 %v16967_v38, %v7644_v52  ;;  %v7643_v12 = vld [vmem:[#allocation3 + $0x70] sm:$0xff] }
 0x3d1   : > { %6856 = vst.msk [vmem:[#allocation3 + $0x90] sm:$0xff] %vm2166_vm5, %v6784_v36  ;;  %v14376_v34 = vpop.f32.mrb[236].mxu1  ;;  %v7715_v40 = vadd.f32 %v7643_v12, %v16971_v42  ;;  %v7901_v16 = vld [vmem:[#allocation2 + $0x291] sm:$0xff] }
 0x3d2   : > { %v6787_v35 = vadd.f32 %v14376_v34, %v6715_v39  ;;  %v6435_v57 = vpop.f32.mrb[237].mxu1  ;;  %14658 = vmatmul.mubr.msk.f32.gmra.mrb[86].mxu1 %vm1344_vm4, %v7900_v59  ;;  %7788 = vst.msk [vmem:[#allocation3 + $0x78] sm:$0xff] %vm2166_vm5, %v7716_v41  ;;  %v6717_v34 = vld [vmem:[#allocation3 + $0xb8] sm:$0xff]  ;;  %v7902_v39 = vld [vmem:[#allocation2 + $0x2a1] sm:$0xff] }
 0x3d3   : > { %v17458_v54 = vpop.f32.mrb[84].mxu0  ;;  %v6786_v37 = vadd.f32 %v6714_v0, %v6435_v57  ;;  %14660 = vmatprep.mubr.msk.f32.mxu1 %vm1344_vm4, %v7901_v16  ;;  %7787 = vst.msk [vmem:[#allocation3 + $0x70] sm:$0xff] %vm2166_vm5, %v7715_v40  ;;  %v7646_v36 = vld [vmem:[#allocation3 + $0x88] sm:$0xff]  ;;  %v6716_v0 = vld [vmem:[#allocation3 + $0xb0] sm:$0xff] }
 0x3d4   : > { %v17462_v38 = vpop.f32.mrb[85].mxu0  ;;  %6859 = vst.msk [vmem:[#allocation3 + $0xa8] sm:$0xff] %vm2166_vm5, %v6787_v35  ;;  %v7718_v42 = vadd.f32 %v16981_v10, %v7646_v36  ;;  %v7645_v52 = vld [vmem:[#allocation3 + $0x80] sm:$0xff]  ;;  %v7903_v40 = vld [vmem:[#allocation2 + $0x2a9] sm:$0xff] }
 0x3d5   : > { %6858 = vst.msk [vmem:[#allocation3 + $0xa0] sm:$0xff] %vm2166_vm5, %v6786_v37  ;;  %v14379_v12 = vpop.f32.mrb[238].mxu1  ;;  %v7717_v41 = vadd.f32 %v7645_v52, %v16985_v60 }
 0x3d6   : > { %v6789_v59 = vadd.f32 %v14379_v12, %v6717_v34  ;;  %v6445_v57 = vpop.f32.mrb[239].mxu1  ;;  %14661 = vmatmul.mubr.msk.f32.gmra.mrb[88].mxu1 %vm1344_vm4, %v7902_v39  ;;  %7790 = vst.msk [vmem:[#allocation3 + $0x88] sm:$0xff] %vm2166_vm5, %v7718_v42  ;;  %v6719_v12 = vld [vmem:[#allocation3 + $0xc8] sm:$0xff]  ;;  %v7904_v34 = vld [vmem:[#allocation2 + $0x2b1] sm:$0xff] }
 0x3d7   : > { %v17470_v16 = vpop.f32.mrb[86].mxu0  ;;  %v6788_v35 = vadd.f32 %v6716_v0, %v6445_v57  ;;  %14663 = vmatprep.mubr.msk.f32.mxu1 %vm1344_vm4, %v7903_v40  ;;  %7789 = vst.msk [vmem:[#allocation3 + $0x80] sm:$0xff] %vm2166_vm5, %v7717_v41  ;;  %v7648_v37 = vld [vmem:[#allocation3 + $0x98] sm:$0xff]  ;;  %v6718_v0 = vld [vmem:[#allocation3 + $0xc0] sm:$0xff] }
 0x3d8   : > { %v17474_v10 = vpop.f32.mrb[87].mxu0  ;;  %6861 = vst.msk [vmem:[#allocation3 + $0xb8] sm:$0xff] %vm2166_vm5, %v6789_v59  ;;  %v7720_v60 = vadd.f32 %v16995_v13, %v7648_v37  ;;  %v7647_v36 = vld [vmem:[#allocation3 + $0x90] sm:$0xff]  ;;  %v7905_v41 = vld [vmem:[#allocation2 + $0x2c1] sm:$0xff] }
 0x3d9   : > { %6860 = vst.msk [vmem:[#allocation3 + $0xb0] sm:$0xff] %vm2166_vm5, %v6788_v35  ;;  %v14382_v52 = vpop.f32.mrb[240].mxu1  ;;  %v7719_v42 = vadd.f32 %v7647_v36, %v16999_v8 }
 0x3da   : > { %v6791_v39 = vadd.f32 %v14382_v52, %v6719_v12  ;;  %v6455_v57 = vpop.f32.mrb[241].mxu1  ;;  %14664 = vmatmul.mubr.msk.f32.gmra.mrb[90].mxu1 %vm1344_vm4, %v7904_v34  ;;  %7792 = vst.msk [vmem:[#allocation3 + $0x98] sm:$0xff] %vm2166_vm5, %v7720_v60  ;;  %v6721_v52 = vld [vmem:[#allocation3 + $0xd8] sm:$0xff]  ;;  %v7906_v12 = vld [vmem:[#allocation2 + $0x2c9] sm:$0xff] }
 0x3db   : > { %v17482_v40 = vpop.f32.mrb[88].mxu0  ;;  %v6790_v59 = vadd.f32 %v6718_v0, %v6455_v57  ;;  %14666 = vmatprep.mubr.msk.f32.mxu1 %vm1344_vm4, %v7905_v41  ;;  %7791 = vst.msk [vmem:[#allocation3 + $0x90] sm:$0xff] %vm2166_vm5, %v7719_v42  ;;  %v7650_v35 = vld [vmem:[#allocation3 + $0xa8] sm:$0xff]  ;;  %v6720_v0 = vld [vmem:[#allocation3 + $0xd0] sm:$0xff] }
 0x3dc   : > { %v17486_v13 = vpop.f32.mrb[89].mxu0  ;;  %6863 = vst.msk [vmem:[#allocation3 + $0xc8] sm:$0xff] %vm2166_vm5, %v6791_v39  ;;  %v7722_v8 = vadd.f32 %v17009_v15, %v7650_v35  ;;  %v7649_v37 = vld [vmem:[#allocation3 + $0xa0] sm:$0xff]  ;;  %v7907_v42 = vld [vmem:[#allocation2 + $0x2d1] sm:$0xff] }
 0x3dd   : > { %6862 = vst.msk [vmem:[#allocation3 + $0xc0] sm:$0xff] %vm2166_vm5, %v6790_v59  ;;  %v14385_v36 = vpop.f32.mrb[242].mxu1  ;;  %v7721_v60 = vadd.f32 %v7649_v37, %v17013_v30 }
 0x3de   : > { %v6793_v34 = vadd.f32 %v14385_v36, %v6721_v52  ;;  %v6465_v57 = vpop.f32.mrb[243].mxu1  ;;  %14667 = vmatmul.mubr.msk.f32.gmra.mrb[92].mxu1 %vm1344_vm4, %v7906_v12  ;;  %7794 = vst.msk [vmem:[#allocation3 + $0xa8] sm:$0xff] %vm2166_vm5, %v7722_v8  ;;  %v6723_v36 = vld [vmem:[#allocation3 + $0xe8] sm:$0xff] }
 0x3df   : > { %v17494_v41 = vpop.f32.mrb[90].mxu0  ;;  %v6792_v39 = vadd.f32 %v6720_v0, %v6465_v57  ;;  %14669 = vmatprep.mubr.msk.f32.mxu1 %vm1344_vm4, %v7907_v42  ;;  %7793 = vst.msk [vmem:[#allocation3 + $0xa0] sm:$0xff] %vm2166_vm5, %v7721_v60  ;;  %v7652_v59 = vld [vmem:[#allocation3 + $0xb8] sm:$0xff]  ;;  %v7908_v52 = vld [vmem:[#allocation2 + $0x2e1] sm:$0xff]  ;;  %v7909_v60 = vld [vmem:[#allocation2 + $0x2e9] sm:$0xff] }
 0x3e0   : > { %v17498_v15 = vpop.f32.mrb[91].mxu0  ;;  %6865 = vst.msk [vmem:[#allocation3 + $0xd8] sm:$0xff] %vm2166_vm5, %v6793_v34  ;;  %v7724_v30 = vadd.f32 %v17023_v24, %v7652_v59  ;;  %v7651_v35 = vld [vmem:[#allocation3 + $0xb0] sm:$0xff]  ;;  %v6722_v0 = vld [vmem:[#allocation3 + $0xe0] sm:$0xff] }
 0x3e1   : > { %6864 = vst.msk [vmem:[#allocation3 + $0xd0] sm:$0xff] %vm2166_vm5, %v6792_v39  ;;  %v14388_v37 = vpop.f32.mrb[244].mxu1  ;;  %v7723_v8 = vadd.f32 %v7651_v35, %v17027_v46 }
 0x3e2   : > { %v6795_v12 = vadd.f32 %v14388_v37, %v6723_v36  ;;  %v6475_v57 = vpop.f32.mrb[245].mxu1  ;;  %14670 = vmatmul.mubr.msk.f32.gmra.mrb[94].mxu1 %vm1344_vm4, %v7908_v52  ;;  %7796 = vst.msk [vmem:[#allocation3 + $0xb8] sm:$0xff] %vm2166_vm5, %v7724_v30  ;;  %v6725_v37 = vld [vmem:[#allocation3 + $0xf8] sm:$0xff] }
 0x3e3   : > { %v17506_v42 = vpop.f32.mrb[92].mxu0  ;;  %v6794_v34 = vadd.f32 %v6722_v0, %v6475_v57  ;;  %14672 = vmatprep.mubr.msk.f32.mxu1 %vm1344_vm4, %v7909_v60  ;;  %7795 = vst.msk [vmem:[#allocation3 + $0xb0] sm:$0xff] %vm2166_vm5, %v7723_v8  ;;  %v7654_v39 = vld [vmem:[#allocation3 + $0xc8] sm:$0xff]  ;;  %v7910_v36 = vld [vmem:[#allocation2 + $0x2f1] sm:$0xff] }
 0x3e4   : > { %v17510_v24 = vpop.f32.mrb[93].mxu0  ;;  %6867 = vst.msk [vmem:[#allocation3 + $0xe8] sm:$0xff] %vm2166_vm5, %v6795_v12  ;;  %v7726_v46 = vadd.f32 %v17037_v2, %v7654_v39  ;;  %v7653_v59 = vld [vmem:[#allocation3 + $0xc0] sm:$0xff]  ;;  %v6724_v0 = vld [vmem:[#allocation3 + $0xf0] sm:$0xff]  ;;  %v9900_v12 = vlaneseq }
 0x3e5   : > { %6866 = vst.msk [vmem:[#allocation3 + $0xe0] sm:$0xff] %vm2166_vm5, %v6794_v34  ;;  %v14391_v35 = vpop.f32.mrb[246].mxu1  ;;  %v7725_v30 = vadd.f32 %v7653_v59, %v17041_v3  ;;  %v7911_v8 = vld [vmem:[#allocation2 + $0x301] sm:$0xff] }
 0x3e6   : > { %v6797_v52 = vadd.f32 %v14391_v35, %v6725_v37  ;;  %v6485_v57 = vpop.f32.mrb[247].mxu1  ;;  %14673 = vmatmul.mubr.msk.f32.gmra.mrb[96].mxu1 %vm1344_vm4, %v7910_v36  ;;  %7798 = vst.msk [vmem:[#allocation3 + $0xc8] sm:$0xff] %vm2166_vm5, %v7726_v46  ;;  %v17526_v3 = vshrl.u32 %v9900_v12, 7  ;;  %v6727_v46 = vld [vmem:[#allocation3 + $0x108] sm:$0xff] }
 0x3e7   : > { %v17518_v60 = vpop.f32.mrb[94].mxu0  ;;  %v6796_v2 = vadd.f32 %v6724_v0, %v6485_v57  ;;  %14675 = vmatprep.mubr.msk.f32.mxu1 %vm1344_vm4, %v7911_v8  ;;  %7797 = vst.msk [vmem:[#allocation3 + $0xc0] sm:$0xff] %vm2166_vm5, %v7725_v30  ;;  %v7656_v39 = vld [vmem:[#allocation3 + $0xd8] sm:$0xff]  ;;  %v7912_v36 = vld [vmem:[#allocation2 + $0x309] sm:$0xff] }
 0x3e8   : > { %18560 = vst [vmem:[#allocation26_spill] sm:$0xff] %v17518_v60  ;;  %v17522_v34 = vpop.f32.mrb[95].mxu0  ;;  %6869 = vst.msk [vmem:[#allocation3 + $0xf8] sm:$0xff] %vm2166_vm5, %v6797_v52  ;;  %v7728_v59 = vadd.f32 %v17051_v14, %v7656_v39  ;;  %v7655_v35 = vld [vmem:[#allocation3 + $0xd0] sm:$0xff]  ;;  %v18408_v39 = vmul.u32 2, %v17526_v3 }
 0x3e9   : > { %18561 = vst [vmem:[#allocation27_spill] sm:$0xff] %v17522_v34  ;;  %18562 = vst [vmem:[#allocation28_spill] sm:$0xff] %v17526_v3  ;;  %v14394_v37 = vpop.f32.mrb[248].mxu1  ;;  %v7727_v57 = vadd.f32 %v7655_v35, %v17055_v28  ;;  %v6726_v34 = vld [vmem:[#allocation3 + $0x100] sm:$0xff]  ;;  %v7913_v52 = vld [vmem:[#allocation2 + $0x311] sm:$0xff] }
 0x3ea   : > { %6868 = vst.msk [vmem:[#allocation3 + $0xf0] sm:$0xff] %vm2166_vm5, %v6796_v2  ;;  %v6799_v0 = vadd.f32 %v14394_v37, %v6727_v46  ;;  %v6495_v8 = vpop.f32.mrb[249].mxu1  ;;  %14676 = vmatmul.mubr.msk.f32.gmra.mrb[98].mxu1 %vm1344_vm4, %v7912_v36  ;;  %7800 = vst.msk [vmem:[#allocation3 + $0xd8] sm:$0xff] %vm2166_vm5, %v7728_v59  ;;  %v17538_v2 = vand.u32 127, %v9900_v12  ;;  %v7914_v46 = vld [vmem:[#allocation2 + $0x321] sm:$0xff] }
 0x3eb   : > { %v17532_v30 = vpop.f32.mrb[96].mxu0  ;;  %v6798_v60 = vadd.f32 %v6726_v34, %v6495_v8  ;;  %14678 = vmatprep.mubr.msk.f32.mxu1 %vm1344_vm4, %v7913_v52  ;;  %7799 = vst.msk [vmem:[#allocation3 + $0xd0] sm:$0xff] %vm2166_vm5, %v7727_v57  ;;  %v7658_v28 = vld [vmem:[#allocation3 + $0xe8] sm:$0xff]  ;;  %v6729_v34 = vld [vmem:[#allocation3 + $0x118] sm:$0xff]  ;;  %v6728_v57 = vld [vmem:[#allocation3 + $0x110] sm:$0xff]  ;;  %v18409_v52 = vmov 0.0  }
 0x3ec   : > { %v17536_v14 = vpop.f32.mrb[97].mxu0  ;;  %6871 = vst.msk [vmem:[#allocation3 + $0x108] sm:$0xff] %vm2166_vm5, %v6799_v0  ;;  %v7730_v35 = vadd.f32 %v17065_v7, %v7658_v28  ;;  %v7657_v37 = vld [vmem:[#allocation3 + $0xe0] sm:$0xff]  ;;  %vm9907_vm6 = vcmp.eq.s32.totalorder %v17538_v2, %v18408_v39  ;;  %v7915_v7 = vld [vmem:[#allocation2 + $0x329] sm:$0xff] }
 0x3ed   : > { %6870 = vst.msk [vmem:[#allocation3 + $0x100] sm:$0xff] %vm2166_vm5, %v6798_v60  ;;  %v14397_v59 = vpop.f32.mrb[250].mxu1  ;;  %v7729_v12 = vadd.f32 %v7657_v37, %v17069_v32  ;;  %v17553_v60 = vsel %vm9907_vm6, 1.0, %v18409_v52  ;;  %v6730_v52 = vld [vmem:[#allocation3 + $0x120] sm:$0xff] }
 0x3ee   : > { %v6801_v36 = vadd.f32 %v14397_v59, %v6729_v34  ;;  %v6505_v8 = vpop.f32.mrb[251].mxu1  ;;  %14679 = vmatmul.mubr.msk.f32.gmra.mrb[100].mxu1 %vm1344_vm4, %v7914_v46  ;;  %7802 = vst.msk [vmem:[#allocation3 + $0xe8] sm:$0xff] %vm2166_vm5, %v7730_v35  ;;  %14896 = vmatprep.mubr.msk.f32.mxu0 %vm9921_vm7, %v17553_v60  ;;  %v6731_v35 = vld [vmem:[#allocation3 + $0x128] sm:$0xff]  ;;  %v7916_v46 = vld [vmem:[#allocation2 + $0x331] sm:$0xff] }
 0x3ef   : > { %v17550_v0 = vpop.f32.mrb[98].mxu0  ;;  %v6800_v28 = vadd.f32 %v6728_v57, %v6505_v8  ;;  %14681 = vmatprep.mubr.msk.f32.mxu1 %vm1344_vm4, %v7915_v7  ;;  %7801 = vst.msk [vmem:[#allocation3 + $0xe0] sm:$0xff] %vm2166_vm5, %v7729_v12  ;;  %v7660_v32 = vld [vmem:[#allocation3 + $0xf8] sm:$0xff] }
 0x3f0   : > { %v17557_v39 = vpop.f32.mrb[99].mxu0  ;;  %6873 = vst.msk [vmem:[#allocation3 + $0x118] sm:$0xff] %vm2166_vm5, %v6801_v36  ;;  %v7732_v37 = vadd.f32 %v17079_v48, %v7660_v32 }
 0x3f1   : > { %18563 = vst [vmem:[#allocation29_spill] sm:$0xff] %v17557_v39  ;;  %v7659_v59 = vld [vmem:[#allocation3 + $0xf0] sm:$0xff]  ;;  %6872 = vst.msk [vmem:[#allocation3 + $0x110] sm:$0xff] %vm2166_vm5, %v6800_v28  ;;  %v14400_v34 = vpop.f32.mrb[252].mxu1 }
 0x3f2   : > { %v7731_v8 = vadd.f32 %v7659_v59, %v17083_v49  ;;  %v6803_v57 = vadd.f32 %v14400_v34, %v6731_v35  ;;  %v6515_v7 = vpop.f32.mrb[253].mxu1  ;;  %14682 = vmatmul.mubr.msk.f32.gmra.mrb[102].mxu1 %vm1344_vm4, %v7916_v46  ;;  %7804 = vst.msk [vmem:[#allocation3 + $0xf8] sm:$0xff] %vm2166_vm5, %v7732_v37  ;;  %v6733_v59 = vld [vmem:[#allocation3 + $0x138] sm:$0xff]  ;;  %v6732_v35 = vld [vmem:[#allocation3 + $0x130] sm:$0xff] }
 0x3f3   : > { %v17567_v12 = vpop.f32.mrb[100].mxu0  ;;  %v6802_v36 = vadd.f32 %v6730_v52, %v6515_v7  ;;  %14806 = vmatprep.mubr.msk.f32.mxu1 %vm9921_vm7, %v17553_v60  ;;  %v7662_v48 = vld [vmem:[#allocation3 + $0x108] sm:$0xff] }
 0x3f4   : > { %v17570_v39 = vpop.f32.mrb[101].mxu0  ;;  %7803 = vst.msk [vmem:[#allocation3 + $0xf0] sm:$0xff] %vm2166_vm5, %v7731_v8  ;;  %6875 = vst.msk [vmem:[#allocation3 + $0x128] sm:$0xff] %vm2166_vm5, %v6803_v57  ;;  %v7734_v49 = vadd.f32 %v17093_v53, %v7662_v48  ;;  %v7661_v28 = vld [vmem:[#allocation3 + $0x100] sm:$0xff]  ;;  %v6735_v48 = vld [vmem:[#allocation3 + $0x148] sm:$0xff] }
 0x3f5   : > { %6874 = vst.msk [vmem:[#allocation3 + $0x120] sm:$0xff] %vm2166_vm5, %v6802_v36  ;;  %v14403_v32 = vpop.f32.mrb[254].mxu1  ;;  %v7733_v37 = vadd.f32 %v7661_v28, %v17097_v56 }
 0x3f6   : > { %v6805_v52 = vadd.f32 %v14403_v32, %v6733_v59  ;;  %v6525_v34 = vpop.f32.mrb[255].mxu1  ;;  %7806 = vst.msk [vmem:[#allocation3 + $0x108] sm:$0xff] %vm2166_vm5, %v7734_v49  ;;  %v6734_v49 = vld [vmem:[#allocation3 + $0x140] sm:$0xff] }
 0x3f7   : > { %v17579_v46 = vpop.f32.mrb[102].mxu0  ;;  %v6804_v8 = vadd.f32 %v6732_v35, %v6525_v34  ;;  %7805 = vst.msk [vmem:[#allocation3 + $0x100] sm:$0xff] %vm2166_vm5, %v7733_v37  ;;  %v7664_v53 = vld [vmem:[#allocation3 + $0x118] sm:$0xff] }
 0x3f8   : > { %v17582_v7 = vpop.f32.mrb[103].mxu0  ;;  %6877 = vst.msk [vmem:[#allocation3 + $0x138] sm:$0xff] %vm2166_vm5, %v6805_v52  ;;  %v7736_v57 = vadd.f32 %v17107_v61, %v7664_v53  ;;  %v7663_v36 = vld [vmem:[#allocation3 + $0x110] sm:$0xff]  ;;  %v6737_v53 = vld [vmem:[#allocation3 + $0x158] sm:$0xff] }
 0x3f9   : > { %6876 = vst.msk [vmem:[#allocation3 + $0x130] sm:$0xff] %vm2166_vm5, %v6804_v8  ;;  %v14406_v56 = vpop.f32.mrb[0].mxu1  ;;  %v7735_v28 = vadd.f32 %v7663_v36, %v17111_v63 }
 0x3fa   : > { %v6807_v32 = vadd.f32 %v14406_v56, %v6735_v48  ;;  %v6535_v59 = vpop.f32.mrb[1].mxu1  ;;  %7808 = vst.msk [vmem:[#allocation3 + $0x118] sm:$0xff] %vm2166_vm5, %v7736_v57  ;;  %v6736_v57 = vld [vmem:[#allocation3 + $0x150] sm:$0xff] }
 0x3fb   : > { %v17589_v34 = vpop.f32.mrb[104].mxu0  ;;  %v6806_v37 = vadd.f32 %v6734_v49, %v6535_v59  ;;  %7807 = vst.msk [vmem:[#allocation3 + $0x110] sm:$0xff] %vm2166_vm5, %v7735_v28  ;;  %v7666_v61 = vld [vmem:[#allocation3 + $0x128] sm:$0xff] }
 0x3fc   : > { %v17592_v35 = vpop.f32.mrb[105].mxu0  ;;  %6879 = vst.msk [vmem:[#allocation3 + $0x148] sm:$0xff] %vm2166_vm5, %v6807_v32  ;;  %v7738_v52 = vadd.f32 %v17121_v5, %v7666_v61  ;;  %v7665_v8 = vld [vmem:[#allocation3 + $0x120] sm:$0xff]  ;;  %v6739_v61 = vld [vmem:[#allocation3 + $0x168] sm:$0xff] }
 0x3fd   : > { %6878 = vst.msk [vmem:[#allocation3 + $0x140] sm:$0xff] %vm2166_vm5, %v6806_v37  ;;  %v14409_v63 = vpop.f32.mrb[2].mxu1  ;;  %v7737_v36 = vadd.f32 %v7665_v8, %v17124_v6 }
 0x3fe   : > { %v6809_v56 = vadd.f32 %v14409_v63, %v6737_v53  ;;  %v6545_v48 = vpop.f32.mrb[3].mxu1  ;;  %7810 = vst.msk [vmem:[#allocation3 + $0x128] sm:$0xff] %vm2166_vm5, %v7738_v52  ;;  %v6738_v52 = vld [vmem:[#allocation3 + $0x160] sm:$0xff] }
 0x3ff   : > { %v17599_v59 = vpop.f32.mrb[106].mxu0  ;;  %v6808_v28 = vadd.f32 %v6736_v57, %v6545_v48  ;;  %7809 = vst.msk [vmem:[#allocation3 + $0x120] sm:$0xff] %vm2166_vm5, %v7737_v36  ;;  %v7668_v5 = vld [vmem:[#allocation3 + $0x138] sm:$0xff] }
 0x400   : > { %v17602_v49 = vpop.f32.mrb[107].mxu0  ;;  %6881 = vst.msk [vmem:[#allocation3 + $0x158] sm:$0xff] %vm2166_vm5, %v6809_v56  ;;  %v7740_v32 = vadd.f32 %v17133_v29, %v7668_v5  ;;  %v7667_v37 = vld [vmem:[#allocation3 + $0x130] sm:$0xff]  ;;  %v6741_v5 = vld [vmem:[#allocation3 + $0x178] sm:$0xff] }
 0x401   : > { %6880 = vst.msk [vmem:[#allocation3 + $0x150] sm:$0xff] %vm2166_vm5, %v6808_v28  ;;  %v14412_v6 = vpop.f32.mrb[4].mxu1  ;;  %v7739_v8 = vadd.f32 %v7667_v37, %v17137_v55 }
 0x402   : > { %v6811_v63 = vadd.f32 %v14412_v6, %v6739_v61  ;;  %v6555_v53 = vpop.f32.mrb[5].mxu1  ;;  %7812 = vst.msk [vmem:[#allocation3 + $0x138] sm:$0xff] %vm2166_vm5, %v7740_v32  ;;  %v6740_v32 = vld [vmem:[#allocation3 + $0x170] sm:$0xff] }
 0x403   : > { %v17609_v48 = vpop.f32.mrb[108].mxu0  ;;  %v6810_v36 = vadd.f32 %v6738_v52, %v6555_v53  ;;  %7811 = vst.msk [vmem:[#allocation3 + $0x130] sm:$0xff] %vm2166_vm5, %v7739_v8  ;;  %v7670_v29 = vld [vmem:[#allocation3 + $0x148] sm:$0xff] }
 0x404   : > { %v17612_v57 = vpop.f32.mrb[109].mxu0  ;;  %6883 = vst.msk [vmem:[#allocation3 + $0x168] sm:$0xff] %vm2166_vm5, %v6811_v63  ;;  %v7742_v56 = vadd.f32 %v17145_v44, %v7670_v29  ;;  %v7669_v28 = vld [vmem:[#allocation3 + $0x140] sm:$0xff]  ;;  %v6743_v29 = vld [vmem:[#allocation3 + $0x188] sm:$0xff] }
 0x405   : > { %6882 = vst.msk [vmem:[#allocation3 + $0x160] sm:$0xff] %vm2166_vm5, %v6810_v36  ;;  %v14415_v55 = vpop.f32.mrb[6].mxu1  ;;  %v7741_v37 = vadd.f32 %v7669_v28, %v17149_v19 }
 0x406   : > { %v6813_v6 = vadd.f32 %v14415_v55, %v6741_v5  ;;  %v6565_v61 = vpop.f32.mrb[7].mxu1  ;;  %7814 = vst.msk [vmem:[#allocation3 + $0x148] sm:$0xff] %vm2166_vm5, %v7742_v56  ;;  %v6742_v56 = vld [vmem:[#allocation3 + $0x180] sm:$0xff] }
 0x407   : > { %v17619_v53 = vpop.f32.mrb[110].mxu0  ;;  %v6812_v8 = vadd.f32 %v6740_v32, %v6565_v61  ;;  %7813 = vst.msk [vmem:[#allocation3 + $0x140] sm:$0xff] %vm2166_vm5, %v7741_v37  ;;  %v7672_v44 = vld [vmem:[#allocation3 + $0x158] sm:$0xff] }
 0x408   : > { %v17622_v52 = vpop.f32.mrb[111].mxu0  ;;  %6885 = vst.msk [vmem:[#allocation3 + $0x178] sm:$0xff] %vm2166_vm5, %v6813_v6  ;;  %v7744_v63 = vadd.f32 %v17157_v21, %v7672_v44  ;;  %v7671_v36 = vld [vmem:[#allocation3 + $0x150] sm:$0xff]  ;;  %v6745_v44 = vld [vmem:[#allocation3 + $0x198] sm:$0xff] }
 0x409   : > { %6884 = vst.msk [vmem:[#allocation3 + $0x170] sm:$0xff] %vm2166_vm5, %v6812_v8  ;;  %v14418_v19 = vpop.f32.mrb[8].mxu1  ;;  %v7743_v28 = vadd.f32 %v7671_v36, %v17161_v26 }
 0x40a   : > { %v6815_v55 = vadd.f32 %v14418_v19, %v6743_v29  ;;  %v6575_v5 = vpop.f32.mrb[9].mxu1  ;;  %7816 = vst.msk [vmem:[#allocation3 + $0x158] sm:$0xff] %vm2166_vm5, %v7744_v63  ;;  %v6744_v63 = vld [vmem:[#allocation3 + $0x190] sm:$0xff] }
 0x40b   : > { %v17629_v61 = vpop.f32.mrb[112].mxu0  ;;  %v6814_v37 = vadd.f32 %v6742_v56, %v6575_v5  ;;  %7815 = vst.msk [vmem:[#allocation3 + $0x150] sm:$0xff] %vm2166_vm5, %v7743_v28  ;;  %v7674_v21 = vld [vmem:[#allocation3 + $0x168] sm:$0xff] }
 0x40c   : > { %v17632_v32 = vpop.f32.mrb[113].mxu0  ;;  %6887 = vst.msk [vmem:[#allocation3 + $0x188] sm:$0xff] %vm2166_vm5, %v6815_v55  ;;  %v7746_v6 = vadd.f32 %v17169_v62, %v7674_v21  ;;  %v7673_v8 = vld [vmem:[#allocation3 + $0x160] sm:$0xff]  ;;  %v6747_v21 = vld [vmem:[#allocation3 + $0x1a8] sm:$0xff] }
 0x40d   : > { %6886 = vst.msk [vmem:[#allocation3 + $0x180] sm:$0xff] %vm2166_vm5, %v6814_v37  ;;  %v14421_v26 = vpop.f32.mrb[10].mxu1  ;;  %v7745_v36 = vadd.f32 %v7673_v8, %v17173_v45 }
 0x40e   : > { %v6817_v19 = vadd.f32 %v14421_v26, %v6745_v44  ;;  %v6585_v29 = vpop.f32.mrb[11].mxu1  ;;  %7818 = vst.msk [vmem:[#allocation3 + $0x168] sm:$0xff] %vm2166_vm5, %v7746_v6  ;;  %v6746_v6 = vld [vmem:[#allocation3 + $0x1a0] sm:$0xff] }
 0x40f   : > { %v17639_v5 = vpop.f32.mrb[114].mxu0  ;;  %v6816_v28 = vadd.f32 %v6744_v63, %v6585_v29  ;;  %7817 = vst.msk [vmem:[#allocation3 + $0x160] sm:$0xff] %vm2166_vm5, %v7745_v36  ;;  %v7676_v62 = vld [vmem:[#allocation3 + $0x178] sm:$0xff] }
 0x410   : > { %v17642_v56 = vpop.f32.mrb[115].mxu0  ;;  %6889 = vst.msk [vmem:[#allocation3 + $0x198] sm:$0xff] %vm2166_vm5, %v6817_v19  ;;  %v7748_v55 = vadd.f32 %v17181_v4, %v7676_v62  ;;  %v7675_v37 = vld [vmem:[#allocation3 + $0x170] sm:$0xff]  ;;  %v6749_v62 = vld [vmem:[#allocation3 + $0x1b8] sm:$0xff] }
 0x411   : > { %6888 = vst.msk [vmem:[#allocation3 + $0x190] sm:$0xff] %vm2166_vm5, %v6816_v28  ;;  %v14424_v45 = vpop.f32.mrb[12].mxu1  ;;  %v7747_v8 = vadd.f32 %v7675_v37, %v17185_v31 }
 0x412   : > { %v6819_v26 = vadd.f32 %v14424_v45, %v6747_v21  ;;  %v6595_v44 = vpop.f32.mrb[13].mxu1  ;;  %7820 = vst.msk [vmem:[#allocation3 + $0x178] sm:$0xff] %vm2166_vm5, %v7748_v55  ;;  %v6748_v55 = vld [vmem:[#allocation3 + $0x1b0] sm:$0xff] }
 0x413   : > { %v17649_v29 = vpop.f32.mrb[116].mxu0  ;;  %v6818_v36 = vadd.f32 %v6746_v6, %v6595_v44  ;;  %7819 = vst.msk [vmem:[#allocation3 + $0x170] sm:$0xff] %vm2166_vm5, %v7747_v8  ;;  %v7678_v4 = vld [vmem:[#allocation3 + $0x188] sm:$0xff] }
 0x414   : > { %v17652_v63 = vpop.f32.mrb[117].mxu0  ;;  %6891 = vst.msk [vmem:[#allocation3 + $0x1a8] sm:$0xff] %vm2166_vm5, %v6819_v26  ;;  %v7750_v19 = vadd.f32 %v17193_v17, %v7678_v4  ;;  %v7677_v28 = vld [vmem:[#allocation3 + $0x180] sm:$0xff]  ;;  %v6751_v4 = vld [vmem:[#allocation3 + $0x1c8] sm:$0xff] }
 0x415   : > { %6890 = vst.msk [vmem:[#allocation3 + $0x1a0] sm:$0xff] %vm2166_vm5, %v6818_v36  ;;  %v14427_v31 = vpop.f32.mrb[14].mxu1  ;;  %v7749_v37 = vadd.f32 %v7677_v28, %v17197_v1 }
 0x416   : > { %v6821_v45 = vadd.f32 %v14427_v31, %v6749_v62  ;;  %v6605_v21 = vpop.f32.mrb[15].mxu1  ;;  %7822 = vst.msk [vmem:[#allocation3 + $0x188] sm:$0xff] %vm2166_vm5, %v7750_v19  ;;  %v6750_v19 = vld [vmem:[#allocation3 + $0x1c0] sm:$0xff] }
 0x417   : > { %v17659_v44 = vpop.f32.mrb[118].mxu0  ;;  %v6820_v8 = vadd.f32 %v6748_v55, %v6605_v21  ;;  %7821 = vst.msk [vmem:[#allocation3 + $0x180] sm:$0xff] %vm2166_vm5, %v7749_v37  ;;  %v7680_v17 = vld [vmem:[#allocation3 + $0x198] sm:$0xff] }
 0x418   : > { %18564 = vst [vmem:[#allocation30_spill] sm:$0xff] %v17659_v44  ;;  %v17662_v6 = vpop.f32.mrb[119].mxu0  ;;  %6893 = vst.msk [vmem:[#allocation3 + $0x1b8] sm:$0xff] %vm2166_vm5, %v6821_v45  ;;  %v7752_v26 = vadd.f32 %v17205_v25, %v7680_v17  ;;  %v7679_v36 = vld [vmem:[#allocation3 + $0x190] sm:$0xff]  ;;  %v6753_v17 = vld [vmem:[#allocation3 + $0x1d8] sm:$0xff] }
 0x419   : > { %18565 = vst [vmem:[#allocation37_spill] sm:$0xff] %v17662_v6  ;;  %6892 = vst.msk [vmem:[#allocation3 + $0x1b0] sm:$0xff] %vm2166_vm5, %v6820_v8  ;;  %v14430_v1 = vpop.f32.mrb[16].mxu1  ;;  %v7751_v28 = vadd.f32 %v7679_v36, %v17209_v20 }
 0x41a   : > { %v6823_v31 = vadd.f32 %v14430_v1, %v6751_v4  ;;  %v6615_v62 = vpop.f32.mrb[17].mxu1  ;;  %7824 = vst.msk [vmem:[#allocation3 + $0x198] sm:$0xff] %vm2166_vm5, %v7752_v26  ;;  %v6752_v26 = vld [vmem:[#allocation3 + $0x1d0] sm:$0xff] }
 0x41b   : > { %v17669_v21 = vpop.f32.mrb[120].mxu0  ;;  %v6822_v37 = vadd.f32 %v6750_v19, %v6615_v62  ;;  %7823 = vst.msk [vmem:[#allocation3 + $0x190] sm:$0xff] %vm2166_vm5, %v7751_v28  ;;  %v7682_v25 = vld [vmem:[#allocation3 + $0x1a8] sm:$0xff] }
 0x41c   : > { %18566 = vst [vmem:[#allocation38_spill] sm:$0xff] %v17669_v21  ;;  %v17672_v55 = vpop.f32.mrb[121].mxu0  ;;  %6895 = vst.msk [vmem:[#allocation3 + $0x1c8] sm:$0xff] %vm2166_vm5, %v6823_v31  ;;  %v7754_v45 = vadd.f32 %v17217_v11, %v7682_v25  ;;  %v7681_v8 = vld [vmem:[#allocation3 + $0x1a0] sm:$0xff]  ;;  %v6755_v25 = vld [vmem:[#allocation3 + $0x1e8] sm:$0xff] }
 0x41d   : > { %18567 = vst [vmem:[#allocation39_spill] sm:$0xff] %v17672_v55  ;;  %6894 = vst.msk [vmem:[#allocation3 + $0x1c0] sm:$0xff] %vm2166_vm5, %v6822_v37  ;;  %v14433_v20 = vpop.f32.mrb[18].mxu1  ;;  %v7753_v36 = vadd.f32 %v7681_v8, %v17221_v22 }
 0x41e   : > { %v6825_v1 = vadd.f32 %v14433_v20, %v6753_v17  ;;  %v6625_v4 = vpop.f32.mrb[19].mxu1  ;;  %7826 = vst.msk [vmem:[#allocation3 + $0x1a8] sm:$0xff] %vm2166_vm5, %v7754_v45  ;;  %v6754_v45 = vld [vmem:[#allocation3 + $0x1e0] sm:$0xff] }
 0x41f   : > { %v17679_v62 = vpop.f32.mrb[122].mxu0  ;;  %v6824_v28 = vadd.f32 %v6752_v26, %v6625_v4  ;;  %7825 = vst.msk [vmem:[#allocation3 + $0x1a0] sm:$0xff] %vm2166_vm5, %v7753_v36  ;;  %v7684_v11 = vld [vmem:[#allocation3 + $0x1b8] sm:$0xff] }
 0x420   : > { %18568 = vst [vmem:[#allocation40_spill] sm:$0xff] %v17679_v62  ;;  %v17682_v19 = vpop.f32.mrb[123].mxu0  ;;  %6897 = vst.msk [vmem:[#allocation3 + $0x1d8] sm:$0xff] %vm2166_vm5, %v6825_v1  ;;  %v7756_v31 = vadd.f32 %v17229_v51, %v7684_v11  ;;  %v7683_v37 = vld [vmem:[#allocation3 + $0x1b0] sm:$0xff]  ;;  %v18572_v1 = vld [vmem:[#allocation31_spill] sm:$0xff] }
 0x421   : > { %18569 = vst [vmem:[#allocation41_spill] sm:$0xff] %v17682_v19  ;;  %6896 = vst.msk [vmem:[#allocation3 + $0x1d0] sm:$0xff] %vm2166_vm5, %v6824_v28  ;;  %v14436_v22 = vpop.f32.mrb[20].mxu1  ;;  %v7755_v8 = vadd.f32 %v7683_v37, %v17233_v23  ;;  %v6757_v37 = vld [vmem:[#allocation3 + $0x1f8] sm:$0xff] }
 0x422   : > { %v6827_v20 = vadd.f32 %v14436_v22, %v6755_v25  ;;  %v6635_v17 = vpop.f32.mrb[21].mxu1  ;;  %7828 = vst.msk [vmem:[#allocation3 + $0x1b8] sm:$0xff] %vm2166_vm5, %v7756_v31  ;;  %v18573_v22 = vld [vmem:[#allocation32_spill] sm:$0xff]  ;;  %v6756_v31 = vld [vmem:[#allocation3 + $0x1f0] sm:$0xff] }
 0x423   : > { %v17689_v4 = vpop.f32.mrb[124].mxu0  ;;  %v6826_v36 = vadd.f32 %v6754_v45, %v6635_v17  ;;  %7827 = vst.msk [vmem:[#allocation3 + $0x1b0] sm:$0xff] %vm2166_vm5, %v7755_v8  ;;  %v7686_v51 = vld [vmem:[#allocation3 + $0x1c8] sm:$0xff] }
 0x424   : > { %18570 = vst [vmem:[#allocation42_spill] sm:$0xff] %v17689_v4  ;;  %v17692_v26 = vpop.f32.mrb[125].mxu0  ;;  %6899 = vst.msk [vmem:[#allocation3 + $0x1e8] sm:$0xff] %vm2166_vm5, %v6827_v20  ;;  %v7758_v28 = vadd.f32 %v18572_v1, %v7686_v51  ;;  %v7685_v11 = vld [vmem:[#allocation3 + $0x1c0] sm:$0xff] }
 0x425   : > { %18571 = vst [vmem:[#allocation43_spill] sm:$0xff] %v17692_v26  ;;  %6898 = vst.msk [vmem:[#allocation3 + $0x1e0] sm:$0xff] %vm2166_vm5, %v6826_v36  ;;  %v14439_v23 = vpop.f32.mrb[22].mxu1  ;;  %v7757_v25 = vadd.f32 %v7685_v11, %v18573_v22  ;;  %v18576_v36 = vld [vmem:[#allocation33_spill] sm:$0xff] }
 0x426   : > { %v6829_v4 = vadd.f32 %v14439_v23, %v6757_v37  ;;  %v6645_v19 = vpop.f32.mrb[23].mxu1  ;;  %7830 = vst.msk [vmem:[#allocation3 + $0x1c8] sm:$0xff] %vm2166_vm5, %v7758_v28  ;;  %v6759_v23 = vld [vmem:[#allocation3 + $0x208] sm:$0xff]  ;;  %v18577_v37 = vld [vmem:[#allocation34_spill] sm:$0xff]  ;;  %v6758_v28 = vld [vmem:[#allocation3 + $0x200] sm:$0xff] }
 0x427   : > { %v17699_v17 = vpop.f32.mrb[126].mxu0  ;;  %v6828_v8 = vadd.f32 %v6756_v31, %v6645_v19  ;;  %7829 = vst.msk [vmem:[#allocation3 + $0x1c0] sm:$0xff] %vm2166_vm5, %v7757_v25  ;;  %v7688_v20 = vld [vmem:[#allocation3 + $0x1d8] sm:$0xff] }
 0x428   : > { %18574 = vst [vmem:[#allocation31_spill] sm:$0xff] %v17699_v17  ;;  %v17702_v45 = vpop.f32.mrb[127].mxu0  ;;  %6901 = vst.msk [vmem:[#allocation3 + $0x1f8] sm:$0xff] %vm2166_vm5, %v6829_v4  ;;  %v7760_v51 = vadd.f32 %v18576_v36, %v7688_v20  ;;  %v7687_v1 = vld [vmem:[#allocation3 + $0x1d0] sm:$0xff] }
 0x429   : > { %18575 = vst [vmem:[#allocation32_spill] sm:$0xff] %v17702_v45  ;;  %6900 = vst.msk [vmem:[#allocation3 + $0x1f0] sm:$0xff] %vm2166_vm5, %v6828_v8  ;;  %v14442_v11 = vpop.f32.mrb[24].mxu1  ;;  %v7759_v22 = vadd.f32 %v7687_v1, %v18577_v37  ;;  %v18580_v8 = vld [vmem:[#allocation35_spill] sm:$0xff] }
 0x42a   : > { %v6831_v17 = vadd.f32 %v14442_v11, %v6759_v23  ;;  %v6655_v26 = vpop.f32.mrb[25].mxu1  ;;  %7832 = vst.msk [vmem:[#allocation3 + $0x1d8] sm:$0xff] %vm2166_vm5, %v7760_v51  ;;  %v6761_v11 = vld [vmem:[#allocation3 + $0x218] sm:$0xff]  ;;  %v18581_v23 = vld [vmem:[#allocation36_spill] sm:$0xff]  ;;  %v6760_v51 = vld [vmem:[#allocation3 + $0x210] sm:$0xff] }
 0x42b   : > { %v17709_v19 = vpop.f32.mrb[128].mxu0  ;;  %v6830_v25 = vadd.f32 %v6758_v28, %v6655_v26  ;;  %7831 = vst.msk [vmem:[#allocation3 + $0x1d0] sm:$0xff] %vm2166_vm5, %v7759_v22  ;;  %v7690_v4 = vld [vmem:[#allocation3 + $0x1e8] sm:$0xff] }
 0x42c   : > { %18578 = vst [vmem:[#allocation33_spill] sm:$0xff] %v17709_v19  ;;  %v17712_v31 = vpop.f32.mrb[129].mxu0  ;;  %6903 = vst.msk [vmem:[#allocation3 + $0x208] sm:$0xff] %vm2166_vm5, %v6831_v17  ;;  %v7762_v20 = vadd.f32 %v18580_v8, %v7690_v4  ;;  %v7689_v36 = vld [vmem:[#allocation3 + $0x1e0] sm:$0xff] }
 0x42d   : > { %18579 = vst [vmem:[#allocation34_spill] sm:$0xff] %v17712_v31  ;;  %6902 = vst.msk [vmem:[#allocation3 + $0x200] sm:$0xff] %vm2166_vm5, %v6830_v25  ;;  %v14445_v1 = vpop.f32.mrb[26].mxu1  ;;  %v7761_v37 = vadd.f32 %v7689_v36, %v18581_v23  ;;  %v18584_v25 = vld [vmem:[#allocation4_spill] sm:$0xff] }
 0x42e   : > { %v6833_v19 = vadd.f32 %v14445_v1, %v6761_v11  ;;  %v6665_v45 = vpop.f32.mrb[27].mxu1  ;;  %7834 = vst.msk [vmem:[#allocation3 + $0x1e8] sm:$0xff] %vm2166_vm5, %v7762_v20  ;;  %v6763_v1 = vld [vmem:[#allocation3 + $0x228] sm:$0xff]  ;;  %v6762_v20 = vld [vmem:[#allocation3 + $0x220] sm:$0xff] }
 0x42f   : > { %v17719_v26 = vpop.f32.mrb[130].mxu0  ;;  %v6832_v22 = vadd.f32 %v6760_v51, %v6665_v45  ;;  %7833 = vst.msk [vmem:[#allocation3 + $0x1e0] sm:$0xff] %vm2166_vm5, %v7761_v37  ;;  %v7692_v17 = vld [vmem:[#allocation3 + $0x1f8] sm:$0xff]  ;;  %v18585_v11 = vld [vmem:[#allocation5_spill] sm:$0xff] }
 0x430   : > { %18582 = vst [vmem:[#allocation35_spill] sm:$0xff] %v17719_v26  ;;  %v17722_v28 = vpop.f32.mrb[131].mxu0  ;;  %6905 = vst.msk [vmem:[#allocation3 + $0x218] sm:$0xff] %vm2166_vm5, %v6833_v19  ;;  %v7764_v4 = vadd.f32 %v18584_v25, %v7692_v17  ;;  %v7691_v8 = vld [vmem:[#allocation3 + $0x1f0] sm:$0xff] }
 0x431   : > { %18583 = vst [vmem:[#allocation36_spill] sm:$0xff] %v17722_v28  ;;  %6904 = vst.msk [vmem:[#allocation3 + $0x210] sm:$0xff] %vm2166_vm5, %v6832_v22  ;;  %v14448_v36 = vpop.f32.mrb[28].mxu1  ;;  %v7763_v23 = vadd.f32 %v7691_v8, %v18585_v11  ;;  %v18588_v22 = vld [vmem:[#allocation6_spill] sm:$0xff] }
 0x432   : > { %v6835_v26 = vadd.f32 %v14448_v36, %v6763_v1  ;;  %v6675_v31 = vpop.f32.mrb[29].mxu1  ;;  %7836 = vst.msk [vmem:[#allocation3 + $0x1f8] sm:$0xff] %vm2166_vm5, %v7764_v4  ;;  %v6765_v36 = vld [vmem:[#allocation3 + $0x238] sm:$0xff]  ;;  %v6764_v4 = vld [vmem:[#allocation3 + $0x230] sm:$0xff] }
 0x433   : > { %v17729_v45 = vpop.f32.mrb[132].mxu0  ;;  %v6834_v37 = vadd.f32 %v6762_v20, %v6675_v31  ;;  %7835 = vst.msk [vmem:[#allocation3 + $0x1f0] sm:$0xff] %vm2166_vm5, %v7763_v23  ;;  %v7694_v19 = vld [vmem:[#allocation3 + $0x208] sm:$0xff]  ;;  %v18589_v1 = vld [vmem:[#allocation7_spill] sm:$0xff] }
 0x434   : > { %18586 = vst [vmem:[#allocation4_spill] sm:$0xff] %v17729_v45  ;;  %v17732_v51 = vpop.f32.mrb[133].mxu0  ;;  %6907 = vst.msk [vmem:[#allocation3 + $0x228] sm:$0xff] %vm2166_vm5, %v6835_v26  ;;  %v7766_v17 = vadd.f32 %v18588_v22, %v7694_v19  ;;  %v7693_v25 = vld [vmem:[#allocation3 + $0x200] sm:$0xff] }
 0x435   : > { %18587 = vst [vmem:[#allocation5_spill] sm:$0xff] %v17732_v51  ;;  %6906 = vst.msk [vmem:[#allocation3 + $0x220] sm:$0xff] %vm2166_vm5, %v6834_v37  ;;  %v14451_v8 = vpop.f32.mrb[30].mxu1  ;;  %v7765_v11 = vadd.f32 %v7693_v25, %v18589_v1  ;;  %v18592_v37 = vld [vmem:[#allocation8_spill] sm:$0xff] }
 0x436   : > { %v6837_v45 = vadd.f32 %v14451_v8, %v6765_v36  ;;  %v6685_v28 = vpop.f32.mrb[31].mxu1  ;;  %7838 = vst.msk [vmem:[#allocation3 + $0x208] sm:$0xff] %vm2166_vm5, %v7766_v17  ;;  %v8564_v8 = vld [vmem:[#allocation3 + $0x8] sm:$0xff]  ;;  %v8563_v17 = vld [vmem:[#allocation3] sm:$0xff] }
 0x437   : > { %v17739_v31 = vpop.f32.mrb[134].mxu0  ;;  %v6836_v23 = vadd.f32 %v6764_v4, %v6685_v28  ;;  %7837 = vst.msk [vmem:[#allocation3 + $0x200] sm:$0xff] %vm2166_vm5, %v7765_v11  ;;  %v7696_v26 = vld [vmem:[#allocation3 + $0x218] sm:$0xff]  ;;  %v18593_v36 = vld [vmem:[#allocation9_spill] sm:$0xff] }
 0x438   : > { %18590 = vst [vmem:[#allocation6_spill] sm:$0xff] %v17739_v31  ;;  %v17742_v20 = vpop.f32.mrb[135].mxu0  ;;  %6909 = vst.msk [vmem:[#allocation3 + $0x238] sm:$0xff] %vm2166_vm5, %v6837_v45  ;;  %v7768_v19 = vadd.f32 %v18592_v37, %v7696_v26  ;;  %v7695_v22 = vld [vmem:[#allocation3 + $0x210] sm:$0xff]  ;;  %v8566_v37 = vld [vmem:[#allocation3 + $0x18] sm:$0xff] }
 0x439   : > { %18591 = vst [vmem:[#allocation7_spill] sm:$0xff] %v17742_v20  ;;  %6908 = vst.msk [vmem:[#allocation3 + $0x230] sm:$0xff] %vm2166_vm5, %v6836_v23  ;;  %v14578_v25 = vpop.f32.mrb[32].mxu1  ;;  %v7767_v1 = vadd.f32 %v7695_v22, %v18593_v36  ;;  %v18594_v45 = vld [vmem:[#allocation10_spill] sm:$0xff]  ;;  %v18595_v20 = vld [vmem:[#allocation11_spill] sm:$0xff] }
 0x43a   : > { %v8636_v31 = vadd.f32 %v14578_v25, %v8564_v8  ;;  %v8204_v51 = vpop.f32.mrb[33].mxu1  ;;  %7840 = vst.msk [vmem:[#allocation3 + $0x218] sm:$0xff] %vm2166_vm5, %v7768_v19  ;;  %v8565_v36 = vld [vmem:[#allocation3 + $0x10] sm:$0xff] }
 0x43b   : > { %v8635_v28 = vadd.f32 %v8563_v17, %v8204_v51  ;;  %7839 = vst.msk [vmem:[#allocation3 + $0x210] sm:$0xff] %vm2166_vm5, %v7767_v1  ;;  %v7698_v11 = vld [vmem:[#allocation3 + $0x228] sm:$0xff] }
 0x43c   : > { %8708 = vst.msk [vmem:[#allocation3 + $0x8] sm:$0xff] %vm2166_vm5, %v8636_v31  ;;  %v7770_v4 = vadd.f32 %v18594_v45, %v7698_v11  ;;  %v7697_v26 = vld [vmem:[#allocation3 + $0x220] sm:$0xff] }
 0x43d   : > { %8707 = vst.msk [vmem:[#allocation3] sm:$0xff] %vm2166_vm5, %v8635_v28  ;;  %v14581_v23 = vpop.f32.mrb[34].mxu1  ;;  %v7769_v22 = vadd.f32 %v7697_v26, %v18595_v20  ;;  %v8568_v28 = vld [vmem:[#allocation3 + $0x28] sm:$0xff]  ;;  %v8567_v26 = vld [vmem:[#allocation3 + $0x20] sm:$0xff] }
 0x43e   : > { %v8638_v25 = vadd.f32 %v14581_v23, %v8566_v37  ;;  %v8214_v8 = vpop.f32.mrb[35].mxu1  ;;  %7842 = vst.msk [vmem:[#allocation3 + $0x228] sm:$0xff] %vm2166_vm5, %v7770_v4  ;;  %v18596_v37 = vld [vmem:[#allocation12_spill] sm:$0xff] }
 0x43f   : > { %v8637_v51 = vadd.f32 %v8565_v36, %v8214_v8  ;;  %7841 = vst.msk [vmem:[#allocation3 + $0x220] sm:$0xff] %vm2166_vm5, %v7769_v22  ;;  %v7700_v19 = vld [vmem:[#allocation3 + $0x238] sm:$0xff] }
 0x440   : > { %8710 = vst.msk [vmem:[#allocation3 + $0x18] sm:$0xff] %vm2166_vm5, %v8638_v25  ;;  %v7772_v31 = vadd.f32 %v17325_v58, %v7700_v19  ;;  %v7699_v1 = vld [vmem:[#allocation3 + $0x230] sm:$0xff]  ;;  %v18597_v58 = vld [vmem:[#allocation13_spill] sm:$0xff] }
 0x441   : > { %8709 = vst.msk [vmem:[#allocation3 + $0x10] sm:$0xff] %vm2166_vm5, %v8637_v51  ;;  %v14584_v17 = vpop.f32.mrb[36].mxu1  ;;  %v7771_v20 = vadd.f32 %v7699_v1, %v17329_v47  ;;  %v8570_v47 = vld [vmem:[#allocation3 + $0x38] sm:$0xff] }
 0x442   : > { %v8640_v11 = vadd.f32 %v14584_v17, %v8568_v28  ;;  %v8224_v45 = vpop.f32.mrb[37].mxu1  ;;  %7844 = vst.msk [vmem:[#allocation3 + $0x238] sm:$0xff] %vm2166_vm5, %v7772_v31  ;;  %v8569_v31 = vld [vmem:[#allocation3 + $0x30] sm:$0xff] }
 0x443   : > { %v9498_v4 = vld [vmem:[#allocation3 + $0x8] sm:$0xff]  ;;  %v8639_v23 = vadd.f32 %v8567_v26, %v8224_v45  ;;  %7843 = vst.msk [vmem:[#allocation3 + $0x230] sm:$0xff] %vm2166_vm5, %v7771_v20  ;;  %v18598_v28 = vld [vmem:[#allocation14_spill] sm:$0xff] }
 0x444   : > { %v9570_v22 = vadd.f32 %v18596_v37, %v9498_v4  ;;  %v9497_v25 = vld [vmem:[#allocation3] sm:$0xff]  ;;  %8712 = vst.msk [vmem:[#allocation3 + $0x28] sm:$0xff] %vm2166_vm5, %v8640_v11  ;;  %v18599_v11 = vld [vmem:[#allocation15_spill] sm:$0xff] }
 0x445   : > { %v9569_v8 = vadd.f32 %v9497_v25, %v18597_v58  ;;  %8711 = vst.msk [vmem:[#allocation3 + $0x20] sm:$0xff] %vm2166_vm5, %v8639_v23  ;;  %v14587_v36 = vpop.f32.mrb[38].mxu1  ;;  %v8572_v23 = vld [vmem:[#allocation3 + $0x48] sm:$0xff]  ;;  %v8571_v25 = vld [vmem:[#allocation3 + $0x40] sm:$0xff] }
 0x446   : > { %9642 = vst.msk [vmem:[#allocation3 + $0x8] sm:$0xff] %vm2166_vm5, %v9570_v22  ;;  %v8642_v51 = vadd.f32 %v14587_v36, %v8570_v47  ;;  %v8234_v19 = vpop.f32.mrb[39].mxu1  ;;  %v18600_v36 = vld [vmem:[#allocation16_spill] sm:$0xff] }
 0x447   : > { %9641 = vst.msk [vmem:[#allocation3] sm:$0xff] %vm2166_vm5, %v9569_v8  ;;  %v9500_v1 = vld [vmem:[#allocation3 + $0x18] sm:$0xff]  ;;  %v8641_v17 = vadd.f32 %v8569_v31, %v8234_v19 }
 0x448   : > { %v9572_v20 = vadd.f32 %v18598_v28, %v9500_v1  ;;  %v9499_v45 = vld [vmem:[#allocation3 + $0x10] sm:$0xff]  ;;  %8714 = vst.msk [vmem:[#allocation3 + $0x38] sm:$0xff] %vm2166_vm5, %v8642_v51  ;;  %v18601_v51 = vld [vmem:[#allocation17_spill] sm:$0xff] }
 0x449   : > { %v9571_v26 = vadd.f32 %v9499_v45, %v18599_v11  ;;  %8713 = vst.msk [vmem:[#allocation3 + $0x30] sm:$0xff] %vm2166_vm5, %v8641_v17  ;;  %v14590_v4 = vpop.f32.mrb[40].mxu1  ;;  %v8574_v17 = vld [vmem:[#allocation3 + $0x58] sm:$0xff]  ;;  %v8573_v45 = vld [vmem:[#allocation3 + $0x50] sm:$0xff] }
 0x44a   : > { %9644 = vst.msk [vmem:[#allocation3 + $0x18] sm:$0xff] %vm2166_vm5, %v9572_v20  ;;  %v8644_v37 = vadd.f32 %v14590_v4, %v8572_v23  ;;  %v8244_v22 = vpop.f32.mrb[41].mxu1  ;;  %v18602_v4 = vld [vmem:[#allocation18_spill] sm:$0xff] }
 0x44b   : > { %9643 = vst.msk [vmem:[#allocation3 + $0x10] sm:$0xff] %vm2166_vm5, %v9571_v26  ;;  %v9502_v58 = vld [vmem:[#allocation3 + $0x28] sm:$0xff]  ;;  %v8643_v8 = vadd.f32 %v8571_v25, %v8244_v22 }
 0x44c   : > { %v9574_v47 = vadd.f32 %v18600_v36, %v9502_v58  ;;  %v9501_v19 = vld [vmem:[#allocation3 + $0x20] sm:$0xff]  ;;  %8716 = vst.msk [vmem:[#allocation3 + $0x48] sm:$0xff] %vm2166_vm5, %v8644_v37  ;;  %v18603_v37 = vld [vmem:[#allocation19_spill] sm:$0xff] }
 0x44d   : > { %v9573_v31 = vadd.f32 %v9501_v19, %v18601_v51  ;;  %8715 = vst.msk [vmem:[#allocation3 + $0x40] sm:$0xff] %vm2166_vm5, %v8643_v8  ;;  %v14593_v1 = vpop.f32.mrb[42].mxu1  ;;  %v8576_v8 = vld [vmem:[#allocation3 + $0x68] sm:$0xff]  ;;  %v8575_v19 = vld [vmem:[#allocation3 + $0x60] sm:$0xff] }
 0x44e   : > { %9646 = vst.msk [vmem:[#allocation3 + $0x28] sm:$0xff] %vm2166_vm5, %v9574_v47  ;;  %v8646_v28 = vadd.f32 %v14593_v1, %v8574_v17  ;;  %v8254_v20 = vpop.f32.mrb[43].mxu1  ;;  %v17790_v17 = vld [vmem:[%s18406_s4] ss:$0 sm:$0xff] }
 0x44f   : > { %9645 = vst.msk [vmem:[#allocation3 + $0x20] sm:$0xff] %vm2166_vm5, %v9573_v31  ;;  %v9504_v11 = vld [vmem:[#allocation3 + $0x38] sm:$0xff]  ;;  %v8645_v26 = vadd.f32 %v8573_v45, %v8254_v20 }
 0x450   : > { %v9576_v23 = vadd.f32 %v18602_v4, %v9504_v11  ;;  %v9503_v22 = vld [vmem:[#allocation3 + $0x30] sm:$0xff]  ;;  %8718 = vst.msk [vmem:[#allocation3 + $0x58] sm:$0xff] %vm2166_vm5, %v8646_v28  ;;  %v18604_v28 = vld [vmem:[#allocation20_spill] sm:$0xff]  ;;  %v17795_v4 = vadd.s32 8, %v17526_v3 }
 0x451   : > { %v9575_v25 = vadd.f32 %v9503_v22, %v18603_v37  ;;  %8717 = vst.msk [vmem:[#allocation3 + $0x50] sm:$0xff] %vm2166_vm5, %v8645_v26  ;;  %v14596_v58 = vpop.f32.mrb[44].mxu1  ;;  %v9716_v51 = vld [vmem:[#allocation3 + $0x18] sm:$0xff]  ;;  %v9713_v11 = vld [vmem:[#allocation3] sm:$0xff]  ;;  %v9714_v26 = vld [vmem:[#allocation3 + $0x8] sm:$0xff] }
 0x452   : > { %9648 = vst.msk [vmem:[#allocation3 + $0x38] sm:$0xff] %vm2166_vm5, %v9576_v23  ;;  %v8648_v36 = vadd.f32 %v14596_v58, %v8576_v8  ;;  %v8264_v47 = vpop.f32.mrb[45].mxu1  ;;  %v18605_v23 = vld [vmem:[#allocation21_spill] sm:$0xff]  ;;  %v9795_v58 = vadd.f32 %v17790_v17, %v9716_v51  ;;  %v9792_v62 = vadd.f32 %v17790_v17, %v9713_v11 }
 0x453   : > { %9647 = vst.msk [vmem:[#allocation3 + $0x30] sm:$0xff] %vm2166_vm5, %v9575_v25  ;;  %v9506_v31 = vld [vmem:[#allocation3 + $0x48] sm:$0xff]  ;;  %v8647_v1 = vadd.f32 %v8575_v19, %v8264_v47  ;;  %v8578_v25 = vld [vmem:[#allocation3 + $0x78] sm:$0xff]  ;;  %v8577_v19 = vld [vmem:[#allocation3 + $0x70] sm:$0xff] }
 0x454   : > { %v9578_v20 = vadd.f32 %v18604_v28, %v9506_v31  ;;  %v9505_v45 = vld [vmem:[#allocation3 + $0x40] sm:$0xff]  ;;  %8720 = vst.msk [vmem:[#allocation3 + $0x68] sm:$0xff] %vm2166_vm5, %v8648_v36 }
 0x455   : > { %v9577_v22 = vadd.f32 %v9505_v45, %v18605_v23  ;;  %8719 = vst.msk [vmem:[#allocation3 + $0x60] sm:$0xff] %vm2166_vm5, %v8647_v1  ;;  %v14599_v37 = vpop.f32.mrb[46].mxu1  ;;  %v9718_v36 = vld [vmem:[#allocation3 + $0x28] sm:$0xff]  ;;  %v9793_v45 = vadd.f32 %v17790_v17, %v9714_v26  ;;  %v18606_v23 = vld [vmem:[#allocation22_spill] sm:$0xff] }
 0x456   : > { %9650 = vst.msk [vmem:[#allocation3 + $0x48] sm:$0xff] %vm2166_vm5, %v9578_v20  ;;  %v8650_v8 = vadd.f32 %v14599_v37, %v8578_v25  ;;  %v8274_v47 = vpop.f32.mrb[47].mxu1  ;;  %v9717_v31 = vld [vmem:[#allocation3 + $0x20] sm:$0xff]  ;;  %v9715_v20 = vld [vmem:[#allocation3 + $0x10] sm:$0xff]  ;;  %v18607_v25 = vld [vmem:[#allocation23_spill] sm:$0xff]  ;;  %v9797_v26 = vadd.f32 %v17790_v17, %v9718_v36 }
 0x457   : > { %9649 = vst.msk [vmem:[#allocation3 + $0x40] sm:$0xff] %vm2166_vm5, %v9577_v22  ;;  %v9508_v28 = vld [vmem:[#allocation3 + $0x58] sm:$0xff]  ;;  %v8649_v3 = vadd.f32 %v8577_v19, %v8274_v47  ;;  %v9796_v1 = vadd.f32 %v17790_v17, %v9717_v31  ;;  %v8580_v47 = vld [vmem:[#allocation3 + $0x88] sm:$0xff]  ;;  %v9864_v19 = vmax.f32 %v9792_v62, %v9795_v58 }
 0x458   : > { %v9580_v55 = vadd.f32 %v18606_v23, %v9508_v28  ;;  %v9507_v51 = vld [vmem:[#allocation3 + $0x50] sm:$0xff]  ;;  %8722 = vst.msk [vmem:[#allocation3 + $0x78] sm:$0xff] %vm2166_vm5, %v8650_v8  ;;  %v8579_v23 = vld [vmem:[#allocation3 + $0x80] sm:$0xff]  ;;  %v18609_v62 = vld [vmem:[#allocation25_spill] sm:$0xff] }
 0x459   : > { %v9579_v21 = vadd.f32 %v9507_v51, %v18607_v25  ;;  %8721 = vst.msk [vmem:[#allocation3 + $0x70] sm:$0xff] %vm2166_vm5, %v8649_v3  ;;  %v14602_v22 = vpop.f32.mrb[48].mxu1  ;;  %v9865_v11 = vmax.f32 %v9793_v45, %v9796_v1  ;;  %v9794_v51 = vadd.f32 %v17790_v17, %v9715_v20  ;;  %v18608_v3 = vld [vmem:[#allocation24_spill] sm:$0xff]  ;;  %v8582_v36 = vld [vmem:[#allocation3 + $0x98] sm:$0xff]  ;;  %v18610_v45 = vmul.u32 2, %v17795_v4 }
 0x45a   : > { %9652 = vst.msk [vmem:[#allocation3 + $0x58] sm:$0xff] %vm2166_vm5, %v9580_v55  ;;  %v8652_v31 = vadd.f32 %v14602_v22, %v8580_v47  ;;  %v8284_v28 = vpop.f32.mrb[49].mxu1 }
 0x45b   : > { %9651 = vst.msk [vmem:[#allocation3 + $0x50] sm:$0xff] %vm2166_vm5, %v9579_v21  ;;  %v9510_v8 = vld [vmem:[#allocation3 + $0x68] sm:$0xff]  ;;  %v8651_v6 = vadd.f32 %v8579_v23, %v8284_v28  ;;  %v17813_v37 = vpack.c.bf16 %v9865_v11, %v9864_v19  ;;  %v17821_v21 = vmax.f32 %v9794_v51, %v9797_v26  ;;  %vm17826_vm8 = vcmp.eq.s32.totalorder %v17538_v2, %v18610_v45  ;;  %v9720_v28 = vld [vmem:[#allocation3 + $0x38] sm:$0xff] }
 0x45c   : > { %v9582_v25 = vadd.f32 %v18608_v3, %v9510_v8  ;;  %v9509_v44 = vld [vmem:[#allocation3 + $0x60] sm:$0xff]  ;;  %8724 = vst.msk [vmem:[#allocation3 + $0x88] sm:$0xff] %vm2166_vm5, %v8652_v31  ;;  %v9719_v31 = vld [vmem:[#allocation3 + $0x30] sm:$0xff]  ;;  %v18613_v23 = vmov 0.0  }
 0x45d   : > { %v9581_v58 = vadd.f32 %v9509_v44, %v18609_v62  ;;  %8723 = vst.msk [vmem:[#allocation3 + $0x80] sm:$0xff] %vm2166_vm5, %v8651_v6  ;;  %v14605_v55 = vpop.f32.mrb[50].mxu1  ;;  %15095 = vmatprep.subr.bf16.mxu1 %v17813_v37  ;;  %v8581_v44 = vld [vmem:[#allocation3 + $0x90] sm:$0xff]  ;;  %v9722_v6 = vld [vmem:[#allocation3 + $0x48] sm:$0xff]  ;;  %v17839_v8 = vsel %vm17826_vm8, 1.0, %v18613_v23 }
 0x45e   : > { %9654 = vst.msk [vmem:[#allocation3 + $0x68] sm:$0xff] %vm2166_vm5, %v9582_v25  ;;  %v8654_v20 = vadd.f32 %v14605_v55, %v8582_v36  ;;  %v8294_v22 = vpop.f32.mrb[51].mxu1  ;;  %15097 = vmatpush3.bf16.msra.mxu1 %v17813_v37  ;;  %v8584_v25 = vld [vmem:[#allocation3 + $0xa8] sm:$0xff]  ;;  %v9801_v62 = vadd.f32 %v17790_v17, %v9722_v6  ;;  %v8583_v55 = vld [vmem:[#allocation3 + $0xa0] sm:$0xff] }
 0x45f   : > { %9653 = vst.msk [vmem:[#allocation3 + $0x60] sm:$0xff] %vm2166_vm5, %v9581_v58  ;;  %v9512_v47 = vld [vmem:[#allocation3 + $0x78] sm:$0xff]  ;;  %v8653_v19 = vadd.f32 %v8581_v44, %v8294_v22  ;;  %14804 = vmatprep.subr.mxu1 %v17821_v21  ;;  %v9799_v22 = vadd.f32 %v17790_v17, %v9720_v28 }
 0x460   : > { %v9584_v11 = vadd.f32 %v17422_v27, %v9512_v47  ;;  %v9511_v26 = vld [vmem:[#allocation3 + $0x70] sm:$0xff]  ;;  %8726 = vst.msk [vmem:[#allocation3 + $0x98] sm:$0xff] %vm2166_vm5, %v8654_v20 }
 0x461   : > { %v9583_v51 = vadd.f32 %v9511_v26, %v17426_v33  ;;  %8725 = vst.msk [vmem:[#allocation3 + $0x90] sm:$0xff] %vm2166_vm5, %v8653_v19  ;;  %v14608_v3 = vpop.f32.mrb[52].mxu1  ;;  %v9724_v45 = vld [vmem:[#allocation3 + $0x58] sm:$0xff]  ;;  %v9798_v33 = vadd.f32 %v17790_v17, %v9719_v31  ;;  %v9721_v19 = vld [vmem:[#allocation3 + $0x40] sm:$0xff] }
 0x462   : > { %9656 = vst.msk [vmem:[#allocation3 + $0x78] sm:$0xff] %vm2166_vm5, %v9584_v11  ;;  %v8656_v27 = vadd.f32 %v14608_v3, %v8584_v25  ;;  %v8304_v58 = vpop.f32.mrb[53].mxu1  ;;  %14805 = vmatpush3.msra.mxu1 %v17821_v21  ;;  %v9723_v36 = vld [vmem:[#allocation3 + $0x50] sm:$0xff]  ;;  %v8586_v31 = vld [vmem:[#allocation3 + $0xb8] sm:$0xff]  ;;  %v9803_v3 = vadd.f32 %v17790_v17, %v9724_v45 }
 0x463   : > { %9655 = vst.msk [vmem:[#allocation3 + $0x70] sm:$0xff] %vm2166_vm5, %v9583_v51  ;;  %v9514_v1 = vld [vmem:[#allocation3 + $0x88] sm:$0xff]  ;;  %v8655_v20 = vadd.f32 %v8583_v55, %v8304_v58  ;;  %v9802_v44 = vadd.f32 %v17790_v17, %v9723_v36  ;;  %14807 = vmatmul.mubr.msk.f32.vlgmr.msra.gmra.mrb[104].mxu1 %vm9921_vm7, %v17839_v8  ;;  %v9867_v28 = vmax.f32 %v9798_v33, %v9801_v62  ;;  %v8585_v58 = vld [vmem:[#allocation3 + $0xb0] sm:$0xff] }
 0x464   : > { %v9586_v6 = vadd.f32 %v17434_v9, %v9514_v1  ;;  %v9513_v47 = vld [vmem:[#allocation3 + $0x80] sm:$0xff]  ;;  %8728 = vst.msk [vmem:[#allocation3 + $0xa8] sm:$0xff] %vm2166_vm5, %v8656_v27  ;;  %14815 = vmatprep.mubr.msk.f32.mxu1 %vm9921_vm7, %v17553_v60  ;;  %v8588_v33 = vld [vmem:[#allocation3 + $0xc8] sm:$0xff] }
 0x465   : > { %v9585_v11 = vadd.f32 %v9513_v47, %v17438_v43  ;;  %8727 = vst.msk [vmem:[#allocation3 + $0xa0] sm:$0xff] %vm2166_vm5, %v8655_v20  ;;  %v14611_v26 = vpop.f32.mrb[54].mxu1  ;;  %v9868_v51 = vmax.f32 %v9799_v22, %v9802_v44  ;;  %v9800_v43 = vadd.f32 %v17790_v17, %v9721_v19  ;;  %v8587_v47 = vld [vmem:[#allocation3 + $0xc0] sm:$0xff] }
 0x466   : > { %9658 = vst.msk [vmem:[#allocation3 + $0x88] sm:$0xff] %vm2166_vm5, %v9586_v6  ;;  %v8658_v9 = vadd.f32 %v14611_v26, %v8586_v31  ;;  %v8314_v25 = vpop.f32.mrb[55].mxu1  ;;  %v9725_v31 = vld [vmem:[#allocation3 + $0x60] sm:$0xff] }
 0x467   : > { %9657 = vst.msk [vmem:[#allocation3 + $0x80] sm:$0xff] %vm2166_vm5, %v9585_v11  ;;  %v9516_v27 = vld [vmem:[#allocation3 + $0x98] sm:$0xff]  ;;  %v8657_v55 = vadd.f32 %v8585_v58, %v8314_v25  ;;  %v17861_v36 = vpack.c.bf16 %v9868_v51, %v9867_v28  ;;  %v17869_v22 = vmax.f32 %v9800_v43, %v9803_v3  ;;  %v9726_v28 = vld [vmem:[#allocation3 + $0x68] sm:$0xff] }
 0x468   : > { %v9588_v1 = vadd.f32 %v17446_v18, %v9516_v27  ;;  %v9515_v20 = vld [vmem:[#allocation3 + $0x90] sm:$0xff]  ;;  %8730 = vst.msk [vmem:[#allocation3 + $0xb8] sm:$0xff] %vm2166_vm5, %v8658_v9  ;;  %v8590_v9 = vld [vmem:[#allocation3 + $0xd8] sm:$0xff] }
 0x469   : > { %v9587_v62 = vadd.f32 %v9515_v20, %v17450_v50  ;;  %8729 = vst.msk [vmem:[#allocation3 + $0xb0] sm:$0xff] %vm2166_vm5, %v8657_v55  ;;  %v14614_v45 = vpop.f32.mrb[56].mxu1  ;;  %15099 = vmatprep.subr.bf16.mxu1 %v17861_v36  ;;  %v9728_v18 = vld [vmem:[#allocation3 + $0x78] sm:$0xff]  ;;  %v8589_v55 = vld [vmem:[#allocation3 + $0xd0] sm:$0xff] }
 0x46a   : > { %9660 = vst.msk [vmem:[#allocation3 + $0x98] sm:$0xff] %vm2166_vm5, %v9588_v1  ;;  %v8660_v44 = vadd.f32 %v14614_v45, %v8588_v33  ;;  %v8324_v6 = vpop.f32.mrb[57].mxu1  ;;  %15101 = vmatpush3.bf16.msra.mxu1 %v17861_v36  ;;  %v9807_v25 = vadd.f32 %v17790_v17, %v9728_v18 }
 0x46b   : > { %9659 = vst.msk [vmem:[#allocation3 + $0x90] sm:$0xff] %vm2166_vm5, %v9587_v62  ;;  %v9518_v19 = vld [vmem:[#allocation3 + $0xa8] sm:$0xff]  ;;  %v8659_v50 = vadd.f32 %v8587_v47, %v8324_v6  ;;  %14813 = vmatprep.subr.mxu1 %v17869_v22  ;;  %v9805_v62 = vadd.f32 %v17790_v17, %v9726_v28  ;;  %v9727_v6 = vld [vmem:[#allocation3 + $0x70] sm:$0xff]  ;;  %v8591_v28 = vld [vmem:[#allocation3 + $0xe0] sm:$0xff] }
 0x46c   : > { %v9590_v11 = vadd.f32 %v17458_v54, %v9518_v19  ;;  %v9517_v26 = vld [vmem:[#allocation3 + $0xa0] sm:$0xff]  ;;  %8732 = vst.msk [vmem:[#allocation3 + $0xc8] sm:$0xff] %vm2166_vm5, %v8660_v44  ;;  %v8592_v19 = vld [vmem:[#allocation3 + $0xe8] sm:$0xff] }
 0x46d   : > { %v9589_v51 = vadd.f32 %v9517_v26, %v17462_v38  ;;  %8731 = vst.msk [vmem:[#allocation3 + $0xc0] sm:$0xff] %vm2166_vm5, %v8659_v50  ;;  %v14617_v3 = vpop.f32.mrb[58].mxu1  ;;  %v9730_v43 = vld [vmem:[#allocation3 + $0x88] sm:$0xff]  ;;  %v9804_v38 = vadd.f32 %v17790_v17, %v9725_v31 }
 0x46e   : > { %9662 = vst.msk [vmem:[#allocation3 + $0xa8] sm:$0xff] %vm2166_vm5, %v9590_v11  ;;  %v8662_v58 = vadd.f32 %v14617_v3, %v8590_v9  ;;  %v8334_v27 = vpop.f32.mrb[59].mxu1  ;;  %14814 = vmatpush3.msra.mxu1 %v17869_v22  ;;  %v9729_v54 = vld [vmem:[#allocation3 + $0x80] sm:$0xff]  ;;  %v9809_v26 = vadd.f32 %v17790_v17, %v9730_v43 }
 0x46f   : > { %9661 = vst.msk [vmem:[#allocation3 + $0xa0] sm:$0xff] %vm2166_vm5, %v9589_v51  ;;  %v9520_v1 = vld [vmem:[#allocation3 + $0xb8] sm:$0xff]  ;;  %v8661_v20 = vadd.f32 %v8589_v55, %v8334_v27  ;;  %v9808_v45 = vadd.f32 %v17790_v17, %v9729_v54  ;;  %14816 = vmatmul.mubr.msk.f32.vlgmr.msra.gmra.mrb[106].mxu1 %vm9921_vm7, %v17839_v8  ;;  %v9870_v50 = vmax.f32 %v9804_v38, %v9807_v25  ;;  %v8593_v38 = vld [vmem:[#allocation3 + $0xf0] sm:$0xff] }
 0x470   : > { %v9592_v33 = vadd.f32 %v17470_v16, %v9520_v1  ;;  %v9519_v44 = vld [vmem:[#allocation3 + $0xb0] sm:$0xff]  ;;  %8734 = vst.msk [vmem:[#allocation3 + $0xd8] sm:$0xff] %vm2166_vm5, %v8662_v58  ;;  %14824 = vmatprep.mubr.msk.f32.mxu1 %vm9921_vm7, %v17553_v60  ;;  %v8594_v54 = vld [vmem:[#allocation3 + $0xf8] sm:$0xff] }
 0x471   : > { %v9591_v47 = vadd.f32 %v9519_v44, %v17474_v10  ;;  %8733 = vst.msk [vmem:[#allocation3 + $0xd0] sm:$0xff] %vm2166_vm5, %v8661_v20  ;;  %v14620_v18 = vpop.f32.mrb[60].mxu1  ;;  %v9871_v11 = vmax.f32 %v9805_v62, %v9808_v45  ;;  %v9806_v10 = vadd.f32 %v17790_v17, %v9727_v6  ;;  %v9732_v6 = vld [vmem:[#allocation3 + $0x98] sm:$0xff] }
 0x472   : > { %9664 = vst.msk [vmem:[#allocation3 + $0xb8] sm:$0xff] %vm2166_vm5, %v9592_v33  ;;  %v8664_v16 = vadd.f32 %v14620_v18, %v8592_v19  ;;  %v8344_v31 = vpop.f32.mrb[61].mxu1  ;;  %v9731_v44 = vld [vmem:[#allocation3 + $0x90] sm:$0xff]  ;;  %v8596_v19 = vld [vmem:[#allocation3 + $0x108] sm:$0xff] }
 0x473   : > { %9663 = vst.msk [vmem:[#allocation3 + $0xb0] sm:$0xff] %vm2166_vm5, %v9591_v47  ;;  %v9522_v51 = vld [vmem:[#allocation3 + $0xc8] sm:$0xff]  ;;  %v8663_v3 = vadd.f32 %v8591_v28, %v8344_v31  ;;  %v17897_v9 = vpack.c.bf16 %v9871_v11, %v9870_v50  ;;  %v17905_v43 = vmax.f32 %v9806_v10, %v9809_v26 }
 0x474   : > { %v9594_v58 = vadd.f32 %v17482_v40, %v9522_v51  ;;  %v9521_v27 = vld [vmem:[#allocation3 + $0xc0] sm:$0xff]  ;;  %8736 = vst.msk [vmem:[#allocation3 + $0xe8] sm:$0xff] %vm2166_vm5, %v8664_v16 }
 0x475   : > { %v9593_v25 = vadd.f32 %v9521_v27, %v17486_v13  ;;  %8735 = vst.msk [vmem:[#allocation3 + $0xe0] sm:$0xff] %vm2166_vm5, %v8663_v3  ;;  %v14623_v55 = vpop.f32.mrb[62].mxu1  ;;  %15103 = vmatprep.subr.bf16.mxu1 %v17897_v9  ;;  %v9734_v40 = vld [vmem:[#allocation3 + $0xa8] sm:$0xff]  ;;  %v8595_v16 = vld [vmem:[#allocation3 + $0x100] sm:$0xff]  ;;  %v9811_v3 = vadd.f32 %v17790_v17, %v9732_v6  ;;  %v18614_v6 = vld [vmem:[#allocation26_spill] sm:$0xff] }
 0x476   : > { %9666 = vst.msk [vmem:[#allocation3 + $0xc8] sm:$0xff] %vm2166_vm5, %v9594_v58  ;;  %v8666_v1 = vadd.f32 %v14623_v55, %v8594_v54  ;;  %v8354_v20 = vpop.f32.mrb[63].mxu1  ;;  %15105 = vmatpush3.bf16.msra.mxu1 %v17897_v9  ;;  %v9813_v50 = vadd.f32 %v17790_v17, %v9734_v40 }
 0x477   : > { %9665 = vst.msk [vmem:[#allocation3 + $0xc0] sm:$0xff] %vm2166_vm5, %v9593_v25  ;;  %v9524_v62 = vld [vmem:[#allocation3 + $0xd8] sm:$0xff]  ;;  %v8665_v13 = vadd.f32 %v8593_v38, %v8354_v20  ;;  %14822 = vmatprep.subr.mxu1 %v17905_v43  ;;  %v9733_v25 = vld [vmem:[#allocation3 + $0xa0] sm:$0xff] }
 0x478   : > { %v9596_v45 = vadd.f32 %v17494_v41, %v9524_v62  ;;  %v9523_v33 = vld [vmem:[#allocation3 + $0xd0] sm:$0xff]  ;;  %8738 = vst.msk [vmem:[#allocation3 + $0xf8] sm:$0xff] %vm2166_vm5, %v8666_v1  ;;  %v8598_v1 = vld [vmem:[#allocation3 + $0x118] sm:$0xff] }
 0x479   : > { %v9595_v47 = vadd.f32 %v9523_v33, %v17498_v15  ;;  %8737 = vst.msk [vmem:[#allocation3 + $0xf0] sm:$0xff] %vm2166_vm5, %v8665_v13  ;;  %v14626_v18 = vpop.f32.mrb[64].mxu1  ;;  %v9736_v31 = vld [vmem:[#allocation3 + $0xb8] sm:$0xff]  ;;  %v9810_v15 = vadd.f32 %v17790_v17, %v9731_v44  ;;  %v8597_v13 = vld [vmem:[#allocation3 + $0x110] sm:$0xff] }
 0x47a   : > { %9668 = vst.msk [vmem:[#allocation3 + $0xd8] sm:$0xff] %vm2166_vm5, %v9596_v45  ;;  %v8668_v11 = vadd.f32 %v14626_v18, %v8596_v19  ;;  %v8364_v26 = vpop.f32.mrb[65].mxu1  ;;  %14823 = vmatpush3.msra.mxu1 %v17905_v43  ;;  %v9735_v41 = vld [vmem:[#allocation3 + $0xb0] sm:$0xff]  ;;  %v9815_v40 = vadd.f32 %v17790_v17, %v9736_v31  ;;  %v18615_v19 = vld [vmem:[#allocation27_spill] sm:$0xff] }
 0x47b   : > { %9667 = vst.msk [vmem:[#allocation3 + $0xd0] sm:$0xff] %vm2166_vm5, %v9595_v47  ;;  %v9526_v28 = vld [vmem:[#allocation3 + $0xe8] sm:$0xff]  ;;  %v8667_v51 = vadd.f32 %v8595_v16, %v8364_v26  ;;  %v9814_v10 = vadd.f32 %v17790_v17, %v9735_v41  ;;  %14825 = vmatmul.mubr.msk.f32.vlgmr.msra.gmra.mrb[108].mxu1 %vm9921_vm7, %v17839_v8  ;;  %v9873_v20 = vmax.f32 %v9810_v15, %v9813_v50 }
 0x47c   : > { %v9598_v58 = vadd.f32 %v17506_v42, %v9526_v28  ;;  %v9525_v27 = vld [vmem:[#allocation3 + $0xe0] sm:$0xff]  ;;  %8740 = vst.msk [vmem:[#allocation3 + $0x108] sm:$0xff] %vm2166_vm5, %v8668_v11  ;;  %14833 = vmatprep.mubr.msk.f32.mxu1 %vm9921_vm7, %v17553_v60  ;;  %v8600_v26 = vld [vmem:[#allocation3 + $0x128] sm:$0xff] }
 0x47d   : > { %v9597_v55 = vadd.f32 %v9525_v27, %v17510_v24  ;;  %8739 = vst.msk [vmem:[#allocation3 + $0x100] sm:$0xff] %vm2166_vm5, %v8667_v51  ;;  %v14629_v54 = vpop.f32.mrb[66].mxu1  ;;  %v9874_v38 = vmax.f32 %v9811_v3, %v9814_v10  ;;  %v9812_v24 = vadd.f32 %v17790_v17, %v9733_v25  ;;  %v8599_v28 = vld [vmem:[#allocation3 + $0x120] sm:$0xff]  ;;  %v9738_v25 = vld [vmem:[#allocation3 + $0xc8] sm:$0xff] }
 0x47e   : > { %9670 = vst.msk [vmem:[#allocation3 + $0xe8] sm:$0xff] %vm2166_vm5, %v9598_v58  ;;  %v8670_v42 = vadd.f32 %v14629_v54, %v8598_v1  ;;  %v8374_v62 = vpop.f32.mrb[67].mxu1  ;;  %v9737_v27 = vld [vmem:[#allocation3 + $0xc0] sm:$0xff]  ;;  %v8602_v1 = vld [vmem:[#allocation3 + $0x138] sm:$0xff] }
 0x47f   : > { %9669 = vst.msk [vmem:[#allocation3 + $0xe0] sm:$0xff] %vm2166_vm5, %v9597_v55  ;;  %v9528_v45 = vld [vmem:[#allocation3 + $0xf8] sm:$0xff]  ;;  %v8669_v33 = vadd.f32 %v8597_v13, %v8374_v62  ;;  %v17933_v44 = vpack.c.bf16 %v9874_v38, %v9873_v20  ;;  %v17941_v16 = vmax.f32 %v9812_v24, %v9815_v40 }
 0x480   : > { %v9600_v47 = vadd.f32 %v18614_v6, %v9528_v45  ;;  %v9527_v18 = vld [vmem:[#allocation3 + $0xf0] sm:$0xff]  ;;  %8742 = vst.msk [vmem:[#allocation3 + $0x118] sm:$0xff] %vm2166_vm5, %v8670_v42 }
 0x481   : > { %v9599_v50 = vadd.f32 %v9527_v18, %v18615_v19  ;;  %8741 = vst.msk [vmem:[#allocation3 + $0x110] sm:$0xff] %vm2166_vm5, %v8669_v33  ;;  %v14632_v11 = vpop.f32.mrb[68].mxu1  ;;  %15107 = vmatprep.subr.bf16.mxu1 %v17933_v44  ;;  %v9740_v51 = vld [vmem:[#allocation3 + $0xd8] sm:$0xff]  ;;  %v8601_v42 = vld [vmem:[#allocation3 + $0x130] sm:$0xff]  ;;  %v9817_v33 = vadd.f32 %v17790_v17, %v9738_v25  ;;  %v18616_v19 = vld [vmem:[#allocation29_spill] sm:$0xff] }
 0x482   : > { %9672 = vst.msk [vmem:[#allocation3 + $0xf8] sm:$0xff] %vm2166_vm5, %v9600_v47  ;;  %v8672_v41 = vadd.f32 %v14632_v11, %v8600_v26  ;;  %v8384_v31 = vpop.f32.mrb[69].mxu1  ;;  %15109 = vmatpush3.bf16.msra.mxu1 %v17933_v44  ;;  %v9819_v20 = vadd.f32 %v17790_v17, %v9740_v51  ;;  %v9739_v18 = vld [vmem:[#allocation3 + $0xd0] sm:$0xff]  ;;  %v8604_v26 = vld [vmem:[#allocation3 + $0x148] sm:$0xff] }
 0x483   : > { %9671 = vst.msk [vmem:[#allocation3 + $0xf0] sm:$0xff] %vm2166_vm5, %v9599_v50  ;;  %v9530_v15 = vld [vmem:[#allocation3 + $0x108] sm:$0xff]  ;;  %v8671_v3 = vadd.f32 %v8599_v28, %v8384_v31  ;;  %14831 = vmatprep.subr.mxu1 %v17941_v16 }
 0x484   : > { %v9602_v10 = vadd.f32 %v17532_v30, %v9530_v15  ;;  %v9529_v58 = vld [vmem:[#allocation3 + $0x100] sm:$0xff]  ;;  %8744 = vst.msk [vmem:[#allocation3 + $0x128] sm:$0xff] %vm2166_vm5, %v8672_v41 }
 0x485   : > { %v9601_v55 = vadd.f32 %v9529_v58, %v17536_v14  ;;  %8743 = vst.msk [vmem:[#allocation3 + $0x120] sm:$0xff] %vm2166_vm5, %v8671_v3  ;;  %v14635_v54 = vpop.f32.mrb[70].mxu1  ;;  %v9742_v62 = vld [vmem:[#allocation3 + $0xe8] sm:$0xff]  ;;  %v9816_v14 = vadd.f32 %v17790_v17, %v9737_v27  ;;  %v8603_v15 = vld [vmem:[#allocation3 + $0x140] sm:$0xff]  ;;  %v9818_v27 = vadd.f32 %v17790_v17, %v9739_v18 }
 0x486   : > { %9674 = vst.msk [vmem:[#allocation3 + $0x108] sm:$0xff] %vm2166_vm5, %v9602_v10  ;;  %v8674_v38 = vadd.f32 %v14635_v54, %v8602_v1  ;;  %v8394_v40 = vpop.f32.mrb[71].mxu1  ;;  %14832 = vmatpush3.msra.mxu1 %v17941_v16  ;;  %v9741_v30 = vld [vmem:[#allocation3 + $0xe0] sm:$0xff]  ;;  %v9821_v28 = vadd.f32 %v17790_v17, %v9742_v62 }
 0x487   : > { %9673 = vst.msk [vmem:[#allocation3 + $0x100] sm:$0xff] %vm2166_vm5, %v9601_v55  ;;  %v9532_v13 = vld [vmem:[#allocation3 + $0x118] sm:$0xff]  ;;  %v8673_v45 = vadd.f32 %v8601_v42, %v8394_v40  ;;  %v9820_v24 = vadd.f32 %v17790_v17, %v9741_v30  ;;  %14834 = vmatmul.mubr.msk.f32.vlgmr.msra.gmra.mrb[110].mxu1 %vm9921_vm7, %v17839_v8  ;;  %v9876_v41 = vmax.f32 %v9816_v14, %v9819_v20  ;;  %v8605_v30 = vld [vmem:[#allocation3 + $0x150] sm:$0xff] }
 0x488   : > { %v9604_v6 = vadd.f32 %v17550_v0, %v9532_v13  ;;  %v9531_v47 = vld [vmem:[#allocation3 + $0x110] sm:$0xff]  ;;  %8746 = vst.msk [vmem:[#allocation3 + $0x138] sm:$0xff] %vm2166_vm5, %v8674_v38  ;;  %14842 = vmatprep.mubr.msk.f32.mxu1 %vm9921_vm7, %v17553_v60  ;;  %v8606_v20 = vld [vmem:[#allocation3 + $0x158] sm:$0xff]  ;;  %v17977_v38 = vmax.f32 %v9818_v27, %v9821_v28 }
 0x489   : > { %v9603_v50 = vadd.f32 %v9531_v47, %v18616_v19  ;;  %8745 = vst.msk [vmem:[#allocation3 + $0x130] sm:$0xff] %vm2166_vm5, %v8673_v45  ;;  %v14638_v11 = vpop.f32.mrb[72].mxu1  ;;  %v9877_v31 = vmax.f32 %v9817_v33, %v9820_v24  ;;  %v9744_v33 = vld [vmem:[#allocation3 + $0xf8] sm:$0xff]  ;;  %v8608_v47 = vld [vmem:[#allocation3 + $0x168] sm:$0xff] }
 0x48a   : > { %9676 = vst.msk [vmem:[#allocation3 + $0x118] sm:$0xff] %vm2166_vm5, %v9604_v6  ;;  %v8676_v0 = vadd.f32 %v14638_v11, %v8604_v26  ;;  %v8404_v51 = vpop.f32.mrb[73].mxu1  ;;  %v9743_v14 = vld [vmem:[#allocation3 + $0xf0] sm:$0xff]  ;;  %v8607_v11 = vld [vmem:[#allocation3 + $0x160] sm:$0xff]  ;;  %v9823_v28 = vadd.f32 %v17790_v17, %v9744_v33 }
 0x48b   : > { %9675 = vst.msk [vmem:[#allocation3 + $0x110] sm:$0xff] %vm2166_vm5, %v9603_v50  ;;  %v9534_v3 = vld [vmem:[#allocation3 + $0x128] sm:$0xff]  ;;  %v8675_v10 = vadd.f32 %v8603_v15, %v8404_v51  ;;  %v17969_v58 = vpack.c.bf16 %v9877_v31, %v9876_v41 }
 0x48c   : > { %v9606_v25 = vadd.f32 %v17567_v12, %v9534_v3  ;;  %v9533_v55 = vld [vmem:[#allocation3 + $0x120] sm:$0xff]  ;;  %8748 = vst.msk [vmem:[#allocation3 + $0x148] sm:$0xff] %vm2166_vm5, %v8676_v0 }
 0x48d   : > { %v9605_v54 = vadd.f32 %v9533_v55, %v17570_v39  ;;  %8747 = vst.msk [vmem:[#allocation3 + $0x140] sm:$0xff] %vm2166_vm5, %v8675_v10  ;;  %v14641_v1 = vpop.f32.mrb[74].mxu1  ;;  %15111 = vmatprep.subr.bf16.mxu1 %v17969_v58  ;;  %v9746_v12 = vld [vmem:[#allocation3 + $0x108] sm:$0xff] }
 0x48e   : > { %9678 = vst.msk [vmem:[#allocation3 + $0x128] sm:$0xff] %vm2166_vm5, %v9606_v25  ;;  %v8678_v40 = vadd.f32 %v14641_v1, %v8606_v20  ;;  %v8414_v42 = vpop.f32.mrb[75].mxu1  ;;  %15113 = vmatpush3.bf16.msra.mxu1 %v17969_v58  ;;  %v9825_v18 = vadd.f32 %v17790_v17, %v9746_v12  ;;  %v9745_v3 = vld [vmem:[#allocation3 + $0x100] sm:$0xff]  ;;  %v8610_v25 = vld [vmem:[#allocation3 + $0x178] sm:$0xff] }
 0x48f   : > { %9677 = vst.msk [vmem:[#allocation3 + $0x120] sm:$0xff] %vm2166_vm5, %v9605_v54  ;;  %v9536_v62 = vld [vmem:[#allocation3 + $0x138] sm:$0xff]  ;;  %v8677_v39 = vadd.f32 %v8605_v30, %v8414_v42  ;;  %14840 = vmatprep.subr.mxu1 %v17977_v38 }
 0x490   : > { %v9608_v13 = vadd.f32 %v17579_v46, %v9536_v62  ;;  %v9535_v45 = vld [vmem:[#allocation3 + $0x130] sm:$0xff]  ;;  %8750 = vst.msk [vmem:[#allocation3 + $0x158] sm:$0xff] %vm2166_vm5, %v8678_v40 }
 0x491   : > { %v9607_v24 = vadd.f32 %v9535_v45, %v17582_v7  ;;  %8749 = vst.msk [vmem:[#allocation3 + $0x150] sm:$0xff] %vm2166_vm5, %v8677_v39  ;;  %v14644_v6 = vpop.f32.mrb[76].mxu1  ;;  %v9748_v26 = vld [vmem:[#allocation3 + $0x118] sm:$0xff]  ;;  %v9822_v7 = vadd.f32 %v17790_v17, %v9743_v14  ;;  %v8609_v40 = vld [vmem:[#allocation3 + $0x170] sm:$0xff]  ;;  %v8612_v14 = vld [vmem:[#allocation3 + $0x188] sm:$0xff] }
 0x492   : > { %9680 = vst.msk [vmem:[#allocation3 + $0x138] sm:$0xff] %vm2166_vm5, %v9608_v13  ;;  %v8680_v19 = vadd.f32 %v14644_v6, %v8608_v47  ;;  %v8424_v50 = vpop.f32.mrb[77].mxu1  ;;  %14841 = vmatpush3.msra.mxu1 %v17977_v38  ;;  %v9747_v46 = vld [vmem:[#allocation3 + $0x110] sm:$0xff]  ;;  %v9827_v1 = vadd.f32 %v17790_v17, %v9748_v26  ;;  %v8611_v47 = vld [vmem:[#allocation3 + $0x180] sm:$0xff] }
 0x493   : > { %9679 = vst.msk [vmem:[#allocation3 + $0x130] sm:$0xff] %vm2166_vm5, %v9607_v24  ;;  %v9538_v41 = vld [vmem:[#allocation3 + $0x148] sm:$0xff]  ;;  %v8679_v31 = vadd.f32 %v8607_v11, %v8424_v50  ;;  %v9826_v0 = vadd.f32 %v17790_v17, %v9747_v46  ;;  %14843 = vmatmul.mubr.msk.f32.vlgmr.msra.gmra.mrb[112].mxu1 %vm9921_vm7, %v17839_v8  ;;  %v9879_v55 = vmax.f32 %v9822_v7, %v9825_v18 }
 0x494   : > { %v9610_v51 = vadd.f32 %v17589_v34, %v9538_v41  ;;  %v9537_v15 = vld [vmem:[#allocation3 + $0x140] sm:$0xff]  ;;  %8752 = vst.msk [vmem:[#allocation3 + $0x168] sm:$0xff] %vm2166_vm5, %v8680_v19  ;;  %14851 = vmatprep.mubr.msk.f32.mxu1 %vm9921_vm7, %v17553_v60 }
 0x495   : > { %v9609_v10 = vadd.f32 %v9537_v15, %v17592_v35  ;;  %8751 = vst.msk [vmem:[#allocation3 + $0x160] sm:$0xff] %vm2166_vm5, %v8679_v31  ;;  %v14647_v27 = vpop.f32.mrb[78].mxu1  ;;  %v9880_v54 = vmax.f32 %v9823_v28, %v9826_v0  ;;  %v9824_v35 = vadd.f32 %v17790_v17, %v9745_v3  ;;  %v9750_v46 = vld [vmem:[#allocation3 + $0x128] sm:$0xff]  ;;  %v8614_v31 = vld [vmem:[#allocation3 + $0x198] sm:$0xff] }
 0x496   : > { %9682 = vst.msk [vmem:[#allocation3 + $0x148] sm:$0xff] %vm2166_vm5, %v9610_v51  ;;  %v8682_v34 = vadd.f32 %v14647_v27, %v8610_v25  ;;  %v8434_v20 = vpop.f32.mrb[79].mxu1  ;;  %v9749_v11 = vld [vmem:[#allocation3 + $0x120] sm:$0xff]  ;;  %v8613_v51 = vld [vmem:[#allocation3 + $0x190] sm:$0xff]  ;;  %v9829_v27 = vadd.f32 %v17790_v17, %v9750_v46 }
 0x497   : > { %9681 = vst.msk [vmem:[#allocation3 + $0x140] sm:$0xff] %vm2166_vm5, %v9609_v10  ;;  %v9540_v42 = vld [vmem:[#allocation3 + $0x158] sm:$0xff]  ;;  %v8681_v30 = vadd.f32 %v8609_v40, %v8434_v20  ;;  %v18005_v12 = vpack.c.bf16 %v9880_v54, %v9879_v55  ;;  %v18013_v33 = vmax.f32 %v9824_v35, %v9827_v1  ;;  %v8616_v40 = vld [vmem:[#allocation3 + $0x1a8] sm:$0xff] }
 0x498   : > { %v9612_v62 = vadd.f32 %v17599_v59, %v9540_v42  ;;  %v9539_v39 = vld [vmem:[#allocation3 + $0x150] sm:$0xff]  ;;  %8754 = vst.msk [vmem:[#allocation3 + $0x178] sm:$0xff] %vm2166_vm5, %v8682_v34 }
 0x499   : > { %v9611_v13 = vadd.f32 %v9539_v39, %v17602_v49  ;;  %8753 = vst.msk [vmem:[#allocation3 + $0x170] sm:$0xff] %vm2166_vm5, %v8681_v30  ;;  %v14650_v45 = vpop.f32.mrb[80].mxu1  ;;  %15115 = vmatprep.subr.bf16.mxu1 %v18005_v12  ;;  %v9752_v59 = vld [vmem:[#allocation3 + $0x138] sm:$0xff]  ;;  %v8615_v39 = vld [vmem:[#allocation3 + $0x1a0] sm:$0xff] }
 0x49a   : > { %9684 = vst.msk [vmem:[#allocation3 + $0x158] sm:$0xff] %vm2166_vm5, %v9612_v62  ;;  %v8684_v24 = vadd.f32 %v14650_v45, %v8612_v14  ;;  %v8444_v6 = vpop.f32.mrb[81].mxu1  ;;  %15117 = vmatpush3.bf16.msra.mxu1 %v18005_v12  ;;  %v9831_v7 = vadd.f32 %v17790_v17, %v9752_v59  ;;  %v9751_v1 = vld [vmem:[#allocation3 + $0x130] sm:$0xff] }
 0x49b   : > { %9683 = vst.msk [vmem:[#allocation3 + $0x150] sm:$0xff] %vm2166_vm5, %v9611_v13  ;;  %v9542_v18 = vld [vmem:[#allocation3 + $0x168] sm:$0xff]  ;;  %v8683_v49 = vadd.f32 %v8611_v47, %v8444_v6  ;;  %14849 = vmatprep.subr.mxu1 %v18013_v33 }
 0x49c   : > { %v9614_v19 = vadd.f32 %v17609_v48, %v9542_v18  ;;  %v9541_v50 = vld [vmem:[#allocation3 + $0x160] sm:$0xff]  ;;  %8756 = vst.msk [vmem:[#allocation3 + $0x188] sm:$0xff] %vm2166_vm5, %v8684_v24  ;;  %v8618_v18 = vld [vmem:[#allocation3 + $0x1b8] sm:$0xff] }
 0x49d   : > { %v9613_v26 = vadd.f32 %v9541_v50, %v17612_v57  ;;  %8755 = vst.msk [vmem:[#allocation3 + $0x180] sm:$0xff] %vm2166_vm5, %v8683_v49  ;;  %v14653_v41 = vpop.f32.mrb[82].mxu1  ;;  %v9754_v15 = vld [vmem:[#allocation3 + $0x148] sm:$0xff]  ;;  %v9828_v57 = vadd.f32 %v17790_v17, %v9749_v11  ;;  %v8617_v11 = vld [vmem:[#allocation3 + $0x1b0] sm:$0xff] }
 0x49e   : > { %9686 = vst.msk [vmem:[#allocation3 + $0x168] sm:$0xff] %vm2166_vm5, %v9614_v19  ;;  %v8686_v28 = vadd.f32 %v14653_v41, %v8614_v31  ;;  %v8454_v0 = vpop.f32.mrb[83].mxu1  ;;  %14850 = vmatpush3.msra.mxu1 %v18013_v33  ;;  %v9753_v48 = vld [vmem:[#allocation3 + $0x140] sm:$0xff]  ;;  %v9833_v35 = vadd.f32 %v17790_v17, %v9754_v15 }
 0x49f   : > { %9685 = vst.msk [vmem:[#allocation3 + $0x160] sm:$0xff] %vm2166_vm5, %v9613_v26  ;;  %v9544_v3 = vld [vmem:[#allocation3 + $0x178] sm:$0xff]  ;;  %v8685_v10 = vadd.f32 %v8613_v51, %v8454_v0  ;;  %v9832_v25 = vadd.f32 %v17790_v17, %v9753_v48  ;;  %14852 = vmatmul.mubr.msk.f32.vlgmr.msra.gmra.mrb[114].mxu1 %vm9921_vm7, %v17839_v8  ;;  %v9882_v42 = vmax.f32 %v9828_v57, %v9831_v7  ;;  %v8620_v51 = vld [vmem:[#allocation3 + $0x1c8] sm:$0xff] }
 0x4a0   : > { %v9616_v55 = vadd.f32 %v17619_v53, %v9544_v3  ;;  %v9543_v54 = vld [vmem:[#allocation3 + $0x170] sm:$0xff]  ;;  %8758 = vst.msk [vmem:[#allocation3 + $0x198] sm:$0xff] %vm2166_vm5, %v8686_v28  ;;  %14860 = vmatprep.mubr.msk.f32.mxu1 %vm9921_vm7, %v17553_v60 }
 0x4a1   : > { %v9615_v34 = vadd.f32 %v9543_v54, %v17622_v52  ;;  %8757 = vst.msk [vmem:[#allocation3 + $0x190] sm:$0xff] %vm2166_vm5, %v8685_v10  ;;  %v14656_v20 = vpop.f32.mrb[84].mxu1  ;;  %v9883_v30 = vmax.f32 %v9829_v27, %v9832_v25  ;;  %v9830_v52 = vadd.f32 %v17790_v17, %v9751_v1  ;;  %v9756_v7 = vld [vmem:[#allocation3 + $0x158] sm:$0xff]  ;;  %v8619_v10 = vld [vmem:[#allocation3 + $0x1c0] sm:$0xff] }
 0x4a2   : > { %9688 = vst.msk [vmem:[#allocation3 + $0x178] sm:$0xff] %vm2166_vm5, %v9616_v55  ;;  %v8688_v53 = vadd.f32 %v14656_v20, %v8616_v40  ;;  %v8464_v62 = vpop.f32.mrb[85].mxu1  ;;  %v9755_v31 = vld [vmem:[#allocation3 + $0x150] sm:$0xff]  ;;  %v9835_v55 = vadd.f32 %v17790_v17, %v9756_v7 }
 0x4a3   : > { %9687 = vst.msk [vmem:[#allocation3 + $0x170] sm:$0xff] %vm2166_vm5, %v9615_v34  ;;  %v9546_v13 = vld [vmem:[#allocation3 + $0x188] sm:$0xff]  ;;  %v8687_v45 = vadd.f32 %v8615_v39, %v8464_v62  ;;  %v18041_v14 = vpack.c.bf16 %v9883_v30, %v9882_v42  ;;  %v18049_v49 = vmax.f32 %v9830_v52, %v9833_v35  ;;  %v8622_v30 = vld [vmem:[#allocation3 + $0x1d8] sm:$0xff]  ;;  %v18619_v7 = vld [vmem:[#allocation38_spill] sm:$0xff] }
 0x4a4   : > { %v9618_v24 = vadd.f32 %v17629_v61, %v9546_v13  ;;  %v9545_v6 = vld [vmem:[#allocation3 + $0x180] sm:$0xff]  ;;  %8760 = vst.msk [vmem:[#allocation3 + $0x1a8] sm:$0xff] %vm2166_vm5, %v8688_v53  ;;  %v8621_v13 = vld [vmem:[#allocation3 + $0x1d0] sm:$0xff] }
 0x4a5   : > { %v9617_v47 = vadd.f32 %v9545_v6, %v17632_v32  ;;  %8759 = vst.msk [vmem:[#allocation3 + $0x1a0] sm:$0xff] %vm2166_vm5, %v8687_v45  ;;  %v14659_v59 = vpop.f32.mrb[86].mxu1  ;;  %15119 = vmatprep.subr.bf16.mxu1 %v18041_v14  ;;  %v9758_v61 = vld [vmem:[#allocation3 + $0x168] sm:$0xff]  ;;  %v18617_v6 = vld [vmem:[#allocation30_spill] sm:$0xff] }
 0x4a6   : > { %9690 = vst.msk [vmem:[#allocation3 + $0x188] sm:$0xff] %vm2166_vm5, %v9618_v24  ;;  %v8690_v19 = vadd.f32 %v14659_v59, %v8618_v18  ;;  %v8474_v50 = vpop.f32.mrb[87].mxu1  ;;  %15121 = vmatpush3.bf16.msra.mxu1 %v18041_v14  ;;  %v9837_v48 = vadd.f32 %v17790_v17, %v9758_v61  ;;  %v9757_v20 = vld [vmem:[#allocation3 + $0x160] sm:$0xff]  ;;  %v18618_v18 = vld [vmem:[#allocation37_spill] sm:$0xff] }
 0x4a7   : > { %9689 = vst.msk [vmem:[#allocation3 + $0x180] sm:$0xff] %vm2166_vm5, %v9617_v47  ;;  %v9548_v46 = vld [vmem:[#allocation3 + $0x198] sm:$0xff]  ;;  %v8689_v32 = vadd.f32 %v8617_v11, %v8474_v50  ;;  %14858 = vmatprep.subr.mxu1 %v18049_v49  ;;  %v8624_v11 = vld [vmem:[#allocation3 + $0x1e8] sm:$0xff] }
 0x4a8   : > { %v9620_v26 = vadd.f32 %v17639_v5, %v9548_v46  ;;  %v9547_v41 = vld [vmem:[#allocation3 + $0x190] sm:$0xff]  ;;  %8762 = vst.msk [vmem:[#allocation3 + $0x1b8] sm:$0xff] %vm2166_vm5, %v8690_v19 }
 0x4a9   : > { %v9619_v28 = vadd.f32 %v9547_v41, %v17642_v56  ;;  %8761 = vst.msk [vmem:[#allocation3 + $0x1b0] sm:$0xff] %vm2166_vm5, %v8689_v32  ;;  %v14662_v0 = vpop.f32.mrb[88].mxu1  ;;  %v9760_v57 = vld [vmem:[#allocation3 + $0x178] sm:$0xff]  ;;  %v9834_v56 = vadd.f32 %v17790_v17, %v9755_v31 }
 0x4aa   : > { %9692 = vst.msk [vmem:[#allocation3 + $0x198] sm:$0xff] %vm2166_vm5, %v9620_v26  ;;  %v8692_v15 = vadd.f32 %v14662_v0, %v8620_v51  ;;  %v8484_v3 = vpop.f32.mrb[89].mxu1  ;;  %14859 = vmatpush3.msra.mxu1 %v18049_v49  ;;  %v9759_v5 = vld [vmem:[#allocation3 + $0x170] sm:$0xff]  ;;  %v9839_v62 = vadd.f32 %v17790_v17, %v9760_v57  ;;  %v18098_v57 = vld [vmem:[%s18406_s4] ss:$0 sm:$0xff] }
 0x4ab   : > { %9691 = vst.msk [vmem:[#allocation3 + $0x190] sm:$0xff] %vm2166_vm5, %v9619_v28  ;;  %v9550_v27 = vld [vmem:[#allocation3 + $0x1a8] sm:$0xff]  ;;  %v8691_v25 = vadd.f32 %v8619_v10, %v8484_v3  ;;  %v9838_v54 = vadd.f32 %v17790_v17, %v9759_v5  ;;  %14861 = vmatmul.mubr.msk.f32.vlgmr.msra.gmra.mrb[116].mxu1 %vm9921_vm7, %v17839_v8  ;;  %v9885_v35 = vmax.f32 %v9834_v56, %v9837_v48  ;;  %v8626_v5 = vld [vmem:[#allocation3 + $0x1f8] sm:$0xff] }
 0x4ac   : > { %v9622_v1 = vadd.f32 %v17649_v29, %v9550_v27  ;;  %v9549_v34 = vld [vmem:[#allocation3 + $0x1a0] sm:$0xff]  ;;  %8764 = vst.msk [vmem:[#allocation3 + $0x1c8] sm:$0xff] %vm2166_vm5, %v8692_v15  ;;  %14869 = vmatprep.mubr.msk.f32.mxu1 %vm9921_vm7, %v17553_v60  ;;  %v18620_v15 = vld [vmem:[#allocation39_spill] sm:$0xff] }
 0x4ad   : > { %v9621_v40 = vadd.f32 %v9549_v34, %v17652_v63  ;;  %8763 = vst.msk [vmem:[#allocation3 + $0x1c0] sm:$0xff] %vm2166_vm5, %v8691_v25  ;;  %v14665_v42 = vpop.f32.mrb[90].mxu1  ;;  %v9886_v53 = vmax.f32 %v9835_v55, %v9838_v54  ;;  %v9836_v63 = vadd.f32 %v17790_v17, %v9757_v20  ;;  %v8623_v17 = vld [vmem:[#allocation3 + $0x1e0] sm:$0xff]  ;;  %v9762_v48 = vld [vmem:[#allocation3 + $0x188] sm:$0xff]  ;;  %v8625_v55 = vld [vmem:[#allocation3 + $0x1f0] sm:$0xff] }
 0x4ae   : > { %9694 = vst.msk [vmem:[#allocation3 + $0x1a8] sm:$0xff] %vm2166_vm5, %v9622_v1  ;;  %v8694_v29 = vadd.f32 %v14665_v42, %v8622_v30  ;;  %v8494_v39 = vpop.f32.mrb[91].mxu1  ;;  %v9761_v51 = vld [vmem:[#allocation3 + $0x180] sm:$0xff]  ;;  %v9841_v42 = vadd.f32 %v18098_v57, %v9762_v48 }
 0x4af   : > { %9693 = vst.msk [vmem:[#allocation3 + $0x1a0] sm:$0xff] %vm2166_vm5, %v9621_v40  ;;  %v9552_v45 = vld [vmem:[#allocation3 + $0x1b8] sm:$0xff]  ;;  %v8693_v52 = vadd.f32 %v8621_v13, %v8494_v39  ;;  %v18077_v24 = vpack.c.bf16 %v9886_v53, %v9885_v35  ;;  %v18085_v61 = vmax.f32 %v9836_v63, %v9839_v62  ;;  %v9840_v40 = vadd.f32 %v18098_v57, %v9761_v51  ;;  %v18621_v35 = vld [vmem:[#allocation40_spill] sm:$0xff]  ;;  %v18622_v39 = vld [vmem:[#allocation41_spill] sm:$0xff] }
 0x4b0   : > { %v9624_v47 = vadd.f32 %v18617_v6, %v9552_v45  ;;  %v9551_v59 = vld [vmem:[#allocation3 + $0x1b0] sm:$0xff]  ;;  %8766 = vst.msk [vmem:[#allocation3 + $0x1d8] sm:$0xff] %vm2166_vm5, %v8694_v29 }
 0x4b1   : > { %v9623_v19 = vadd.f32 %v9551_v59, %v18618_v18  ;;  %8765 = vst.msk [vmem:[#allocation3 + $0x1d0] sm:$0xff] %vm2166_vm5, %v8693_v52  ;;  %v14668_v50 = vpop.f32.mrb[92].mxu1  ;;  %15123 = vmatprep.subr.bf16.mxu1 %v18077_v24  ;;  %v9764_v26 = vld [vmem:[#allocation3 + $0x198] sm:$0xff]  ;;  %v8628_v52 = vld [vmem:[#allocation3 + $0x208] sm:$0xff] }
 0x4b2   : > { %9696 = vst.msk [vmem:[#allocation3 + $0x1b8] sm:$0xff] %vm2166_vm5, %v9624_v47  ;;  %v8696_v46 = vadd.f32 %v14668_v50, %v8624_v11  ;;  %v8504_v32 = vpop.f32.mrb[93].mxu1  ;;  %15125 = vmatpush3.bf16.msra.mxu1 %v18077_v24  ;;  %v9843_v27 = vadd.f32 %v18098_v57, %v9764_v26  ;;  %v9763_v29 = vld [vmem:[#allocation3 + $0x190] sm:$0xff] }
 0x4b3   : > { %9695 = vst.msk [vmem:[#allocation3 + $0x1b0] sm:$0xff] %vm2166_vm5, %v9623_v19  ;;  %v9554_v41 = vld [vmem:[#allocation3 + $0x1c8] sm:$0xff]  ;;  %v8695_v31 = vadd.f32 %v8623_v17, %v8504_v32  ;;  %14867 = vmatprep.subr.mxu1 %v18085_v61  ;;  %v8627_v19 = vld [vmem:[#allocation3 + $0x200] sm:$0xff]  ;;  %v9842_v32 = vadd.f32 %v18098_v57, %v9763_v29  ;;  %v18623_v17 = vld [vmem:[#allocation42_spill] sm:$0xff] }
 0x4b4   : > { %v9626_v28 = vadd.f32 %v18619_v7, %v9554_v41  ;;  %v9553_v0 = vld [vmem:[#allocation3 + $0x1c0] sm:$0xff]  ;;  %8768 = vst.msk [vmem:[#allocation3 + $0x1e8] sm:$0xff] %vm2166_vm5, %v8696_v46  ;;  %v9888_v63 = vmax.f32 %v9840_v40, %v9843_v27 }
 0x4b5   : > { %v9625_v3 = vadd.f32 %v9553_v0, %v18620_v15  ;;  %8767 = vst.msk [vmem:[#allocation3 + $0x1e0] sm:$0xff] %vm2166_vm5, %v8695_v31  ;;  %v14671_v10 = vpop.f32.mrb[94].mxu1  ;;  %v9766_v1 = vld [vmem:[#allocation3 + $0x1a8] sm:$0xff]  ;;  %v18624_v31 = vld [vmem:[#allocation43_spill] sm:$0xff] }
 0x4b6   : > { %9698 = vst.msk [vmem:[#allocation3 + $0x1c8] sm:$0xff] %vm2166_vm5, %v9626_v28  ;;  %v8698_v25 = vadd.f32 %v14671_v10, %v8626_v5  ;;  %v8514_v56 = vpop.f32.mrb[95].mxu1  ;;  %14868 = vmatpush3.msra.mxu1 %v18085_v61  ;;  %v9765_v54 = vld [vmem:[#allocation3 + $0x1a0] sm:$0xff]  ;;  %v9845_v47 = vadd.f32 %v18098_v57, %v9766_v1  ;;  %v8630_v0 = vld [vmem:[#allocation3 + $0x218] sm:$0xff] }
 0x4b7   : > { %9697 = vst.msk [vmem:[#allocation3 + $0x1c0] sm:$0xff] %vm2166_vm5, %v9625_v3  ;;  %v9556_v34 = vld [vmem:[#allocation3 + $0x1d8] sm:$0xff]  ;;  %v8697_v20 = vadd.f32 %v8625_v55, %v8514_v56  ;;  %v9844_v30 = vadd.f32 %v18098_v57, %v9765_v54  ;;  %14870 = vmatmul.mubr.msk.f32.vlgmr.msra.gmra.mrb[118].mxu1 %vm9921_vm7, %v17839_v8  ;;  %v8629_v3 = vld [vmem:[#allocation3 + $0x210] sm:$0xff] }
 0x4b8   : > { %v9628_v53 = vadd.f32 %v18621_v35, %v9556_v34  ;;  %v9555_v62 = vld [vmem:[#allocation3 + $0x1d0] sm:$0xff]  ;;  %8770 = vst.msk [vmem:[#allocation3 + $0x1f8] sm:$0xff] %vm2166_vm5, %v8698_v25  ;;  %14878 = vmatprep.mubr.msk.f32.mxu1 %vm9921_vm7, %v17553_v60  ;;  %v18126_v51 = vmax.f32 %v9842_v32, %v9845_v47  ;;  %v18625_v25 = vld [vmem:[#allocation31_spill] sm:$0xff]  ;;  %v18626_v34 = vld [vmem:[#allocation32_spill] sm:$0xff] }
 0x4b9   : > { %v9627_v13 = vadd.f32 %v9555_v62, %v18622_v39  ;;  %8769 = vst.msk [vmem:[#allocation3 + $0x1f0] sm:$0xff] %vm2166_vm5, %v8697_v20  ;;  %v14674_v45 = vpop.f32.mrb[96].mxu1  ;;  %v9889_v6 = vmax.f32 %v9841_v42, %v9844_v30  ;;  %v9768_v1 = vld [vmem:[#allocation3 + $0x1b8] sm:$0xff]  ;;  %v8632_v42 = vld [vmem:[#allocation3 + $0x228] sm:$0xff]  ;;  %v8631_v62 = vld [vmem:[#allocation3 + $0x220] sm:$0xff] }
 0x4ba   : > { %9700 = vst.msk [vmem:[#allocation3 + $0x1d8] sm:$0xff] %vm2166_vm5, %v9628_v53  ;;  %v8700_v59 = vadd.f32 %v14674_v45, %v8628_v52  ;;  %v8524_v18 = vpop.f32.mrb[97].mxu1  ;;  %v9767_v54 = vld [vmem:[#allocation3 + $0x1b0] sm:$0xff]  ;;  %v18627_v47 = vld [vmem:[#allocation33_spill] sm:$0xff] }
 0x4bb   : > { %9699 = vst.msk [vmem:[#allocation3 + $0x1d0] sm:$0xff] %vm2166_vm5, %v9627_v13  ;;  %v9558_v50 = vld [vmem:[#allocation3 + $0x1e8] sm:$0xff]  ;;  %v8699_v11 = vadd.f32 %v8627_v19, %v8524_v18  ;;  %v18118_v46 = vpack.c.bf16 %v9889_v6, %v9888_v63  ;;  %v9846_v52 = vadd.f32 %v18098_v57, %v9767_v54  ;;  %v9847_v63 = vadd.f32 %v18098_v57, %v9768_v1 }
 0x4bc   : > { %v9630_v26 = vadd.f32 %v18623_v17, %v9558_v50  ;;  %v9557_v41 = vld [vmem:[#allocation3 + $0x1e0] sm:$0xff]  ;;  %8772 = vst.msk [vmem:[#allocation3 + $0x208] sm:$0xff] %vm2166_vm5, %v8700_v59  ;;  %v18628_v50 = vld [vmem:[#allocation34_spill] sm:$0xff]  ;;  %v8634_v17 = vld [vmem:[#allocation3 + $0x238] sm:$0xff] }
 0x4bd   : > { %v9629_v7 = vadd.f32 %v9557_v41, %v18624_v31  ;;  %8771 = vst.msk [vmem:[#allocation3 + $0x200] sm:$0xff] %vm2166_vm5, %v8699_v11  ;;  %v14677_v28 = vpop.f32.mrb[98].mxu1  ;;  %15127 = vmatprep.subr.bf16.mxu1 %v18118_v46  ;;  %v9770_v10 = vld [vmem:[#allocation3 + $0x1c8] sm:$0xff] }
 0x4be   : > { %9702 = vst.msk [vmem:[#allocation3 + $0x1e8] sm:$0xff] %vm2166_vm5, %v9630_v26  ;;  %v8702_v48 = vadd.f32 %v14677_v28, %v8630_v0  ;;  %v8534_v15 = vpop.f32.mrb[99].mxu1  ;;  %15129 = vmatpush3.bf16.msra.mxu1 %v18118_v46  ;;  %v9849_v30 = vadd.f32 %v18098_v57, %v9770_v10  ;;  %v9769_v19 = vld [vmem:[#allocation3 + $0x1c0] sm:$0xff]  ;;  %v8633_v0 = vld [vmem:[#allocation3 + $0x230] sm:$0xff] }
 0x4bf   : > { %9701 = vst.msk [vmem:[#allocation3 + $0x1e0] sm:$0xff] %vm2166_vm5, %v9629_v7  ;;  %v9560_v5 = vld [vmem:[#allocation3 + $0x1f8] sm:$0xff]  ;;  %v8701_v27 = vadd.f32 %v8629_v3, %v8534_v15  ;;  %14876 = vmatprep.subr.mxu1 %v18126_v51  ;;  %v9848_v10 = vadd.f32 %v18098_v57, %v9769_v19 }
 0x4c0   : > { %v9632_v56 = vadd.f32 %v18625_v25, %v9560_v5  ;;  %v9559_v55 = vld [vmem:[#allocation3 + $0x1f0] sm:$0xff]  ;;  %8774 = vst.msk [vmem:[#allocation3 + $0x218] sm:$0xff] %vm2166_vm5, %v8702_v48  ;;  %v9891_v26 = vmax.f32 %v9846_v52, %v9849_v30  ;;  %v18629_v5 = vld [vmem:[#allocation35_spill] sm:$0xff] }
 0x4c1   : > { %v9631_v20 = vadd.f32 %v9559_v55, %v18626_v34  ;;  %8773 = vst.msk [vmem:[#allocation3 + $0x210] sm:$0xff] %vm2166_vm5, %v8701_v27  ;;  %v14680_v40 = vpop.f32.mrb[100].mxu1  ;;  %v9772_v39 = vld [vmem:[#allocation3 + $0x1d8] sm:$0xff] }
 0x4c2   : > { %9704 = vst.msk [vmem:[#allocation3 + $0x1f8] sm:$0xff] %vm2166_vm5, %v9632_v56  ;;  %v8704_v35 = vadd.f32 %v14680_v40, %v8632_v42  ;;  %v8544_v53 = vpop.f32.mrb[101].mxu1  ;;  %14877 = vmatpush3.msra.mxu1 %v18126_v51  ;;  %v9771_v29 = vld [vmem:[#allocation3 + $0x1d0] sm:$0xff]  ;;  %v9851_v31 = vadd.f32 %v18098_v57, %v9772_v39  ;;  %v18630_v56 = vld [vmem:[#allocation36_spill] sm:$0xff] }
 0x4c3   : > { %9703 = vst.msk [vmem:[#allocation3 + $0x1f0] sm:$0xff] %vm2166_vm5, %v9631_v20  ;;  %v9562_v13 = vld [vmem:[#allocation3 + $0x208] sm:$0xff]  ;;  %v8703_v45 = vadd.f32 %v8631_v62, %v8544_v53  ;;  %v9850_v6 = vadd.f32 %v18098_v57, %v9771_v29  ;;  %14879 = vmatmul.mubr.msk.f32.vlgmr.msra.gmra.mrb[120].mxu1 %vm9921_vm7, %v17839_v8  ;;  %v18631_v20 = vld [vmem:[#allocation4_spill] sm:$0xff] }
 0x4c4   : > { %v9634_v59 = vadd.f32 %v18627_v47, %v9562_v13  ;;  %v9561_v18 = vld [vmem:[#allocation3 + $0x200] sm:$0xff]  ;;  %8776 = vst.msk [vmem:[#allocation3 + $0x228] sm:$0xff] %vm2166_vm5, %v8704_v35  ;;  %14887 = vmatprep.mubr.msk.f32.mxu1 %vm9921_vm7, %v17553_v60  ;;  %v18162_v54 = vmax.f32 %v9848_v10, %v9851_v31  ;;  %v18632_v53 = vld [vmem:[#allocation5_spill] sm:$0xff]  ;;  %v18633_v47 = vld [vmem:[#allocation6_spill] sm:$0xff] }
 0x4c5   : > { %v9633_v11 = vadd.f32 %v9561_v18, %v18628_v50  ;;  %8775 = vst.msk [vmem:[#allocation3 + $0x220] sm:$0xff] %vm2166_vm5, %v8703_v45  ;;  %v14683_v32 = vpop.f32.mrb[102].mxu1  ;;  %v9892_v41 = vmax.f32 %v9847_v63, %v9850_v6  ;;  %v9774_v35 = vld [vmem:[#allocation3 + $0x1e8] sm:$0xff]  ;;  %v18634_v50 = vld [vmem:[#allocation7_spill] sm:$0xff] }
 0x4c6   : > { %9706 = vst.msk [vmem:[#allocation3 + $0x208] sm:$0xff] %vm2166_vm5, %v9634_v59  ;;  %v8706_v7 = vadd.f32 %v14683_v32, %v8634_v17  ;;  %v8554_v28 = vpop.f32.mrb[103].mxu1  ;;  %v9773_v30 = vld [vmem:[#allocation3 + $0x1e0] sm:$0xff]  ;;  %v9853_v63 = vadd.f32 %v18098_v57, %v9774_v35 }
 0x4c7   : > { %9705 = vst.msk [vmem:[#allocation3 + $0x200] sm:$0xff] %vm2166_vm5, %v9633_v11  ;;  %v9564_v48 = vld [vmem:[#allocation3 + $0x218] sm:$0xff]  ;;  %v8705_v15 = vadd.f32 %v8633_v0, %v8554_v28  ;;  %v18154_v3 = vpack.c.bf16 %v9892_v41, %v9891_v26  ;;  %v9852_v52 = vadd.f32 %v18098_v57, %v9773_v30  ;;  %v18635_v41 = vld [vmem:[#allocation28_spill] sm:$0xff] }
 0x4c8   : > { %v9636_v27 = vadd.f32 %v18629_v5, %v9564_v48  ;;  %v9563_v25 = vld [vmem:[#allocation3 + $0x210] sm:$0xff]  ;;  %8778 = vst.msk [vmem:[#allocation3 + $0x238] sm:$0xff] %vm2166_vm5, %v8706_v7  ;;  %v18636_v31 = vmul.u32 2, %v18635_v41  ;;  %v18637_v5 = vmul.u32 2, %v17795_v4 }
 0x4c9   : > { %v9635_v55 = vadd.f32 %v9563_v25, %v18630_v56  ;;  %8777 = vst.msk [vmem:[#allocation3 + $0x230] sm:$0xff] %vm2166_vm5, %v8705_v15  ;;  %15131 = vmatprep.subr.bf16.mxu1 %v18154_v3  ;;  %v9776_v1 = vld [vmem:[#allocation3 + $0x1f8] sm:$0xff] }
 0x4ca   : > { %9708 = vst.msk [vmem:[#allocation3 + $0x218] sm:$0xff] %vm2166_vm5, %v9636_v27  ;;  %15133 = vmatpush3.bf16.msra.mxu1 %v18154_v3  ;;  %v9855_v29 = vadd.f32 %v18098_v57, %v9776_v1  ;;  %v9775_v19 = vld [vmem:[#allocation3 + $0x1f0] sm:$0xff]  ;;  %v9913_v7 = vadd.s32 1, %v18636_v31  ;;  %v9914_v27 = vadd.s32 1, %v18637_v5 }
 0x4cb   : > { %9707 = vst.msk [vmem:[#allocation3 + $0x210] sm:$0xff] %vm2166_vm5, %v9635_v55  ;;  %v9566_v34 = vld [vmem:[#allocation3 + $0x228] sm:$0xff]  ;;  %14885 = vmatprep.subr.mxu1 %v18162_v54  ;;  %v9854_v0 = vadd.f32 %v18098_v57, %v9775_v19 }
 0x4cc   : > { %v9638_v40 = vadd.f32 %v18631_v20, %v9566_v34  ;;  %v9565_v42 = vld [vmem:[#allocation3 + $0x220] sm:$0xff]  ;;  %v9894_v32 = vmax.f32 %v9852_v52, %v9855_v29  ;;  %vm9915_vm9 = vcmp.eq.s32.totalorder %v17538_v2, %v9913_v7  ;;  %vm9916_vm10 = vcmp.eq.s32.totalorder %v17538_v2, %v9914_v27 }
 0x4cd   : > { %v9637_v62 = vadd.f32 %v9565_v42, %v18632_v53  ;;  %v9778_v13 = vld [vmem:[#allocation3 + $0x208] sm:$0xff]  ;;  %v18201_v56 = vsel %vm9915_vm9, 1.0, %v18613_v23 }
 0x4ce   : > { %9710 = vst.msk [vmem:[#allocation3 + $0x228] sm:$0xff] %vm2166_vm5, %v9638_v40  ;;  %14886 = vmatpush3.msra.mxu1 %v18162_v54  ;;  %v9777_v39 = vld [vmem:[#allocation3 + $0x200] sm:$0xff]  ;;  %v9857_v26 = vadd.f32 %v18098_v57, %v9778_v13 }
 0x4cf   : > { %9709 = vst.msk [vmem:[#allocation3 + $0x220] sm:$0xff] %vm2166_vm5, %v9637_v62  ;;  %v9568_v45 = vld [vmem:[#allocation3 + $0x238] sm:$0xff]  ;;  %v9856_v6 = vadd.f32 %v18098_v57, %v9777_v39  ;;  %14888 = vmatmul.mubr.msk.f32.vlgmr.msra.gmra.mrb[122].mxu1 %vm9921_vm7, %v17839_v8  ;;  %v18219_v62 = vsel %vm9916_vm10, 1.0, %v18613_v23 }
 0x4d0   : > { %v9640_v59 = vadd.f32 %v18633_v47, %v9568_v45  ;;  %v9567_v18 = vld [vmem:[#allocation3 + $0x230] sm:$0xff]  ;;  %14905 = vmatprep.mubr.msk.f32.mxu1 %vm9921_vm7, %v17553_v60  ;;  %v18192_v60 = vmax.f32 %v9854_v0, %v9857_v26 }
 0x4d1   : > { %v9639_v11 = vadd.f32 %v9567_v18, %v18634_v50  ;;  %v9895_v17 = vmax.f32 %v9853_v63, %v9856_v6  ;;  %v9780_v10 = vld [vmem:[#allocation3 + $0x218] sm:$0xff] }
 0x4d2   : > { %9712 = vst.msk [vmem:[#allocation3 + $0x238] sm:$0xff] %vm2166_vm5, %v9640_v59  ;;  %v9779_v15 = vld [vmem:[#allocation3 + $0x210] sm:$0xff]  ;;  %v9859_v20 = vadd.f32 %v18098_v57, %v9780_v10 }
 0x4d3   : > { %9711 = vst.msk [vmem:[#allocation3 + $0x230] sm:$0xff] %vm2166_vm5, %v9639_v11  ;;  %v18188_v28 = vpack.c.bf16 %v9895_v17, %v9894_v32  ;;  %v9858_v34 = vadd.f32 %v18098_v57, %v9779_v15 }
 0x4d5   : > { %15135 = vmatprep.subr.bf16.mxu0 %v18188_v28  ;;  %v9782_v48 = vld [vmem:[#allocation3 + $0x228] sm:$0xff] }
 0x4d6   : > { %15137 = vmatpush3.bf16.msra.mxu0 %v18188_v28  ;;  %v9861_v25 = vadd.f32 %v18098_v57, %v9782_v48  ;;  %v9781_v40 = vld [vmem:[#allocation3 + $0x220] sm:$0xff] }
 0x4d7   : > { %14894 = vmatprep.subr.mxu0 %v18192_v60  ;;  %v9860_v29 = vadd.f32 %v18098_v57, %v9781_v40 }
 0x4d8   : > { %v9897_v42 = vmax.f32 %v9858_v34, %v9861_v25 }
 0x4d9   : > { %v9784_v1 = vld [vmem:[#allocation3 + $0x238] sm:$0xff] }
 0x4da   : > { %14895 = vmatpush3.msra.mxu0 %v18192_v60  ;;  %v9783_v55 = vld [vmem:[#allocation3 + $0x230] sm:$0xff]  ;;  %v9863_v35 = vadd.f32 %v18098_v57, %v9784_v1 }
 0x4db   : > { %15143 = vmatprep.subr.bf16.mxu0 %v17813_v37  ;;  %14897 = vmatmul.mubr.msk.f32.vlgmr.msra.gmra.mrb[136].mxu0 %vm9921_vm7, %v17839_v8  ;;  %v9862_v4 = vadd.f32 %v18098_v57, %v9783_v55 }
 0x4dc   : > { %15145 = vmatpush3.bf16.msra.mxu0 %v17813_v37  ;;  %14914 = vmatprep.mubr.msk.f32.mxu0 %vm9921_vm7, %v18201_v56  ;;  %v18225_v2 = vmax.f32 %v9860_v29, %v9863_v35 }
 0x4dd   : > { %14912 = vmatprep.subr.mxu0 %v17821_v21  ;;  %v9898_v30 = vmax.f32 %v9859_v20, %v9862_v4 }
 0x4df   : > { %v18216_v53 = vpack.c.bf16 %v9898_v30, %v9897_v42 }
 0x4e0   : > { %14913 = vmatpush3.msra.mxu0 %v17821_v21 }
 0x4e1   : > { %15139 = vmatprep.subr.bf16.mxu1 %v18216_v53  ;;  %15151 = vmatprep.subr.bf16.mxu0 %v17897_v9 }
 0x4e2   : > { %15141 = vmatpush3.bf16.msra.mxu1 %v18216_v53  ;;  %14915 = vmatmul.mubr.msk.f32.vlgmr.msra.gmra.mrb[138].mxu0 %vm9921_vm7, %v18219_v62 }
 0x4e3   : > { %15153 = vmatpush3.bf16.msra.mxu0 %v17897_v9  ;;  %14903 = vmatprep.subr.mxu1 %v18225_v2 }
 0x4e4   : > { %14930 = vmatprep.subr.mxu0 %v17905_v43  ;;  %14932 = vmatprep.mubr.msk.f32.mxu0 %vm9921_vm7, %v18201_v56 }
 0x4e6   : > { %14904 = vmatpush3.msra.mxu1 %v18225_v2 }
 0x4e7   : > { %14931 = vmatpush3.msra.mxu0 %v17905_v43  ;;  %15147 = vmatprep.subr.bf16.mxu1 %v17861_v36 }
 0x4e8   : > { %15159 = vmatprep.subr.bf16.mxu0 %v17969_v58  ;;  %14906 = vmatmul.mubr.msk.f32.vlgmr.msra.gmra.mrb[124].mxu1 %vm9921_vm7, %v17839_v8 }
 0x4e9   : > { %15149 = vmatpush3.bf16.msra.mxu1 %v17861_v36  ;;  %14933 = vmatmul.mubr.msk.f32.vlgmr.msra.gmra.mrb[140].mxu0 %vm9921_vm7, %v18219_v62 }
 0x4ea   : > { %15161 = vmatpush3.bf16.msra.mxu0 %v17969_v58  ;;  %14921 = vmatprep.subr.mxu1 %v17869_v22 }
 0x4eb   : > { %14948 = vmatprep.subr.mxu0 %v17977_v38  ;;  %14923 = vmatprep.mubr.msk.f32.mxu1 %vm9921_vm7, %v18201_v56 }
 0x4ec   : > { %14950 = vmatprep.mubr.msk.f32.mxu0 %vm9921_vm7, %v18201_v56 }
 0x4ed   : > { %14922 = vmatpush3.msra.mxu1 %v17869_v22 }
 0x4ee   : > { %14949 = vmatpush3.msra.mxu0 %v17977_v38  ;;  %15155 = vmatprep.subr.bf16.mxu1 %v17933_v44 }
 0x4ef   : > { %15167 = vmatprep.subr.bf16.mxu0 %v18041_v14  ;;  %14924 = vmatmul.mubr.msk.f32.vlgmr.msra.gmra.mrb[126].mxu1 %vm9921_vm7, %v18219_v62 }
 0x4f0   : > { %15157 = vmatpush3.bf16.msra.mxu1 %v17933_v44  ;;  %14951 = vmatmul.mubr.msk.f32.vlgmr.msra.gmra.mrb[142].mxu0 %vm9921_vm7, %v18219_v62 }
 0x4f1   : > { %15169 = vmatpush3.bf16.msra.mxu0 %v18041_v14  ;;  %14939 = vmatprep.subr.mxu1 %v17941_v16 }
 0x4f2   : > { %14966 = vmatprep.subr.mxu0 %v18049_v49  ;;  %14941 = vmatprep.mubr.msk.f32.mxu1 %vm9921_vm7, %v18201_v56 }
 0x4f3   : > { %14968 = vmatprep.mubr.msk.f32.mxu0 %vm9921_vm7, %v18201_v56 }
 0x4f4   : > { %14940 = vmatpush3.msra.mxu1 %v17941_v16 }
 0x4f5   : > { %14967 = vmatpush3.msra.mxu0 %v18049_v49  ;;  %15163 = vmatprep.subr.bf16.mxu1 %v18005_v12 }
 0x4f6   : > { %15175 = vmatprep.subr.bf16.mxu0 %v18118_v46  ;;  %14942 = vmatmul.mubr.msk.f32.vlgmr.msra.gmra.mrb[128].mxu1 %vm9921_vm7, %v18219_v62 }
 0x4f7   : > { %15165 = vmatpush3.bf16.msra.mxu1 %v18005_v12  ;;  %14969 = vmatmul.mubr.msk.f32.vlgmr.msra.gmra.mrb[144].mxu0 %vm9921_vm7, %v18219_v62 }
 0x4f8   : > { %15177 = vmatpush3.bf16.msra.mxu0 %v18118_v46  ;;  %14957 = vmatprep.subr.mxu1 %v18013_v33 }
 0x4f9   : > { %14984 = vmatprep.subr.mxu0 %v18126_v51  ;;  %14959 = vmatprep.mubr.msk.f32.mxu1 %vm9921_vm7, %v18201_v56 }
 0x4fa   : > { %14986 = vmatprep.mubr.msk.f32.mxu0 %vm9921_vm7, %v18201_v56 }
 0x4fb   : > { %14958 = vmatpush3.msra.mxu1 %v18013_v33 }
 0x4fc   : > { %14985 = vmatpush3.msra.mxu0 %v18126_v51  ;;  %15171 = vmatprep.subr.bf16.mxu1 %v18077_v24 }
 0x4fd   : > { %15183 = vmatprep.subr.bf16.mxu0 %v18188_v28  ;;  %14960 = vmatmul.mubr.msk.f32.vlgmr.msra.gmra.mrb[130].mxu1 %vm9921_vm7, %v18219_v62 }
 0x4fe   : > { %15173 = vmatpush3.bf16.msra.mxu1 %v18077_v24  ;;  %14987 = vmatmul.mubr.msk.f32.vlgmr.msra.gmra.mrb[146].mxu0 %vm9921_vm7, %v18219_v62 }
 0x4ff   : > { %15185 = vmatpush3.bf16.msra.mxu0 %v18188_v28  ;;  %14975 = vmatprep.subr.mxu1 %v18085_v61 }
 0x500   : > { %15002 = vmatprep.subr.mxu0 %v18192_v60  ;;  %14977 = vmatprep.mubr.msk.f32.mxu1 %vm9921_vm7, %v18201_v56 }
 0x501   : > { %15004 = vmatprep.mubr.msk.f32.mxu0 %vm9921_vm7, %v18201_v56 }
 0x502   : > { %14976 = vmatpush3.msra.mxu1 %v18085_v61 }
 0x503   : > { %15003 = vmatpush3.msra.mxu0 %v18192_v60  ;;  %15179 = vmatprep.subr.bf16.mxu1 %v18154_v3 }
 0x504   : > { %14978 = vmatmul.mubr.msk.f32.vlgmr.msra.gmra.mrb[132].mxu1 %vm9921_vm7, %v18219_v62  ;;  %15005 = vmatmul.mubr.msk.f32.vlgmr.msra.gmra.mrb[148].mxu0 %vm9921_vm7, %v18219_v62 }
 0x505   : > { %15181 = vmatpush3.bf16.msra.mxu1 %v18154_v3  ;;  %14995 = vmatprep.mubr.msk.f32.mxu1 %vm9921_vm7, %v18201_v56 }
 0x506   : > { %14993 = vmatprep.subr.mxu1 %v18162_v54 }
 0x509   : > { %14994 = vmatpush3.msra.mxu1 %v18162_v54 }
 0x50a   : > { %15187 = vmatprep.subr.bf16.mxu1 %v18216_v53  ;;  %14996 = vmatmul.mubr.msk.f32.vlgmr.msra.gmra.mrb[134].mxu1 %vm9921_vm7, %v18219_v62 }
 0x50b   : > { %15189 = vmatpush3.bf16.msra.mxu1 %v18216_v53  ;;  %15013 = vmatprep.mubr.msk.f32.mxu1 %vm9921_vm7, %v18201_v56 }
 0x50c   : > { %15011 = vmatprep.subr.mxu1 %v18225_v2 }
 0x50f   : > { %15012 = vmatpush3.msra.mxu1 %v18225_v2 }
 0x510   : > { %15014 = vmatmul.mubr.msk.f32.vlgmr.msra.gmra.mrb[136].mxu1 %vm9921_vm7, %v18219_v62 }
 0x536   : > { %v14808_v37 = vpop.f32.mrb[104].mxu1 }
 0x537   : > { %v9994_v21 = vpop.f32.mrb[105].mxu1 }
 0x542   : > { %v14817_v23 = vpop.f32.mrb[106].mxu1 }
 0x543   : > { %v10069_v8 = vpop.f32.mrb[107].mxu1 }
 0x54e   : > { %v14826_v36 = vpop.f32.mrb[108].mxu1 }
 0x54f   : > { %v10144_v22 = vpop.f32.mrb[109].mxu1 }
 0x55a   : > { %v14835_v9 = vpop.f32.mrb[110].mxu1 }
 0x55b   : > { %v10219_v43 = vpop.f32.mrb[111].mxu1 }
 0x566   : > { %v14844_v44 = vpop.f32.mrb[112].mxu1 }
 0x567   : > { %v10294_v16 = vpop.f32.mrb[113].mxu1 }
 0x572   : > { %v14853_v58 = vpop.f32.mrb[114].mxu1 }
 0x573   : > { %v10369_v38 = vpop.f32.mrb[115].mxu1 }
 0x57e   : > { %v14862_v12 = vpop.f32.mrb[116].mxu1 }
 0x57f   : > { %v10444_v33 = vpop.f32.mrb[117].mxu1 }
 0x58a   : > { %v18321_v14 = vpop.f32.mrb[118].mxu1 }
 0x58b   : > { %v18323_v49 = vpop.f32.mrb[119].mxu1 }
 0x596   : > { %v14880_v24 = vpop.f32.mrb[120].mxu1 }
 0x597   : > { %v10594_v61 = vpop.f32.mrb[121].mxu1 }
 0x5a2   : > { %v18325_v57 = vpop.f32.mrb[122].mxu1 }
 0x5a3   : > { %v18327_v46 = vpop.f32.mrb[123].mxu1 }
 0x5ae   : > { %v18329_v51 = vpop.f32.mrb[136].mxu0 }
 0x5af   : > { %v18331_v3 = vpop.f32.mrb[137].mxu0 }
 0x5b5   : > { %v14916_v54 = vpop.f32.mrb[138].mxu0 }
 0x5b6   : > { %v11735_v39 = vmax.f32 %v14808_v37, %v14916_v54  ;;  %v10900_v13 = vpop.f32.mrb[139].mxu0 }
 0x5b7   : > { %v11734_v45 = vmax.f32 %v9994_v21, %v10900_v13 }
 0x5b8   : > { %11760 = vst.msk [vmem:[%s18337_s17 + $0x8] sm:$0xf] %vm11759_vm11, %v11735_v39 }
 0x5b9   : > { %11758 = vst.msk [vmem:[%s18337_s17] sm:$0xff] %vm2166_vm5, %v11734_v45 }
 0x5bb   : > { %v18343_v52 = vpop.f32.mrb[124].mxu1 }
 0x5bc   : > { %v18345_v63 = vpop.f32.mrb[125].mxu1  ;;  %v14934_v6 = vpop.f32.mrb[140].mxu0 }
 0x5bd   : > { %v11739_v47 = vmax.f32 %v14826_v36, %v14934_v6  ;;  %v11050_v59 = vpop.f32.mrb[141].mxu0 }
 0x5be   : > { %v11738_v18 = vmax.f32 %v10144_v22, %v11050_v59 }
 0x5bf   : > { %11764 = vst.msk [vmem:[%s18337_s17 + $0x28] sm:$0xf] %vm11759_vm11, %v11739_v47 }
 0x5c0   : > { %11763 = vst.msk [vmem:[%s18337_s17 + $0x20] sm:$0xff] %vm2166_vm5, %v11738_v18 }
 0x5c2   : > { %v14925_v19 = vpop.f32.mrb[126].mxu1 }
 0x5c3   : > { %v11737_v50 = vmax.f32 %v14817_v23, %v14925_v19  ;;  %v10975_v11 = vpop.f32.mrb[127].mxu1  ;;  %v14952_v32 = vpop.f32.mrb[142].mxu0 }
 0x5c4   : > { %v11736_v17 = vmax.f32 %v10069_v8, %v10975_v11  ;;  %v11743_v26 = vmax.f32 %v14844_v44, %v14952_v32  ;;  %v11200_v41 = vpop.f32.mrb[143].mxu0 }
 0x5c5   : > { %11762 = vst.msk [vmem:[%s18337_s17 + $0x18] sm:$0xf] %vm11759_vm11, %v11737_v50  ;;  %v11742_v31 = vmax.f32 %v10294_v16, %v11200_v41 }
 0x5c6   : > { %11761 = vst.msk [vmem:[%s18337_s17 + $0x10] sm:$0xff] %vm2166_vm5, %v11736_v17 }
 0x5c7   : > { %11768 = vst.msk [vmem:[%s18337_s17 + $0x48] sm:$0xf] %vm11759_vm11, %v11743_v26 }
 0x5c8   : > { %11767 = vst.msk [vmem:[%s18337_s17 + $0x40] sm:$0xff] %vm2166_vm5, %v11742_v31 }
 0x5c9   : > { %v14943_v7 = vpop.f32.mrb[128].mxu1 }
 0x5ca   : > { %v11741_v28 = vmax.f32 %v14835_v9, %v14943_v7  ;;  %v11125_v0 = vpop.f32.mrb[129].mxu1  ;;  %v14970_v60 = vpop.f32.mrb[144].mxu0 }
 0x5cb   : > { %v11740_v48 = vmax.f32 %v10219_v43, %v11125_v0  ;;  %v11747_v15 = vmax.f32 %v14862_v12, %v14970_v60  ;;  %v11350_v10 = vpop.f32.mrb[145].mxu0 }
 0x5cc   : > { %11766 = vst.msk [vmem:[%s18337_s17 + $0x38] sm:$0xf] %vm11759_vm11, %v11741_v28  ;;  %v11746_v5 = vmax.f32 %v10444_v33, %v11350_v10 }
 0x5cd   : > { %11765 = vst.msk [vmem:[%s18337_s17 + $0x30] sm:$0xff] %vm2166_vm5, %v11740_v48 }
 0x5ce   : > { %11772 = vst.msk [vmem:[%s18337_s17 + $0x68] sm:$0xf] %vm11759_vm11, %v11747_v15 }
 0x5cf   : > { %11771 = vst.msk [vmem:[%s18337_s17 + $0x60] sm:$0xff] %vm2166_vm5, %v11746_v5 }
 0x5d0   : > { %v14961_v27 = vpop.f32.mrb[130].mxu1 }
 0x5d1   : > { %v11745_v25 = vmax.f32 %v14853_v58, %v14961_v27  ;;  %v11275_v56 = vpop.f32.mrb[131].mxu1  ;;  %v14988_v55 = vpop.f32.mrb[146].mxu0 }
 0x5d2   : > { %v11744_v1 = vmax.f32 %v10369_v38, %v11275_v56  ;;  %v11751_v34 = vmax.f32 %v14880_v24, %v14988_v55  ;;  %v11500_v20 = vpop.f32.mrb[147].mxu0 }
 0x5d3   : > { %11770 = vst.msk [vmem:[%s18337_s17 + $0x58] sm:$0xf] %vm11759_vm11, %v11745_v25  ;;  %v11750_v4 = vmax.f32 %v10594_v61, %v11500_v20 }
 0x5d4   : > { %11769 = vst.msk [vmem:[%s18337_s17 + $0x50] sm:$0xff] %vm2166_vm5, %v11744_v1 }
 0x5d5   : > { %11776 = vst.msk [vmem:[%s18337_s17 + $0x88] sm:$0xf] %vm11759_vm11, %v11751_v34 }
 0x5d6   : > { %11775 = vst.msk [vmem:[%s18337_s17 + $0x80] sm:$0xff] %vm2166_vm5, %v11750_v4 }
 0x5d7   : > { %v14979_v40 = vpop.f32.mrb[132].mxu1  ;;  %v15006_v42 = vpop.f32.mrb[148].mxu0 }
 0x5d8   : > { %v11749_v30 = vmax.f32 %v18321_v14, %v14979_v40  ;;  %v11425_v35 = vpop.f32.mrb[133].mxu1  ;;  %v11755_v53 = vmax.f32 %v18329_v51, %v15006_v42  ;;  %v11650_v62 = vpop.f32.mrb[149].mxu0 }
 0x5d9   : > { %v11748_v29 = vmax.f32 %v18323_v49, %v11425_v35  ;;  %v11754_v2 = vmax.f32 %v18331_v3, %v11650_v62 }
 0x5da   : > { %11774 = vst.msk [vmem:[%s18337_s17 + $0x78] sm:$0xf] %vm11759_vm11, %v11749_v30  ;;  %11780 = vst.msk [vmem:[%s18337_s17 + $0xa8] sm:$0xf] %vm11759_vm11, %v11755_v53 }
 0x5db   : > { %11773 = vst.msk [vmem:[%s18337_s17 + $0x70] sm:$0xff] %vm2166_vm5, %v11748_v29  ;;  %11779 = vst.msk [vmem:[%s18337_s17 + $0xa0] sm:$0xff] %vm2166_vm5, %v11754_v2 }
 0x5dd   : > { %v14997_v37 = vpop.f32.mrb[134].mxu1 }
 0x5de   : > { %v11753_v21 = vmax.f32 %v18325_v57, %v14997_v37  ;;  %v11575_v23 = vpop.f32.mrb[135].mxu1 }
 0x5df   : > { %v11752_v8 = vmax.f32 %v18327_v46, %v11575_v23 }
 0x5e0   : > { %11778 = vst.msk [vmem:[%s18337_s17 + $0x98] sm:$0xf] %vm11759_vm11, %v11753_v21 }
 0x5e1   : > { %11777 = vst.msk [vmem:[%s18337_s17 + $0x90] sm:$0xff] %vm2166_vm5, %v11752_v8 }
 0x5e3   : > { %v15015_v36 = vpop.f32.mrb[136].mxu1 }
 0x5e4   : > { %v11757_v22 = vmax.f32 %v18343_v52, %v15015_v36  ;;  %v11725_v9 = vpop.f32.mrb[137].mxu1 }
 0x5e5   : > { %v11756_v43 = vmax.f32 %v18345_v63, %v11725_v9 }
 0x5e6   : > { %11782 = vst.msk [vmem:[%s18337_s17 + $0xb8] sm:$0xf] %vm11759_vm11, %v11757_v22 }
 0x5e7   : > { %11781 = vst.msk [vmem:[%s18337_s17 + $0xb0] sm:$0xff] %vm2166_vm5, %v11756_v43 }
 0x5e8 PF: > { %s15_s18 = sadd.s32 1, %s15210_s18  }
 0x5e9   : > { %p12_p4 = scmp.ge.s32.totalorder %s15_s18, 4  }
 0x5eb   :  { %14 = sbr.rel (!%p12_p4) target bundleno = 1 (0x1), region = 80 }

</bundles_post_ra>
